<compile_context>
chip_gen: v6e
topology: v6e:2x2x1
jax: 0.10.0
libtpu: 0.0.40
codegen_flags: <defaults>
</compile_context>

<pallas_src>
import jax
import jax.numpy as jnp
from jax.experimental import pallas as pl
from jax.experimental.pallas import tpu as pltpu

PAD_IDX = 1

# Small synthetic model config (tiny encoder classifier).
VOCAB = 32
SEQ = 8
HIDDEN = 32
N_HEADS = 4
HEAD_DIM = HIDDEN // N_HEADS
FFN = 64
N_LABELS = 2
LN_EPS = 1e-5
OUT_LANES = 128           # lane-dense logits store width

BATCH = 64                # total sequences in the example input
B_TILE = 32               # sequences per grid step (-> 256 rows per matmul)

# ---- weight-slab row offsets (all sublane-aligned, lane offset always 0) ----
EMB_R = 0                       # (VOCAB, H)
WQ_R = EMB_R + VOCAB            # 32   (H, H), 1/sqrt(hd) folded in
WK_R = WQ_R + HIDDEN            # 64   (H, H)
WV_R = WK_R + HIDDEN            # 96   (H, H)
WO_R = WV_R + HIDDEN            # 128  (H, H)
W1_R = WO_R + HIDDEN            # 160  (H, FFN)
W2_R = W1_R + HIDDEN            # 192  (FFN, H)
WP_R = W2_R + FFN               # 256  (H, H)
WC_R = WP_R + HIDDEN            # 288  (H, OUT_LANES)
W_ROWS = WC_R + HIDDEN          # 320

# ---- vector-slab row offsets (one parameter vector per 128-lane row) ----
BQ_R, BK_R, BV_R, BO_R = 0, 1, 2, 3
LN1G_R, LN1B_R = 4, 5
B1_R, B2_R = 6, 7
LN2G_R, LN2B_R = 8, 9
BP_R, BC_R = 10, 11
POS_R = 12                      # rows 12..19 = positional embedding (SEQ, H)
V_ROWS = 24                     # padded to a multiple of 8 sublanes


def _layernorm(x, gamma, beta):
    mu = jnp.mean(x, axis=-1, keepdims=True)
    var = jnp.mean((x - mu) ** 2, axis=-1, keepdims=True)
    inv = jax.lax.rsqrt(var + LN_EPS)
    return (x - mu) * inv * gamma + beta


def _gelu(x):
    # TODO(synk): tanh-approx GELU; HF RoBERTa's default is exact erf GELU.
    c = 0.7978845608028654  # sqrt(2/pi)
    return 0.5 * x * (1.0 + jnp.tanh(c * (x + 0.044715 * x * x * x)))


def transformer_kernel(ids_ref, w_ref, v_ref, logits_ref):
    ids = ids_ref[...]                                   # (Bt, S) int32
    Bt, S = ids.shape
    H, HD, NH = HIDDEN, HEAD_DIM, N_HEADS

    # attention_mask = (input_ids != pad_idx) — additive key-padding bias,
    # built once (broadcast hoisted out of the head loop).
    key_bias = jnp.where(ids != PAD_IDX, 0.0, -1e9)[:, None, :]    # (Bt,1,S)

    # ---- embedding lookup: one-hot @ table (MXU-friendly at VOCAB=32) ----
    iota_v = jax.lax.broadcasted_iota(jnp.int32, (Bt, S, VOCAB), 2)
    one_hot = (ids[:, :, None] == iota_v).astype(jnp.float32)
    emb = w_ref[EMB_R:EMB_R + VOCAB, :H]                           # (V, H)
    x = jnp.dot(one_hot.reshape(Bt * S, VOCAB), emb,
                preferred_element_type=jnp.float32)                # (Bt*S, H)
    x = x.reshape(Bt, S, H) + v_ref[POS_R:POS_R + S, :H]           # (Bt, S, H)
    x2 = x.reshape(Bt * S, H)

    # ---- self-attention: separate Q/K/V matmuls (no lane-offset slices);
    #      softmax scale already folded into Wq/bq at pack time ----
    def proj(w_row, b_row, width=H):
        y = jnp.dot(x2, w_ref[w_row:w_row + H, :width],
                    preferred_element_type=jnp.float32)
        return (y + v_ref[b_row:b_row + 1, :width]).reshape(Bt, S, width)

    q = proj(WQ_R, BQ_R)
    k = proj(WK_R, BK_R)
    v = proj(WV_R, BV_R)

    # per-head lane masks (VALU select of each head's HEAD_DIM lanes) — this
    # replaces the previous 8-lane slices, so no XLU lane relayouts at all.
    lane = jax.lax.broadcasted_iota(jnp.int32, (1, 1, H), 2)
    head_masks = [((lane >= h * HD) & (lane < (h + 1) * HD)).astype(jnp.float32)
                  for h in range(NH)]

    ctx = jnp.zeros((Bt, S, H), jnp.float32)
    for h in range(NH):                        # static unroll, tiny
        # zeroing q's lanes outside head h makes the full-width dot equal the
        # per-head score matmul (k stays full, un-sliced).
        s_h = jnp.einsum('bqd,bkd->bqk', q * head_masks[h], k,
                         preferred_element_type=jnp.float32)       # (Bt,S,S)
        s_h = s_h + key_bias
        s_h = s_h - jnp.max(s_h, axis=-1, keepdims=True)
        p_h = jnp.exp(s_h)
        p_h = p_h * pl.reciprocal(jnp.sum(p_h, axis=-1, keepdims=True),
                                  approx=True)                     # EUP recip
        c_h = jnp.einsum('bqk,bkd->bqd', p_h, v,
                         preferred_element_type=jnp.float32)       # (Bt,S,H)
        ctx = ctx + c_h * head_masks[h]        # keep only head h's lanes

    attn = jnp.dot(ctx.reshape(Bt * S, H), w_ref[WO_R:WO_R + H, :H],
                   preferred_element_type=jnp.float32)
    attn = (attn + v_ref[BO_R:BO_R + 1, :H]).reshape(Bt, S, H)

    h1 = _layernorm(x + attn,
                    v_ref[LN1G_R:LN1G_R + 1, :H], v_ref[LN1B_R:LN1B_R + 1, :H])

    # ---- feed-forward ----
    f = jnp.dot(h1.reshape(Bt * S, H), w_ref[W1_R:W1_R + H, :FFN],
                preferred_element_type=jnp.float32)
    f = _gelu(f + v_ref[B1_R:B1_R + 1, :FFN])
    f = jnp.dot(f, w_ref[W2_R:W2_R + FFN, :H],
                preferred_element_type=jnp.float32)
    f = (f + v_ref[B2_R:B2_R + 1, :H]).reshape(Bt, S, H)

    h2 = _layernorm(h1 + f,
                    v_ref[LN2G_R:LN2G_R + 1, :H], v_ref[LN2B_R:LN2B_R + 1, :H])

    # ---- pooler (first token) + classification head, lane-dense store ----
    cls = h2[:, 0, :]                                              # (Bt, H)
    pooled = jnp.tanh(jnp.dot(cls, w_ref[WP_R:WP_R + H, :H],
                              preferred_element_type=jnp.float32)
                      + v_ref[BP_R:BP_R + 1, :H])
    logits = jnp.dot(pooled, w_ref[WC_R:WC_R + H, :],
                     preferred_element_type=jnp.float32) + v_ref[BC_R:BC_R + 1, :]
    logits_ref[...] = logits.astype(logits_ref.dtype)              # (Bt, 128)


def init_params(key):
    ks = jax.random.split(key, 10)

    def dense(k, shape, scale=0.02):
        return jax.random.normal(k, shape, jnp.float32) * scale

    emb = dense(ks[0], (VOCAB, HIDDEN))
    pos = dense(ks[1], (SEQ, HIDDEN))
    scale = HEAD_DIM ** -0.5
    wq = dense(ks[2], (HIDDEN, HIDDEN)) * scale       # fold 1/sqrt(hd) into Wq
    wk = dense(ks[3], (HIDDEN, HIDDEN))
    wv = dense(ks[4], (HIDDEN, HIDDEN))
    wo = dense(ks[5], (HIDDEN, HIDDEN))
    w1 = dense(ks[6], (HIDDEN, FFN))
    w2 = dense(ks[7], (FFN, HIDDEN))
    wp = dense(ks[8], (HIDDEN, HIDDEN))
    wc = dense(ks[9], (HIDDEN, N_LABELS))
    bq = jnp.zeros((HIDDEN,), jnp.float32) * scale    # fold scale into bq too

    # ---- packed weight slab: one lane-padded (320, 128) f32 array ----
    w_slab = jnp.zeros((W_ROWS, 128), jnp.float32)
    w_slab = w_slab.at[EMB_R:EMB_R + VOCAB, :HIDDEN].set(emb)
    w_slab = w_slab.at[WQ_R:WQ_R + HIDDEN, :HIDDEN].set(wq)
    w_slab = w_slab.at[WK_R:WK_R + HIDDEN, :HIDDEN].set(wk)
    w_slab = w_slab.at[WV_R:WV_R + HIDDEN, :HIDDEN].set(wv)
    w_slab = w_slab.at[WO_R:WO_R + HIDDEN, :HIDDEN].set(wo)
    w_slab = w_slab.at[W1_R:W1_R + HIDDEN, :FFN].set(w1)
    w_slab = w_slab.at[W2_R:W2_R + FFN, :HIDDEN].set(w2)
    w_slab = w_slab.at[WP_R:WP_R + HIDDEN, :HIDDEN].set(wp)
    w_slab = w_slab.at[WC_R:WC_R + HIDDEN, :N_LABELS].set(wc)  # classifier, lane-padded

    # ---- packed vector slab: biases / LN params / positional embedding ----
    v_slab = jnp.zeros((V_ROWS, 128), jnp.float32)
    v_slab = v_slab.at[BQ_R, :HIDDEN].set(bq)                  # zero (kept general)
    v_slab = v_slab.at[LN1G_R, :HIDDEN].set(1.0)
    v_slab = v_slab.at[LN2G_R, :HIDDEN].set(1.0)
    v_slab = v_slab.at[POS_R:POS_R + SEQ, :HIDDEN].set(pos)
    # all other biases / betas stay zero

    return w_slab, v_slab


@jax.jit
def custom_transformer_forward(input_ids, w_slab, v_slab):
    B = input_ids.shape[0]
    assert B % B_TILE == 0
    out_shape = jax.ShapeDtypeStruct((B, OUT_LANES), jnp.float32)
    logits_padded = pl.pallas_call(
        transformer_kernel,
        out_shape=out_shape,
        grid_spec=pltpu.PrefetchScalarGridSpec(
            num_scalar_prefetch=0,
            grid=(B // B_TILE,),
            in_specs=[
                pl.BlockSpec((B_TILE, SEQ), lambda i: (i, 0)),     # input_ids tile
                pl.BlockSpec((W_ROWS, 128), lambda i: (0, 0)),     # weights, resident
                pl.BlockSpec((V_ROWS, 128), lambda i: (0, 0)),     # vectors, resident
            ],
            out_specs=pl.BlockSpec((B_TILE, OUT_LANES), lambda i: (i, 0)),
        ),
        compiler_params=pltpu.CompilerParams(
            dimension_semantics=("parallel",)),   # v7x: split steps over 2 TCs
    )(input_ids, w_slab, v_slab)
    return logits_padded[:, :N_LABELS]


if __name__ == "__main__":
    key = jax.random.PRNGKey(0)
    pkey, ikey = jax.random.split(key)

    w_slab, v_slab = init_params(pkey)
    input_ids = jax.random.randint(ikey, (BATCH, SEQ), 0, VOCAB, dtype=jnp.int32)
    input_ids = input_ids.at[:, -2:].set(PAD_IDX)   # trailing padding tokens

    logits = custom_transformer_forward(input_ids, w_slab, v_slab)
    jax.block_until_ready(logits)
    assert logits.shape == (BATCH, N_LABELS) and logits.dtype == jnp.float32
    print("KERNEL_OK")
</pallas_src>

<mosaic_0001>
module attributes {stable_mosaic.version = 11 : i64} {
  func.func @transformer_kernel(%arg0: i32, %arg1: memref<32x8xi32, #tpu.memory_space<vmem>>, %arg2: memref<320x128xf32, #tpu.memory_space<vmem>>, %arg3: memref<24x128xf32, #tpu.memory_space<vmem>>, %arg4: memref<32x128xf32, #tpu.memory_space<vmem>>) attributes {dimension_semantics = [#tpu.dimension_semantics<parallel>], iteration_bounds = array<i64: 2>, scalar_prefetch = 0 : i64, scratch_operands = 0 : i64, tpu.core_type = #tpu.core_type<tc>, window_params = [{transform_indices = @transform_0, window_bounds = array<i64: 32, 8>}, {pipeline_mode = #tpu.pipeline_mode<synchronous>, transform_indices = @transform_1, window_bounds = array<i64: 320, 128>}, {pipeline_mode = #tpu.pipeline_mode<synchronous>, transform_indices = @transform_2, window_bounds = array<i64: 24, 128>}, {transform_indices = @transform_3, window_bounds = array<i64: 32, 128>}]} {
    %c0 = arith.constant 0 : index
    %c0_0 = arith.constant 0 : index
    %0 = vector.load %arg1[%c0, %c0_0] : memref<32x8xi32, #tpu.memory_space<vmem>>, vector<32x8xi32>
    %c1_i32 = arith.constant 1 : i32
    %1 = vector.broadcast %c1_i32 : i32 to vector<32x8xi32>
    %2 = arith.cmpi ne, %0, %1 : vector<32x8xi32>
    %cst = arith.constant 0.000000e+00 : f32
    %cst_1 = arith.constant -1.000000e+09 : f32
    %3 = vector.broadcast %cst : f32 to vector<32x8xf32>
    %4 = vector.broadcast %cst_1 : f32 to vector<32x8xf32>
    %5 = arith.select %2, %3, %4 : vector<32x8xi1>, vector<32x8xf32>
    %6 = vector.shape_cast %5 : vector<32x8xf32> to vector<32x1x8xf32>
    %7 = tpu.iota {dimensions = array<i32: 2>} : vector<32x8x32xi32>
    %8 = vector.shape_cast %0 : vector<32x8xi32> to vector<32x8x1xi32>
    %9 = vector.broadcast %8 : vector<32x8x1xi32> to vector<32x8x32xi32>
    %10 = arith.cmpi eq, %9, %7 : vector<32x8x32xi32>
    %11 = arith.extui %10 : vector<32x8x32xi1> to vector<32x8x32xi32>
    %12 = arith.sitofp %11 : vector<32x8x32xi32> to vector<32x8x32xf32>
    %c0_2 = arith.constant 0 : index
    %c0_3 = arith.constant 0 : index
    %13 = vector.load %arg2[%c0_2, %c0_3] : memref<320x128xf32, #tpu.memory_space<vmem>>, vector<32x32xf32>
    %14 = vector.shape_cast %12 : vector<32x8x32xf32> to vector<256x32xf32>
    %cst_4 = arith.constant dense<0.000000e+00> : vector<256x32xf32>
    %15 = tpu.matmul %14, %13, %cst_4 {dimension_numbers = #tpu.dot_dimension_numbers<[1], [0], [0], [1], [0, 0, 1, 1], [], []>} : vector<256x32xf32>, vector<32x32xf32>, vector<256x32xf32> -> vector<256x32xf32>
    %16 = vector.shape_cast %15 : vector<256x32xf32> to vector<32x8x32xf32>
    %c12 = arith.constant 12 : index
    %c0_5 = arith.constant 0 : index
    %17 = vector.load %arg3[%c12, %c0_5] : memref<24x128xf32, #tpu.memory_space<vmem>>, vector<8x32xf32>
    %18 = vector.shape_cast %17 : vector<8x32xf32> to vector<1x8x32xf32>
    %19 = vector.broadcast %18 : vector<1x8x32xf32> to vector<32x8x32xf32>
    %20 = arith.addf %16, %19 : vector<32x8x32xf32>
    %21 = vector.shape_cast %20 : vector<32x8x32xf32> to vector<256x32xf32>
    %c32 = arith.constant 32 : index
    %c0_6 = arith.constant 0 : index
    %22 = vector.load %arg2[%c32, %c0_6] : memref<320x128xf32, #tpu.memory_space<vmem>>, vector<32x32xf32>
    %cst_7 = arith.constant dense<0.000000e+00> : vector<256x32xf32>
    %23 = tpu.matmul %21, %22, %cst_7 {dimension_numbers = #tpu.dot_dimension_numbers<[1], [0], [0], [1], [0, 0, 1, 1], [], []>} : vector<256x32xf32>, vector<32x32xf32>, vector<256x32xf32> -> vector<256x32xf32>
    %c0_8 = arith.constant 0 : index
    %c0_9 = arith.constant 0 : index
    %24 = vector.load %arg3[%c0_8, %c0_9] : memref<24x128xf32, #tpu.memory_space<vmem>>, vector<1x32xf32>
    %25 = vector.broadcast %24 : vector<1x32xf32> to vector<256x32xf32>
    %26 = arith.addf %23, %25 : vector<256x32xf32>
    %27 = vector.shape_cast %26 : vector<256x32xf32> to vector<32x8x32xf32>
    %c64 = arith.constant 64 : index
    %c0_10 = arith.constant 0 : index
    %28 = vector.load %arg2[%c64, %c0_10] : memref<320x128xf32, #tpu.memory_space<vmem>>, vector<32x32xf32>
    %cst_11 = arith.constant dense<0.000000e+00> : vector<256x32xf32>
    %29 = tpu.matmul %21, %28, %cst_11 {dimension_numbers = #tpu.dot_dimension_numbers<[1], [0], [0], [1], [0, 0, 1, 1], [], []>} : vector<256x32xf32>, vector<32x32xf32>, vector<256x32xf32> -> vector<256x32xf32>
    %c1 = arith.constant 1 : index
    %c0_12 = arith.constant 0 : index
    %30 = vector.load %arg3[%c1, %c0_12] : memref<24x128xf32, #tpu.memory_space<vmem>>, vector<1x32xf32>
    %31 = vector.broadcast %30 : vector<1x32xf32> to vector<256x32xf32>
    %32 = arith.addf %29, %31 : vector<256x32xf32>
    %33 = vector.shape_cast %32 : vector<256x32xf32> to vector<32x8x32xf32>
    %c96 = arith.constant 96 : index
    %c0_13 = arith.constant 0 : index
    %34 = vector.load %arg2[%c96, %c0_13] : memref<320x128xf32, #tpu.memory_space<vmem>>, vector<32x32xf32>
    %cst_14 = arith.constant dense<0.000000e+00> : vector<256x32xf32>
    %35 = tpu.matmul %21, %34, %cst_14 {dimension_numbers = #tpu.dot_dimension_numbers<[1], [0], [0], [1], [0, 0, 1, 1], [], []>} : vector<256x32xf32>, vector<32x32xf32>, vector<256x32xf32> -> vector<256x32xf32>
    %c2 = arith.constant 2 : index
    %c0_15 = arith.constant 0 : index
    %36 = vector.load %arg3[%c2, %c0_15] : memref<24x128xf32, #tpu.memory_space<vmem>>, vector<1x32xf32>
    %37 = vector.broadcast %36 : vector<1x32xf32> to vector<256x32xf32>
    %38 = arith.addf %35, %37 : vector<256x32xf32>
    %39 = vector.shape_cast %38 : vector<256x32xf32> to vector<32x8x32xf32>
    %40 = tpu.iota {dimensions = array<i32: 2>} : vector<1x1x32xi32>
    %c0_i32 = arith.constant 0 : i32
    %41 = vector.broadcast %c0_i32 : i32 to vector<1x1x32xi32>
    %42 = arith.cmpi sge, %40, %41 : vector<1x1x32xi32>
    %c8_i32 = arith.constant 8 : i32
    %43 = vector.broadcast %c8_i32 : i32 to vector<1x1x32xi32>
    %44 = arith.cmpi slt, %40, %43 : vector<1x1x32xi32>
    %45 = arith.andi %42, %44 : vector<1x1x32xi1>
    %46 = arith.extui %45 : vector<1x1x32xi1> to vector<1x1x32xi32>
    %47 = arith.sitofp %46 : vector<1x1x32xi32> to vector<1x1x32xf32>
    %c8_i32_16 = arith.constant 8 : i32
    %48 = vector.broadcast %c8_i32_16 : i32 to vector<1x1x32xi32>
    %49 = arith.cmpi sge, %40, %48 : vector<1x1x32xi32>
    %c16_i32 = arith.constant 16 : i32
    %50 = vector.broadcast %c16_i32 : i32 to vector<1x1x32xi32>
    %51 = arith.cmpi slt, %40, %50 : vector<1x1x32xi32>
    %52 = arith.andi %49, %51 : vector<1x1x32xi1>
    %53 = arith.extui %52 : vector<1x1x32xi1> to vector<1x1x32xi32>
    %54 = arith.sitofp %53 : vector<1x1x32xi32> to vector<1x1x32xf32>
    %c16_i32_17 = arith.constant 16 : i32
    %55 = vector.broadcast %c16_i32_17 : i32 to vector<1x1x32xi32>
    %56 = arith.cmpi sge, %40, %55 : vector<1x1x32xi32>
    %c24_i32 = arith.constant 24 : i32
    %57 = vector.broadcast %c24_i32 : i32 to vector<1x1x32xi32>
    %58 = arith.cmpi slt, %40, %57 : vector<1x1x32xi32>
    %59 = arith.andi %56, %58 : vector<1x1x32xi1>
    %60 = arith.extui %59 : vector<1x1x32xi1> to vector<1x1x32xi32>
    %61 = arith.sitofp %60 : vector<1x1x32xi32> to vector<1x1x32xf32>
    %c24_i32_18 = arith.constant 24 : i32
    %62 = vector.broadcast %c24_i32_18 : i32 to vector<1x1x32xi32>
    %63 = arith.cmpi sge, %40, %62 : vector<1x1x32xi32>
    %c32_i32 = arith.constant 32 : i32
    %64 = vector.broadcast %c32_i32 : i32 to vector<1x1x32xi32>
    %65 = arith.cmpi slt, %40, %64 : vector<1x1x32xi32>
    %66 = arith.andi %63, %65 : vector<1x1x32xi1>
    %67 = arith.extui %66 : vector<1x1x32xi1> to vector<1x1x32xi32>
    %68 = arith.sitofp %67 : vector<1x1x32xi32> to vector<1x1x32xf32>
    %cst_19 = arith.constant 0.000000e+00 : f32
    %69 = vector.broadcast %cst_19 : f32 to vector<32x8x32xf32>
    %70 = vector.broadcast %47 : vector<1x1x32xf32> to vector<32x8x32xf32>
    %71 = arith.mulf %27, %70 : vector<32x8x32xf32>
    "tpu.trace_start"() <{level = 10 : i32, message = "bqd,bkd->bqk"}> : () -> ()
    %cst_20 = arith.constant dense<0.000000e+00> : vector<32x8x8xf32>
    %72 = tpu.matmul %71, %33, %cst_20 {dimension_numbers = #tpu.dot_dimension_numbers<[2], [2], [1], [1], [0, 0, 0, 1, 1, 1], [0], [0]>} : vector<32x8x32xf32>, vector<32x8x32xf32>, vector<32x8x8xf32> -> vector<32x8x8xf32>
    "tpu.trace_stop"() : () -> ()
    %73 = vector.broadcast %6 : vector<32x1x8xf32> to vector<32x8x8xf32>
    %74 = arith.addf %72, %73 : vector<32x8x8xf32>
    %cst_21 = arith.constant dense<0xFF800000> : vector<32x8xf32>
    %75 = vector.multi_reduction <maximumf>, %74, %cst_21 [2] : vector<32x8x8xf32> to vector<32x8xf32>
    %76 = vector.shape_cast %75 : vector<32x8xf32> to vector<32x8x1xf32>
    %77 = vector.broadcast %76 : vector<32x8x1xf32> to vector<32x8x8xf32>
    %78 = arith.subf %74, %77 : vector<32x8x8xf32>
    %79 = math.exp %78 : vector<32x8x8xf32>
    %cst_22 = arith.constant dense<0.000000e+00> : vector<32x8xf32>
    %80 = vector.multi_reduction <add>, %79, %cst_22 [2] : vector<32x8x8xf32> to vector<32x8xf32>
    %81 = vector.shape_cast %80 : vector<32x8xf32> to vector<32x8x1xf32>
    %82 = tpu.reciprocal %81 {approx = true} : vector<32x8x1xf32> -> vector<32x8x1xf32>
    %83 = vector.broadcast %82 : vector<32x8x1xf32> to vector<32x8x8xf32>
    %84 = arith.mulf %79, %83 : vector<32x8x8xf32>
    "tpu.trace_start"() <{level = 10 : i32, message = "bqk,bkd->bqd"}> : () -> ()
    %cst_23 = arith.constant dense<0.000000e+00> : vector<32x8x32xf32>
    %85 = tpu.matmul %84, %39, %cst_23 {dimension_numbers = #tpu.dot_dimension_numbers<[2], [1], [1], [2], [0, 0, 0, 1, 1, 2], [0], [0]>} : vector<32x8x8xf32>, vector<32x8x32xf32>, vector<32x8x32xf32> -> vector<32x8x32xf32>
    "tpu.trace_stop"() : () -> ()
    %86 = vector.broadcast %47 : vector<1x1x32xf32> to vector<32x8x32xf32>
    %87 = arith.mulf %85, %86 : vector<32x8x32xf32>
    %88 = arith.addf %69, %87 : vector<32x8x32xf32>
    %89 = vector.broadcast %54 : vector<1x1x32xf32> to vector<32x8x32xf32>
    %90 = arith.mulf %27, %89 : vector<32x8x32xf32>
    "tpu.trace_start"() <{level = 10 : i32, message = "bqd,bkd->bqk"}> : () -> ()
    %cst_24 = arith.constant dense<0.000000e+00> : vector<32x8x8xf32>
    %91 = tpu.matmul %90, %33, %cst_24 {dimension_numbers = #tpu.dot_dimension_numbers<[2], [2], [1], [1], [0, 0, 0, 1, 1, 1], [0], [0]>} : vector<32x8x32xf32>, vector<32x8x32xf32>, vector<32x8x8xf32> -> vector<32x8x8xf32>
    "tpu.trace_stop"() : () -> ()
    %92 = vector.broadcast %6 : vector<32x1x8xf32> to vector<32x8x8xf32>
    %93 = arith.addf %91, %92 : vector<32x8x8xf32>
    %cst_25 = arith.constant dense<0xFF800000> : vector<32x8xf32>
    %94 = vector.multi_reduction <maximumf>, %93, %cst_25 [2] : vector<32x8x8xf32> to vector<32x8xf32>
    %95 = vector.shape_cast %94 : vector<32x8xf32> to vector<32x8x1xf32>
    %96 = vector.broadcast %95 : vector<32x8x1xf32> to vector<32x8x8xf32>
    %97 = arith.subf %93, %96 : vector<32x8x8xf32>
    %98 = math.exp %97 : vector<32x8x8xf32>
    %cst_26 = arith.constant dense<0.000000e+00> : vector<32x8xf32>
    %99 = vector.multi_reduction <add>, %98, %cst_26 [2] : vector<32x8x8xf32> to vector<32x8xf32>
    %100 = vector.shape_cast %99 : vector<32x8xf32> to vector<32x8x1xf32>
    %101 = tpu.reciprocal %100 {approx = true} : vector<32x8x1xf32> -> vector<32x8x1xf32>
    %102 = vector.broadcast %101 : vector<32x8x1xf32> to vector<32x8x8xf32>
    %103 = arith.mulf %98, %102 : vector<32x8x8xf32>
    "tpu.trace_start"() <{level = 10 : i32, message = "bqk,bkd->bqd"}> : () -> ()
    %cst_27 = arith.constant dense<0.000000e+00> : vector<32x8x32xf32>
    %104 = tpu.matmul %103, %39, %cst_27 {dimension_numbers = #tpu.dot_dimension_numbers<[2], [1], [1], [2], [0, 0, 0, 1, 1, 2], [0], [0]>} : vector<32x8x8xf32>, vector<32x8x32xf32>, vector<32x8x32xf32> -> vector<32x8x32xf32>
    "tpu.trace_stop"() : () -> ()
    %105 = vector.broadcast %54 : vector<1x1x32xf32> to vector<32x8x32xf32>
    %106 = arith.mulf %104, %105 : vector<32x8x32xf32>
    %107 = arith.addf %88, %106 : vector<32x8x32xf32>
    %108 = vector.broadcast %61 : vector<1x1x32xf32> to vector<32x8x32xf32>
    %109 = arith.mulf %27, %108 : vector<32x8x32xf32>
    "tpu.trace_start"() <{level = 10 : i32, message = "bqd,bkd->bqk"}> : () -> ()
    %cst_28 = arith.constant dense<0.000000e+00> : vector<32x8x8xf32>
    %110 = tpu.matmul %109, %33, %cst_28 {dimension_numbers = #tpu.dot_dimension_numbers<[2], [2], [1], [1], [0, 0, 0, 1, 1, 1], [0], [0]>} : vector<32x8x32xf32>, vector<32x8x32xf32>, vector<32x8x8xf32> -> vector<32x8x8xf32>
    "tpu.trace_stop"() : () -> ()
    %111 = vector.broadcast %6 : vector<32x1x8xf32> to vector<32x8x8xf32>
    %112 = arith.addf %110, %111 : vector<32x8x8xf32>
    %cst_29 = arith.constant dense<0xFF800000> : vector<32x8xf32>
    %113 = vector.multi_reduction <maximumf>, %112, %cst_29 [2] : vector<32x8x8xf32> to vector<32x8xf32>
    %114 = vector.shape_cast %113 : vector<32x8xf32> to vector<32x8x1xf32>
    %115 = vector.broadcast %114 : vector<32x8x1xf32> to vector<32x8x8xf32>
    %116 = arith.subf %112, %115 : vector<32x8x8xf32>
    %117 = math.exp %116 : vector<32x8x8xf32>
    %cst_30 = arith.constant dense<0.000000e+00> : vector<32x8xf32>
    %118 = vector.multi_reduction <add>, %117, %cst_30 [2] : vector<32x8x8xf32> to vector<32x8xf32>
    %119 = vector.shape_cast %118 : vector<32x8xf32> to vector<32x8x1xf32>
    %120 = tpu.reciprocal %119 {approx = true} : vector<32x8x1xf32> -> vector<32x8x1xf32>
    %121 = vector.broadcast %120 : vector<32x8x1xf32> to vector<32x8x8xf32>
    %122 = arith.mulf %117, %121 : vector<32x8x8xf32>
    "tpu.trace_start"() <{level = 10 : i32, message = "bqk,bkd->bqd"}> : () -> ()
    %cst_31 = arith.constant dense<0.000000e+00> : vector<32x8x32xf32>
    %123 = tpu.matmul %122, %39, %cst_31 {dimension_numbers = #tpu.dot_dimension_numbers<[2], [1], [1], [2], [0, 0, 0, 1, 1, 2], [0], [0]>} : vector<32x8x8xf32>, vector<32x8x32xf32>, vector<32x8x32xf32> -> vector<32x8x32xf32>
    "tpu.trace_stop"() : () -> ()
    %124 = vector.broadcast %61 : vector<1x1x32xf32> to vector<32x8x32xf32>
    %125 = arith.mulf %123, %124 : vector<32x8x32xf32>
    %126 = arith.addf %107, %125 : vector<32x8x32xf32>
    %127 = vector.broadcast %68 : vector<1x1x32xf32> to vector<32x8x32xf32>
    %128 = arith.mulf %27, %127 : vector<32x8x32xf32>
    "tpu.trace_start"() <{level = 10 : i32, message = "bqd,bkd->bqk"}> : () -> ()
    %cst_32 = arith.constant dense<0.000000e+00> : vector<32x8x8xf32>
    %129 = tpu.matmul %128, %33, %cst_32 {dimension_numbers = #tpu.dot_dimension_numbers<[2], [2], [1], [1], [0, 0, 0, 1, 1, 1], [0], [0]>} : vector<32x8x32xf32>, vector<32x8x32xf32>, vector<32x8x8xf32> -> vector<32x8x8xf32>
    "tpu.trace_stop"() : () -> ()
    %130 = vector.broadcast %6 : vector<32x1x8xf32> to vector<32x8x8xf32>
    %131 = arith.addf %129, %130 : vector<32x8x8xf32>
    %cst_33 = arith.constant dense<0xFF800000> : vector<32x8xf32>
    %132 = vector.multi_reduction <maximumf>, %131, %cst_33 [2] : vector<32x8x8xf32> to vector<32x8xf32>
    %133 = vector.shape_cast %132 : vector<32x8xf32> to vector<32x8x1xf32>
    %134 = vector.broadcast %133 : vector<32x8x1xf32> to vector<32x8x8xf32>
    %135 = arith.subf %131, %134 : vector<32x8x8xf32>
    %136 = math.exp %135 : vector<32x8x8xf32>
    %cst_34 = arith.constant dense<0.000000e+00> : vector<32x8xf32>
    %137 = vector.multi_reduction <add>, %136, %cst_34 [2] : vector<32x8x8xf32> to vector<32x8xf32>
    %138 = vector.shape_cast %137 : vector<32x8xf32> to vector<32x8x1xf32>
    %139 = tpu.reciprocal %138 {approx = true} : vector<32x8x1xf32> -> vector<32x8x1xf32>
    %140 = vector.broadcast %139 : vector<32x8x1xf32> to vector<32x8x8xf32>
    %141 = arith.mulf %136, %140 : vector<32x8x8xf32>
    "tpu.trace_start"() <{level = 10 : i32, message = "bqk,bkd->bqd"}> : () -> ()
    %cst_35 = arith.constant dense<0.000000e+00> : vector<32x8x32xf32>
    %142 = tpu.matmul %141, %39, %cst_35 {dimension_numbers = #tpu.dot_dimension_numbers<[2], [1], [1], [2], [0, 0, 0, 1, 1, 2], [0], [0]>} : vector<32x8x8xf32>, vector<32x8x32xf32>, vector<32x8x32xf32> -> vector<32x8x32xf32>
    "tpu.trace_stop"() : () -> ()
    %143 = vector.broadcast %68 : vector<1x1x32xf32> to vector<32x8x32xf32>
    %144 = arith.mulf %142, %143 : vector<32x8x32xf32>
    %145 = arith.addf %126, %144 : vector<32x8x32xf32>
    %146 = vector.shape_cast %145 : vector<32x8x32xf32> to vector<256x32xf32>
    %c128 = arith.constant 128 : index
    %c0_36 = arith.constant 0 : index
    %147 = vector.load %arg2[%c128, %c0_36] : memref<320x128xf32, #tpu.memory_space<vmem>>, vector<32x32xf32>
    %cst_37 = arith.constant dense<0.000000e+00> : vector<256x32xf32>
    %148 = tpu.matmul %146, %147, %cst_37 {dimension_numbers = #tpu.dot_dimension_numbers<[1], [0], [0], [1], [0, 0, 1, 1], [], []>} : vector<256x32xf32>, vector<32x32xf32>, vector<256x32xf32> -> vector<256x32xf32>
    %c3 = arith.constant 3 : index
    %c0_38 = arith.constant 0 : index
    %149 = vector.load %arg3[%c3, %c0_38] : memref<24x128xf32, #tpu.memory_space<vmem>>, vector<1x32xf32>
    %150 = vector.broadcast %149 : vector<1x32xf32> to vector<256x32xf32>
    %151 = arith.addf %148, %150 : vector<256x32xf32>
    %152 = vector.shape_cast %151 : vector<256x32xf32> to vector<32x8x32xf32>
    %153 = arith.addf %20, %152 : vector<32x8x32xf32>
    %c4 = arith.constant 4 : index
    %c0_39 = arith.constant 0 : index
    %154 = vector.load %arg3[%c4, %c0_39] : memref<24x128xf32, #tpu.memory_space<vmem>>, vector<1x32xf32>
    %c5 = arith.constant 5 : index
    %c0_40 = arith.constant 0 : index
    %155 = vector.load %arg3[%c5, %c0_40] : memref<24x128xf32, #tpu.memory_space<vmem>>, vector<1x32xf32>
    %cst_41 = arith.constant dense<0.000000e+00> : vector<32x8xf32>
    %156 = vector.multi_reduction <add>, %153, %cst_41 [2] : vector<32x8x32xf32> to vector<32x8xf32>
    %157 = vector.shape_cast %156 : vector<32x8xf32> to vector<32x8x1xf32>
    %cst_42 = arith.constant 3.200000e+01 : f32
    %158 = vector.broadcast %cst_42 : f32 to vector<32x8x1xf32>
    %159 = arith.divf %157, %158 : vector<32x8x1xf32>
    %160 = vector.broadcast %159 : vector<32x8x1xf32> to vector<32x8x32xf32>
    %161 = arith.subf %153, %160 : vector<32x8x32xf32>
    %162 = arith.mulf %161, %161 : vector<32x8x32xf32>
    %cst_43 = arith.constant dense<0.000000e+00> : vector<32x8xf32>
    %163 = vector.multi_reduction <add>, %162, %cst_43 [2] : vector<32x8x32xf32> to vector<32x8xf32>
    %164 = vector.shape_cast %163 : vector<32x8xf32> to vector<32x8x1xf32>
    %cst_44 = arith.constant 3.200000e+01 : f32
    %165 = vector.broadcast %cst_44 : f32 to vector<32x8x1xf32>
    %166 = arith.divf %164, %165 : vector<32x8x1xf32>
    %cst_45 = arith.constant 9.99999974E-6 : f32
    %167 = vector.broadcast %cst_45 : f32 to vector<32x8x1xf32>
    %168 = arith.addf %166, %167 : vector<32x8x1xf32>
    %169 = math.rsqrt %168 : vector<32x8x1xf32>
    %170 = vector.broadcast %159 : vector<32x8x1xf32> to vector<32x8x32xf32>
    %171 = arith.subf %153, %170 : vector<32x8x32xf32>
    %172 = vector.broadcast %169 : vector<32x8x1xf32> to vector<32x8x32xf32>
    %173 = arith.mulf %171, %172 : vector<32x8x32xf32>
    %174 = vector.shape_cast %154 : vector<1x32xf32> to vector<1x1x32xf32>
    %175 = vector.broadcast %174 : vector<1x1x32xf32> to vector<32x8x32xf32>
    %176 = arith.mulf %173, %175 : vector<32x8x32xf32>
    %177 = vector.shape_cast %155 : vector<1x32xf32> to vector<1x1x32xf32>
    %178 = vector.broadcast %177 : vector<1x1x32xf32> to vector<32x8x32xf32>
    %179 = arith.addf %176, %178 : vector<32x8x32xf32>
    %180 = vector.shape_cast %179 : vector<32x8x32xf32> to vector<256x32xf32>
    %c160 = arith.constant 160 : index
    %c0_46 = arith.constant 0 : index
    %181 = vector.load %arg2[%c160, %c0_46] : memref<320x128xf32, #tpu.memory_space<vmem>>, vector<32x64xf32>
    %cst_47 = arith.constant dense<0.000000e+00> : vector<256x64xf32>
    %182 = tpu.matmul %180, %181, %cst_47 {dimension_numbers = #tpu.dot_dimension_numbers<[1], [0], [0], [1], [0, 0, 1, 1], [], []>} : vector<256x32xf32>, vector<32x64xf32>, vector<256x64xf32> -> vector<256x64xf32>
    %c6 = arith.constant 6 : index
    %c0_48 = arith.constant 0 : index
    %183 = vector.load %arg3[%c6, %c0_48] : memref<24x128xf32, #tpu.memory_space<vmem>>, vector<1x64xf32>
    %184 = vector.broadcast %183 : vector<1x64xf32> to vector<256x64xf32>
    %185 = arith.addf %182, %184 : vector<256x64xf32>
    %cst_49 = arith.constant 5.000000e-01 : f32
    %186 = vector.broadcast %cst_49 : f32 to vector<256x64xf32>
    %187 = arith.mulf %186, %185 : vector<256x64xf32>
    %cst_50 = arith.constant 4.471500e-02 : f32
    %188 = vector.broadcast %cst_50 : f32 to vector<256x64xf32>
    %189 = arith.mulf %188, %185 : vector<256x64xf32>
    %190 = arith.mulf %189, %185 : vector<256x64xf32>
    %191 = arith.mulf %190, %185 : vector<256x64xf32>
    %192 = arith.addf %185, %191 : vector<256x64xf32>
    %cst_51 = arith.constant 0.797884583 : f32
    %193 = vector.broadcast %cst_51 : f32 to vector<256x64xf32>
    %194 = arith.mulf %193, %192 : vector<256x64xf32>
    %195 = math.tanh %194 : vector<256x64xf32>
    %cst_52 = arith.constant 1.000000e+00 : f32
    %196 = vector.broadcast %cst_52 : f32 to vector<256x64xf32>
    %197 = arith.addf %196, %195 : vector<256x64xf32>
    %198 = arith.mulf %187, %197 : vector<256x64xf32>
    %c192 = arith.constant 192 : index
    %c0_53 = arith.constant 0 : index
    %199 = vector.load %arg2[%c192, %c0_53] : memref<320x128xf32, #tpu.memory_space<vmem>>, vector<64x32xf32>
    %cst_54 = arith.constant dense<0.000000e+00> : vector<256x32xf32>
    %200 = tpu.matmul %198, %199, %cst_54 {dimension_numbers = #tpu.dot_dimension_numbers<[1], [0], [0], [1], [0, 0, 1, 1], [], []>} : vector<256x64xf32>, vector<64x32xf32>, vector<256x32xf32> -> vector<256x32xf32>
    %c7 = arith.constant 7 : index
    %c0_55 = arith.constant 0 : index
    %201 = vector.load %arg3[%c7, %c0_55] : memref<24x128xf32, #tpu.memory_space<vmem>>, vector<1x32xf32>
    %202 = vector.broadcast %201 : vector<1x32xf32> to vector<256x32xf32>
    %203 = arith.addf %200, %202 : vector<256x32xf32>
    %204 = vector.shape_cast %203 : vector<256x32xf32> to vector<32x8x32xf32>
    %205 = arith.addf %179, %204 : vector<32x8x32xf32>
    %c8 = arith.constant 8 : index
    %c0_56 = arith.constant 0 : index
    %206 = vector.load %arg3[%c8, %c0_56] : memref<24x128xf32, #tpu.memory_space<vmem>>, vector<1x32xf32>
    %c9 = arith.constant 9 : index
    %c0_57 = arith.constant 0 : index
    %207 = vector.load %arg3[%c9, %c0_57] : memref<24x128xf32, #tpu.memory_space<vmem>>, vector<1x32xf32>
    %cst_58 = arith.constant dense<0.000000e+00> : vector<32x8xf32>
    %208 = vector.multi_reduction <add>, %205, %cst_58 [2] : vector<32x8x32xf32> to vector<32x8xf32>
    %209 = vector.shape_cast %208 : vector<32x8xf32> to vector<32x8x1xf32>
    %cst_59 = arith.constant 3.200000e+01 : f32
    %210 = vector.broadcast %cst_59 : f32 to vector<32x8x1xf32>
    %211 = arith.divf %209, %210 : vector<32x8x1xf32>
    %212 = vector.broadcast %211 : vector<32x8x1xf32> to vector<32x8x32xf32>
    %213 = arith.subf %205, %212 : vector<32x8x32xf32>
    %214 = arith.mulf %213, %213 : vector<32x8x32xf32>
    %cst_60 = arith.constant dense<0.000000e+00> : vector<32x8xf32>
    %215 = vector.multi_reduction <add>, %214, %cst_60 [2] : vector<32x8x32xf32> to vector<32x8xf32>
    %216 = vector.shape_cast %215 : vector<32x8xf32> to vector<32x8x1xf32>
    %cst_61 = arith.constant 3.200000e+01 : f32
    %217 = vector.broadcast %cst_61 : f32 to vector<32x8x1xf32>
    %218 = arith.divf %216, %217 : vector<32x8x1xf32>
    %cst_62 = arith.constant 9.99999974E-6 : f32
    %219 = vector.broadcast %cst_62 : f32 to vector<32x8x1xf32>
    %220 = arith.addf %218, %219 : vector<32x8x1xf32>
    %221 = math.rsqrt %220 : vector<32x8x1xf32>
    %222 = vector.broadcast %211 : vector<32x8x1xf32> to vector<32x8x32xf32>
    %223 = arith.subf %205, %222 : vector<32x8x32xf32>
    %224 = vector.broadcast %221 : vector<32x8x1xf32> to vector<32x8x32xf32>
    %225 = arith.mulf %223, %224 : vector<32x8x32xf32>
    %226 = vector.shape_cast %206 : vector<1x32xf32> to vector<1x1x32xf32>
    %227 = vector.broadcast %226 : vector<1x1x32xf32> to vector<32x8x32xf32>
    %228 = arith.mulf %225, %227 : vector<32x8x32xf32>
    %229 = vector.shape_cast %207 : vector<1x32xf32> to vector<1x1x32xf32>
    %230 = vector.broadcast %229 : vector<1x1x32xf32> to vector<32x8x32xf32>
    %231 = arith.addf %228, %230 : vector<32x8x32xf32>
    %232 = vector.extract_strided_slice %231 {offsets = [0, 0, 0], sizes = [32, 1, 32], strides = [1, 1, 1]} : vector<32x8x32xf32> to vector<32x1x32xf32>
    %233 = vector.shape_cast %232 : vector<32x1x32xf32> to vector<32x32xf32>
    %c256 = arith.constant 256 : index
    %c0_63 = arith.constant 0 : index
    %234 = vector.load %arg2[%c256, %c0_63] : memref<320x128xf32, #tpu.memory_space<vmem>>, vector<32x32xf32>
    %cst_64 = arith.constant dense<0.000000e+00> : vector<32x32xf32>
    %235 = tpu.matmul %233, %234, %cst_64 {dimension_numbers = #tpu.dot_dimension_numbers<[1], [0], [0], [1], [0, 0, 1, 1], [], []>} : vector<32x32xf32>, vector<32x32xf32>, vector<32x32xf32> -> vector<32x32xf32>
    %c10 = arith.constant 10 : index
    %c0_65 = arith.constant 0 : index
    %236 = vector.load %arg3[%c10, %c0_65] : memref<24x128xf32, #tpu.memory_space<vmem>>, vector<1x32xf32>
    %237 = vector.broadcast %236 : vector<1x32xf32> to vector<32x32xf32>
    %238 = arith.addf %235, %237 : vector<32x32xf32>
    %239 = math.tanh %238 : vector<32x32xf32>
    %c288 = arith.constant 288 : index
    %c0_66 = arith.constant 0 : index
    %240 = vector.load %arg2[%c288, %c0_66] : memref<320x128xf32, #tpu.memory_space<vmem>>, vector<32x128xf32>
    %cst_67 = arith.constant dense<0.000000e+00> : vector<32x128xf32>
    %241 = tpu.matmul %239, %240, %cst_67 {dimension_numbers = #tpu.dot_dimension_numbers<[1], [0], [0], [1], [0, 0, 1, 1], [], []>} : vector<32x32xf32>, vector<32x128xf32>, vector<32x128xf32> -> vector<32x128xf32>
    %c11 = arith.constant 11 : index
    %c0_68 = arith.constant 0 : index
    %242 = vector.load %arg3[%c11, %c0_68] : memref<24x128xf32, #tpu.memory_space<vmem>>, vector<1x128xf32>
    %243 = vector.broadcast %242 : vector<1x128xf32> to vector<32x128xf32>
    %244 = arith.addf %241, %243 : vector<32x128xf32>
    %c0_69 = arith.constant 0 : index
    %c0_70 = arith.constant 0 : index
    %245 = vector.load %arg4[%c0_69, %c0_70] : memref<32x128xf32, #tpu.memory_space<vmem>>, vector<32x128xf32>
    tpu.vector_store %arg4[%c0_69, %c0_70], %244 {strides = array<i32>} : memref<32x128xf32, #tpu.memory_space<vmem>>, vector<32x128xf32>,
    return
  }
  func.func @transform_0(%arg0: i32) -> (i32, i32) {
    %c0_i32 = arith.constant 0 : i32
    %c0_i32_0 = arith.constant 0 : i32
    return %arg0, %c0_i32 : i32, i32
  }
  func.func @transform_1(%arg0: i32) -> (i32, i32) {
    %c0_i32 = arith.constant 0 : i32
    %c0_i32_0 = arith.constant 0 : i32
    %c0_i32_1 = arith.constant 0 : i32
    return %c0_i32, %c0_i32_0 : i32, i32
  }
  func.func @transform_2(%arg0: i32) -> (i32, i32) {
    %c0_i32 = arith.constant 0 : i32
    %c0_i32_0 = arith.constant 0 : i32
    %c0_i32_1 = arith.constant 0 : i32
    return %c0_i32, %c0_i32_0 : i32, i32
  }
  func.func @transform_3(%arg0: i32) -> (i32, i32) {
    %c0_i32 = arith.constant 0 : i32
    %c0_i32_0 = arith.constant 0 : i32
    return %arg0, %c0_i32 : i32, i32
  }
}

</mosaic_0001>

<bundles_post_ra>
// kernel: custom_transformer_forward.1
= control target key start
LH: loop header
LB: loop body
LE: loop exit
PB: predicated region body
PF: predicated region fallthrough
CT: control target
= control target key end

     0   :  { %8 = vsyncpa [#allocation3], 0  ;;  %s29328_s12 = smov 0   ;;  %s35325_s0 = inlined_call_operand.vmem [shape: s32[64,8], index: 0, kind: input, shape index: {}]   ;;  %s35326_s1 = inlined_call_operand.hbm [shape: f32[320,128], index: 1, kind: input, shape index: {}]   ;;  %s35327_s2 = inlined_call_operand.vmem [shape: f32[24,128], index: 2, kind: input, shape index: {}]   ;;  %s35328_s3 = inlined_call_operand.vmem [shape: f32[64,128], index: 3, kind: output, shape index: {}]  }
   0x1 LB: > { %s25344_s13 = sadd.s32 4294967295, %s29299_s12   ;;  %p25346_p0 = scmp.ge.s32.totalorder %s29299_s12, 1  ;;  %s29299_s12 = sphi %s29328_s12, %s14_s12  }
   0x2   : > { %p113_p1 = scmp.lt.s32.totalorder %s29299_s12, 3  ;;  %s29301_s14 = smov [#allocation2]  }
   0x3   : > { %s125_s15 = sshll.u32 %s29301_s14, 4  ;;  %p29340_p3 = scmp.eq.s32.totalorder %s25344_s13, 0  ;;  %s126_s15 = int_to_ptr.vmem [resolvable:$true] %s125_s15 }
   0x4   : > { %p29336_p2 = pnand %p25346_p0, %p113_p1  ;;  %s29274_s18 = scalar_lea.vmem %s126_s15, 5120 }
   0x5   : > { %p29275_p7 = scmp.ne.s32.totalorder %s126_s15, %s29274_s18  ;;  %p29282_p10 = scmp.lt.s32.totalorder %s126_s15, %s126_s15 }
   0x6   : > { %p28525_p4 = pneg %p29336_p2  ;;  %p29283_p11 = scmp.lt.s32.totalorder %s29274_s18, %s29274_s18 }
   0x8   : > { %p28526_p5 = pnand %p29340_p3, %p28525_p4  ;;  %p29284_p12 = por %p29283_p11, %p29282_p10 }
   0xa   : > { %p29265_p6 = pneg %p28526_p5 }
   0xc   : > { %p29277_p8 = pnand %p29275_p7, %p29265_p6 }
   0xe   : > { %p29278_p9 = pneg %p29277_p8 }
  0x10   : > { %p29285_p13 = pnand %p29284_p12, %p29278_p9 }
  0x12   : > { %29288 = shalt.err (!%p29285_p13)
}
  0x13   : > { %s29302_s19 = smov 128   ;;  %s29303_s20 = smov 8  }
  0x14   : > { %28528 = dma.hbm_to_vmem [thread:$0]  (!%p28526_p5), %s35326_s1, 5120, %s126_s15, [#allocation3], %s29302_s19, %s29302_s19, %s29303_s20  }
  0x15   : > { %153 = sbr.rel (%p29336_p2) target bundleno = 4721 (0x1271), region = 32 }
  0x1a   : > { %29294 = dma.done.wait (%p29340_p3), [#allocation3], 5120  }
  0x1b   : > { %29296 = vsyncadd (%p29340_p3), [#allocation3], 4294962176  ;;  %s25351_s23 = sshll.u32 %s25344_s13, 2  ;;  %v209_v0 = vlaneseq  ;;  %v726_v9 = vld [vmem:[#allocation2 + $0x18] sm:$0xff]  ;;  %v725_v10 = vld [vmem:[#allocation2 + $0x10] sm:$0xff]  ;;  %vm727_vm0 = vcmask 261120  }
  0x1c   : > { %p178_p0 = scmp.lt.s32.totalorder %s25351_s23, 7  ;;  %26805 = vmatprep.subr.mxu0 %v726_v9  ;;  %v724_v15 = vld [vmem:[#allocation2 + $0x8] sm:$0xff]  ;;  %v723_v20 = vld [vmem:[#allocation2] sm:$0xff]  ;;  %28513 = vmatprep.subr.mxu1 %v726_v9  ;;  %v29426_v46 = vld [vmem:[#allocation2 + $0x38] sm:$0xff]  ;;  %v35329_v55 = vmov 0.0  }
  0x1d   : > { %v29358_v1 = vshrl.u32 %v209_v0, 7  ;;  %26806 = vmatpush3.msra.mxu0 %v726_v9  ;;  %28517 = vmatpush3.msra.mxu1 %v726_v9  ;;  %v1415_v47 = vld [vmem:[#allocation2 + $0x58] sm:$0xff]  ;;  %v29434_v52 = vand.u32 127, %v209_v0 }
  0x1e   : > { %s36382_s23 = smov (!%p178_p0, %s25351_s23), 7  ;;  %26807 = vmatprep.subr.mxu0 %v725_v10  ;;  %28514 = vmatprep.subr.mxu1 %v725_v10 }
  0x1f   : > { %v29363_v2 = vsub.s32 0, %v29358_v1  ;;  %v29366_v3 = vsub.s32 2, %v29358_v1  ;;  %s25352_s24 = sshll.u32 %s36382_s23, 3  ;;  %v29377_v4 = vsub.s32 1, %v29358_v1  ;;  %v29380_v5 = vsub.s32 3, %v29358_v1  ;;  %26808 = vmatpush3.msra.mxu0 %v725_v10  ;;  %28518 = vmatpush3.msra.mxu1 %v725_v10  ;;  %35612 = vst [vmem:[#allocation5_spill] sm:$0xff] %v29434_v52 }
  0x20   : > { %s29374_s27 = scalar_lea.vmem %s35325_s0, %s25352_s24  ;;  %v29388_v13 = vsub.s32 4, %v29358_v1  ;;  %v29391_v14 = vsub.s32 5, %v29358_v1  ;;  %v29396_v18 = vsub.s32 6, %v29358_v1  ;;  %v29399_v19 = vsub.s32 7, %v29358_v1  ;;  %26809 = vmatprep.subr.mxu0 %v724_v15  ;;  %28515 = vmatprep.subr.mxu1 %v724_v15  ;;  %s187_s7 = scalar_lea.vmem %s35328_s3, %s25352_s24 }
  0x21   : > { %v189_v6 = vld [vmem:[%s29374_s27] sm:$0xff]  ;;  %26810 = vmatpush3.msra.mxu0 %v724_v15  ;;  %v190_v23 = vld [vmem:[%s29374_s27 + $0x8] sm:$0xff]  ;;  %28519 = vmatpush3.msra.mxu1 %v724_v15  ;;  %v191_v32 = vld [vmem:[%s29374_s27 + $0x10] sm:$0xff] }
  0x22   : > { %v406_v7 = vrot.slane %v189_v6, %v29363_v2  ;;  %v420_v8 = vrot.slane %v189_v6, %v29366_v3  ;;  %v413_v11 = vrot.slane %v189_v6, %v29377_v4  ;;  %v427_v12 = vrot.slane %v189_v6, %v29380_v5  ;;  %26811 = vmatprep.subr.mxu0 %v723_v20  ;;  %v192_v41 = vld [vmem:[%s29374_s27 + $0x18] sm:$0xff] }
  0x23   : > { %v434_v16 = vrot.slane %v189_v6, %v29388_v13  ;;  %v441_v17 = vrot.slane %v189_v6, %v29391_v14  ;;  %v448_v21 = vrot.slane %v189_v6, %v29396_v18  ;;  %v455_v22 = vrot.slane %v189_v6, %v29399_v19  ;;  %26812 = vmatpush3.msra.mxu0 %v723_v20 }
  0x24   : > { %408 = vbcast.lane.b32.xlu0 %v406_v7, 256  ;;  %422 = vbcast.lane.b32.xlu1 %v420_v8, 256  ;;  %v462_v24 = vrot.slane %v190_v23, %v29363_v2  ;;  %v469_v25 = vrot.slane %v190_v23, %v29377_v4  ;;  %v476_v26 = vrot.slane %v190_v23, %v29366_v3 }
  0x25   : > { %28516 = vmatprep.subr.mxu1 %v723_v20  ;;  %v483_v27 = vrot.slane %v190_v23, %v29380_v5  ;;  %v490_v28 = vrot.slane %v190_v23, %v29388_v13  ;;  %v497_v29 = vrot.slane %v190_v23, %v29391_v14  ;;  %v504_v30 = vrot.slane %v190_v23, %v29396_v18 }
  0x26   : > { %28520 = vmatpush3.msra.mxu1 %v723_v20  ;;  %v511_v31 = vrot.slane %v190_v23, %v29399_v19  ;;  %v518_v33 = vrot.slane %v191_v32, %v29363_v2  ;;  %v525_v34 = vrot.slane %v191_v32, %v29377_v4  ;;  %v532_v35 = vrot.slane %v191_v32, %v29366_v3 }
  0x27   : > { %v539_v36 = vrot.slane %v191_v32, %v29380_v5  ;;  %v546_v37 = vrot.slane %v191_v32, %v29388_v13  ;;  %v553_v38 = vrot.slane %v191_v32, %v29391_v14  ;;  %v560_v39 = vrot.slane %v191_v32, %v29396_v18  ;;  %26861 = vmatprep.subr.mxu1 %v29426_v46 }
  0x28   : > { %415 = vbcast.lane.b32.xlu0 %v413_v11, 256  ;;  %429 = vbcast.lane.b32.xlu1 %v427_v12, 256  ;;  %v567_v40 = vrot.slane %v191_v32, %v29399_v19  ;;  %v574_v42 = vrot.slane %v192_v41, %v29363_v2  ;;  %v581_v43 = vrot.slane %v192_v41, %v29377_v4 }
  0x29   : > { %v588_v44 = vrot.slane %v192_v41, %v29366_v3  ;;  %v595_v45 = vrot.slane %v192_v41, %v29380_v5  ;;  %26917 = vmatprep.subr.mxu0 %v1415_v47  ;;  %v602_v48 = vrot.slane %v192_v41, %v29388_v13  ;;  %v609_v49 = vrot.slane %v192_v41, %v29391_v14 }
  0x2a   : > { %v616_v50 = vrot.slane %v192_v41, %v29396_v18  ;;  %v623_v51 = vrot.slane %v192_v41, %v29399_v19 }
  0x2c   : > { %436 = vbcast.lane.b32.xlu0 %v434_v16, 256  ;;  %443 = vbcast.lane.b32.xlu1 %v441_v17, 256 }
  0x30   : > { %450 = vbcast.lane.b32.xlu0 %v448_v21, 256  ;;  %457 = vbcast.lane.b32.xlu1 %v455_v22, 256 }
  0x34   : > { %464 = vbcast.lane.b32.xlu0 %v462_v24, 256  ;;  %471 = vbcast.lane.b32.xlu1 %v469_v25, 256 }
  0x38   : > { %478 = vbcast.lane.b32.xlu0 %v476_v26, 256  ;;  %485 = vbcast.lane.b32.xlu1 %v483_v27, 256 }
  0x3c   : > { %492 = vbcast.lane.b32.xlu0 %v490_v28, 256  ;;  %499 = vbcast.lane.b32.xlu1 %v497_v29, 256 }
  0x40   : > { %506 = vbcast.lane.b32.xlu0 %v504_v30, 256  ;;  %513 = vbcast.lane.b32.xlu1 %v511_v31, 256 }
  0x44   : > { %520 = vbcast.lane.b32.xlu0 %v518_v33, 256  ;;  %527 = vbcast.lane.b32.xlu1 %v525_v34, 256 }
  0x48   : > { %534 = vbcast.lane.b32.xlu0 %v532_v35, 256  ;;  %541 = vbcast.lane.b32.xlu1 %v539_v36, 256 }
  0x4c   : > { %548 = vbcast.lane.b32.xlu0 %v546_v37, 256  ;;  %555 = vbcast.lane.b32.xlu1 %v553_v38, 256 }
  0x50   : > { %562 = vbcast.lane.b32.xlu0 %v560_v39, 256  ;;  %569 = vbcast.lane.b32.xlu1 %v567_v40, 256 }
  0x54   : > { %576 = vbcast.lane.b32.xlu0 %v574_v42, 256  ;;  %583 = vbcast.lane.b32.xlu1 %v581_v43, 256 }
  0x58   : > { %590 = vbcast.lane.b32.xlu0 %v588_v44, 256  ;;  %597 = vbcast.lane.b32.xlu1 %v595_v45, 256 }
  0x5c   : > { %604 = vbcast.lane.b32.xlu0 %v602_v48, 256  ;;  %611 = vbcast.lane.b32.xlu1 %v609_v49, 256 }
  0x60   : > { %618 = vbcast.lane.b32.xlu0 %v616_v50, 256  ;;  %625 = vbcast.lane.b32.xlu1 %v623_v51, 256 }
  0x96   : > { %v409_v53 = vpop.permute.xlu0 %408  ;;  %v423_v54 = vpop.permute.xlu1 %422 }
  0x97   : > { %vm627_vm1 = vcmp.eq.s32.totalorder %v409_v53, %v29434_v52  ;;  %vm629_vm2 = vcmp.eq.s32.totalorder %v423_v54, %v29434_v52 }
  0x98   : > { %v25355_v56 = vsel %vm627_vm1, 1.0, %v35329_v55  ;;  %v25357_v59 = vsel %vm629_vm2, 1.0, %v35329_v55 }
  0x99   : > { %26813 = vmatprep.mubr.msk.f32.mxu0 %vm727_vm0, %v25355_v56 }
  0x9a   : > { %v416_v57 = vpop.permute.xlu0 %415  ;;  %v430_v58 = vpop.permute.xlu1 %429 }
  0x9b   : > { %vm628_vm3 = vcmp.eq.s32.totalorder %v416_v57, %v29434_v52  ;;  %vm630_vm4 = vcmp.eq.s32.totalorder %v430_v58, %v29434_v52  ;;  %v1084_v58 = vld [vmem:[#allocation2 + $0x30] sm:$0xff] }
  0x9c   : > { %v25356_v60 = vsel %vm628_vm3, 1.0, %v35329_v55  ;;  %v25358_v61 = vsel %vm630_vm4, 1.0, %v35329_v55 }
  0x9d   : > { %26814 = vmatmul.mubr.msk.f32.vlgmr.msra.gmra.mxu0 %vm727_vm0, %v25356_v60  ;;  %v1083_v60 = vld [vmem:[#allocation2 + $0x28] sm:$0xff] }
  0x9e   : > { %26816 = vmatprep.mubr.msk.f32.mxu0 %vm727_vm0, %v25357_v59  ;;  %v437_v62 = vpop.permute.xlu0 %436  ;;  %v444_v63 = vpop.permute.xlu1 %443  ;;  %26918 = vmatpush3.msra.mxu0 %v1415_v47  ;;  %v1414_v59 = vld [vmem:[#allocation2 + $0x50] sm:$0xff] }
  0x9f   : > { %vm631_vm5 = vcmp.eq.s32.totalorder %v437_v62, %v29434_v52  ;;  %vm632_vm6 = vcmp.eq.s32.totalorder %v444_v63, %v29434_v52  ;;  %26919 = vmatprep.subr.mxu0 %v1414_v59  ;;  %v1082_v62 = vld [vmem:[#allocation2 + $0x20] sm:$0xff] }
  0xa0   : > { %v25359_v0 = vsel %vm631_vm5, 1.0, %v35329_v55  ;;  %v25360_v3 = vsel %vm632_vm6, 1.0, %v35329_v55  ;;  %26920 = vmatpush3.msra.mxu0 %v1414_v59  ;;  %v1412_v63 = vld [vmem:[#allocation2 + $0x40] sm:$0xff] }
  0xa1   : > { %26817 = vmatmul.mubr.msk.f32.gmra.mxu0 %vm727_vm0, %v25358_v61  ;;  %v1413_v61 = vld [vmem:[#allocation2 + $0x48] sm:$0xff] }
  0xa2   : > { %26819 = vmatprep.mubr.msk.f32.mxu0 %vm727_vm0, %v25359_v0  ;;  %v451_v4 = vpop.permute.xlu0 %450  ;;  %v458_v5 = vpop.permute.xlu1 %457  ;;  %26921 = vmatprep.subr.mxu0 %v1413_v61  ;;  %v1649_v0 = vld [vmem:[#allocation2 + $0x78] sm:$0xff] }
  0xa3   : > { %vm633_vm7 = vcmp.eq.s32.totalorder %v451_v4, %v29434_v52  ;;  %vm634_vm8 = vcmp.eq.s32.totalorder %v458_v5, %v29434_v52  ;;  %26922 = vmatpush3.msra.mxu0 %v1413_v61  ;;  %v29537_v4 = vld [vmem:[%s35327_s2 + $0xc] sm:$0xff] }
  0xa4   : > { %v25361_v6 = vsel %vm633_vm7, 1.0, %v35329_v55  ;;  %v25362_v7 = vsel %vm634_vm8, 1.0, %v35329_v55  ;;  %26923 = vmatprep.subr.mxu0 %v1412_v63 }
  0xa5   : > { %26820 = vmatmul.mubr.msk.f32.gmra.mxu0 %vm727_vm0, %v25360_v3 }
  0xa6   : > { %26822 = vmatprep.mubr.msk.f32.mxu0 %vm727_vm0, %v25361_v6  ;;  %v465_v8 = vpop.permute.xlu0 %464  ;;  %v472_v9 = vpop.permute.xlu1 %471  ;;  %26924 = vmatpush3.msra.mxu0 %v1412_v63 }
  0xa7   : > { %vm635_vm9 = vcmp.eq.s32.totalorder %v465_v8, %v29434_v52  ;;  %vm636_vm10 = vcmp.eq.s32.totalorder %v472_v9, %v29434_v52  ;;  %27029 = vmatprep.subr.mxu0 %v35329_v55  ;;  %v1648_v9 = vld [vmem:[#allocation2 + $0x70] sm:$0xff] }
  0xa8   : > { %v25363_v10 = vsel %vm635_vm9, 1.0, %v35329_v55  ;;  %v25364_v11 = vsel %vm636_vm10, 1.0, %v35329_v55 }
  0xa9   : > { %26823 = vmatmul.mubr.msk.f32.gmra.mxu0 %vm727_vm0, %v25362_v7 }
  0xaa   : > { %26825 = vmatprep.mubr.msk.f32.mxu0 %vm727_vm0, %v25363_v10  ;;  %v479_v12 = vpop.permute.xlu0 %478  ;;  %v486_v13 = vpop.permute.xlu1 %485 }
  0xab   : > { %vm637_vm11 = vcmp.eq.s32.totalorder %v479_v12, %v29434_v52  ;;  %vm638_vm12 = vcmp.eq.s32.totalorder %v486_v13, %v29434_v52 }
  0xac   : > { %v25365_v14 = vsel %vm637_vm11, 1.0, %v35329_v55  ;;  %v25366_v15 = vsel %vm638_vm12, 1.0, %v35329_v55 }
  0xad   : > { %26826 = vmatmul.mubr.msk.f32.gmra.mxu0 %vm727_vm0, %v25364_v11 }
  0xae   : > { %26828 = vmatprep.mubr.msk.f32.mxu0 %vm727_vm0, %v25365_v14  ;;  %v493_v16 = vpop.permute.xlu0 %492  ;;  %v500_v17 = vpop.permute.xlu1 %499  ;;  %v1647_v14 = vld [vmem:[#allocation2 + $0x68] sm:$0xff] }
  0xaf   : > { %vm639_vm13 = vcmp.eq.s32.totalorder %v493_v16, %v29434_v52  ;;  %vm640_vm14 = vcmp.eq.s32.totalorder %v500_v17, %v29434_v52 }
  0xb0   : > { %v25367_v18 = vsel %vm639_vm13, 1.0, %v35329_v55  ;;  %v25368_v19 = vsel %vm640_vm14, 1.0, %v35329_v55 }
  0xb1   : > { %26829 = vmatmul.mubr.msk.f32.gmra.mxu0 %vm727_vm0, %v25366_v15 }
  0xb2   : > { %26831 = vmatprep.mubr.msk.f32.mxu0 %vm727_vm0, %v25367_v18  ;;  %v507_v20 = vpop.permute.xlu0 %506  ;;  %v514_v21 = vpop.permute.xlu1 %513 }
  0xb3   : > { %vm641_vm15 = vcmp.eq.s32.totalorder %v507_v20, %v29434_v52  ;;  %vm642_vm1 = vcmp.eq.s32.totalorder %v514_v21, %v29434_v52 }
  0xb4   : > { %v25369_v22 = vsel %vm641_vm15, 1.0, %v35329_v55  ;;  %v25370_v23 = vsel %vm642_vm1, 1.0, %v35329_v55 }
  0xb5   : > { %26832 = vmatmul.mubr.msk.f32.gmra.mxu0 %vm727_vm0, %v25368_v19  ;;  %v1646_v19 = vld [vmem:[#allocation2 + $0x60] sm:$0xff] }
  0xb6   : > { %26834 = vmatprep.mubr.msk.f32.mxu0 %vm727_vm0, %v25369_v22  ;;  %v521_v24 = vpop.permute.xlu0 %520  ;;  %v528_v25 = vpop.permute.xlu1 %527 }
  0xb7   : > { %vm643_vm2 = vcmp.eq.s32.totalorder %v521_v24, %v29434_v52  ;;  %vm644_vm3 = vcmp.eq.s32.totalorder %v528_v25, %v29434_v52 }
  0xb8   : > { %v25371_v26 = vsel %vm643_vm2, 1.0, %v35329_v55  ;;  %v25372_v27 = vsel %vm644_vm3, 1.0, %v35329_v55  ;;  %vm29305_vm3 = vmmov 0  }
  0xb9   : > { %26835 = vmatmul.mubr.msk.f32.gmra.mxu0 %vm727_vm0, %v25370_v23 }
  0xba   : > { %26837 = vmatprep.mubr.msk.f32.mxu0 %vm727_vm0, %v25371_v26  ;;  %v535_v28 = vpop.permute.xlu0 %534  ;;  %v542_v29 = vpop.permute.xlu1 %541 }
  0xbb   : > { %vm645_vm4 = vcmp.eq.s32.totalorder %v535_v28, %v29434_v52  ;;  %vm646_vm5 = vcmp.eq.s32.totalorder %v542_v29, %v29434_v52 }
  0xbc   : > { %v25373_v30 = vsel %vm645_vm4, 1.0, %v35329_v55  ;;  %v25374_v31 = vsel %vm646_vm5, 1.0, %v35329_v55  ;;  %vm1881_vm4 = vcmp.lt.s32.totalorder %v29434_v52, 8 }
  0xbd   : > { %26838 = vmatmul.mubr.msk.f32.gmra.mxu0 %vm727_vm0, %v25372_v27 }
  0xbe   : > { %26840 = vmatprep.mubr.msk.f32.mxu0 %vm727_vm0, %v25373_v30  ;;  %v549_v32 = vpop.permute.xlu0 %548  ;;  %v556_v33 = vpop.permute.xlu1 %555 }
  0xbf   : > { %vm648_vm6 = vcmp.eq.s32.totalorder %v556_v33, %v29434_v52  ;;  %vm647_vm7 = vcmp.eq.s32.totalorder %v549_v32, %v29434_v52 }
  0xc0   : > { %v25376_v34 = vsel %vm648_vm6, 1.0, %v35329_v55  ;;  %v25375_v35 = vsel %vm647_vm7, 1.0, %v35329_v55  ;;  %vm4524_vm6 = vcmask 64512  }
  0xc1   : > { %26841 = vmatmul.mubr.msk.f32.gmra.mxu0 %vm727_vm0, %v25374_v31  ;;  %26843 = vmatprep.mubr.msk.f32.mxu1 %vm727_vm0, %v25375_v35 }
  0xc2   : > { %26844 = vmatmul.mubr.msk.f32.vlgmr.msra.gmra.mxu1 %vm727_vm0, %v25376_v34  ;;  %v563_v36 = vpop.permute.xlu0 %562  ;;  %v570_v37 = vpop.permute.xlu1 %569 }
  0xc3   : > { %vm649_vm8 = vcmp.eq.s32.totalorder %v563_v36, %v29434_v52  ;;  %vm650_vm9 = vcmp.eq.s32.totalorder %v570_v37, %v29434_v52  ;;  %26862 = vmatpush3.msra.mxu1 %v29426_v46 }
  0xc4   : > { %v25377_v38 = vsel %vm649_vm8, 1.0, %v35329_v55  ;;  %v25378_v39 = vsel %vm650_vm9, 1.0, %v35329_v55  ;;  %26863 = vmatprep.subr.mxu1 %v1084_v58 }
  0xc5   : > { %26846 = vmatprep.mubr.msk.f32.mxu1 %vm727_vm0, %v25377_v38  ;;  %26864 = vmatpush3.msra.mxu1 %v1084_v58 }
  0xc6   : > { %26847 = vmatmul.mubr.msk.f32.gmra.mxu1 %vm727_vm0, %v25378_v39  ;;  %v577_v40 = vpop.permute.xlu0 %576  ;;  %v584_v41 = vpop.permute.xlu1 %583  ;;  %26865 = vmatprep.subr.mxu1 %v1083_v60 }
  0xc7   : > { %vm651_vm10 = vcmp.eq.s32.totalorder %v577_v40, %v29434_v52  ;;  %vm652_vm11 = vcmp.eq.s32.totalorder %v584_v41, %v29434_v52  ;;  %26866 = vmatpush3.msra.mxu1 %v1083_v60 }
  0xc8   : > { %v25379_v42 = vsel %vm651_vm10, 1.0, %v35329_v55  ;;  %v25380_v43 = vsel %vm652_vm11, 1.0, %v35329_v55  ;;  %26867 = vmatprep.subr.mxu1 %v1082_v62 }
  0xc9   : > { %26849 = vmatprep.mubr.msk.f32.mxu1 %vm727_vm0, %v25379_v42  ;;  %26868 = vmatpush3.msra.mxu1 %v1082_v62 }
  0xca   : > { %26850 = vmatmul.mubr.msk.f32.gmra.mxu1 %vm727_vm0, %v25380_v43  ;;  %v591_v44 = vpop.permute.xlu0 %590  ;;  %v598_v45 = vpop.permute.xlu1 %597  ;;  %26973 = vmatprep.subr.mxu1 %v1649_v0 }
  0xcb   : > { %vm653_vm12 = vcmp.eq.s32.totalorder %v591_v44, %v29434_v52  ;;  %vm654_vm13 = vcmp.eq.s32.totalorder %v598_v45, %v29434_v52 }
  0xcc   : > { %v25381_v46 = vsel %vm653_vm12, 1.0, %v35329_v55  ;;  %v25382_v47 = vsel %vm654_vm13, 1.0, %v35329_v55 }
  0xcd   : > { %26852 = vmatprep.mubr.msk.f32.mxu1 %vm727_vm0, %v25381_v46 }
  0xce   : > { %26853 = vmatmul.mubr.msk.f32.gmra.mxu1 %vm727_vm0, %v25382_v47  ;;  %v605_v48 = vpop.permute.xlu0 %604  ;;  %v612_v49 = vpop.permute.xlu1 %611 }
  0xcf   : > { %vm655_vm14 = vcmp.eq.s32.totalorder %v605_v48, %v29434_v52  ;;  %vm656_vm15 = vcmp.eq.s32.totalorder %v612_v49, %v29434_v52 }
  0xd0   : > { %v25383_v50 = vsel %vm655_vm14, 1.0, %v35329_v55  ;;  %v25384_v51 = vsel %vm656_vm15, 1.0, %v35329_v55 }
  0xd1   : > { %26855 = vmatprep.mubr.msk.f32.mxu1 %vm727_vm0, %v25383_v50 }
  0xd2   : > { %26856 = vmatmul.mubr.msk.f32.gmra.mxu1 %vm727_vm0, %v25384_v51  ;;  %v619_v53 = vpop.permute.xlu0 %618  ;;  %v626_v54 = vpop.permute.xlu1 %625 }
  0xd3   : > { %vm657_vm1 = vcmp.eq.s32.totalorder %v619_v53, %v29434_v52  ;;  %vm658_vm2 = vcmp.eq.s32.totalorder %v626_v54, %v29434_v52 }
  0xd4   : > { %v25385_v56 = vsel %vm657_vm1, 1.0, %v35329_v55  ;;  %v25386_v57 = vsel %vm658_vm2, 1.0, %v35329_v55 }
  0xd5   : > { %26858 = vmatprep.mubr.msk.f32.mxu1 %vm727_vm0, %v25385_v56 }
  0xd6   : > { %26859 = vmatmul.mubr.msk.f32.gmra.mxu1 %vm727_vm0, %v25386_v57 }
 0x15d   : > { %v26815_v3 = vpop.f32.mrf.mxu0 }
 0x15e   : > { %v29543_v7 = vadd.f32 %v26815_v3, %v29537_v4 }
 0x15f   : > { %v890_v5 = vpop.f32.mrf.mxu0 }
 0x160   : > { %v29540_v6 = vadd.f32 %v29537_v4, %v890_v5  ;;  %35614 = vst [vmem:[#allocation7_spill] sm:$0xff] %v29543_v7 }
 0x161   : > { %v26818_v8 = vpop.f32.mrf.mxu0 }
 0x162   : > { %35613 = vst [vmem:[#allocation6_spill] sm:$0xff] %v29540_v6  ;;  %26869 = vmatprep.mubr.msk.f32.mxu1 %vm727_vm0, %v29540_v6  ;;  %26925 = vmatprep.mubr.msk.f32.mxu0 %vm727_vm0, %v29540_v6  ;;  %v29557_v12 = vadd.f32 %v26818_v8, %v29537_v4 }
 0x163   : > { %v900_v10 = vpop.f32.mrf.mxu0  ;;  %26870 = vmatmul.mubr.msk.f32.vlgmr.msra.gmra.mxu1 %vm727_vm0, %v29543_v7  ;;  %26926 = vmatmul.mubr.msk.f32.vlgmr.msra.gmra.mxu0 %vm727_vm0, %v29543_v7 }
 0x164   : > { %v29554_v11 = vadd.f32 %v29537_v4, %v900_v10  ;;  %26974 = vmatpush3.msra.mxu1 %v1649_v0  ;;  %35616 = vst [vmem:[#allocation9_spill] sm:$0xff] %v29557_v12 }
 0x165   : > { %v26821_v13 = vpop.f32.mrf.mxu0  ;;  %26975 = vmatprep.subr.mxu1 %v1648_v9 }
 0x166   : > { %35615 = vst [vmem:[#allocation8_spill] sm:$0xff] %v29554_v11  ;;  %26872 = vmatprep.mubr.msk.f32.mxu1 %vm727_vm0, %v29554_v11  ;;  %26928 = vmatprep.mubr.msk.f32.mxu0 %vm727_vm0, %v29554_v11  ;;  %v29564_v15 = vadd.f32 %v26821_v13, %v29537_v4 }
 0x167   : > { %v910_v16 = vpop.f32.mrf.mxu0  ;;  %26873 = vmatmul.mubr.msk.f32.gmra.mxu1 %vm727_vm0, %v29557_v12  ;;  %26929 = vmatmul.mubr.msk.f32.gmra.mxu0 %vm727_vm0, %v29557_v12 }
 0x168   : > { %35617 = vst [vmem:[#allocation10_spill] sm:$0xff] %v29564_v15  ;;  %v29571_v17 = vadd.f32 %v29537_v4, %v910_v16  ;;  %26976 = vmatpush3.msra.mxu1 %v1648_v9 }
 0x169   : > { %v26824_v18 = vpop.f32.mrf.mxu0  ;;  %26977 = vmatprep.subr.mxu1 %v1647_v14 }
 0x16a   : > { %35618 = vst [vmem:[#allocation11_spill] sm:$0xff] %v29571_v17  ;;  %26875 = vmatprep.mubr.msk.f32.mxu1 %vm727_vm0, %v29571_v17  ;;  %26931 = vmatprep.mubr.msk.f32.mxu0 %vm727_vm0, %v29571_v17  ;;  %v29578_v20 = vadd.f32 %v26824_v18, %v29537_v4  ;;  %v29841_v18 = vld [vmem:[%s35327_s2 + $0x1] ss:$0 sm:$0xff] }
 0x16b   : > { %v920_v21 = vpop.f32.mrf.mxu0  ;;  %26876 = vmatmul.mubr.msk.f32.gmra.mxu1 %vm727_vm0, %v29564_v15  ;;  %26932 = vmatmul.mubr.msk.f32.gmra.mxu0 %vm727_vm0, %v29564_v15 }
 0x16c   : > { %35619 = vst [vmem:[#allocation12_spill] sm:$0xff] %v29578_v20  ;;  %v29585_v22 = vadd.f32 %v29537_v4, %v920_v21  ;;  %26978 = vmatpush3.msra.mxu1 %v1647_v14  ;;  %v29844_v21 = vsel %vm1881_vm4, 1.0, %v35329_v55 }
 0x16d   : > { %v26827_v23 = vpop.f32.mrf.mxu0  ;;  %26979 = vmatprep.subr.mxu1 %v1646_v19  ;;  %35645 = vst [vmem:[#allocation38_spill] sm:$0xff] %v29844_v21 }
 0x16e   : > { %35620 = vst [vmem:[#allocation13_spill] sm:$0xff] %v29585_v22  ;;  %26878 = vmatprep.mubr.msk.f32.mxu1 %vm727_vm0, %v29585_v22  ;;  %26934 = vmatprep.mubr.msk.f32.mxu0 %vm727_vm0, %v29585_v22  ;;  %v29592_v24 = vadd.f32 %v26827_v23, %v29537_v4 }
 0x16f   : > { %v930_v25 = vpop.f32.mrf.mxu0  ;;  %26879 = vmatmul.mubr.msk.f32.gmra.mxu1 %vm727_vm0, %v29578_v20  ;;  %26935 = vmatmul.mubr.msk.f32.gmra.mxu0 %vm727_vm0, %v29578_v20 }
 0x170   : > { %35621 = vst [vmem:[#allocation14_spill] sm:$0xff] %v29592_v24  ;;  %v29599_v26 = vadd.f32 %v29537_v4, %v930_v25  ;;  %26980 = vmatpush3.msra.mxu1 %v1646_v19 }
 0x171   : > { %v26830_v27 = vpop.f32.mrf.mxu0  ;;  %27034 = vmatprep.subr.mxu1 %v35329_v55 }
 0x172   : > { %35622 = vst [vmem:[#allocation15_spill] sm:$0xff] %v29599_v26  ;;  %26881 = vmatprep.mubr.msk.f32.mxu1 %vm727_vm0, %v29599_v26  ;;  %26937 = vmatprep.mubr.msk.f32.mxu0 %vm727_vm0, %v29599_v26  ;;  %v29607_v28 = vadd.f32 %v26830_v27, %v29537_v4 }
 0x173   : > { %v940_v29 = vpop.f32.mrf.mxu0  ;;  %26882 = vmatmul.mubr.msk.f32.gmra.mxu1 %vm727_vm0, %v29592_v24  ;;  %26938 = vmatmul.mubr.msk.f32.gmra.mxu0 %vm727_vm0, %v29592_v24 }
 0x174   : > { %35623 = vst [vmem:[#allocation16_spill] sm:$0xff] %v29607_v28  ;;  %v29614_v30 = vadd.f32 %v29537_v4, %v940_v29 }
 0x175   : > { %v26833_v31 = vpop.f32.mrf.mxu0 }
 0x176   : > { %35624 = vst [vmem:[#allocation17_spill] sm:$0xff] %v29614_v30  ;;  %26884 = vmatprep.mubr.msk.f32.mxu1 %vm727_vm0, %v29614_v30  ;;  %26940 = vmatprep.mubr.msk.f32.mxu0 %vm727_vm0, %v29614_v30  ;;  %v29621_v32 = vadd.f32 %v26833_v31, %v29537_v4 }
 0x177   : > { %v950_v33 = vpop.f32.mrf.mxu0  ;;  %26885 = vmatmul.mubr.msk.f32.gmra.mxu1 %vm727_vm0, %v29607_v28  ;;  %26941 = vmatmul.mubr.msk.f32.gmra.mxu0 %vm727_vm0, %v29607_v28 }
 0x178   : > { %35625 = vst [vmem:[#allocation18_spill] sm:$0xff] %v29621_v32  ;;  %v29628_v34 = vadd.f32 %v29537_v4, %v950_v33 }
 0x179   : > { %v26836_v35 = vpop.f32.mrf.mxu0 }
 0x17a   : > { %35626 = vst [vmem:[#allocation19_spill] sm:$0xff] %v29628_v34  ;;  %26887 = vmatprep.mubr.msk.f32.mxu1 %vm727_vm0, %v29628_v34  ;;  %26943 = vmatprep.mubr.msk.f32.mxu0 %vm727_vm0, %v29628_v34  ;;  %v29635_v36 = vadd.f32 %v26836_v35, %v29537_v4 }
 0x17b   : > { %v960_v37 = vpop.f32.mrf.mxu0  ;;  %26888 = vmatmul.mubr.msk.f32.gmra.mxu1 %vm727_vm0, %v29621_v32  ;;  %26944 = vmatmul.mubr.msk.f32.gmra.mxu0 %vm727_vm0, %v29621_v32 }
 0x17c   : > { %35627 = vst [vmem:[#allocation20_spill] sm:$0xff] %v29635_v36  ;;  %v29642_v38 = vadd.f32 %v29537_v4, %v960_v37 }
 0x17d   : > { %v26839_v39 = vpop.f32.mrf.mxu0 }
 0x17e   : > { %35628 = vst [vmem:[#allocation21_spill] sm:$0xff] %v29642_v38  ;;  %26890 = vmatprep.mubr.msk.f32.mxu1 %vm727_vm0, %v29642_v38  ;;  %26946 = vmatprep.mubr.msk.f32.mxu0 %vm727_vm0, %v29642_v38  ;;  %v29649_v40 = vadd.f32 %v26839_v39, %v29537_v4 }
 0x17f   : > { %v970_v41 = vpop.f32.mrf.mxu0  ;;  %26891 = vmatmul.mubr.msk.f32.gmra.mxu1 %vm727_vm0, %v29635_v36  ;;  %26947 = vmatmul.mubr.msk.f32.gmra.mxu0 %vm727_vm0, %v29635_v36 }
 0x180   : > { %35629 = vst [vmem:[#allocation22_spill] sm:$0xff] %v29649_v40  ;;  %v29656_v42 = vadd.f32 %v29537_v4, %v970_v41 }
 0x181   : > { %v26842_v43 = vpop.f32.mrf.mxu0 }
 0x182   : > { %35630 = vst [vmem:[#allocation23_spill] sm:$0xff] %v29656_v42  ;;  %26893 = vmatprep.mubr.msk.f32.mxu1 %vm727_vm0, %v29656_v42  ;;  %26949 = vmatprep.mubr.msk.f32.mxu0 %vm727_vm0, %v29656_v42  ;;  %v26845_v44 = vpop.f32.mrf.mxu1  ;;  %v29663_v45 = vadd.f32 %v26842_v43, %v29537_v4 }
 0x183   : > { %v980_v46 = vpop.f32.mrf.mxu0  ;;  %26894 = vmatmul.mubr.msk.f32.gmra.mxu1 %vm727_vm0, %v29649_v40  ;;  %26950 = vmatmul.mubr.msk.f32.gmra.mxu0 %vm727_vm0, %v29649_v40  ;;  %v29680_v51 = vadd.f32 %v26845_v44, %v29537_v4 }
 0x184   : > { %35631 = vst [vmem:[#allocation24_spill] sm:$0xff] %v29663_v45  ;;  %v29670_v47 = vadd.f32 %v29537_v4, %v980_v46  ;;  %v990_v48 = vpop.f32.mrf.mxu1 }
 0x185   : > { %v29673_v49 = vadd.f32 %v29537_v4, %v990_v48  ;;  %35634 = vst [vmem:[#allocation27_spill] sm:$0xff] %v29680_v51 }
 0x186   : > { %35632 = vst [vmem:[#allocation25_spill] sm:$0xff] %v29670_v47  ;;  %26896 = vmatprep.mubr.msk.f32.mxu1 %vm727_vm0, %v29670_v47  ;;  %26952 = vmatprep.mubr.msk.f32.mxu0 %vm727_vm0, %v29670_v47  ;;  %v26848_v50 = vpop.f32.mrf.mxu1 }
 0x187   : > { %35633 = vst [vmem:[#allocation26_spill] sm:$0xff] %v29673_v49  ;;  %26897 = vmatmul.mubr.msk.f32.gmra.mxu1 %vm727_vm0, %v29663_v45  ;;  %26953 = vmatmul.mubr.msk.f32.gmra.mxu0 %vm727_vm0, %v29663_v45  ;;  %v29694_v57 = vadd.f32 %v26848_v50, %v29537_v4 }
 0x188   : > { %26899 = vmatprep.mubr.msk.f32.mxu1 %vm727_vm0, %v29673_v49  ;;  %26955 = vmatprep.mubr.msk.f32.mxu0 %vm727_vm0, %v29673_v49  ;;  %v1000_v53 = vpop.f32.mrf.mxu1 }
 0x189   : > { %v29691_v54 = vadd.f32 %v29537_v4, %v1000_v53  ;;  %35636 = vst [vmem:[#allocation29_spill] sm:$0xff] %v29694_v57 }
 0x18a   : > { %v26851_v56 = vpop.f32.mrf.mxu1 }
 0x18b   : > { %35635 = vst [vmem:[#allocation28_spill] sm:$0xff] %v29691_v54  ;;  %26900 = vmatmul.mubr.msk.f32.gmra.mxu1 %vm727_vm0, %v29680_v51  ;;  %26956 = vmatmul.mubr.msk.f32.gmra.mxu0 %vm727_vm0, %v29680_v51  ;;  %v29708_v61 = vadd.f32 %v26851_v56, %v29537_v4 }
 0x18c   : > { %26902 = vmatprep.mubr.msk.f32.mxu1 %vm727_vm0, %v29691_v54  ;;  %26958 = vmatprep.mubr.msk.f32.mxu0 %vm727_vm0, %v29691_v54  ;;  %v1010_v58 = vpop.f32.mrf.mxu1 }
 0x18d   : > { %v29705_v59 = vadd.f32 %v29537_v4, %v1010_v58  ;;  %35638 = vst [vmem:[#allocation31_spill] sm:$0xff] %v29708_v61 }
 0x18e   : > { %v26854_v60 = vpop.f32.mrf.mxu1 }
 0x18f   : > { %35637 = vst [vmem:[#allocation30_spill] sm:$0xff] %v29705_v59  ;;  %26903 = vmatmul.mubr.msk.f32.gmra.mxu1 %vm727_vm0, %v29694_v57  ;;  %26959 = vmatmul.mubr.msk.f32.gmra.mxu0 %vm727_vm0, %v29694_v57  ;;  %v29722_v3 = vadd.f32 %v26854_v60, %v29537_v4 }
 0x190   : > { %26905 = vmatprep.mubr.msk.f32.mxu1 %vm727_vm0, %v29705_v59  ;;  %26961 = vmatprep.mubr.msk.f32.mxu0 %vm727_vm0, %v29705_v59  ;;  %v1020_v62 = vpop.f32.mrf.mxu1 }
 0x191   : > { %v29719_v63 = vadd.f32 %v29537_v4, %v1020_v62  ;;  %35640 = vst [vmem:[#allocation33_spill] sm:$0xff] %v29722_v3 }
 0x192   : > { %v26857_v0 = vpop.f32.mrf.mxu1 }
 0x193   : > { %35639 = vst [vmem:[#allocation32_spill] sm:$0xff] %v29719_v63  ;;  %26906 = vmatmul.mubr.msk.f32.gmra.mxu1 %vm727_vm0, %v29708_v61  ;;  %26962 = vmatmul.mubr.msk.f32.gmra.mxu0 %vm727_vm0, %v29708_v61  ;;  %v29736_v10 = vadd.f32 %v26857_v0, %v29537_v4 }
 0x194   : > { %26908 = vmatprep.mubr.msk.f32.mxu1 %vm727_vm0, %v29719_v63  ;;  %26964 = vmatprep.mubr.msk.f32.mxu0 %vm727_vm0, %v29719_v63  ;;  %v1030_v5 = vpop.f32.mrf.mxu1 }
 0x195   : > { %v29733_v8 = vadd.f32 %v29537_v4, %v1030_v5  ;;  %35642 = vst [vmem:[#allocation35_spill] sm:$0xff] %v29736_v10 }
 0x196   : > { %v26860_v9 = vpop.f32.mrf.mxu1 }
 0x197   : > { %35641 = vst [vmem:[#allocation34_spill] sm:$0xff] %v29733_v8  ;;  %26909 = vmatmul.mubr.msk.f32.gmra.mxu1 %vm727_vm0, %v29722_v3  ;;  %26965 = vmatmul.mubr.msk.f32.gmra.mxu0 %vm727_vm0, %v29722_v3  ;;  %v29750_v16 = vadd.f32 %v26860_v9, %v29537_v4 }
 0x198   : > { %26911 = vmatprep.mubr.msk.f32.mxu1 %vm727_vm0, %v29733_v8  ;;  %26967 = vmatprep.mubr.msk.f32.mxu0 %vm727_vm0, %v29733_v8  ;;  %v1040_v13 = vpop.f32.mrf.mxu1 }
 0x199   : > { %v29747_v14 = vadd.f32 %v29537_v4, %v1040_v13  ;;  %35644 = vst [vmem:[#allocation37_spill] sm:$0xff] %v29750_v16  ;;  %v29836_v4 = vld [vmem:[%s35327_s2] ss:$0 sm:$0xff] }
 0x19b   : > { %35643 = vst [vmem:[#allocation36_spill] sm:$0xff] %v29747_v14  ;;  %26912 = vmatmul.mubr.msk.f32.gmra.mxu1 %vm727_vm0, %v29736_v10  ;;  %26968 = vmatmul.mubr.msk.f32.gmra.mxu0 %vm727_vm0, %v29736_v10 }
 0x19c   : > { %26914 = vmatprep.mubr.msk.f32.mxu1 %vm727_vm0, %v29747_v14  ;;  %26970 = vmatprep.mubr.msk.f32.mxu0 %vm727_vm0, %v29747_v14 }
 0x19f   : > { %26915 = vmatmul.mubr.msk.f32.gmra.mxu1 %vm727_vm0, %v29750_v16  ;;  %26971 = vmatmul.mubr.msk.f32.gmra.mxu0 %vm727_vm0, %v29750_v16 }
 0x1a0   : > { %26981 = vmatprep.mubr.msk.f32.mxu1 %vm727_vm0, %v29540_v6  ;;  %27031 = vmatprep.mubr.msk.f32.mxu0 %vm29305_vm3, %v35329_v55 }
 0x1a3   : > { %26982 = vmatmul.mubr.msk.f32.vlgmr.msra.gmra.mxu1 %vm727_vm0, %v29543_v7 }
 0x1a4   : > { %26984 = vmatprep.mubr.msk.f32.mxu1 %vm727_vm0, %v29554_v11 }
 0x1a7   : > { %26985 = vmatmul.mubr.msk.f32.gmra.mxu1 %vm727_vm0, %v29557_v12 }
 0x1a8   : > { %26987 = vmatprep.mubr.msk.f32.mxu1 %vm727_vm0, %v29571_v17 }
 0x1ab   : > { %26988 = vmatmul.mubr.msk.f32.gmra.mxu1 %vm727_vm0, %v29564_v15 }
 0x1ac   : > { %26990 = vmatprep.mubr.msk.f32.mxu1 %vm727_vm0, %v29585_v22 }
 0x1af   : > { %26991 = vmatmul.mubr.msk.f32.gmra.mxu1 %vm727_vm0, %v29578_v20 }
 0x1b0   : > { %26993 = vmatprep.mubr.msk.f32.mxu1 %vm727_vm0, %v29599_v26 }
 0x1b3   : > { %26994 = vmatmul.mubr.msk.f32.gmra.mxu1 %vm727_vm0, %v29592_v24 }
 0x1b4   : > { %26996 = vmatprep.mubr.msk.f32.mxu1 %vm727_vm0, %v29614_v30 }
 0x1b7   : > { %26997 = vmatmul.mubr.msk.f32.gmra.mxu1 %vm727_vm0, %v29607_v28 }
 0x1b8   : > { %26999 = vmatprep.mubr.msk.f32.mxu1 %vm727_vm0, %v29628_v34 }
 0x1bb   : > { %27000 = vmatmul.mubr.msk.f32.gmra.mxu1 %vm727_vm0, %v29621_v32 }
 0x1bc   : > { %27002 = vmatprep.mubr.msk.f32.mxu1 %vm727_vm0, %v29642_v38 }
 0x1bf   : > { %27003 = vmatmul.mubr.msk.f32.gmra.mxu1 %vm727_vm0, %v29635_v36 }
 0x1c0   : > { %27005 = vmatprep.mubr.msk.f32.mxu1 %vm727_vm0, %v29656_v42 }
 0x1c3   : > { %27006 = vmatmul.mubr.msk.f32.gmra.mxu1 %vm727_vm0, %v29649_v40 }
 0x1c4   : > { %27008 = vmatprep.mubr.msk.f32.mxu1 %vm727_vm0, %v29670_v47 }
 0x1c7   : > { %27009 = vmatmul.mubr.msk.f32.gmra.mxu1 %vm727_vm0, %v29663_v45 }
 0x1c8   : > { %27011 = vmatprep.mubr.msk.f32.mxu1 %vm727_vm0, %v29673_v49 }
 0x1cb   : > { %27012 = vmatmul.mubr.msk.f32.gmra.mxu1 %vm727_vm0, %v29680_v51 }
 0x1cc   : > { %27014 = vmatprep.mubr.msk.f32.mxu1 %vm727_vm0, %v29691_v54 }
 0x1cf   : > { %27015 = vmatmul.mubr.msk.f32.gmra.mxu1 %vm727_vm0, %v29694_v57 }
 0x1d0   : > { %27017 = vmatprep.mubr.msk.f32.mxu1 %vm727_vm0, %v29705_v59 }
 0x1d3   : > { %27018 = vmatmul.mubr.msk.f32.gmra.mxu1 %vm727_vm0, %v29708_v61 }
 0x1d4   : > { %27020 = vmatprep.mubr.msk.f32.mxu1 %vm727_vm0, %v29719_v63 }
 0x1d7   : > { %27021 = vmatmul.mubr.msk.f32.gmra.mxu1 %vm727_vm0, %v29722_v3 }
 0x1d8   : > { %27023 = vmatprep.mubr.msk.f32.mxu1 %vm727_vm0, %v29733_v8 }
 0x1db   : > { %27024 = vmatmul.mubr.msk.f32.gmra.mxu1 %vm727_vm0, %v29736_v10 }
 0x1dc   : > { %27026 = vmatprep.mubr.msk.f32.mxu1 %vm727_vm0, %v29747_v14 }
 0x1df   : > { %27027 = vmatmul.mubr.msk.f32.gmra.mxu1 %vm727_vm0, %v29750_v16 }
 0x1e0   : > { %27036 = vmatprep.mubr.msk.f32.mxu1 %vm29305_vm3, %v35329_v55 }
 0x223   : > { %v26871_v19 = vpop.f32.mrf.mxu1  ;;  %v26927_v23 = vpop.f32.mrf.mxu0 }
 0x224   : > { %v29847_v25 = vadd.f32 %v26871_v19, %v29836_v4  ;;  %v29850_v27 = vadd.f32 %v26927_v23, %v29841_v18 }
 0x225   : > { %v1253_v29 = vpop.f32.mrf.mxu1  ;;  %v1487_v31 = vpop.f32.mrf.mxu0 }
 0x226   : > { %35646 = vst [vmem:[#allocation39_spill] sm:$0xff] %v29847_v25  ;;  %35647 = vst [vmem:[#allocation40_spill] sm:$0xff] %v29850_v27  ;;  %v1901_v33 = vmul.f32 %v29844_v21, %v29847_v25  ;;  %27035 = vmatpush3.xpose.msk.msra.mxu1 %vm727_vm0, %v29850_v27  ;;  %v29857_v35 = vadd.f32 %v29836_v4, %v1253_v29  ;;  %v29860_v37 = vadd.f32 %v29841_v18, %v1487_v31 }
 0x227   : > { %v26874_v39 = vpop.f32.mrf.mxu1  ;;  %v26930_v41 = vpop.f32.mrf.mxu0  ;;  %27044 = vmatprep.subr.mxu1 %v35329_v55 }
 0x228   : > { %35648 = vst [vmem:[#allocation41_spill] sm:$0xff] %v29857_v35  ;;  %35649 = vst [vmem:[#allocation42_spill] sm:$0xff] %v29860_v37  ;;  %v29864_v43 = vadd.f32 %v26874_v39, %v29836_v4  ;;  %v29867_v44 = vadd.f32 %v26930_v41, %v29841_v18  ;;  %v1900_v46 = vmul.f32 %v29844_v21, %v29857_v35  ;;  %27030 = vmatpush3.xpose.msk.msra.mxu0 %vm727_vm0, %v29860_v37 }
 0x229   : > { %v1263_v48 = vpop.f32.mrf.mxu1  ;;  %v1497_v50 = vpop.f32.mrf.mxu0  ;;  %27037 = vmatmul.mubr.msk.f32.vlgmr.msra.gmra.mxu1 %vm727_vm0, %v1901_v33  ;;  %27039 = vmatprep.subr.mxu0 %v35329_v55 }
 0x22a   : > { %35650 = vst [vmem:[#allocation43_spill] sm:$0xff] %v29864_v43  ;;  %35651 = vst [vmem:[#allocation44_spill] sm:$0xff] %v29867_v44  ;;  %v1903_v53 = vmul.f32 %v29844_v21, %v29864_v43  ;;  %v29877_v56 = vadd.f32 %v29836_v4, %v1263_v48  ;;  %v29880_v58 = vadd.f32 %v29841_v18, %v1497_v50  ;;  %27045 = vmatpush3.xpose.msk.msra.mxu1 %vm727_vm0, %v29867_v44 }
 0x22b   : > { %v26877_v60 = vpop.f32.mrf.mxu1  ;;  %v26933_v62 = vpop.f32.mrf.mxu0  ;;  %27032 = vmatmul.mubr.msk.f32.vlgmr.msra.gmra.mxu0 %vm727_vm0, %v1900_v46  ;;  %27046 = vmatprep.mubr.msk.f32.mxu1 %vm29305_vm3, %v35329_v55 }
 0x22c   : > { %35652 = vst [vmem:[#allocation45_spill] sm:$0xff] %v29877_v56  ;;  %35653 = vst [vmem:[#allocation46_spill] sm:$0xff] %v29880_v58  ;;  %v29886_v0 = vadd.f32 %v26877_v60, %v29836_v4  ;;  %v29889_v5 = vadd.f32 %v26933_v62, %v29841_v18  ;;  %v1902_v9 = vmul.f32 %v29844_v21, %v29877_v56  ;;  %27040 = vmatpush3.xpose.msk.msra.mxu0 %vm727_vm0, %v29880_v58 }
 0x22d   : > { %v1273_v13 = vpop.f32.mrf.mxu1  ;;  %v1507_v19 = vpop.f32.mrf.mxu0  ;;  %27054 = vmatprep.subr.mxu1 %v35329_v55  ;;  %27041 = vmatprep.mubr.msk.f32.mxu0 %vm29305_vm3, %v35329_v55 }
 0x22e   : > { %35654 = vst [vmem:[#allocation47_spill] sm:$0xff] %v29886_v0  ;;  %35655 = vst [vmem:[#allocation48_spill] sm:$0xff] %v29889_v5  ;;  %v29900_v23 = vadd.f32 %v29836_v4, %v1273_v13  ;;  %v29903_v29 = vadd.f32 %v29841_v18, %v1507_v19  ;;  %27047 = vmatmul.mubr.msk.f32.vlgmr.msra.gmra.mxu1 %vm727_vm0, %v1903_v53  ;;  %v1905_v39 = vmul.f32 %v29844_v21, %v29886_v0 }
 0x22f   : > { %v26880_v31 = vpop.f32.mrf.mxu1  ;;  %v26936_v33 = vpop.f32.mrf.mxu0  ;;  %27055 = vmatpush3.xpose.msk.msra.mxu1 %vm727_vm0, %v29889_v5  ;;  %27042 = vmatmul.mubr.msk.f32.vlgmr.msra.gmra.mxu0 %vm727_vm0, %v1902_v9 }
 0x230   : > { %35656 = vst [vmem:[#allocation49_spill] sm:$0xff] %v29900_v23  ;;  %35657 = vst [vmem:[#allocation50_spill] sm:$0xff] %v29903_v29  ;;  %v29914_v41 = vadd.f32 %v26936_v33, %v29841_v18  ;;  %27049 = vmatprep.subr.mxu0 %v35329_v55  ;;  %v1904_v50 = vmul.f32 %v29844_v21, %v29900_v23  ;;  %v29920_v53 = vadd.f32 %v26880_v31, %v29836_v4 }
 0x231   : > { %v1283_v46 = vpop.f32.mrf.mxu1  ;;  %v1517_v48 = vpop.f32.mrf.mxu0  ;;  %27050 = vmatpush3.xpose.msk.msra.mxu0 %vm727_vm0, %v29903_v29  ;;  %27056 = vmatprep.mubr.msk.f32.mxu1 %vm29305_vm3, %v35329_v55 }
 0x232   : > { %35658 = vst [vmem:[#allocation51_spill] sm:$0xff] %v29914_v41  ;;  %35659 = vst [vmem:[#allocation52_spill] sm:$0xff] %v29920_v53  ;;  %v29925_v60 = vadd.f32 %v29836_v4, %v1283_v46  ;;  %27064 = vmatprep.subr.mxu1 %v35329_v55  ;;  %v29931_v13 = vadd.f32 %v29841_v18, %v1517_v48  ;;  %27051 = vmatprep.mubr.msk.f32.mxu0 %vm29305_vm3, %v35329_v55 }
 0x233   : > { %v26883_v62 = vpop.f32.mrf.mxu1  ;;  %v26939_v9 = vpop.f32.mrf.mxu0  ;;  %27057 = vmatmul.mubr.msk.f32.vlgmr.msra.gmra.mxu1 %vm727_vm0, %v1905_v39  ;;  %v1907_v33 = vmul.f32 %v29844_v21, %v29920_v53  ;;  %v35664_v39 = vmov 0.0  }
 0x234   : > { %35660 = vst [vmem:[#allocation53_spill] sm:$0xff] %v29925_v60  ;;  %35661 = vst [vmem:[#allocation54_spill] sm:$0xff] %v29931_v13  ;;  %27065 = vmatpush3.xpose.msk.msra.mxu1 %vm727_vm0, %v29914_v41  ;;  %27052 = vmatmul.mubr.msk.f32.vlgmr.msra.gmra.mxu0 %vm727_vm0, %v1904_v50  ;;  %v1906_v46 = vmul.f32 %v29844_v21, %v29925_v60  ;;  %v29944_v48 = vadd.f32 %v26883_v62, %v29836_v4 }
 0x235   : > { %v1293_v19 = vpop.f32.mrf.mxu1  ;;  %v1527_v31 = vpop.f32.mrf.mxu0  ;;  %v29947_v55 = vadd.f32 %v26939_v9, %v29841_v18  ;;  %27059 = vmatprep.subr.mxu0 %v35664_v39  ;;  %27066 = vmatprep.mubr.msk.f32.mxu1 %vm29305_vm3, %v35664_v39 }
 0x236   : > { %35662 = vst [vmem:[#allocation55_spill] sm:$0xff] %v29944_v48  ;;  %27060 = vmatpush3.xpose.msk.msra.mxu0 %vm727_vm0, %v29931_v13  ;;  %v29955_v50 = vadd.f32 %v29836_v4, %v1293_v19  ;;  %27074 = vmatprep.subr.mxu1 %v35664_v39  ;;  %v29959_v62 = vadd.f32 %v29841_v18, %v1527_v31 }
 0x237   : > { %35663 = vst [vmem:[#allocation56_spill] sm:$0xff] %v29947_v55  ;;  %v26886_v14 = vpop.f32.mrf.mxu1  ;;  %v26942_v16 = vpop.f32.mrf.mxu0  ;;  %27061 = vmatprep.mubr.msk.f32.mxu0 %vm29305_vm3, %v35664_v39  ;;  %27067 = vmatmul.mubr.msk.f32.vlgmr.msra.gmra.mxu1 %vm727_vm0, %v1907_v33  ;;  %v1909_v10 = vmul.f32 %v29844_v21, %v29944_v48 }
 0x238   : > { %35665 = vst [vmem:[#allocation57_spill] sm:$0xff] %v29955_v50  ;;  %35666 = vst [vmem:[#allocation58_spill] sm:$0xff] %v29959_v62  ;;  %27075 = vmatpush3.xpose.msk.msra.mxu1 %vm727_vm0, %v29947_v55  ;;  %v29969_v19 = vadd.f32 %v26886_v14, %v29836_v4  ;;  %v1908_v3 = vmul.f32 %v29844_v21, %v29955_v50  ;;  %v29975_v59 = vadd.f32 %v26942_v16, %v29841_v18 }
 0x239   : > { %v1303_v9 = vpop.f32.mrf.mxu1  ;;  %v1537_v8 = vpop.f32.mrf.mxu0  ;;  %27062 = vmatmul.mubr.msk.f32.vlgmr.msra.gmra.mxu0 %vm727_vm0, %v1906_v46  ;;  %27069 = vmatprep.subr.mxu0 %v35664_v39 }
 0x23a   : > { %35667 = vst [vmem:[#allocation59_spill] sm:$0xff] %v29969_v19  ;;  %35668 = vst [vmem:[#allocation60_spill] sm:$0xff] %v29975_v59  ;;  %v29979_v33 = vadd.f32 %v29836_v4, %v1303_v9  ;;  %27076 = vmatprep.mubr.msk.f32.mxu1 %vm29305_vm3, %v35664_v39  ;;  %27070 = vmatpush3.xpose.msk.msra.mxu0 %vm727_vm0, %v29959_v62  ;;  %v29986_v14 = vadd.f32 %v29841_v18, %v1537_v8 }
 0x23b   : > { %v26889_v31 = vpop.f32.mrf.mxu1  ;;  %v26945_v63 = vpop.f32.mrf.mxu0  ;;  %27084 = vmatprep.subr.mxu1 %v35664_v39  ;;  %27071 = vmatprep.mubr.msk.f32.mxu0 %vm29305_vm3, %v35664_v39  ;;  %v1911_v16 = vmul.f32 %v29844_v21, %v29969_v19  ;;  %v29258_v19 = vld [vmem:[%s29374_s27] sm:$0xff] }
 0x23c   : > { %35669 = vst [vmem:[#allocation61_spill] sm:$0xff] %v29979_v33  ;;  %35670 = vst [vmem:[#allocation62_spill] sm:$0xff] %v29986_v14  ;;  %27077 = vmatmul.mubr.msk.f32.vlgmr.msra.gmra.mxu1 %vm727_vm0, %v1909_v10  ;;  %27079 = vmatprep.subr.mxu0 %v35664_v39  ;;  %v1910_v8 = vmul.f32 %v29844_v21, %v29979_v33  ;;  %v30000_v57 = vadd.f32 %v26889_v31, %v29836_v4  ;;  %vm193_vm5 = vcmp.ne.s32.totalorder %v29258_v19, 1 }
 0x23d   : > { %v1313_v46 = vpop.f32.mrf.mxu1  ;;  %v1547_v61 = vpop.f32.mrf.mxu0  ;;  %27085 = vmatpush3.xpose.msk.msra.mxu1 %vm727_vm0, %v29975_v59  ;;  %v30003_v49 = vadd.f32 %v26945_v63, %v29841_v18  ;;  %27072 = vmatmul.mubr.msk.f32.vlgmr.msra.gmra.mxu0 %vm727_vm0, %v1908_v3  ;;  %v35461_v59 = vmov -1e+09  }
 0x23e   : > { %35671 = vst [vmem:[#allocation63_spill] sm:$0xff] %v30000_v57  ;;  %27080 = vmatpush3.xpose.msk.msra.mxu0 %vm727_vm0, %v29986_v14  ;;  %v30009_v10 = vadd.f32 %v29836_v4, %v1313_v46  ;;  %v30012_v45 = vadd.f32 %v29841_v18, %v1547_v61  ;;  %27086 = vmatprep.mubr.msk.f32.mxu1 %vm29305_vm3, %v35664_v39  ;;  %v197_v33 = vsel %vm193_vm5, 0.0, %v35461_v59  ;;  %v29259_v59 = vld [vmem:[%s29374_s27 + $0x8] sm:$0xff]  ;;  %vm25007_vm5 = vcmask 1041409  }
 0x23f   : > { %v26892_v9 = vpop.f32.mrf.mxu1  ;;  %v26948_v54 = vpop.f32.mrf.mxu0  ;;  %35672 = vst [vmem:[#allocation64_spill] sm:$0xff] %v30003_v49  ;;  %27094 = vmatprep.subr.mxu1 %v35664_v39  ;;  %27081 = vmatprep.mubr.msk.f32.mxu0 %vm29305_vm3, %v35664_v39  ;;  %v1913_v31 = vmul.f32 %v29844_v21, %v30000_v57  ;;  %v205_v55 = vcombine.high %v197_v33, %v197_v33  ;;  %vm194_vm7 = vcmp.ne.s32.totalorder %v29259_v59, 1 }
 0x240   : > { %35673 = vst [vmem:[#allocation65_spill] sm:$0xff] %v30009_v10  ;;  %35674 = vst [vmem:[#allocation66_spill] sm:$0xff] %v30012_v45  ;;  %27087 = vmatmul.mubr.msk.f32.vlgmr.msra.gmra.mxu1 %vm727_vm0, %v1911_v16  ;;  %v30025_v61 = vadd.f32 %v26892_v9, %v29836_v4  ;;  %v1912_v46 = vmul.f32 %v29844_v21, %v30009_v10  ;;  %v30031_v42 = vadd.f32 %v26948_v54, %v29841_v18 }
 0x241   : > { %v1323_v51 = vpop.f32.mrf.mxu1  ;;  %v1557_v47 = vpop.f32.mrf.mxu0  ;;  %27095 = vmatpush3.xpose.msk.msra.mxu1 %vm727_vm0, %v30003_v49  ;;  %27082 = vmatmul.mubr.msk.f32.vlgmr.msra.gmra.mxu0 %vm727_vm0, %v1910_v8 }
 0x242   : > { %35675 = vst [vmem:[#allocation67_spill] sm:$0xff] %v30025_v61  ;;  %35676 = vst [vmem:[#allocation68_spill] sm:$0xff] %v30031_v42  ;;  %27089 = vmatprep.subr.mxu0 %v35664_v39  ;;  %v30035_v16 = vadd.f32 %v29836_v4, %v1323_v51  ;;  %v30040_v9 = vadd.f32 %v29841_v18, %v1557_v47  ;;  %27096 = vmatprep.mubr.msk.f32.mxu1 %vm29305_vm3, %v35664_v39 }
 0x243   : > { %v26895_v63 = vpop.f32.mrf.mxu1  ;;  %v26951_v3 = vpop.f32.mrf.mxu0  ;;  %27090 = vmatpush3.xpose.msk.msra.mxu0 %vm727_vm0, %v30012_v45  ;;  %27104 = vmatprep.subr.mxu1 %v35664_v39  ;;  %v1915_v51 = vmul.f32 %v29844_v21, %v30025_v61 }
 0x244   : > { %35677 = vst [vmem:[#allocation69_spill] sm:$0xff] %v30035_v16  ;;  %35678 = vst [vmem:[#allocation70_spill] sm:$0xff] %v30040_v9  ;;  %27091 = vmatprep.mubr.msk.f32.mxu0 %vm29305_vm3, %v35664_v39  ;;  %27097 = vmatmul.mubr.msk.f32.vlgmr.msra.gmra.mxu1 %vm727_vm0, %v1913_v31  ;;  %v30051_v36 = vadd.f32 %v26895_v63, %v29836_v4  ;;  %v1914_v47 = vmul.f32 %v29844_v21, %v30035_v16 }
 0x245   : > { %v1333_v40 = vpop.f32.mrf.mxu1  ;;  %v1567_v38 = vpop.f32.mrf.mxu0  ;;  %27099 = vmatprep.subr.mxu0 %v35664_v39  ;;  %27105 = vmatpush3.xpose.msk.msra.mxu1 %vm727_vm0, %v30031_v42  ;;  %v30059_v34 = vadd.f32 %v26951_v3, %v29841_v18 }
 0x246   : > { %35679 = vst [vmem:[#allocation71_spill] sm:$0xff] %v30051_v36  ;;  %27092 = vmatmul.mubr.msk.f32.vlgmr.msra.gmra.mxu0 %vm727_vm0, %v1912_v46  ;;  %v30063_v32 = vadd.f32 %v29836_v4, %v1333_v40  ;;  %v30068_v63 = vadd.f32 %v29841_v18, %v1567_v38  ;;  %27106 = vmatprep.mubr.msk.f32.mxu1 %vm29305_vm3, %v35664_v39 }
 0x247   : > { %v26898_v54 = vpop.f32.mrf.mxu1  ;;  %v26954_v8 = vpop.f32.mrf.mxu0  ;;  %35680 = vst [vmem:[#allocation72_spill] sm:$0xff] %v30059_v34  ;;  %27100 = vmatpush3.xpose.msk.msra.mxu0 %vm727_vm0, %v30040_v9  ;;  %27114 = vmatprep.subr.mxu1 %v35664_v39  ;;  %v1917_v40 = vmul.f32 %v29844_v21, %v30051_v36 }
 0x248   : > { %35681 = vst [vmem:[#allocation73_spill] sm:$0xff] %v30063_v32  ;;  %35682 = vst [vmem:[#allocation74_spill] sm:$0xff] %v30068_v63  ;;  %27101 = vmatprep.mubr.msk.f32.mxu0 %vm29305_vm3, %v35664_v39  ;;  %27107 = vmatmul.mubr.msk.f32.vlgmr.msra.gmra.mxu1 %vm727_vm0, %v1915_v51  ;;  %v30079_v28 = vadd.f32 %v26898_v54, %v29836_v4  ;;  %v1916_v38 = vmul.f32 %v29844_v21, %v30063_v32 }
 0x249   : > { %v1343_v31 = vpop.f32.mrf.mxu1  ;;  %v1577_v30 = vpop.f32.mrf.mxu0  ;;  %27109 = vmatprep.subr.mxu0 %v35664_v39  ;;  %27115 = vmatpush3.xpose.msk.msra.mxu1 %vm727_vm0, %v30059_v34  ;;  %v30087_v26 = vadd.f32 %v26954_v8, %v29841_v18 }
 0x24a   : > { %35683 = vst [vmem:[#allocation75_spill] sm:$0xff] %v30079_v28  ;;  %27102 = vmatmul.mubr.msk.f32.vlgmr.msra.gmra.mxu0 %vm727_vm0, %v1914_v47  ;;  %v30091_v24 = vadd.f32 %v29836_v4, %v1343_v31  ;;  %v30096_v54 = vadd.f32 %v29841_v18, %v1577_v30  ;;  %27116 = vmatprep.mubr.msk.f32.mxu1 %vm29305_vm3, %v35664_v39 }
 0x24b   : > { %v26901_v3 = vpop.f32.mrf.mxu1  ;;  %v26957_v46 = vpop.f32.mrf.mxu0  ;;  %35684 = vst [vmem:[#allocation76_spill] sm:$0xff] %v30087_v26  ;;  %27110 = vmatpush3.xpose.msk.msra.mxu0 %vm727_vm0, %v30068_v63  ;;  %27124 = vmatprep.subr.mxu1 %v35664_v39  ;;  %v1919_v31 = vmul.f32 %v29844_v21, %v30079_v28 }
 0x24c   : > { %35685 = vst [vmem:[#allocation77_spill] sm:$0xff] %v30091_v24  ;;  %35686 = vst [vmem:[#allocation78_spill] sm:$0xff] %v30096_v54  ;;  %27111 = vmatprep.mubr.msk.f32.mxu0 %vm29305_vm3, %v35664_v39  ;;  %27117 = vmatmul.mubr.msk.f32.vlgmr.msra.gmra.mxu1 %vm727_vm0, %v1917_v40  ;;  %v30107_v20 = vadd.f32 %v26901_v3, %v29836_v4  ;;  %v1918_v30 = vmul.f32 %v29844_v21, %v30091_v24 }
 0x24d   : > { %v1353_v51 = vpop.f32.mrf.mxu1  ;;  %v1587_v22 = vpop.f32.mrf.mxu0  ;;  %27119 = vmatprep.subr.mxu0 %v35664_v39  ;;  %27125 = vmatpush3.xpose.msk.msra.mxu1 %vm727_vm0, %v30087_v26  ;;  %v30115_v17 = vadd.f32 %v26957_v46, %v29841_v18 }
 0x24e   : > { %35687 = vst [vmem:[#allocation79_spill] sm:$0xff] %v30107_v20  ;;  %27112 = vmatmul.mubr.msk.f32.vlgmr.msra.gmra.mxu0 %vm727_vm0, %v1916_v38  ;;  %v30119_v15 = vadd.f32 %v29836_v4, %v1353_v51  ;;  %v30124_v3 = vadd.f32 %v29841_v18, %v1587_v22  ;;  %27126 = vmatprep.mubr.msk.f32.mxu1 %vm29305_vm3, %v35664_v39 }
 0x24f   : > { %v26904_v8 = vpop.f32.mrf.mxu1  ;;  %v26960_v47 = vpop.f32.mrf.mxu0  ;;  %35688 = vst [vmem:[#allocation80_spill] sm:$0xff] %v30115_v17  ;;  %27120 = vmatpush3.xpose.msk.msra.mxu0 %vm727_vm0, %v30096_v54  ;;  %27134 = vmatprep.subr.mxu1 %v35664_v39  ;;  %v1921_v51 = vmul.f32 %v29844_v21, %v30107_v20 }
 0x250   : > { %35689 = vst [vmem:[#allocation81_spill] sm:$0xff] %v30119_v15  ;;  %35690 = vst [vmem:[#allocation82_spill] sm:$0xff] %v30124_v3  ;;  %27121 = vmatprep.mubr.msk.f32.mxu0 %vm29305_vm3, %v35664_v39  ;;  %27127 = vmatmul.mubr.msk.f32.vlgmr.msra.gmra.mxu1 %vm727_vm0, %v1919_v31  ;;  %v30135_v12 = vadd.f32 %v26904_v8, %v29836_v4  ;;  %v1920_v22 = vmul.f32 %v29844_v21, %v30119_v15 }
 0x251   : > { %v1363_v40 = vpop.f32.mrf.mxu1  ;;  %v1597_v11 = vpop.f32.mrf.mxu0  ;;  %27129 = vmatprep.subr.mxu0 %v35664_v39  ;;  %27135 = vmatpush3.xpose.msk.msra.mxu1 %vm727_vm0, %v30115_v17  ;;  %v30143_v6 = vadd.f32 %v26960_v47, %v29841_v18 }
 0x252   : > { %35691 = vst [vmem:[#allocation83_spill] sm:$0xff] %v30135_v12  ;;  %27122 = vmatmul.mubr.msk.f32.vlgmr.msra.gmra.mxu0 %vm727_vm0, %v1918_v30  ;;  %v30147_v7 = vadd.f32 %v29836_v4, %v1363_v40  ;;  %v30152_v8 = vadd.f32 %v29841_v18, %v1597_v11  ;;  %27136 = vmatprep.mubr.msk.f32.mxu1 %vm29305_vm3, %v35664_v39 }
 0x253   : > { %v26907_v46 = vpop.f32.mrf.mxu1  ;;  %v26963_v38 = vpop.f32.mrf.mxu0  ;;  %35692 = vst [vmem:[#allocation84_spill] sm:$0xff] %v30143_v6  ;;  %27130 = vmatpush3.xpose.msk.msra.mxu0 %vm727_vm0, %v30124_v3  ;;  %27144 = vmatprep.subr.mxu1 %v35664_v39  ;;  %v1923_v40 = vmul.f32 %v29844_v21, %v30135_v12 }
 0x254   : > { %35693 = vst [vmem:[#allocation85_spill] sm:$0xff] %v30147_v7  ;;  %35694 = vst [vmem:[#allocation86_spill] sm:$0xff] %v30152_v8  ;;  %27131 = vmatprep.mubr.msk.f32.mxu0 %vm29305_vm3, %v35664_v39  ;;  %27137 = vmatmul.mubr.msk.f32.vlgmr.msra.gmra.mxu1 %vm727_vm0, %v1921_v51  ;;  %v30163_v17 = vadd.f32 %v26907_v46, %v29836_v4  ;;  %v1922_v11 = vmul.f32 %v29844_v21, %v30147_v7 }
 0x255   : > { %v1373_v31 = vpop.f32.mrf.mxu1  ;;  %v1607_v20 = vpop.f32.mrf.mxu0  ;;  %27139 = vmatprep.subr.mxu0 %v35664_v39  ;;  %27145 = vmatpush3.xpose.msk.msra.mxu1 %vm727_vm0, %v30143_v6  ;;  %v30171_v15 = vadd.f32 %v26963_v38, %v29841_v18 }
 0x256   : > { %35695 = vst [vmem:[#allocation87_spill] sm:$0xff] %v30163_v17  ;;  %27132 = vmatmul.mubr.msk.f32.vlgmr.msra.gmra.mxu0 %vm727_vm0, %v1920_v22  ;;  %v30175_v12 = vadd.f32 %v29836_v4, %v1373_v31  ;;  %v30180_v46 = vadd.f32 %v29841_v18, %v1607_v20  ;;  %27146 = vmatprep.mubr.msk.f32.mxu1 %vm29305_vm3, %v35664_v39 }
 0x257   : > { %v26910_v47 = vpop.f32.mrf.mxu1  ;;  %v26966_v30 = vpop.f32.mrf.mxu0  ;;  %35696 = vst [vmem:[#allocation88_spill] sm:$0xff] %v30171_v15  ;;  %27140 = vmatpush3.xpose.msk.msra.mxu0 %vm727_vm0, %v30152_v8  ;;  %27154 = vmatprep.subr.mxu1 %v35664_v39  ;;  %v1925_v31 = vmul.f32 %v29844_v21, %v30163_v17 }
 0x258   : > { %35697 = vst [vmem:[#allocation89_spill] sm:$0xff] %v30175_v12  ;;  %35698 = vst [vmem:[#allocation90_spill] sm:$0xff] %v30180_v46  ;;  %27141 = vmatprep.mubr.msk.f32.mxu0 %vm29305_vm3, %v35664_v39  ;;  %27147 = vmatmul.mubr.msk.f32.vlgmr.msra.gmra.mxu1 %vm727_vm0, %v1923_v40  ;;  %v30191_v6 = vadd.f32 %v26910_v47, %v29836_v4  ;;  %v1924_v20 = vmul.f32 %v29844_v21, %v30175_v12 }
 0x259   : > { %v1383_v51 = vpop.f32.mrf.mxu1  ;;  %v1617_v3 = vpop.f32.mrf.mxu0  ;;  %27149 = vmatprep.subr.mxu0 %v35664_v39  ;;  %27155 = vmatpush3.xpose.msk.msra.mxu1 %vm727_vm0, %v30171_v15  ;;  %v30199_v7 = vadd.f32 %v26966_v30, %v29841_v18 }
 0x25a   : > { %35699 = vst [vmem:[#allocation91_spill] sm:$0xff] %v30191_v6  ;;  %27142 = vmatmul.mubr.msk.f32.vlgmr.msra.gmra.mxu0 %vm727_vm0, %v1922_v11  ;;  %v30203_v17 = vadd.f32 %v29836_v4, %v1383_v51  ;;  %v30208_v47 = vadd.f32 %v29841_v18, %v1617_v3  ;;  %27156 = vmatprep.mubr.msk.f32.mxu1 %vm29305_vm3, %v35664_v39 }
 0x25b   : > { %v26913_v38 = vpop.f32.mrf.mxu1  ;;  %v26969_v22 = vpop.f32.mrf.mxu0  ;;  %35700 = vst [vmem:[#allocation92_spill] sm:$0xff] %v30199_v7  ;;  %27150 = vmatpush3.xpose.msk.msra.mxu0 %vm727_vm0, %v30180_v46  ;;  %27164 = vmatprep.subr.mxu1 %v35664_v39  ;;  %v1927_v51 = vmul.f32 %v29844_v21, %v30191_v6 }
 0x25c   : > { %35701 = vst [vmem:[#allocation93_spill] sm:$0xff] %v30203_v17  ;;  %35702 = vst [vmem:[#allocation94_spill] sm:$0xff] %v30208_v47  ;;  %27151 = vmatprep.mubr.msk.f32.mxu0 %vm29305_vm3, %v35664_v39  ;;  %27157 = vmatmul.mubr.msk.f32.vlgmr.msra.gmra.mxu1 %vm727_vm0, %v1925_v31  ;;  %v30219_v15 = vadd.f32 %v26913_v38, %v29836_v4  ;;  %v1926_v3 = vmul.f32 %v29844_v21, %v30203_v17 }
 0x25d   : > { %v1393_v40 = vpop.f32.mrf.mxu1  ;;  %v1627_v8 = vpop.f32.mrf.mxu0  ;;  %27159 = vmatprep.subr.mxu0 %v35664_v39  ;;  %27165 = vmatpush3.xpose.msk.msra.mxu1 %vm727_vm0, %v30199_v7  ;;  %v30227_v12 = vadd.f32 %v26969_v22, %v29841_v18 }
 0x25e   : > { %35703 = vst [vmem:[#allocation95_spill] sm:$0xff] %v30219_v15  ;;  %27152 = vmatmul.mubr.msk.f32.vlgmr.msra.gmra.mxu0 %vm727_vm0, %v1924_v20  ;;  %v30231_v6 = vadd.f32 %v29836_v4, %v1393_v40  ;;  %v30236_v38 = vadd.f32 %v29841_v18, %v1627_v8  ;;  %27166 = vmatprep.mubr.msk.f32.mxu1 %vm29305_vm3, %v35664_v39 }
 0x25f   : > { %v26916_v30 = vpop.f32.mrf.mxu1  ;;  %v26972_v11 = vpop.f32.mrf.mxu0  ;;  %35704 = vst [vmem:[#allocation96_spill] sm:$0xff] %v30227_v12  ;;  %27160 = vmatpush3.xpose.msk.msra.mxu0 %vm727_vm0, %v30208_v47  ;;  %27174 = vmatprep.subr.mxu1 %v35664_v39  ;;  %v1929_v40 = vmul.f32 %v29844_v21, %v30219_v15 }
 0x260   : > { %35705 = vst [vmem:[#allocation97_spill] sm:$0xff] %v30231_v6  ;;  %35706 = vst [vmem:[#allocation98_spill] sm:$0xff] %v30236_v38  ;;  %27161 = vmatprep.mubr.msk.f32.mxu0 %vm29305_vm3, %v35664_v39  ;;  %27167 = vmatmul.mubr.msk.f32.vlgmr.msra.gmra.mxu1 %vm727_vm0, %v1927_v51  ;;  %v30247_v7 = vadd.f32 %v26916_v30, %v29836_v4  ;;  %v1928_v8 = vmul.f32 %v29844_v21, %v30231_v6 }
 0x261   : > { %v1403_v31 = vpop.f32.mrf.mxu1  ;;  %v1637_v22 = vpop.f32.mrf.mxu0  ;;  %27169 = vmatprep.subr.mxu0 %v35664_v39  ;;  %27175 = vmatpush3.xpose.msk.msra.mxu1 %vm727_vm0, %v30227_v12  ;;  %v30255_v17 = vadd.f32 %v26972_v11, %v29841_v18  ;;  %v30271_v11 = vld [vmem:[%s35327_s2 + $0x2] ss:$0 sm:$0xff] }
 0x262   : > { %35707 = vst [vmem:[#allocation99_spill] sm:$0xff] %v30247_v7  ;;  %27162 = vmatmul.mubr.msk.f32.vlgmr.msra.gmra.mxu0 %vm727_vm0, %v1926_v3  ;;  %v30259_v15 = vadd.f32 %v29836_v4, %v1403_v31  ;;  %v30264_v30 = vadd.f32 %v29841_v18, %v1637_v22  ;;  %27176 = vmatprep.mubr.msk.f32.mxu1 %vm29305_vm3, %v35664_v39 }
 0x263   : > { %v26983_v20 = vpop.f32.mrf.mxu1  ;;  %35708 = vst [vmem:[#allocation100_spill] sm:$0xff] %v30255_v17  ;;  %27170 = vmatpush3.xpose.msk.msra.mxu0 %vm727_vm0, %v30236_v38  ;;  %27184 = vmatprep.subr.mxu1 %v35664_v39  ;;  %v1931_v3 = vmul.f32 %v29844_v21, %v30247_v7 }
 0x264   : > { %35709 = vst [vmem:[#allocation101_spill] sm:$0xff] %v30259_v15  ;;  %35710 = vst [vmem:[#allocation102_spill] sm:$0xff] %v30264_v30  ;;  %27171 = vmatprep.mubr.msk.f32.mxu0 %vm29305_vm3, %v35664_v39  ;;  %27177 = vmatmul.mubr.msk.f32.vlgmr.msra.gmra.mxu1 %vm727_vm0, %v1929_v40  ;;  %v1930_v31 = vmul.f32 %v29844_v21, %v30259_v15  ;;  %v30288_v22 = vadd.f32 %v26983_v20, %v30271_v11 }
 0x265   : > { %v1721_v51 = vpop.f32.mrf.mxu1  ;;  %27179 = vmatprep.subr.mxu0 %v35664_v39  ;;  %27185 = vmatpush3.xpose.msk.msra.mxu1 %vm727_vm0, %v30255_v17 }
 0x266   : > { %35711 = vst [vmem:[#allocation103_spill] sm:$0xff] %v30288_v22  ;;  %27172 = vmatmul.mubr.msk.f32.vlgmr.msra.gmra.mxu0 %vm727_vm0, %v1928_v8  ;;  %v30296_v40 = vadd.f32 %v30271_v11, %v1721_v51  ;;  %27186 = vmatprep.mubr.msk.f32.mxu1 %vm29305_vm3, %v35664_v39 }
 0x267   : > { %v26986_v4 = vpop.f32.mrf.mxu1  ;;  %27180 = vmatpush3.xpose.msk.msra.mxu0 %vm727_vm0, %v30264_v30  ;;  %27194 = vmatprep.subr.mxu1 %v35664_v39 }
 0x268   : > { %v30281_v18 = vadd.f32 %v26986_v4, %v30271_v11  ;;  %35712 = vst [vmem:[#allocation104_spill] sm:$0xff] %v30296_v40  ;;  %27181 = vmatprep.mubr.msk.f32.mxu0 %vm29305_vm3, %v35664_v39  ;;  %27187 = vmatmul.mubr.msk.f32.vlgmr.msra.gmra.mxu1 %vm727_vm0, %v1931_v3 }
 0x269   : > { %v30291_v12 = vpop.f32.mrf.mxu1  ;;  %27189 = vmatprep.subr.mxu0 %v35664_v39  ;;  %27195 = vmatpush3.msra.mxu1 %v30288_v22 }
 0x26a   : > { %27182 = vmatmul.mubr.msk.f32.vlgmr.msra.gmra.mxu0 %vm727_vm0, %v1930_v31  ;;  %27196 = vmatprep.mubr.msk.f32.mxu1 %vm29305_vm3, %v35664_v39 }
 0x26b   : > { %v26989_v20 = vpop.f32.mrf.mxu1  ;;  %27190 = vmatpush3.msra.mxu0 %v30296_v40  ;;  %27204 = vmatprep.subr.mxu1 %v35664_v39 }
 0x26c   : > { %v30306_v8 = vadd.f32 %v26989_v20, %v30271_v11  ;;  %27191 = vmatprep.mubr.msk.f32.mxu0 %vm29305_vm3, %v35664_v39  ;;  %27199 = vmatprep.subr.mxu0 %v35664_v39 }
 0x26d   : > { %v30310_v51 = vpop.f32.mrf.mxu1 }
 0x26f   : > { %v26992_v4 = vpop.f32.mrf.mxu1 }
 0x270   : > { %v30319_v3 = vadd.f32 %v26992_v4, %v30271_v11 }
 0x271   : > { %v30322_v20 = vpop.f32.mrf.mxu1 }
 0x273   : > { %v26995_v31 = vpop.f32.mrf.mxu1 }
 0x274   : > { %v30325_v21 = vadd.f32 %v26995_v31, %v30271_v11 }
 0x275   : > { %v30327_v22 = vpop.f32.mrf.mxu1 }
 0x277   : > { %v26998_v40 = vpop.f32.mrf.mxu1 }
 0x278   : > { %v30330_v7 = vadd.f32 %v26998_v40, %v30271_v11 }
 0x279   : > { %v30332_v17 = vpop.f32.mrf.mxu1 }
 0x27b   : > { %v27001_v15 = vpop.f32.mrf.mxu1 }
 0x27c   : > { %v30335_v4 = vadd.f32 %v27001_v15, %v30271_v11 }
 0x27d   : > { %v30337_v30 = vpop.f32.mrf.mxu1 }
 0x27f   : > { %v27004_v6 = vpop.f32.mrf.mxu1 }
 0x280   : > { %v30340_v38 = vadd.f32 %v27004_v6, %v30271_v11 }
 0x281   : > { %v30342_v31 = vpop.f32.mrf.mxu1 }
 0x283   : > { %v27007_v47 = vpop.f32.mrf.mxu1 }
 0x284   : > { %v30345_v46 = vadd.f32 %v27007_v47, %v30271_v11 }
 0x285   : > { %v30347_v40 = vpop.f32.mrf.mxu1 }
 0x287   : > { %v27010_v28 = vpop.f32.mrf.mxu1 }
 0x288   : > { %v30350_v26 = vadd.f32 %v27010_v28, %v30271_v11 }
 0x289   : > { %v30352_v15 = vpop.f32.mrf.mxu1 }
 0x28a   : > { %35713 = vst [vmem:[#allocation105_spill] sm:$0xff] %v30350_v26 }
 0x28b   : > { %v27013_v24 = vpop.f32.mrf.mxu1 }
 0x28c   : > { %v30355_v54 = vadd.f32 %v27013_v24, %v30271_v11 }
 0x28d   : > { %v30357_v6 = vpop.f32.mrf.mxu1 }
 0x28e   : > { %35714 = vst [vmem:[#allocation106_spill] sm:$0xff] %v30355_v54  ;;  %35715 = vst [vmem:[#allocation107_spill] sm:$0xff] %v30357_v6 }
 0x28f   : > { %v27016_v36 = vpop.f32.mrf.mxu1 }
 0x290   : > { %v30360_v34 = vadd.f32 %v27016_v36, %v30271_v11 }
 0x291   : > { %v30362_v47 = vpop.f32.mrf.mxu1 }
 0x292   : > { %35716 = vst [vmem:[#allocation108_spill] sm:$0xff] %v30360_v34  ;;  %35717 = vst [vmem:[#allocation109_spill] sm:$0xff] %v30362_v47 }
 0x293   : > { %v27019_v32 = vpop.f32.mrf.mxu1 }
 0x294   : > { %v30365_v63 = vadd.f32 %v27019_v32, %v30271_v11  ;;  %v29306_v32 = vmov 1966171168  }
 0x295   : > { %v30367_v28 = vpop.f32.mrf.mxu1  ;;  %v207_v10 = vunpack.c.l.s4 %v29306_v32 }
 0x296   : > { %35718 = vst [vmem:[#allocation110_spill] sm:$0xff] %v30365_v63  ;;  %35719 = vst [vmem:[#allocation111_spill] sm:$0xff] %v30367_v28 }
 0x297   : > { %v27022_v61 = vpop.f32.mrf.mxu1  ;;  %v208_v45 = vunpack.c.0.s8 %v207_v10 }
 0x298   : > { %v30370_v42 = vadd.f32 %v27022_v61, %v30271_v11 }
 0x299   : > { %v30372_v24 = vpop.f32.mrf.mxu1  ;;  %v30384_v61 = vsub.s32 %v208_v45, %v29358_v1 }
 0x29a   : > { %35720 = vst [vmem:[#allocation112_spill] sm:$0xff] %v30370_v42  ;;  %35721 = vst [vmem:[#allocation113_spill] sm:$0xff] %v30372_v24 }
 0x29b   : > { %v27025_v16 = vpop.f32.mrf.mxu1  ;;  %v219_v19 = vrot.slane %v205_v55, %v30384_v61 }
 0x29c   : > { %v30375_v9 = vadd.f32 %v27025_v16, %v30271_v11  ;;  %v212_v16 = vrot.slane %v197_v33, %v30384_v61 }
 0x29d   : > { %v30377_v36 = vpop.f32.mrf.mxu1  ;;  %v235_v59 = vrot.slane %v219_v19, %v30384_v61 }
 0x29e   : > { %35722 = vst [vmem:[#allocation114_spill] sm:$0xff] %v30375_v9  ;;  %35723 = vst [vmem:[#allocation115_spill] sm:$0xff] %v30377_v36  ;;  %v220_v14 = vcombine.high %v212_v16, %v212_v16 }
 0x29f   : > { %v27028_v57 = vpop.f32.mrf.mxu1  ;;  %v251_v23 = vcombine.high %v235_v59, %v235_v59 }
 0x2a0   : > { %v30380_v49 = vadd.f32 %v27028_v57, %v30271_v11  ;;  %v242_v48 = vrot.slane %v220_v14, %v30384_v61  ;;  %v228_v57 = vrot.slane %v212_v16, %v30384_v61  ;;  %v221_v16 = vcombine.high %v219_v19, %v219_v19 }
 0x2a1   : > { %v30394_v10 = vpop.f32.mrf.mxu1  ;;  %v30424_v19 = vrot.slane %v235_v59, %v29363_v2  ;;  %v30446_v59 = vrot.slane %v251_v23, %v29363_v2 }
 0x2a2   : > { %35724 = vst [vmem:[#allocation116_spill] sm:$0xff] %v30380_v49  ;;  %v30391_v11 = vrot.slane %v242_v48, %v29363_v2  ;;  %35726 = vst [vmem:[#allocation118_spill] sm:$0xff] %v30394_v10  ;;  %v30397_v1 = vrot.slane %v228_v57, %v29363_v2  ;;  %v250_v45 = vcombine.high %v228_v57, %v228_v57  ;;  %v35729_v57 = vmov -1e+09  }
 0x2a3   : > { %v252_v33 = vcombine.high %v242_v48, %v242_v48  ;;  %v198_v60 = vsel %vm194_vm7, 0.0, %v35729_v57  ;;  %35731 = vst [vmem:[#allocation122_spill] sm:$0xff] %v30424_v19  ;;  %35734 = vst [vmem:[#allocation125_spill] sm:$0xff] %v30446_v59  ;;  %vm25013_vm7 = vcmask 1043459  }
 0x2a4   : > { %35725 = vst [vmem:[#allocation117_spill] sm:$0xff] %v30391_v11  ;;  %35727 = vst [vmem:[#allocation119_spill] sm:$0xff] %v30397_v1  ;;  %v30409_v41 = vrot.slane %v250_v45, %v29363_v2  ;;  %v261_v45 = vrot.slane %v198_v60, %v30384_v61 }
 0x2a6   : > { %35728 = vst [vmem:[#allocation120_spill] sm:$0xff] %v30409_v41 }
 0x2e9   : > { %v2240_v32 = vpop.f32.mrf.mxu1 }
 0x2ea   : > { %v30401_v14 = vadd.f32 %v2240_v32, %v30391_v11  ;;  %v249_v32 = vrot.slane %v221_v16, %v30384_v61 }
 0x2eb   : > { %v2164_v50 = vpop.f32.mrf.mxu0  ;;  %v27038_v62 = vpop.f32.mrf.mxu1 }
 0x2ec   : > { %v30404_v53 = vadd.f32 %v2164_v50, %v30397_v1  ;;  %v4528_v55 = vsel %vm4524_vm6, %v30401_v14, -inf  ;;  %v30416_v62 = vrot.slane %v252_v33, %v29363_v2  ;;  %v30432_v16 = vrot.slane %v249_v32, %v29363_v2 }
 0x2ed   : > { %v27033_v13 = vpop.f32.mrf.mxu0  ;;  %4529 = vmax.xlane.f32.xlu1 %v4528_v55 }
 0x2ee   : > { %v4525_v48 = vsel %vm4524_vm6, %v30404_v53, -inf  ;;  %35730 = vst [vmem:[#allocation121_spill] sm:$0xff] %v30416_v62  ;;  %v2392_v50 = vpop.f32.mrf.mxu1  ;;  %35732 = vst [vmem:[#allocation123_spill] sm:$0xff] %v30432_v16 }
 0x2ef   : > { %v2316_v11 = vpop.f32.mrf.mxu0  ;;  %4526 = vmax.xlane.f32.xlu0 %v4525_v48  ;;  %v30427_v0 = vadd.f32 %v2392_v50, %v30416_v62  ;;  %v253_v48 = vcombine.high %v249_v32, %v249_v32 }
 0x2f0   : > { %v30421_v1 = vadd.f32 %v2316_v11, %v30409_v41  ;;  %v27048_v13 = vpop.f32.mrf.mxu1  ;;  %v269_v11 = vcombine.high %v261_v45, %v261_v45  ;;  %v254_v41 = vcombine.high %v198_v60, %v198_v60 }
 0x2f1   : > { %v27043_v55 = vpop.f32.mrf.mxu0  ;;  %v4534_v62 = vsel %vm4524_vm6, %v30427_v0, -inf  ;;  %v30443_v43 = vrot.slane %v253_v48, %v29363_v2 }
 0x2f2   : > { %v4531_v33 = vsel %vm4524_vm6, %v30421_v1, -inf  ;;  %v291_v60 = vrot.slane %v269_v11, %v30384_v61 }
 0x2f3   : > { %4532 = vmax.xlane.f32.xlu0 %v4531_v33  ;;  %v2544_v5 = vpop.f32.mrf.mxu1  ;;  %35733 = vst [vmem:[#allocation124_spill] sm:$0xff] %v30443_v43 }
 0x2f4   : > { %v2468_v13 = vpop.f32.mrf.mxu0  ;;  %v30438_v50 = vadd.f32 %v2544_v5, %v30432_v16  ;;  %v268_v5 = vrot.slane %v254_v41, %v30384_v61  ;;  %v301_v41 = vcombine.high %v291_v60, %v291_v60 }
 0x2f5   : > { %v27058_v55 = vpop.f32.mrf.mxu1  ;;  %v30435_v29 = vadd.f32 %v2468_v13, %v30424_v19  ;;  %v277_v13 = vrot.slane %v261_v45, %v30384_v61  ;;  %v30463_v45 = vrot.slane %v291_v60, %v29363_v2 }
 0x2f6   : > { %v27053_v32 = vpop.f32.mrf.mxu0  ;;  %v4540_v23 = vsel %vm4524_vm6, %v30438_v50, -inf  ;;  %v30477_v60 = vrot.slane %v301_v41, %v29363_v2  ;;  %v284_v27 = vrot.slane %v268_v5, %v30384_v61 }
 0x2f7   : > { %4535 = vmax.xlane.f32.xlu0 %v4534_v62  ;;  %v4537_v33 = vsel %vm4524_vm6, %v30435_v29, -inf  ;;  %v2696_v55 = vpop.f32.mrf.mxu1  ;;  %v29260_v32 = vld [vmem:[%s29374_s27 + $0x10] sm:$0xff]  ;;  %35735 = vst [vmem:[#allocation126_spill] sm:$0xff] %v30463_v45  ;;  %v30466_v19 = vrot.slane %v277_v13, %v29363_v2 }
 0x2f8   : > { %4538 = vmax.xlane.f32.xlu1 %v4537_v33  ;;  %v30454_v48 = vadd.f32 %v2696_v55, %v30443_v43  ;;  %vm195_vm8 = vcmp.ne.s32.totalorder %v29260_v32, 1  ;;  %v299_v55 = vcombine.high %v277_v13, %v277_v13  ;;  %v270_v43 = vcombine.high %v268_v5, %v268_v5  ;;  %35737 = vst [vmem:[#allocation128_spill] sm:$0xff] %v30477_v60 }
 0x2f9   : > { %v2620_v16 = vpop.f32.mrf.mxu0  ;;  %v27068_v11 = vpop.f32.mrf.mxu1  ;;  %35736 = vst [vmem:[#allocation127_spill] sm:$0xff] %v30466_v19  ;;  %v199_v32 = vsel %vm195_vm8, 0.0, %v35729_v57  ;;  %v30502_v37 = vrot.slane %v284_v27, %v29363_v2  ;;  %v300_v49 = vcombine.high %v284_v27, %v284_v27  ;;  %vm25016_vm8 = vcmask 1044484  }
 0x2fa   : > { %v30460_v62 = vadd.f32 %v2620_v16, %v30446_v59  ;;  %v310_v58 = vrot.slane %v199_v32, %v30384_v61 }
 0x2fb   : > { %4541 = vmax.xlane.f32.xlu0 %v4540_v23  ;;  %v27063_v33 = vpop.f32.mrf.mxu0  ;;  %v4546_v23 = vsel %vm4524_vm6, %v30454_v48, -inf  ;;  %35740 = vst [vmem:[#allocation131_spill] sm:$0xff] %v30502_v37 }
 0x2fc   : > { %v4543_v44 = vsel %vm4524_vm6, %v30460_v62, -inf  ;;  %v2848_v16 = vpop.f32.mrf.mxu1  ;;  %v30483_v33 = vrot.slane %v299_v55, %v29363_v2 }
 0x2fd   : > { %4544 = vmax.xlane.f32.xlu1 %v4543_v44  ;;  %v2772_v11 = vpop.f32.mrf.mxu0  ;;  %v30474_v59 = vadd.f32 %v2848_v16, %v30463_v45  ;;  %v298_v44 = vrot.slane %v270_v43, %v30384_v61 }
 0x2fe   : > { %v30480_v13 = vadd.f32 %v2772_v11, %v30466_v19  ;;  %35738 = vst [vmem:[#allocation129_spill] sm:$0xff] %v30483_v33  ;;  %v27078_v56 = vpop.f32.mrf.mxu1  ;;  %v318_v19 = vcombine.high %v310_v58, %v310_v58 }
 0x2ff   : > { %4547 = vmax.xlane.f32.xlu0 %v4546_v23  ;;  %v27073_v25 = vpop.f32.mrf.mxu0  ;;  %v4552_v41 = vsel %vm4524_vm6, %v30474_v59, -inf  ;;  %v303_v56 = vcombine.high %v199_v32, %v199_v32  ;;  %v30499_v5 = vrot.slane %v298_v44, %v29363_v2  ;;  %v302_v45 = vcombine.high %v298_v44, %v298_v44 }
 0x300   : > { %v4549_v16 = vsel %vm4524_vm6, %v30480_v13, -inf  ;;  %v3000_v23 = vpop.f32.mrf.mxu1  ;;  %v340_v27 = vrot.slane %v318_v19, %v30384_v61 }
 0x301   : > { %v2924_v11 = vpop.f32.mrf.mxu0  ;;  %4550 = vmax.xlane.f32.xlu1 %v4549_v16  ;;  %v30493_v55 = vadd.f32 %v3000_v23, %v30477_v60  ;;  %35739 = vst [vmem:[#allocation130_spill] sm:$0xff] %v30499_v5  ;;  %v30520_v60 = vrot.slane %v300_v49, %v29363_v2 }
 0x302   : > { %v30496_v43 = vadd.f32 %v2924_v11, %v30483_v33  ;;  %v27088_v25 = vpop.f32.mrf.mxu1 }
 0x303   : > { %4553 = vmax.xlane.f32.xlu0 %v4552_v41  ;;  %v27083_v35 = vpop.f32.mrf.mxu0  ;;  %v4558_v32 = vsel %vm4524_vm6, %v30493_v55, -inf  ;;  %v317_v41 = vrot.slane %v303_v56, %v30384_v61  ;;  %35742 = vst [vmem:[#allocation133_spill] sm:$0xff] %v30520_v60 }
 0x304   : > { %v4555_v16 = vsel %vm4524_vm6, %v30496_v43, -inf  ;;  %v3152_v23 = vpop.f32.mrf.mxu1  ;;  %v30513_v35 = vrot.slane %v302_v45, %v29363_v2 }
 0x305   : > { %4556 = vmax.xlane.f32.xlu1 %v4555_v16  ;;  %v30510_v44 = vadd.f32 %v3152_v23, %v30499_v5  ;;  %v29261_v23 = vld [vmem:[%s29374_s27 + $0x18] sm:$0xff]  ;;  %v319_v19 = vcombine.high %v317_v41, %v317_v41 }
 0x306   : > { %v3076_v11 = vpop.f32.mrf.mxu0  ;;  %35741 = vst [vmem:[#allocation132_spill] sm:$0xff] %v30513_v35  ;;  %v27098_v16 = vpop.f32.mrf.mxu1  ;;  %vm196_vm9 = vcmp.ne.s32.totalorder %v29261_v23, 1 }
 0x307   : > { %4559 = vmax.xlane.f32.xlu0 %v4558_v32  ;;  %v30517_v25 = vadd.f32 %v3076_v11, %v30502_v37  ;;  %v326_v32 = vrot.slane %v310_v58, %v30384_v61  ;;  %v4564_v56 = vsel %vm4524_vm6, %v30510_v44, -inf  ;;  %v30532_v16 = vrot.slane %v340_v27, %v29363_v2 }
 0x308   : > { %v27093_v33 = vpop.f32.mrf.mxu0  ;;  %v3304_v5 = vpop.f32.mrf.mxu1  ;;  %v350_v58 = vcombine.high %v340_v27, %v340_v27  ;;  %v347_v27 = vrot.slane %v319_v19, %v30384_v61 }
 0x309   : > { %v4561_v45 = vsel %vm4524_vm6, %v30517_v25, -inf  ;;  %v30529_v49 = vadd.f32 %v3304_v5, %v30513_v35  ;;  %35743 = vst [vmem:[#allocation134_spill] sm:$0xff] %v30532_v16  ;;  %v30538_v23 = vrot.slane %v326_v32, %v29363_v2  ;;  %v348_v9 = vcombine.high %v326_v32, %v326_v32 }
 0x30a   : > { %v3228_v11 = vpop.f32.mrf.mxu0  ;;  %4562 = vmax.xlane.f32.xlu1 %v4561_v45  ;;  %v27108_v37 = vpop.f32.mrf.mxu1 }
 0x30b   : > { %4565 = vmax.xlane.f32.xlu0 %v4564_v56  ;;  %v30535_v33 = vadd.f32 %v3228_v11, %v30520_v60  ;;  %35744 = vst [vmem:[#allocation135_spill] sm:$0xff] %v30538_v23  ;;  %v200_v56 = vsel %vm196_vm9, 0.0, %v35729_v57  ;;  %v4570_v45 = vsel %vm4524_vm6, %v30529_v49, -inf  ;;  %v30550_v37 = vrot.slane %v350_v58, %v29363_v2 }
 0x30c   : > { %v27103_v10 = vpop.f32.mrf.mxu0  ;;  %v3456_v35 = vpop.f32.mrf.mxu1  ;;  %v30557_v32 = vrot.slane %v348_v9, %v29363_v2  ;;  %vm25019_vm9 = vcmask 1045509  }
 0x30d   : > { %v4567_v5 = vsel %vm4524_vm6, %v30535_v33, -inf  ;;  %v30547_v60 = vadd.f32 %v3456_v35, %v30532_v16  ;;  %35745 = vst [vmem:[#allocation136_spill] sm:$0xff] %v30550_v37  ;;  %v359_v10 = vrot.slane %v200_v56, %v30384_v61  ;;  %v30565_v16 = vrot.slane %v347_v27, %v29363_v2 }
 0x30e   : > { %v3380_v11 = vpop.f32.mrf.mxu0  ;;  %4568 = vmax.xlane.f32.xlu1 %v4567_v5  ;;  %35746 = vst [vmem:[#allocation137_spill] sm:$0xff] %v30557_v32  ;;  %v27118_v52 = vpop.f32.mrf.mxu1 }
 0x30f   : > { %4571 = vmax.xlane.f32.xlu0 %v4570_v45  ;;  %v30554_v57 = vadd.f32 %v3380_v11, %v30538_v23  ;;  %v333_v45 = vrot.slane %v317_v41, %v30384_v61  ;;  %v4576_v5 = vsel %vm4524_vm6, %v30547_v60, -inf  ;;  %35747 = vst [vmem:[#allocation138_spill] sm:$0xff] %v30565_v16  ;;  %v351_v52 = vcombine.high %v347_v27, %v347_v27 }
 0x310   : > { %v27113_v19 = vpop.f32.mrf.mxu0  ;;  %v3608_v58 = vpop.f32.mrf.mxu1  ;;  %v367_v23 = vcombine.high %v359_v10, %v359_v10  ;;  %v352_v41 = vcombine.high %v200_v56, %v200_v56 }
 0x311   : > { %v4573_v35 = vsel %vm4524_vm6, %v30554_v57, -inf  ;;  %v30568_v9 = vadd.f32 %v3608_v58, %v30550_v37  ;;  %v30574_v42 = vrot.slane %v333_v45, %v29363_v2  ;;  %v349_v63 = vcombine.high %v333_v45, %v333_v45 }
 0x312   : > { %v3532_v11 = vpop.f32.mrf.mxu0  ;;  %4574 = vmax.xlane.f32.xlu1 %v4573_v35  ;;  %v27128_v36 = vpop.f32.mrf.mxu1  ;;  %v366_v45 = vrot.slane %v352_v41, %v30384_v61 }
 0x313   : > { %4577 = vmax.xlane.f32.xlu0 %v4576_v5  ;;  %v30571_v19 = vadd.f32 %v3532_v11, %v30557_v32  ;;  %35748 = vst [vmem:[#allocation139_spill] sm:$0xff] %v30574_v42  ;;  %v4582_v24 = vsel %vm4524_vm6, %v30568_v9, -inf  ;;  %v30584_v11 = vrot.slane %v351_v52, %v29363_v2  ;;  %v389_v36 = vrot.slane %v367_v23, %v30384_v61 }
 0x314   : > { %v27123_v5 = vpop.f32.mrf.mxu0  ;;  %v3760_v58 = vpop.f32.mrf.mxu1  ;;  %v30592_v37 = vrot.slane %v349_v63, %v29363_v2  ;;  %v382_v54 = vrot.slane %v366_v45, %v30384_v61 }
 0x315   : > { %v4579_v35 = vsel %vm4524_vm6, %v30571_v19, -inf  ;;  %v30581_v56 = vadd.f32 %v3760_v58, %v30565_v16  ;;  %35749 = vst [vmem:[#allocation140_spill] sm:$0xff] %v30584_v11  ;;  %v30603_v63 = vrot.slane %v389_v36, %v29363_v2 }
 0x316   : > { %v3684_v27 = vpop.f32.mrf.mxu0  ;;  %4580 = vmax.xlane.f32.xlu1 %v4579_v35  ;;  %35750 = vst [vmem:[#allocation141_spill] sm:$0xff] %v30592_v37  ;;  %v27138_v32 = vpop.f32.mrf.mxu1 }
 0x317   : > { %4583 = vmax.xlane.f32.xlu0 %v4582_v24  ;;  %v30589_v5 = vadd.f32 %v3684_v27, %v30574_v42  ;;  %v375_v24 = vrot.slane %v359_v10, %v30384_v61  ;;  %v4588_v58 = vsel %vm4524_vm6, %v30581_v56, -inf  ;;  %35751 = vst [vmem:[#allocation142_spill] sm:$0xff] %v30603_v63  ;;  %v399_v32 = vcombine.high %v389_v36, %v389_v36 }
 0x318   : > { %v27133_v35 = vpop.f32.mrf.mxu0  ;;  %v3912_v16 = vpop.f32.mrf.mxu1  ;;  %v368_v27 = vcombine.high %v366_v45, %v366_v45  ;;  %v30643_v45 = vrot.slane %v382_v54, %v29363_v2 }
 0x319   : > { %v4585_v52 = vsel %vm4524_vm6, %v30589_v5, -inf  ;;  %v30600_v41 = vadd.f32 %v3912_v16, %v30584_v11  ;;  %v30609_v35 = vrot.slane %v375_v24, %v29363_v2  ;;  %v397_v34 = vcombine.high %v375_v24, %v375_v24 }
 0x31a   : > { %v3836_v23 = vpop.f32.mrf.mxu0  ;;  %4586 = vmax.xlane.f32.xlu1 %v4585_v52  ;;  %v27148_v42 = vpop.f32.mrf.mxu1  ;;  %35756 = vst [vmem:[#allocation147_spill] sm:$0xff] %v30643_v45 }
 0x31b   : > { %4589 = vmax.xlane.f32.xlu0 %v4588_v58  ;;  %v30606_v10 = vadd.f32 %v3836_v23, %v30592_v37  ;;  %35752 = vst [vmem:[#allocation143_spill] sm:$0xff] %v30609_v35  ;;  %v4594_v58 = vsel %vm4524_vm6, %v30600_v41, -inf  ;;  %v30619_v23 = vrot.slane %v399_v32, %v29363_v2  ;;  %v396_v42 = vrot.slane %v368_v27, %v30384_v61 }
 0x31c   : > { %v27143_v28 = vpop.f32.mrf.mxu0  ;;  %v4064_v52 = vpop.f32.mrf.mxu1  ;;  %v30626_v24 = vrot.slane %v397_v34, %v29363_v2 }
 0x31d   : > { %v4591_v16 = vsel %vm4524_vm6, %v30606_v10, -inf  ;;  %v30616_v36 = vadd.f32 %v4064_v52, %v30603_v63  ;;  %35753 = vst [vmem:[#allocation144_spill] sm:$0xff] %v30619_v23  ;;  %v30637_v34 = vrot.slane %v396_v42, %v29363_v2 }
 0x31e   : > { %v3988_v11 = vpop.f32.mrf.mxu0  ;;  %4592 = vmax.xlane.f32.xlu1 %v4591_v16  ;;  %35754 = vst [vmem:[#allocation145_spill] sm:$0xff] %v30626_v24  ;;  %v27158_v37 = vpop.f32.mrf.mxu1 }
 0x31f   : > { %4595 = vmax.xlane.f32.xlu0 %v4594_v58  ;;  %v30623_v28 = vadd.f32 %v3988_v11, %v30609_v35  ;;  %v4600_v16 = vsel %vm4524_vm6, %v30616_v36, -inf  ;;  %35755 = vst [vmem:[#allocation146_spill] sm:$0xff] %v30637_v34  ;;  %v400_v37 = vcombine.high %v396_v42, %v396_v42 }
 0x320   : > { %v27153_v58 = vpop.f32.mrf.mxu0  ;;  %v4216_v32 = vpop.f32.mrf.mxu1 }
 0x321   : > { %v4597_v52 = vsel %vm4524_vm6, %v30623_v28, -inf  ;;  %v30634_v11 = vadd.f32 %v4216_v32, %v30619_v23  ;;  %v398_v58 = vcombine.high %v382_v54, %v382_v54 }
 0x322   : > { %v4140_v63 = vpop.f32.mrf.mxu0  ;;  %4598 = vmax.xlane.f32.xlu1 %v4597_v52  ;;  %v27168_v27 = vpop.f32.mrf.mxu1 }
 0x323   : > { %4601 = vmax.xlane.f32.xlu0 %v4600_v16  ;;  %v30640_v61 = vadd.f32 %v4140_v63, %v30626_v24  ;;  %v4606_v16 = vsel %vm4524_vm6, %v30634_v11, -inf  ;;  %v30653_v63 = vrot.slane %v400_v37, %v29363_v2  ;;  %v30659_v54 = vrot.slane %v398_v58, %v29363_v2 }
 0x324   : > { %v27163_v35 = vpop.f32.mrf.mxu0  ;;  %v4368_v32 = vpop.f32.mrf.mxu1 }
 0x325   : > { %v4603_v52 = vsel %vm4524_vm6, %v30640_v61, -inf  ;;  %v30650_v42 = vadd.f32 %v4368_v32, %v30637_v34  ;;  %35757 = vst [vmem:[#allocation148_spill] sm:$0xff] %v30653_v63  ;;  %35758 = vst [vmem:[#allocation149_spill] sm:$0xff] %v30659_v54 }
 0x326   : > { %v4292_v23 = vpop.f32.mrf.mxu0  ;;  %4604 = vmax.xlane.f32.xlu1 %v4603_v52  ;;  %v27178_v35 = vpop.f32.mrf.mxu1 }
 0x327   : > { %4607 = vmax.xlane.f32.xlu0 %v4606_v16  ;;  %v30656_v27 = vadd.f32 %v4292_v23, %v30643_v45  ;;  %v4612_v47 = vsel %vm4524_vm6, %v30650_v42, -inf }
 0x328   : > { %v27173_v24 = vpop.f32.mrf.mxu0  ;;  %v4520_v52 = vpop.f32.mrf.mxu1 }
 0x329   : > { %v4609_v16 = vsel %vm4524_vm6, %v30656_v27, -inf  ;;  %v30666_v37 = vadd.f32 %v4520_v52, %v30653_v63 }
 0x32a   : > { %v4444_v32 = vpop.f32.mrf.mxu0  ;;  %4610 = vmax.xlane.f32.xlu1 %v4609_v16  ;;  %v27188_v2 = vpop.f32.mrf.mxu1 }
 0x32b   : > { %4613 = vmax.xlane.f32.xlu0 %v4612_v47  ;;  %v30669_v23 = vadd.f32 %v4444_v32, %v30659_v54  ;;  %v4618_v24 = vsel %vm4524_vm6, %v30666_v37, -inf }
 0x32c   : > { %v27183_v58 = vpop.f32.mrf.mxu0 }
 0x32d   : > { %v4615_v35 = vsel %vm4524_vm6, %v30669_v23, -inf }
 0x32e   : > { %4616 = vmax.xlane.f32.xlu1 %v4615_v35 }
 0x32f   : > { %4619 = vmax.xlane.f32.xlu0 %v4618_v24 }
 0x376   : > { %v4530_v34 = vpop.xlane.xlu1 %4529 }
 0x377   : > { %v4622_v47 = vsub.f32 %v30401_v14, %v4530_v34 }
 0x378   : > { %v4527_v16 = vpop.xlane.xlu0 %4526 }
 0x379   : > { %v4655_v45 = vmul.f32 1.442695, %v4622_v47  ;;  %v4621_v52 = vsub.f32 %v30404_v53, %v4527_v16 }
 0x37b   : > { %28546 = vpow2.f32 %v4655_v45  ;;  %v4653_v32 = vmul.f32 1.442695, %v4621_v52 }
 0x37c   : > { %v4533_v63 = vpop.xlane.xlu0 %4532 }
 0x37d   : > { %28548 = vpow2.f32 %v4653_v32  ;;  %v4623_v2 = vsub.f32 %v30421_v1, %v4533_v63 }
 0x37f   : > { %v4657_v54 = vmul.f32 1.442695, %v4623_v2 }
 0x380   : > { %v4536_v58 = vpop.xlane.xlu0 %4535 }
 0x381   : > { %28550 = vpow2.f32 %v4657_v54  ;;  %v4624_v26 = vsub.f32 %v30427_v0, %v4536_v58  ;;  %v4539_v24 = vpop.xlane.xlu1 %4538 }
 0x382   : > { %v4625_v6 = vsub.f32 %v30435_v29, %v4539_v24 }
 0x383   : > { %v4659_v35 = vmul.f32 1.442695, %v4624_v26 }
 0x384   : > { %v4542_v14 = vpop.xlane.xlu0 %4541  ;;  %v4661_v34 = vmul.f32 1.442695, %v4625_v6 }
 0x385   : > { %28552 = vpow2.f32 %v4659_v35  ;;  %v4626_v53 = vsub.f32 %v30438_v50, %v4542_v14 }
 0x386   : > { %28554 = vpow2.f32 %v4661_v34  ;;  %v4545_v45 = vpop.xlane.xlu1 %4544 }
 0x387   : > { %v4663_v47 = vmul.f32 1.442695, %v4626_v53  ;;  %v4627_v1 = vsub.f32 %v30460_v62, %v4545_v45 }
 0x388   : > { %v30681_v16 = vpop.eup %28546  ;;  %v4548_v63 = vpop.xlane.xlu0 %4547 }
 0x389   : > { %28556 = vpow2.f32 %v4663_v47  ;;  %v4628_v0 = vsub.f32 %v30454_v48, %v4548_v63  ;;  %v4720_v26 = vsel %vm4524_vm6, %v30681_v16, 0.0  ;;  %v4665_v54 = vmul.f32 1.442695, %v4627_v1 }
 0x38a   : > { %v30687_v29 = vpop.eup %28548  ;;  %4721 = vadd.xlane.f32.xlu0 %v4720_v26  ;;  %v4551_v52 = vpop.xlane.xlu1 %4550 }
 0x38b   : > { %v4667_v6 = vmul.f32 1.442695, %v4628_v0  ;;  %v4717_v50 = vsel %vm4524_vm6, %v30687_v29, 0.0  ;;  %28558 = vpow2.f32 %v4665_v54  ;;  %v4629_v62 = vsub.f32 %v30480_v13, %v4551_v52 }
 0x38c   : > { %4718 = vadd.xlane.f32.xlu1 %v4717_v50  ;;  %v4554_v32 = vpop.xlane.xlu0 %4553 }
 0x38d   : > { %28560 = vpow2.f32 %v4667_v6  ;;  %v4630_v48 = vsub.f32 %v30474_v59, %v4554_v32  ;;  %v4669_v58 = vmul.f32 1.442695, %v4629_v62 }
 0x38e   : > { %v30693_v2 = vpop.eup %28550  ;;  %v4557_v14 = vpop.xlane.xlu1 %4556 }
 0x38f   : > { %v4671_v24 = vmul.f32 1.442695, %v4630_v48  ;;  %v4723_v35 = vsel %vm4524_vm6, %v30693_v2, 0.0  ;;  %28562 = vpow2.f32 %v4669_v58  ;;  %v4631_v53 = vsub.f32 %v30496_v43, %v4557_v14 }
 0x390   : > { %4724 = vadd.xlane.f32.xlu1 %v4723_v35  ;;  %v4560_v34 = vpop.xlane.xlu0 %4559 }
 0x391   : > { %v4632_v45 = vsub.f32 %v30493_v55, %v4560_v34  ;;  %28564 = vpow2.f32 %v4671_v24  ;;  %v4673_v13 = vmul.f32 1.442695, %v4631_v53 }
 0x392   : > { %v30699_v47 = vpop.eup %28552 }
 0x393   : > { %v4675_v59 = vmul.f32 1.442695, %v4632_v45  ;;  %v4726_v1 = vsel %vm4524_vm6, %v30699_v47, 0.0  ;;  %v30703_v63 = vpop.eup %28554  ;;  %28566 = vpow2.f32 %v4673_v13  ;;  %v4563_v26 = vpop.xlane.xlu1 %4562 }
 0x394   : > { %4727 = vadd.xlane.f32.xlu0 %v4726_v1  ;;  %v4566_v0 = vpop.xlane.xlu0 %4565  ;;  %v4729_v54 = vsel %vm4524_vm6, %v30703_v63, 0.0  ;;  %v4633_v6 = vsub.f32 %v30517_v25, %v4563_v26 }
 0x395   : > { %v4634_v43 = vsub.f32 %v30510_v44, %v4566_v0  ;;  %28568 = vpow2.f32 %v4675_v59  ;;  %4730 = vadd.xlane.f32.xlu1 %v4729_v54 }
 0x396   : > { %v30708_v55 = vpop.eup %28556  ;;  %v4677_v32 = vmul.f32 1.442695, %v4633_v6 }
 0x397   : > { %v4679_v50 = vmul.f32 1.442695, %v4634_v43  ;;  %v4732_v52 = vsel %vm4524_vm6, %v30708_v55, 0.0  ;;  %v4569_v58 = vpop.xlane.xlu1 %4568 }
 0x398   : > { %4733 = vadd.xlane.f32.xlu0 %v4732_v52  ;;  %v4572_v62 = vpop.xlane.xlu0 %4571  ;;  %v30713_v48 = vpop.eup %28558  ;;  %v4635_v25 = vsub.f32 %v30535_v33, %v4569_v58 }
 0x399   : > { %28570 = vpow2.f32 %v4679_v50  ;;  %v4636_v24 = vsub.f32 %v30529_v49, %v4572_v62  ;;  %v4735_v35 = vsel %vm4524_vm6, %v30713_v48, 0.0 }
 0x39a   : > { %v30716_v44 = vpop.eup %28560  ;;  %28572 = vpow2.f32 %v4677_v32  ;;  %4736 = vadd.xlane.f32.xlu1 %v4735_v35  ;;  %v4681_v53 = vmul.f32 1.442695, %v4635_v25 }
 0x39b   : > { %v4683_v14 = vmul.f32 1.442695, %v4636_v24  ;;  %v4738_v34 = vsel %vm4524_vm6, %v30716_v44, 0.0  ;;  %v4575_v13 = vpop.xlane.xlu1 %4574 }
 0x39c   : > { %4739 = vadd.xlane.f32.xlu0 %v4738_v34  ;;  %v4578_v45 = vpop.xlane.xlu0 %4577  ;;  %v30724_v59 = vpop.eup %28562  ;;  %v4637_v33 = vsub.f32 %v30554_v57, %v4575_v13 }
 0x39d   : > { %28574 = vpow2.f32 %v4683_v14  ;;  %v4638_v49 = vsub.f32 %v30547_v60, %v4578_v45  ;;  %v4741_v0 = vsel %vm4524_vm6, %v30724_v59, 0.0 }
 0x39e   : > { %28576 = vpow2.f32 %v4681_v53  ;;  %v30727_v1 = vpop.eup %28564  ;;  %v4685_v54 = vmul.f32 1.442695, %v4637_v33  ;;  %4742 = vadd.xlane.f32.xlu1 %v4741_v0 }
 0x39f   : > { %v4687_v26 = vmul.f32 1.442695, %v4638_v49  ;;  %v4744_v43 = vsel %vm4524_vm6, %v30727_v1, 0.0  ;;  %v4581_v50 = vpop.xlane.xlu1 %4580 }
 0x3a0   : > { %v4584_v6 = vpop.xlane.xlu0 %4583  ;;  %4745 = vadd.xlane.f32.xlu0 %v4744_v43  ;;  %v30734_v52 = vpop.eup %28566  ;;  %v4639_v57 = vsub.f32 %v30571_v19, %v4581_v50 }
 0x3a1   : > { %28578 = vpow2.f32 %v4687_v26  ;;  %v4640_v60 = vsub.f32 %v30568_v9, %v4584_v6  ;;  %v4747_v62 = vsel %vm4524_vm6, %v30734_v52, 0.0 }
 0x3a2   : > { %28580 = vpow2.f32 %v4685_v54  ;;  %v30737_v32 = vpop.eup %28568  ;;  %v4689_v24 = vmul.f32 1.442695, %v4639_v57  ;;  %4748 = vadd.xlane.f32.xlu1 %v4747_v62 }
 0x3a3   : > { %v4691_v58 = vmul.f32 1.442695, %v4640_v60  ;;  %v4750_v25 = vsel %vm4524_vm6, %v30737_v32, 0.0  ;;  %v4587_v14 = vpop.xlane.xlu1 %4586 }
 0x3a4   : > { %v4590_v35 = vpop.xlane.xlu0 %4589  ;;  %4751 = vadd.xlane.f32.xlu0 %v4750_v25  ;;  %v4641_v19 = vsub.f32 %v30589_v5, %v4587_v14 }
 0x3a5   : > { %28582 = vpow2.f32 %v4691_v58  ;;  %v4642_v9 = vsub.f32 %v30581_v56, %v4590_v35 }
 0x3a6   : > { %v30744_v34 = vpop.eup %28570  ;;  %28584 = vpow2.f32 %v4689_v24  ;;  %v4693_v49 = vmul.f32 1.442695, %v4641_v19 }
 0x3a7   : > { %v30747_v53 = vpop.eup %28572  ;;  %v4695_v45 = vmul.f32 1.442695, %v4642_v9  ;;  %v4756_v13 = vsel %vm4524_vm6, %v30744_v34, 0.0  ;;  %v4593_v26 = vpop.xlane.xlu1 %4592 }
 0x3a8   : > { %v4753_v33 = vsel %vm4524_vm6, %v30747_v53, 0.0  ;;  %v4596_v0 = vpop.xlane.xlu0 %4595  ;;  %4757 = vadd.xlane.f32.xlu0 %v4756_v13  ;;  %v4643_v5 = vsub.f32 %v30606_v10, %v4593_v26 }
 0x3a9   : > { %4754 = vadd.xlane.f32.xlu1 %v4753_v33  ;;  %28586 = vpow2.f32 %v4695_v45  ;;  %v4644_v56 = vsub.f32 %v30600_v41, %v4596_v0 }
 0x3aa   : > { %v30754_v54 = vpop.eup %28574  ;;  %28588 = vpow2.f32 %v4693_v49  ;;  %v4697_v60 = vmul.f32 1.442695, %v4643_v5 }
 0x3ab   : > { %v30757_v43 = vpop.eup %28576  ;;  %v4699_v6 = vmul.f32 1.442695, %v4644_v56  ;;  %v4762_v50 = vsel %vm4524_vm6, %v30754_v54, 0.0  ;;  %v4599_v58 = vpop.xlane.xlu1 %4598 }
 0x3ac   : > { %v4759_v57 = vsel %vm4524_vm6, %v30757_v43, 0.0  ;;  %v4602_v62 = vpop.xlane.xlu0 %4601  ;;  %4763 = vadd.xlane.f32.xlu0 %v4762_v50  ;;  %v4645_v10 = vsub.f32 %v30623_v28, %v4599_v58 }
 0x3ad   : > { %4760 = vadd.xlane.f32.xlu1 %v4759_v57  ;;  %28590 = vpow2.f32 %v4699_v6  ;;  %v4646_v41 = vsub.f32 %v30616_v36, %v4602_v62 }
 0x3ae   : > { %v30764_v24 = vpop.eup %28578  ;;  %28592 = vpow2.f32 %v4697_v60  ;;  %v4701_v9 = vmul.f32 1.442695, %v4645_v10 }
 0x3af   : > { %v30767_v25 = vpop.eup %28580  ;;  %v4703_v35 = vmul.f32 1.442695, %v4646_v41  ;;  %v4768_v14 = vsel %vm4524_vm6, %v30764_v24, 0.0  ;;  %v4605_v13 = vpop.xlane.xlu1 %4604 }
 0x3b0   : > { %v4765_v19 = vsel %vm4524_vm6, %v30767_v25, 0.0  ;;  %v4608_v45 = vpop.xlane.xlu0 %4607  ;;  %4769 = vadd.xlane.f32.xlu0 %v4768_v14  ;;  %v4647_v28 = vsub.f32 %v30640_v61, %v4605_v13 }
 0x3b1   : > { %4766 = vadd.xlane.f32.xlu1 %v4765_v19  ;;  %28594 = vpow2.f32 %v4703_v35  ;;  %v4648_v36 = vsub.f32 %v30634_v11, %v4608_v45 }
 0x3b2   : > { %v30774_v49 = vpop.eup %28582  ;;  %28596 = vpow2.f32 %v4701_v9  ;;  %v4705_v56 = vmul.f32 1.442695, %v4647_v28 }
 0x3b3   : > { %v30777_v33 = vpop.eup %28584  ;;  %v4707_v0 = vmul.f32 1.442695, %v4648_v36  ;;  %v4774_v26 = vsel %vm4524_vm6, %v30774_v49, 0.0  ;;  %v4611_v50 = vpop.xlane.xlu1 %4610 }
 0x3b4   : > { %v4771_v5 = vsel %vm4524_vm6, %v30777_v33, 0.0  ;;  %v4614_v6 = vpop.xlane.xlu0 %4613  ;;  %4775 = vadd.xlane.f32.xlu0 %v4774_v26  ;;  %v4649_v61 = vsub.f32 %v30656_v27, %v4611_v50 }
 0x3b5   : > { %4772 = vadd.xlane.f32.xlu1 %v4771_v5  ;;  %28598 = vpow2.f32 %v4707_v0  ;;  %v4650_v11 = vsub.f32 %v30650_v42, %v4614_v6 }
 0x3b6   : > { %v30784_v60 = vpop.eup %28586  ;;  %28600 = vpow2.f32 %v4705_v56  ;;  %v4709_v41 = vmul.f32 1.442695, %v4649_v61 }
 0x3b7   : > { %v30787_v57 = vpop.eup %28588  ;;  %v4711_v62 = vmul.f32 1.442695, %v4650_v11  ;;  %v4780_v58 = vsel %vm4524_vm6, %v30784_v60, 0.0  ;;  %v4617_v14 = vpop.xlane.xlu1 %4616 }
 0x3b8   : > { %v4777_v10 = vsel %vm4524_vm6, %v30787_v57, 0.0  ;;  %v4620_v35 = vpop.xlane.xlu0 %4619  ;;  %4781 = vadd.xlane.f32.xlu0 %v4780_v58  ;;  %v4651_v27 = vsub.f32 %v30669_v23, %v4617_v14 }
 0x3b9   : > { %4778 = vadd.xlane.f32.xlu1 %v4777_v10  ;;  %28602 = vpow2.f32 %v4711_v62  ;;  %v4652_v42 = vsub.f32 %v30666_v37, %v4620_v35 }
 0x3ba   : > { %v30794_v9 = vpop.eup %28590  ;;  %28604 = vpow2.f32 %v4709_v41  ;;  %v4713_v36 = vmul.f32 1.442695, %v4651_v27 }
 0x3bb   : > { %v30797_v19 = vpop.eup %28592  ;;  %v4715_v45 = vmul.f32 1.442695, %v4652_v42  ;;  %v4786_v13 = vsel %vm4524_vm6, %v30794_v9, 0.0 }
 0x3bc   : > { %v4783_v28 = vsel %vm4524_vm6, %v30797_v19, 0.0  ;;  %4787 = vadd.xlane.f32.xlu0 %v4786_v13 }
 0x3bd   : > { %4784 = vadd.xlane.f32.xlu1 %v4783_v28  ;;  %28606 = vpow2.f32 %v4715_v45 }
 0x3be   : > { %v30803_v0 = vpop.eup %28594  ;;  %28608 = vpow2.f32 %v4713_v36 }
 0x3bf   : > { %v30805_v37 = vpop.eup %28596  ;;  %v4792_v23 = vsel %vm4524_vm6, %v30803_v0, 0.0 }
 0x3c0   : > { %v4789_v26 = vsel %vm4524_vm6, %v30805_v37, 0.0  ;;  %4793 = vadd.xlane.f32.xlu0 %v4792_v23 }
 0x3c1   : > { %4790 = vadd.xlane.f32.xlu1 %v4789_v26 }
 0x3c2   : > { %v30811_v56 = vpop.eup %28598 }
 0x3c3   : > { %v30813_v5 = vpop.eup %28600  ;;  %v4798_v6 = vsel %vm4524_vm6, %v30811_v56, 0.0 }
 0x3c4   : > { %v4795_v50 = vsel %vm4524_vm6, %v30813_v5, 0.0  ;;  %4799 = vadd.xlane.f32.xlu0 %v4798_v6 }
 0x3c5   : > { %4796 = vadd.xlane.f32.xlu1 %v4795_v50 }
 0x3c6   : > { %v30819_v11 = vpop.eup %28602 }
 0x3c7   : > { %v30821_v61 = vpop.eup %28604  ;;  %v4804_v62 = vsel %vm4524_vm6, %v30819_v11, 0.0 }
 0x3c8   : > { %v4801_v58 = vsel %vm4524_vm6, %v30821_v61, 0.0  ;;  %4805 = vadd.xlane.f32.xlu0 %v4804_v62 }
 0x3c9   : > { %4802 = vadd.xlane.f32.xlu1 %v4801_v58  ;;  %v30841_v58 = vld [vmem:[%s35327_s2 + $0x2] ss:$0 sm:$0xff] }
 0x3ca   : > { %v30827_v41 = vpop.eup %28606 }
 0x3cb   : > { %v30829_v10 = vpop.eup %28608  ;;  %v4810_v35 = vsel %vm4524_vm6, %v30827_v41, 0.0 }
 0x3cc   : > { %v4807_v14 = vsel %vm4524_vm6, %v30829_v10, 0.0  ;;  %4811 = vadd.xlane.f32.xlu0 %v4810_v35  ;;  %v30845_v35 = vadd.f32 %v30841_v58, %v30291_v12 }
 0x3cd   : > { %4808 = vadd.xlane.f32.xlu1 %v4807_v14 }
 0x413   : > { %v4722_v42 = vpop.xlane.xlu0 %4721 }
 0x414   : > { %28610 = vrcp.f32 %v4722_v42 }
 0x415   : > { %v4719_v27 = vpop.xlane.xlu1 %4718 }
 0x416   : > { %28612 = vrcp.f32 %v4719_v27 }
 0x419   : > { %v4725_v45 = vpop.xlane.xlu1 %4724 }
 0x41a   : > { %28614 = vrcp.f32 %v4725_v45 }
 0x41d   : > { %v4728_v13 = vpop.xlane.xlu0 %4727 }
 0x41e   : > { %28616 = vrcp.f32 %v4728_v13  ;;  %v4731_v36 = vpop.xlane.xlu1 %4730 }
 0x41f   : > { %28618 = vrcp.f32 %v4731_v36 }
 0x421   : > { %v28611_v28 = vpop.eup %28610  ;;  %v4734_v23 = vpop.xlane.xlu0 %4733 }
 0x422   : > { %28620 = vrcp.f32 %v4734_v23  ;;  %v4846_v26 = vmul.f32 %v28611_v28, %v30681_v16 }
 0x423   : > { %v28613_v6 = vpop.eup %28612  ;;  %v4737_v50 = vpop.xlane.xlu1 %4736 }
 0x424   : > { %27197 = vmatmul.mubr.msk.f32.vlgmr.msra.gmra.mxu1 %vm4524_vm6, %v4846_v26  ;;  %v4845_v62 = vmul.f32 %v28613_v6, %v30687_v29  ;;  %28622 = vrcp.f32 %v4737_v50  ;;  %v30859_v29 = vadd.f32 %v30841_v58, %v30310_v51  ;;  %v30871_v26 = vadd.f32 %v30841_v58, %v30322_v20 }
 0x425   : > { %27205 = vmatpush3.msra.mxu1 %v30281_v18  ;;  %v4740_v14 = vpop.xlane.xlu0 %4739  ;;  %27206 = vmatprep.mubr.msk.f32.mxu1 %vm29305_vm3, %v35664_v39 }
 0x426   : > { %28624 = vrcp.f32 %v4740_v14  ;;  %27192 = vmatmul.mubr.msk.f32.vlgmr.msra.gmra.mxu0 %vm4524_vm6, %v4845_v62  ;;  %27214 = vmatprep.subr.mxu1 %v35664_v39  ;;  %v30890_v62 = vadd.f32 %v30841_v58, %v30327_v22 }
 0x427   : > { %v28615_v16 = vpop.eup %28614  ;;  %27200 = vmatpush3.msra.mxu0 %v30845_v35  ;;  %27201 = vmatprep.mubr.msk.f32.mxu0 %vm29305_vm3, %v35664_v39  ;;  %v4743_v42 = vpop.xlane.xlu1 %4742 }
 0x428   : > { %27209 = vmatprep.subr.mxu0 %v35664_v39  ;;  %v4847_v12 = vmul.f32 %v28615_v16, %v30693_v2  ;;  %28626 = vrcp.f32 %v4743_v42  ;;  %v30906_v42 = vadd.f32 %v30841_v58, %v30332_v17 }
 0x429   : > { %v4746_v27 = vpop.xlane.xlu0 %4745 }
 0x42a   : > { %27202 = vmatmul.mubr.msk.f32.vlgmr.msra.gmra.mxu0 %vm4524_vm6, %v4847_v12  ;;  %28628 = vrcp.f32 %v4746_v27 }
 0x42b   : > { %v28617_v45 = vpop.eup %28616  ;;  %27210 = vmatpush3.msra.mxu0 %v30859_v29  ;;  %27211 = vmatprep.mubr.msk.f32.mxu0 %vm29305_vm3, %v35664_v39  ;;  %v4749_v36 = vpop.xlane.xlu1 %4748 }
 0x42c   : > { %27219 = vmatprep.subr.mxu0 %v35664_v39  ;;  %v4848_v2 = vmul.f32 %v28617_v45, %v30699_v47  ;;  %v28619_v13 = vpop.eup %28618  ;;  %28630 = vrcp.f32 %v4749_v36 }
 0x42d   : > { %v4752_v51 = vpop.xlane.xlu0 %4751  ;;  %v4849_v28 = vmul.f32 %v28619_v13, %v30703_v63 }
 0x42e   : > { %27207 = vmatmul.mubr.msk.f32.vlgmr.msra.gmra.mxu1 %vm4524_vm6, %v4848_v2  ;;  %28632 = vrcp.f32 %v4752_v51 }
 0x42f   : > { %v28621_v23 = vpop.eup %28620  ;;  %27215 = vmatpush3.msra.mxu1 %v30306_v8  ;;  %27216 = vmatprep.mubr.msk.f32.mxu1 %vm29305_vm3, %v35664_v39 }
 0x430   : > { %v4850_v47 = vmul.f32 %v28621_v23, %v30708_v55  ;;  %27212 = vmatmul.mubr.msk.f32.vlgmr.msra.gmra.mxu0 %vm4524_vm6, %v4849_v28  ;;  %27224 = vmatprep.subr.mxu1 %v35664_v39  ;;  %v30938_v23 = vadd.f32 %v30841_v58, %v30342_v31 }
 0x431   : > { %27220 = vmatpush3.msra.mxu0 %v30871_v26  ;;  %27221 = vmatprep.mubr.msk.f32.mxu0 %vm29305_vm3, %v35664_v39  ;;  %v28623_v63 = vpop.eup %28622  ;;  %v4758_v6 = vpop.xlane.xlu0 %4757 }
 0x432   : > { %v4755_v20 = vpop.xlane.xlu1 %4754  ;;  %27229 = vmatprep.subr.mxu0 %v35664_v39  ;;  %27217 = vmatmul.mubr.msk.f32.vlgmr.msra.gmra.mxu1 %vm4524_vm6, %v4850_v47  ;;  %v4851_v55 = vmul.f32 %v28623_v63, %v30713_v48 }
 0x433   : > { %v28625_v50 = vpop.eup %28624  ;;  %28634 = vrcp.f32 %v4755_v20  ;;  %27225 = vmatpush3.msra.mxu1 %v30319_v3  ;;  %27226 = vmatprep.mubr.msk.f32.mxu1 %vm29305_vm3, %v35664_v39 }
 0x434   : > { %v4852_v14 = vmul.f32 %v28625_v50, %v30716_v44  ;;  %28636 = vrcp.f32 %v4758_v6  ;;  %27234 = vmatprep.subr.mxu1 %v35664_v39  ;;  %27222 = vmatmul.mubr.msk.f32.vlgmr.msra.gmra.mxu0 %vm4524_vm6, %v4851_v55 }
 0x435   : > { %27230 = vmatpush3.msra.mxu0 %v30890_v62  ;;  %27231 = vmatprep.mubr.msk.f32.mxu0 %vm29305_vm3, %v35664_v39  ;;  %v4764_v48 = vpop.xlane.xlu0 %4763  ;;  %v28627_v12 = vpop.eup %28626 }
 0x436   : > { %v4761_v16 = vpop.xlane.xlu1 %4760  ;;  %27239 = vmatprep.subr.mxu0 %v35664_v39  ;;  %27227 = vmatmul.mubr.msk.f32.vlgmr.msra.gmra.mxu1 %vm4524_vm6, %v4852_v14  ;;  %v4853_v44 = vmul.f32 %v28627_v12, %v30724_v59 }
 0x437   : > { %28638 = vrcp.f32 %v4761_v16  ;;  %v28629_v22 = vpop.eup %28628  ;;  %27235 = vmatpush3.msra.mxu1 %v30325_v21  ;;  %27236 = vmatprep.mubr.msk.f32.mxu1 %vm29305_vm3, %v35664_v39 }
 0x438   : > { %28640 = vrcp.f32 %v4764_v48  ;;  %v4854_v27 = vmul.f32 %v28629_v22, %v30727_v1  ;;  %27244 = vmatprep.subr.mxu1 %v35664_v39  ;;  %27232 = vmatmul.mubr.msk.f32.vlgmr.msra.gmra.mxu0 %vm4524_vm6, %v4853_v44  ;;  %v30919_v1 = vadd.f32 %v30841_v58, %v30337_v30 }
 0x439   : > { %v4770_v2 = vpop.xlane.xlu0 %4769  ;;  %v28631_v13 = vpop.eup %28630  ;;  %27240 = vmatpush3.msra.mxu0 %v30906_v42  ;;  %27241 = vmatprep.mubr.msk.f32.mxu0 %vm29305_vm3, %v35664_v39 }
 0x43a   : > { %v4767_v45 = vpop.xlane.xlu1 %4766  ;;  %27249 = vmatprep.subr.mxu0 %v35664_v39  ;;  %27237 = vmatmul.mubr.msk.f32.vlgmr.msra.gmra.mxu1 %vm4524_vm6, %v4854_v27  ;;  %v4855_v17 = vmul.f32 %v28631_v13, %v30734_v52  ;;  %v35761_v13 = vld [vmem:[#allocation105_spill] sm:$0xff] }
 0x43b   : > { %28642 = vrcp.f32 %v4767_v45  ;;  %v28633_v59 = vpop.eup %28632  ;;  %27245 = vmatpush3.msra.mxu1 %v30330_v7  ;;  %27246 = vmatprep.mubr.msk.f32.mxu1 %vm29305_vm3, %v35664_v39 }
 0x43c   : > { %28644 = vrcp.f32 %v4770_v2  ;;  %v4856_v36 = vmul.f32 %v28633_v59, %v30737_v32  ;;  %27242 = vmatmul.mubr.msk.f32.vlgmr.msra.gmra.mxu0 %vm4524_vm6, %v4855_v17  ;;  %27254 = vmatprep.subr.mxu1 %v35664_v39 }
 0x43d   : > { %v4776_v28 = vpop.xlane.xlu0 %4775  ;;  %27250 = vmatpush3.msra.mxu0 %v30919_v1  ;;  %27251 = vmatprep.mubr.msk.f32.mxu0 %vm29305_vm3, %v35664_v39 }
 0x43e   : > { %v4773_v51 = vpop.xlane.xlu1 %4772  ;;  %27259 = vmatprep.subr.mxu0 %v35664_v39  ;;  %27247 = vmatmul.mubr.msk.f32.vlgmr.msra.gmra.mxu1 %vm4524_vm6, %v4856_v36  ;;  %v35762_v36 = vld [vmem:[#allocation109_spill] sm:$0xff] }
 0x43f   : > { %28646 = vrcp.f32 %v4773_v51  ;;  %27255 = vmatpush3.msra.mxu1 %v30335_v4  ;;  %27256 = vmatprep.mubr.msk.f32.mxu1 %vm29305_vm3, %v35664_v39  ;;  %v30999_v51 = vadd.f32 %v30841_v58, %v35762_v36 }
 0x440   : > { %v28635_v30 = vpop.eup %28634  ;;  %28648 = vrcp.f32 %v4776_v28  ;;  %27264 = vmatprep.subr.mxu1 %v35664_v39 }
 0x441   : > { %v28637_v52 = vpop.eup %28636  ;;  %v4857_v32 = vmul.f32 %v28635_v30, %v30747_v53  ;;  %v4782_v20 = vpop.xlane.xlu0 %4781  ;;  %35763 = vst [vmem:[#allocation109_spill] sm:$0xff] %v30999_v51 }
 0x442   : > { %v4858_v47 = vmul.f32 %v28637_v52, %v30744_v34  ;;  %v4779_v63 = vpop.xlane.xlu1 %4778  ;;  %v30951_v34 = vadd.f32 %v30841_v58, %v30347_v40  ;;  %v35764_v52 = vld [vmem:[#allocation106_spill] sm:$0xff] }
 0x443   : > { %28650 = vrcp.f32 %v4779_v63  ;;  %27252 = vmatmul.mubr.msk.f32.vlgmr.msra.gmra.mxu0 %vm4524_vm6, %v4857_v32  ;;  %v35765_v63 = vld [vmem:[#allocation111_spill] sm:$0xff] }
 0x444   : > { %v28639_v6 = vpop.eup %28638  ;;  %27260 = vmatpush3.msra.mxu0 %v30938_v23  ;;  %27261 = vmatprep.mubr.msk.f32.mxu0 %vm29305_vm3, %v35664_v39  ;;  %28652 = vrcp.f32 %v4782_v20  ;;  %v31015_v20 = vadd.f32 %v30841_v58, %v35765_v63 }
 0x445   : > { %v28641_v53 = vpop.eup %28640  ;;  %27269 = vmatprep.subr.mxu0 %v35664_v39  ;;  %27257 = vmatmul.mubr.msk.f32.vlgmr.msra.gmra.mxu1 %vm4524_vm6, %v4858_v47  ;;  %v4859_v31 = vmul.f32 %v28639_v6, %v30757_v43  ;;  %v4788_v14 = vpop.xlane.xlu0 %4787  ;;  %v30967_v43 = vadd.f32 %v30841_v58, %v30352_v15 }
 0x446   : > { %v4860_v50 = vmul.f32 %v28641_v53, %v30754_v54  ;;  %v4785_v55 = vpop.xlane.xlu1 %4784  ;;  %27265 = vmatpush3.msra.mxu1 %v30340_v38  ;;  %27266 = vmatprep.mubr.msk.f32.mxu1 %vm29305_vm3, %v35664_v39  ;;  %35766 = vst [vmem:[#allocation111_spill] sm:$0xff] %v31015_v20 }
 0x447   : > { %28654 = vrcp.f32 %v4785_v55  ;;  %27262 = vmatmul.mubr.msk.f32.vlgmr.msra.gmra.mxu0 %vm4524_vm6, %v4859_v31  ;;  %27274 = vmatprep.subr.mxu1 %v35664_v39  ;;  %v35767_v31 = vld [vmem:[#allocation108_spill] sm:$0xff] }
 0x448   : > { %v28643_v16 = vpop.eup %28642  ;;  %27270 = vmatpush3.msra.mxu0 %v30951_v34  ;;  %27271 = vmatprep.mubr.msk.f32.mxu0 %vm29305_vm3, %v35664_v39  ;;  %28656 = vrcp.f32 %v4788_v14  ;;  %v35768_v14 = vld [vmem:[#allocation113_spill] sm:$0xff] }
 0x449   : > { %v28645_v40 = vpop.eup %28644  ;;  %27279 = vmatprep.subr.mxu0 %v35664_v39  ;;  %27267 = vmatmul.mubr.msk.f32.vlgmr.msra.gmra.mxu1 %vm4524_vm6, %v4860_v50  ;;  %v4861_v54 = vmul.f32 %v28643_v16, %v30767_v25  ;;  %v4794_v22 = vpop.xlane.xlu0 %4793  ;;  %v35759_v25 = vld [vmem:[#allocation107_spill] sm:$0xff]  ;;  %v31031_v16 = vadd.f32 %v30841_v58, %v35768_v14  ;;  %v35790_v14 = vld [vmem:[#allocation48_spill] sm:$0xff] }
 0x44a   : > { %v4862_v48 = vmul.f32 %v28645_v40, %v30764_v24  ;;  %v4791_v12 = vpop.xlane.xlu1 %4790  ;;  %27275 = vmatpush3.msra.mxu1 %v30345_v46  ;;  %27276 = vmatprep.mubr.msk.f32.mxu1 %vm29305_vm3, %v35664_v39  ;;  %v30983_v27 = vadd.f32 %v30841_v58, %v35759_v25 }
 0x44b   : > { %28658 = vrcp.f32 %v4791_v12  ;;  %27272 = vmatmul.mubr.msk.f32.vlgmr.msra.gmra.mxu0 %vm4524_vm6, %v4861_v54  ;;  %27284 = vmatprep.subr.mxu1 %v35664_v39  ;;  %35769 = vst [vmem:[#allocation113_spill] sm:$0xff] %v31031_v16  ;;  %v35770_v54 = vld [vmem:[#allocation110_spill] sm:$0xff]  ;;  %v35771_v12 = vld [vmem:[#allocation115_spill] sm:$0xff] }
 0x44c   : > { %v28647_v44 = vpop.eup %28646  ;;  %27280 = vmatpush3.msra.mxu0 %v30967_v43  ;;  %27281 = vmatprep.mubr.msk.f32.mxu0 %vm29305_vm3, %v35664_v39  ;;  %28660 = vrcp.f32 %v4794_v22  ;;  %35760 = vst [vmem:[#allocation107_spill] sm:$0xff] %v30983_v27  ;;  %v31047_v22 = vadd.f32 %v30841_v58, %v35771_v12 }
 0x44d   : > { %v28649_v15 = vpop.eup %28648  ;;  %27289 = vmatprep.subr.mxu0 %v35664_v39  ;;  %27277 = vmatmul.mubr.msk.f32.vlgmr.msra.gmra.mxu1 %vm4524_vm6, %v4862_v48  ;;  %v4863_v24 = vmul.f32 %v28647_v44, %v30777_v33  ;;  %v4800_v59 = vpop.xlane.xlu0 %4799 }
 0x44e   : > { %v4864_v45 = vmul.f32 %v28649_v15, %v30774_v49  ;;  %v4797_v2 = vpop.xlane.xlu1 %4796  ;;  %27285 = vmatpush3.msra.mxu1 %v35761_v13  ;;  %27286 = vmatprep.mubr.msk.f32.mxu1 %vm29305_vm3, %v35664_v39  ;;  %35772 = vst [vmem:[#allocation115_spill] sm:$0xff] %v31047_v22  ;;  %v35773_v15 = vld [vmem:[#allocation112_spill] sm:$0xff] }
 0x44f   : > { %28662 = vrcp.f32 %v4797_v2  ;;  %27282 = vmatmul.mubr.msk.f32.vlgmr.msra.gmra.mxu0 %vm4524_vm6, %v4863_v24  ;;  %27294 = vmatprep.subr.mxu1 %v35664_v39 }
 0x450   : > { %v28651_v17 = vpop.eup %28650  ;;  %27290 = vmatpush3.msra.mxu0 %v30983_v27  ;;  %27291 = vmatprep.mubr.msk.f32.mxu0 %vm29305_vm3, %v35664_v39  ;;  %28664 = vrcp.f32 %v4800_v59 }
 0x451   : > { %v28653_v49 = vpop.eup %28652  ;;  %27299 = vmatprep.subr.mxu0 %v35664_v39  ;;  %27287 = vmatmul.mubr.msk.f32.vlgmr.msra.gmra.mxu1 %vm4524_vm6, %v4864_v45  ;;  %v4865_v33 = vmul.f32 %v28651_v17, %v30787_v57  ;;  %v4806_v32 = vpop.xlane.xlu0 %4805  ;;  %v35775_v45 = vld [vmem:[#allocation118_spill] sm:$0xff] }
 0x452   : > { %v4866_v28 = vmul.f32 %v28653_v49, %v30784_v60  ;;  %v4803_v30 = vpop.xlane.xlu1 %4802  ;;  %27295 = vmatpush3.msra.mxu1 %v35764_v52  ;;  %27296 = vmatprep.mubr.msk.f32.mxu1 %vm29305_vm3, %v35664_v39  ;;  %v31065_v2 = vadd.f32 %v30841_v58, %v35775_v45  ;;  %v35777_v17 = vld [vmem:[#allocation114_spill] sm:$0xff]  ;;  %v35797_v45 = vld [vmem:[#allocation57_spill] sm:$0xff] }
 0x453   : > { %28666 = vrcp.f32 %v4803_v30  ;;  %27292 = vmatmul.mubr.msk.f32.vlgmr.msra.gmra.mxu0 %vm4524_vm6, %v4865_v33  ;;  %27304 = vmatprep.subr.mxu1 %v35664_v39  ;;  %v35778_v33 = vld [vmem:[#allocation116_spill] sm:$0xff] }
 0x454   : > { %v28655_v47 = vpop.eup %28654  ;;  %27300 = vmatpush3.msra.mxu0 %v30999_v51  ;;  %27301 = vmatprep.mubr.msk.f32.mxu0 %vm29305_vm3, %v35664_v39  ;;  %28668 = vrcp.f32 %v4806_v32  ;;  %35776 = vst [vmem:[#allocation118_spill] sm:$0xff] %v31065_v2  ;;  %v35782_v30 = vld [vmem:[#allocation40_spill] sm:$0xff]  ;;  %v35783_v32 = vld [vmem:[#allocation39_spill] sm:$0xff] }
 0x455   : > { %v28657_v60 = vpop.eup %28656  ;;  %27309 = vmatprep.subr.mxu0 %v35664_v39  ;;  %27297 = vmatmul.mubr.msk.f32.vlgmr.msra.gmra.mxu1 %vm4524_vm6, %v4866_v28  ;;  %v4867_v57 = vmul.f32 %v28655_v47, %v30797_v19  ;;  %v4812_v50 = vpop.xlane.xlu0 %4811  ;;  %v35780_v28 = vld [vmem:[#allocation42_spill] sm:$0xff] }
 0x456   : > { %v4868_v6 = vmul.f32 %v28657_v60, %v30794_v9  ;;  %v4809_v53 = vpop.xlane.xlu1 %4808  ;;  %27305 = vmatpush3.msra.mxu1 %v35767_v31  ;;  %27306 = vmatprep.mubr.msk.f32.mxu1 %vm29305_vm3, %v35664_v39  ;;  %v35784_v60 = vld [vmem:[#allocation46_spill] sm:$0xff]  ;;  %v35909_v31 = vld [vmem:[#allocation148_spill] sm:$0xff] }
 0x457   : > { %28670 = vrcp.f32 %v4809_v53  ;;  %27302 = vmatmul.mubr.msk.f32.vlgmr.msra.gmra.mxu0 %vm4524_vm6, %v4867_v57  ;;  %27314 = vmatprep.subr.mxu1 %v35664_v39  ;;  %v35785_v57 = vld [vmem:[#allocation45_spill] sm:$0xff]  ;;  %v35787_v53 = vld [vmem:[#allocation43_spill] sm:$0xff] }
 0x458   : > { %v28659_v55 = vpop.eup %28658  ;;  %27310 = vmatpush3.msra.mxu0 %v31015_v20  ;;  %27311 = vmatprep.mubr.msk.f32.mxu0 %vm29305_vm3, %v35664_v39  ;;  %28672 = vrcp.f32 %v4812_v50 }
 0x459   : > { %v28661_v9 = vpop.eup %28660  ;;  %27319 = vmatprep.subr.mxu0 %v35664_v39  ;;  %27307 = vmatmul.mubr.msk.f32.vlgmr.msra.gmra.mxu1 %vm4524_vm6, %v4868_v6  ;;  %v4869_v19 = vmul.f32 %v28659_v55, %v30805_v37  ;;  %v35786_v6 = vld [vmem:[#allocation44_spill] sm:$0xff]  ;;  %v35788_v55 = vld [vmem:[#allocation50_spill] sm:$0xff] }
 0x45a   : > { %v4870_v40 = vmul.f32 %v28661_v9, %v30803_v0  ;;  %27315 = vmatpush3.msra.mxu1 %v35770_v54  ;;  %27316 = vmatprep.mubr.msk.f32.mxu1 %vm29305_vm3, %v35664_v39  ;;  %v35789_v9 = vld [vmem:[#allocation49_spill] sm:$0xff]  ;;  %v35907_v54 = vld [vmem:[#allocation146_spill] sm:$0xff] }
 0x45b   : > { %27312 = vmatmul.mubr.msk.f32.vlgmr.msra.gmra.mxu0 %vm4524_vm6, %v4869_v19  ;;  %27324 = vmatprep.subr.mxu1 %v35664_v39 }
 0x45c   : > { %v28663_v48 = vpop.eup %28662  ;;  %27320 = vmatpush3.msra.mxu0 %v31031_v16  ;;  %27321 = vmatprep.mubr.msk.f32.mxu0 %vm29305_vm3, %v35664_v39 }
 0x45d   : > { %v28665_v37 = vpop.eup %28664  ;;  %27329 = vmatprep.subr.mxu0 %v35664_v39  ;;  %27317 = vmatmul.mubr.msk.f32.vlgmr.msra.gmra.mxu1 %vm4524_vm6, %v4870_v40  ;;  %v4871_v0 = vmul.f32 %v28663_v48, %v30813_v5  ;;  %v35791_v40 = vld [vmem:[#allocation47_spill] sm:$0xff] }
 0x45e   : > { %v4872_v44 = vmul.f32 %v28665_v37, %v30811_v56  ;;  %27325 = vmatpush3.msra.mxu1 %v35773_v15  ;;  %27326 = vmatprep.mubr.msk.f32.mxu1 %vm29305_vm3, %v35664_v39  ;;  %v35774_v56 = vld [vmem:[#allocation5_spill] sm:$0xff]  ;;  %v35792_v37 = vld [vmem:[#allocation54_spill] sm:$0xff]  ;;  %v35905_v15 = vld [vmem:[#allocation144_spill] sm:$0xff] }
 0x45f   : > { %27322 = vmatmul.mubr.msk.f32.vlgmr.msra.gmra.mxu0 %vm4524_vm6, %v4871_v0  ;;  %27334 = vmatprep.subr.mxu1 %v35664_v39  ;;  %vm1885_vm10 = vcmp.ge.s32.totalorder %v35774_v56, 8  ;;  %vm1886_vm11 = vcmp.lt.s32.totalorder %v35774_v56, 16  ;;  %v35793_v0 = vld [vmem:[#allocation53_spill] sm:$0xff]  ;;  %v35903_v56 = vld [vmem:[#allocation142_spill] sm:$0xff] }
 0x460   : > { %v28667_v24 = vpop.eup %28666  ;;  %27330 = vmatpush3.msra.mxu0 %v31047_v22  ;;  %27331 = vmatprep.mubr.msk.f32.mxu0 %vm29305_vm3, %v35664_v39  ;;  %vm1887_vm12 = vmand %vm1885_vm10, %vm1886_vm11  ;;  %vm25022_vm10 = vcmask 1046534   ;;  %vm25025_vm11 = vcmask 1047559  }
 0x461   : > { %v28669_v5 = vpop.eup %28668  ;;  %v4873_v25 = vmul.f32 %v28667_v24, %v30821_v61  ;;  %27339 = vmatprep.subr.mxu0 %v35664_v39  ;;  %27327 = vmatmul.mubr.msk.f32.vlgmr.msra.gmra.mxu1 %vm4524_vm6, %v4872_v44  ;;  %v31086_v36 = vsel %vm1887_vm12, 1.0, %v35664_v39  ;;  %v35794_v44 = vld [vmem:[#allocation51_spill] sm:$0xff]  ;;  %v35795_v24 = vld [vmem:[#allocation52_spill] sm:$0xff] }
 0x462   : > { %v4874_v59 = vmul.f32 %v28669_v5, %v30819_v11  ;;  %27335 = vmatpush3.msra.mxu1 %v35777_v17  ;;  %27336 = vmatprep.mubr.msk.f32.mxu1 %vm29305_vm3, %v35664_v39  ;;  %35779 = vst [vmem:[#allocation150_spill] sm:$0xff] %v31086_v36  ;;  %v7278_v47 = vmul.f32 %v31086_v36, %v35783_v32 }
 0x463   : > { %27332 = vmatmul.mubr.msk.f32.vlgmr.msra.gmra.mxu0 %vm4524_vm6, %v4873_v25  ;;  %27344 = vmatprep.subr.mxu1 %v35664_v39  ;;  %v7279_v63 = vmul.f32 %v31086_v36, %v35785_v57  ;;  %v7280_v50 = vmul.f32 %v31086_v36, %v35787_v53  ;;  %v7281_v19 = vmul.f32 %v31086_v36, %v35789_v9  ;;  %v35796_v25 = vld [vmem:[#allocation58_spill] sm:$0xff] }
 0x464   : > { %v28671_v61 = vpop.eup %28670  ;;  %27340 = vmatpush3.msra.mxu0 %v31065_v2  ;;  %27341 = vmatprep.mubr.msk.f32.mxu0 %vm29305_vm3, %v35664_v39  ;;  %v7282_v48 = vmul.f32 %v31086_v36, %v35791_v40  ;;  %v7283_v12 = vmul.f32 %v31086_v36, %v35793_v0  ;;  %v7284_v5 = vmul.f32 %v31086_v36, %v35795_v24  ;;  %v35901_v2 = vld [vmem:[#allocation140_spill] sm:$0xff] }
 0x465   : > { %v28673_v49 = vpop.eup %28672  ;;  %v4875_v58 = vmul.f32 %v28671_v61, %v30829_v10  ;;  %27349 = vmatprep.subr.mxu0 %v35664_v39  ;;  %27337 = vmatmul.mubr.msk.f32.vlgmr.msra.gmra.mxu1 %vm4524_vm6, %v4874_v59  ;;  %v35781_v10 = vld [vmem:[#allocation41_spill] sm:$0xff]  ;;  %v7285_v59 = vmul.f32 %v31086_v36, %v35797_v45  ;;  %v35798_v61 = vld [vmem:[#allocation56_spill] sm:$0xff]  ;;  %v35878_v45 = vld [vmem:[#allocation119_spill] sm:$0xff] }
 0x466   : > { %v4876_v11 = vmul.f32 %v28673_v49, %v30827_v41  ;;  %27345 = vmatpush3.msra.mxu1 %v35778_v33  ;;  %27346 = vmatprep.mubr.msk.f32.mxu1 %vm29305_vm3, %v35664_v39  ;;  %v7277_v41 = vmul.f32 %v31086_v36, %v35781_v10  ;;  %v35799_v49 = vld [vmem:[#allocation55_spill] sm:$0xff] }
 0x467   : > { %27342 = vmatmul.mubr.msk.f32.vlgmr.msra.gmra.mxu0 %vm4524_vm6, %v4875_v58  ;;  %27354 = vmatprep.subr.mxu1 %v35664_v39  ;;  %v7286_v58 = vmul.f32 %v31086_v36, %v35799_v49 }
 0x468   : > { %27350 = vmatpush3.xpose.msk.msra.mxu0 %vm727_vm0, %v35780_v28  ;;  %27351 = vmatprep.mubr.msk.f32.mxu0 %vm29305_vm3, %v35664_v39  ;;  %v35899_v28 = vld [vmem:[#allocation138_spill] sm:$0xff] }
 0x469   : > { %27359 = vmatprep.subr.mxu0 %v35664_v39  ;;  %27347 = vmatmul.mubr.msk.f32.vlgmr.msra.gmra.mxu1 %vm4524_vm6, %v4876_v11  ;;  %v35800_v11 = vld [vmem:[#allocation62_spill] sm:$0xff] }
 0x46a   : > { %27355 = vmatpush3.xpose.msk.msra.mxu1 %vm727_vm0, %v35782_v30  ;;  %27356 = vmatprep.mubr.msk.f32.mxu1 %vm29305_vm3, %v35664_v39  ;;  %v35897_v30 = vld [vmem:[#allocation136_spill] sm:$0xff] }
 0x46b   : > { %27352 = vmatmul.mubr.msk.f32.vlgmr.msra.gmra.mxu0 %vm727_vm0, %v7277_v41  ;;  %27364 = vmatprep.subr.mxu1 %v35664_v39  ;;  %v35801_v41 = vld [vmem:[#allocation61_spill] sm:$0xff] }
 0x46c   : > { %27360 = vmatpush3.xpose.msk.msra.mxu0 %vm727_vm0, %v35784_v60  ;;  %27361 = vmatprep.mubr.msk.f32.mxu0 %vm29305_vm3, %v35664_v39  ;;  %v35895_v60 = vld [vmem:[#allocation134_spill] sm:$0xff] }
 0x46d   : > { %27369 = vmatprep.subr.mxu0 %v35664_v39  ;;  %27357 = vmatmul.mubr.msk.f32.vlgmr.msra.gmra.mxu1 %vm727_vm0, %v7278_v47  ;;  %v7287_v47 = vmul.f32 %v31086_v36, %v35801_v41 }
 0x46e   : > { %27365 = vmatpush3.xpose.msk.msra.mxu1 %vm727_vm0, %v35786_v6  ;;  %27366 = vmatprep.mubr.msk.f32.mxu1 %vm29305_vm3, %v35664_v39  ;;  %v35893_v6 = vld [vmem:[#allocation132_spill] sm:$0xff] }
 0x46f   : > { %27362 = vmatmul.mubr.msk.f32.vlgmr.msra.gmra.mxu0 %vm727_vm0, %v7279_v63  ;;  %27374 = vmatprep.subr.mxu1 %v35664_v39  ;;  %v35802_v63 = vld [vmem:[#allocation60_spill] sm:$0xff] }
 0x470   : > { %27370 = vmatpush3.xpose.msk.msra.mxu0 %vm727_vm0, %v35788_v55  ;;  %27371 = vmatprep.mubr.msk.f32.mxu0 %vm29305_vm3, %v35664_v39  ;;  %v35891_v55 = vld [vmem:[#allocation130_spill] sm:$0xff] }
 0x471   : > { %27379 = vmatprep.subr.mxu0 %v35664_v39  ;;  %27367 = vmatmul.mubr.msk.f32.vlgmr.msra.gmra.mxu1 %vm727_vm0, %v7280_v50  ;;  %v35803_v50 = vld [vmem:[#allocation59_spill] sm:$0xff] }
 0x472   : > { %27375 = vmatpush3.xpose.msk.msra.mxu1 %vm727_vm0, %v35790_v14  ;;  %27376 = vmatprep.mubr.msk.f32.mxu1 %vm29305_vm3, %v35664_v39  ;;  %v35889_v14 = vld [vmem:[#allocation128_spill] sm:$0xff] }
 0x473   : > { %27372 = vmatmul.mubr.msk.f32.vlgmr.msra.gmra.mxu0 %vm727_vm0, %v7281_v19  ;;  %27384 = vmatprep.subr.mxu1 %v35664_v39  ;;  %v7288_v19 = vmul.f32 %v31086_v36, %v35803_v50 }
 0x474   : > { %27380 = vmatpush3.xpose.msk.msra.mxu0 %vm727_vm0, %v35792_v37  ;;  %27381 = vmatprep.mubr.msk.f32.mxu0 %vm29305_vm3, %v35664_v39  ;;  %v35887_v37 = vld [vmem:[#allocation126_spill] sm:$0xff] }
 0x475   : > { %27389 = vmatprep.subr.mxu0 %v35664_v39  ;;  %27377 = vmatmul.mubr.msk.f32.vlgmr.msra.gmra.mxu1 %vm727_vm0, %v7282_v48  ;;  %v35804_v48 = vld [vmem:[#allocation66_spill] sm:$0xff] }
 0x476   : > { %27385 = vmatpush3.xpose.msk.msra.mxu1 %vm727_vm0, %v35794_v44  ;;  %27386 = vmatprep.mubr.msk.f32.mxu1 %vm29305_vm3, %v35664_v39  ;;  %v35885_v44 = vld [vmem:[#allocation124_spill] sm:$0xff] }
 0x477   : > { %27382 = vmatmul.mubr.msk.f32.vlgmr.msra.gmra.mxu0 %vm727_vm0, %v7283_v12  ;;  %27394 = vmatprep.subr.mxu1 %v35664_v39  ;;  %v35805_v12 = vld [vmem:[#allocation65_spill] sm:$0xff] }
 0x478   : > { %27390 = vmatpush3.xpose.msk.msra.mxu0 %vm727_vm0, %v35796_v25  ;;  %27391 = vmatprep.mubr.msk.f32.mxu0 %vm29305_vm3, %v35664_v39  ;;  %v35883_v25 = vld [vmem:[#allocation123_spill] sm:$0xff] }
 0x479   : > { %27399 = vmatprep.subr.mxu0 %v35664_v39  ;;  %27387 = vmatmul.mubr.msk.f32.vlgmr.msra.gmra.mxu1 %vm727_vm0, %v7284_v5  ;;  %v7289_v5 = vmul.f32 %v31086_v36, %v35805_v12 }
 0x47a   : > { %27395 = vmatpush3.xpose.msk.msra.mxu1 %vm727_vm0, %v35798_v61  ;;  %27396 = vmatprep.mubr.msk.f32.mxu1 %vm29305_vm3, %v35664_v39 }
 0x47b   : > { %27392 = vmatmul.mubr.msk.f32.vlgmr.msra.gmra.mxu0 %vm727_vm0, %v7285_v59  ;;  %27404 = vmatprep.subr.mxu1 %v35664_v39  ;;  %v35806_v59 = vld [vmem:[#allocation64_spill] sm:$0xff] }
 0x47c   : > { %27400 = vmatpush3.xpose.msk.msra.mxu0 %vm727_vm0, %v35800_v11  ;;  %27401 = vmatprep.mubr.msk.f32.mxu0 %vm29305_vm3, %v35664_v39 }
 0x47d   : > { %27409 = vmatprep.subr.mxu0 %v35664_v39  ;;  %27397 = vmatmul.mubr.msk.f32.vlgmr.msra.gmra.mxu1 %vm727_vm0, %v7286_v58  ;;  %v35807_v58 = vld [vmem:[#allocation63_spill] sm:$0xff] }
 0x47e   : > { %27405 = vmatpush3.xpose.msk.msra.mxu1 %vm727_vm0, %v35802_v63  ;;  %27406 = vmatprep.mubr.msk.f32.mxu1 %vm29305_vm3, %v35664_v39 }
 0x47f   : > { %27402 = vmatmul.mubr.msk.f32.vlgmr.msra.gmra.mxu0 %vm727_vm0, %v7287_v47  ;;  %27414 = vmatprep.subr.mxu1 %v35664_v39  ;;  %v7290_v47 = vmul.f32 %v31086_v36, %v35807_v58 }
 0x480   : > { %27410 = vmatpush3.xpose.msk.msra.mxu0 %vm727_vm0, %v35804_v48  ;;  %27411 = vmatprep.mubr.msk.f32.mxu0 %vm29305_vm3, %v35664_v39  ;;  %v35808_v48 = vld [vmem:[#allocation70_spill] sm:$0xff] }
 0x481   : > { %27419 = vmatprep.subr.mxu0 %v35664_v39  ;;  %27407 = vmatmul.mubr.msk.f32.vlgmr.msra.gmra.mxu1 %vm727_vm0, %v7288_v19  ;;  %v35809_v19 = vld [vmem:[#allocation69_spill] sm:$0xff] }
 0x482   : > { %27415 = vmatpush3.xpose.msk.msra.mxu1 %vm727_vm0, %v35806_v59  ;;  %27416 = vmatprep.mubr.msk.f32.mxu1 %vm29305_vm3, %v35664_v39  ;;  %v7291_v12 = vmul.f32 %v31086_v36, %v35809_v19  ;;  %v35810_v59 = vld [vmem:[#allocation68_spill] sm:$0xff] }
 0x483   : > { %27412 = vmatmul.mubr.msk.f32.vlgmr.msra.gmra.mxu0 %vm727_vm0, %v7289_v5  ;;  %27424 = vmatprep.subr.mxu1 %v35664_v39  ;;  %v35811_v5 = vld [vmem:[#allocation67_spill] sm:$0xff] }
 0x484   : > { %27420 = vmatpush3.xpose.msk.msra.mxu0 %vm727_vm0, %v35808_v48  ;;  %27421 = vmatprep.mubr.msk.f32.mxu0 %vm29305_vm3, %v35664_v39  ;;  %v7292_v58 = vmul.f32 %v31086_v36, %v35811_v5  ;;  %v35812_v48 = vld [vmem:[#allocation74_spill] sm:$0xff] }
 0x485   : > { %27429 = vmatprep.subr.mxu0 %v35664_v39  ;;  %27417 = vmatmul.mubr.msk.f32.vlgmr.msra.gmra.mxu1 %vm727_vm0, %v7290_v47  ;;  %v35813_v47 = vld [vmem:[#allocation73_spill] sm:$0xff] }
 0x486   : > { %27425 = vmatpush3.xpose.msk.msra.mxu1 %vm727_vm0, %v35810_v59  ;;  %27426 = vmatprep.mubr.msk.f32.mxu1 %vm29305_vm3, %v35664_v39  ;;  %v7293_v19 = vmul.f32 %v31086_v36, %v35813_v47  ;;  %v35814_v59 = vld [vmem:[#allocation72_spill] sm:$0xff] }
 0x487   : > { %27422 = vmatmul.mubr.msk.f32.vlgmr.msra.gmra.mxu0 %vm727_vm0, %v7291_v12  ;;  %27434 = vmatprep.subr.mxu1 %v35664_v39  ;;  %v35815_v12 = vld [vmem:[#allocation71_spill] sm:$0xff] }
 0x488   : > { %27430 = vmatpush3.xpose.msk.msra.mxu0 %vm727_vm0, %v35812_v48  ;;  %27431 = vmatprep.mubr.msk.f32.mxu0 %vm29305_vm3, %v35664_v39  ;;  %v7294_v5 = vmul.f32 %v31086_v36, %v35815_v12  ;;  %v35816_v48 = vld [vmem:[#allocation78_spill] sm:$0xff] }
 0x489   : > { %27439 = vmatprep.subr.mxu0 %v35664_v39  ;;  %27427 = vmatmul.mubr.msk.f32.vlgmr.msra.gmra.mxu1 %vm727_vm0, %v7292_v58  ;;  %v35817_v58 = vld [vmem:[#allocation77_spill] sm:$0xff] }
 0x48a   : > { %27435 = vmatpush3.xpose.msk.msra.mxu1 %vm727_vm0, %v35814_v59  ;;  %27436 = vmatprep.mubr.msk.f32.mxu1 %vm29305_vm3, %v35664_v39  ;;  %v7295_v47 = vmul.f32 %v31086_v36, %v35817_v58  ;;  %v35818_v59 = vld [vmem:[#allocation76_spill] sm:$0xff] }
 0x48b   : > { %27432 = vmatmul.mubr.msk.f32.vlgmr.msra.gmra.mxu0 %vm727_vm0, %v7293_v19  ;;  %27444 = vmatprep.subr.mxu1 %v35664_v39  ;;  %v35819_v19 = vld [vmem:[#allocation75_spill] sm:$0xff] }
 0x48c   : > { %27440 = vmatpush3.xpose.msk.msra.mxu0 %vm727_vm0, %v35816_v48  ;;  %27441 = vmatprep.mubr.msk.f32.mxu0 %vm29305_vm3, %v35664_v39  ;;  %v7296_v12 = vmul.f32 %v31086_v36, %v35819_v19  ;;  %v35820_v48 = vld [vmem:[#allocation82_spill] sm:$0xff] }
 0x48d   : > { %27449 = vmatprep.subr.mxu0 %v35664_v39  ;;  %27437 = vmatmul.mubr.msk.f32.vlgmr.msra.gmra.mxu1 %vm727_vm0, %v7294_v5  ;;  %v35821_v5 = vld [vmem:[#allocation81_spill] sm:$0xff] }
 0x48e   : > { %27445 = vmatpush3.xpose.msk.msra.mxu1 %vm727_vm0, %v35818_v59  ;;  %27446 = vmatprep.mubr.msk.f32.mxu1 %vm29305_vm3, %v35664_v39  ;;  %v7297_v58 = vmul.f32 %v31086_v36, %v35821_v5  ;;  %v35822_v59 = vld [vmem:[#allocation80_spill] sm:$0xff] }
 0x48f   : > { %27442 = vmatmul.mubr.msk.f32.vlgmr.msra.gmra.mxu0 %vm727_vm0, %v7295_v47  ;;  %27454 = vmatprep.subr.mxu1 %v35664_v39  ;;  %v35823_v47 = vld [vmem:[#allocation79_spill] sm:$0xff] }
 0x490   : > { %27450 = vmatpush3.xpose.msk.msra.mxu0 %vm727_vm0, %v35820_v48  ;;  %27451 = vmatprep.mubr.msk.f32.mxu0 %vm29305_vm3, %v35664_v39  ;;  %v7298_v19 = vmul.f32 %v31086_v36, %v35823_v47  ;;  %v35824_v48 = vld [vmem:[#allocation86_spill] sm:$0xff] }
 0x491   : > { %27459 = vmatprep.subr.mxu0 %v35664_v39  ;;  %27447 = vmatmul.mubr.msk.f32.vlgmr.msra.gmra.mxu1 %vm727_vm0, %v7296_v12  ;;  %v35825_v12 = vld [vmem:[#allocation85_spill] sm:$0xff] }
 0x492   : > { %27455 = vmatpush3.xpose.msk.msra.mxu1 %vm727_vm0, %v35822_v59  ;;  %27456 = vmatprep.mubr.msk.f32.mxu1 %vm29305_vm3, %v35664_v39  ;;  %v7299_v5 = vmul.f32 %v31086_v36, %v35825_v12  ;;  %v35826_v59 = vld [vmem:[#allocation84_spill] sm:$0xff] }
 0x493   : > { %27452 = vmatmul.mubr.msk.f32.vlgmr.msra.gmra.mxu0 %vm727_vm0, %v7297_v58  ;;  %27464 = vmatprep.subr.mxu1 %v35664_v39  ;;  %v35827_v58 = vld [vmem:[#allocation83_spill] sm:$0xff] }
 0x494   : > { %27460 = vmatpush3.xpose.msk.msra.mxu0 %vm727_vm0, %v35824_v48  ;;  %27461 = vmatprep.mubr.msk.f32.mxu0 %vm29305_vm3, %v35664_v39  ;;  %v7300_v47 = vmul.f32 %v31086_v36, %v35827_v58  ;;  %v35828_v48 = vld [vmem:[#allocation90_spill] sm:$0xff] }
 0x495   : > { %27469 = vmatprep.subr.mxu0 %v35664_v39  ;;  %27457 = vmatmul.mubr.msk.f32.vlgmr.msra.gmra.mxu1 %vm727_vm0, %v7298_v19  ;;  %v35829_v19 = vld [vmem:[#allocation89_spill] sm:$0xff] }
 0x496   : > { %27465 = vmatpush3.xpose.msk.msra.mxu1 %vm727_vm0, %v35826_v59  ;;  %27466 = vmatprep.mubr.msk.f32.mxu1 %vm29305_vm3, %v35664_v39  ;;  %v7301_v12 = vmul.f32 %v31086_v36, %v35829_v19  ;;  %v35830_v59 = vld [vmem:[#allocation88_spill] sm:$0xff] }
 0x497   : > { %27462 = vmatmul.mubr.msk.f32.vlgmr.msra.gmra.mxu0 %vm727_vm0, %v7299_v5  ;;  %27474 = vmatprep.subr.mxu1 %v35664_v39  ;;  %v35831_v5 = vld [vmem:[#allocation87_spill] sm:$0xff] }
 0x498   : > { %27470 = vmatpush3.xpose.msk.msra.mxu0 %vm727_vm0, %v35828_v48  ;;  %27471 = vmatprep.mubr.msk.f32.mxu0 %vm29305_vm3, %v35664_v39  ;;  %v7302_v58 = vmul.f32 %v31086_v36, %v35831_v5  ;;  %v35832_v48 = vld [vmem:[#allocation94_spill] sm:$0xff] }
 0x499   : > { %27479 = vmatprep.subr.mxu0 %v35664_v39  ;;  %27467 = vmatmul.mubr.msk.f32.vlgmr.msra.gmra.mxu1 %vm727_vm0, %v7300_v47  ;;  %v35833_v47 = vld [vmem:[#allocation93_spill] sm:$0xff] }
 0x49a   : > { %27475 = vmatpush3.xpose.msk.msra.mxu1 %vm727_vm0, %v35830_v59  ;;  %27476 = vmatprep.mubr.msk.f32.mxu1 %vm29305_vm3, %v35664_v39  ;;  %v7303_v19 = vmul.f32 %v31086_v36, %v35833_v47  ;;  %v35834_v59 = vld [vmem:[#allocation92_spill] sm:$0xff] }
 0x49b   : > { %27472 = vmatmul.mubr.msk.f32.vlgmr.msra.gmra.mxu0 %vm727_vm0, %v7301_v12  ;;  %27484 = vmatprep.subr.mxu1 %v35664_v39  ;;  %v35835_v12 = vld [vmem:[#allocation91_spill] sm:$0xff] }
 0x49c   : > { %27480 = vmatpush3.xpose.msk.msra.mxu0 %vm727_vm0, %v35832_v48  ;;  %27481 = vmatprep.mubr.msk.f32.mxu0 %vm29305_vm3, %v35664_v39  ;;  %v7304_v5 = vmul.f32 %v31086_v36, %v35835_v12  ;;  %v35836_v48 = vld [vmem:[#allocation98_spill] sm:$0xff] }
 0x49d   : > { %27489 = vmatprep.subr.mxu0 %v35664_v39  ;;  %27477 = vmatmul.mubr.msk.f32.vlgmr.msra.gmra.mxu1 %vm727_vm0, %v7302_v58  ;;  %v35837_v58 = vld [vmem:[#allocation97_spill] sm:$0xff] }
 0x49e   : > { %27485 = vmatpush3.xpose.msk.msra.mxu1 %vm727_vm0, %v35834_v59  ;;  %27486 = vmatprep.mubr.msk.f32.mxu1 %vm29305_vm3, %v35664_v39  ;;  %v7305_v47 = vmul.f32 %v31086_v36, %v35837_v58  ;;  %v35838_v59 = vld [vmem:[#allocation96_spill] sm:$0xff] }
 0x49f   : > { %27482 = vmatmul.mubr.msk.f32.vlgmr.msra.gmra.mxu0 %vm727_vm0, %v7303_v19  ;;  %27494 = vmatprep.subr.mxu1 %v35664_v39  ;;  %v35839_v19 = vld [vmem:[#allocation95_spill] sm:$0xff] }
 0x4a0   : > { %27490 = vmatpush3.xpose.msk.msra.mxu0 %vm727_vm0, %v35836_v48  ;;  %27491 = vmatprep.mubr.msk.f32.mxu0 %vm29305_vm3, %v35664_v39  ;;  %v7306_v12 = vmul.f32 %v31086_v36, %v35839_v19  ;;  %v35840_v48 = vld [vmem:[#allocation102_spill] sm:$0xff] }
 0x4a1   : > { %27499 = vmatprep.subr.mxu0 %v35664_v39  ;;  %27487 = vmatmul.mubr.msk.f32.vlgmr.msra.gmra.mxu1 %vm727_vm0, %v7304_v5  ;;  %v35841_v5 = vld [vmem:[#allocation101_spill] sm:$0xff] }
 0x4a2   : > { %27495 = vmatpush3.xpose.msk.msra.mxu1 %vm727_vm0, %v35838_v59  ;;  %27496 = vmatprep.mubr.msk.f32.mxu1 %vm29305_vm3, %v35664_v39  ;;  %v7307_v58 = vmul.f32 %v31086_v36, %v35841_v5  ;;  %v35842_v59 = vld [vmem:[#allocation100_spill] sm:$0xff] }
 0x4a3   : > { %27492 = vmatmul.mubr.msk.f32.vlgmr.msra.gmra.mxu0 %vm727_vm0, %v7305_v47  ;;  %27504 = vmatprep.subr.mxu1 %v35664_v39  ;;  %v35843_v47 = vld [vmem:[#allocation99_spill] sm:$0xff] }
 0x4a4   : > { %27500 = vmatpush3.xpose.msk.msra.mxu0 %vm727_vm0, %v35840_v48  ;;  %27501 = vmatprep.mubr.msk.f32.mxu0 %vm29305_vm3, %v35664_v39  ;;  %v7308_v19 = vmul.f32 %v31086_v36, %v35843_v47  ;;  %v35844_v48 = vld [vmem:[#allocation104_spill] sm:$0xff] }
 0x4a5   : > { %27509 = vmatprep.subr.mxu0 %v35664_v39  ;;  %27497 = vmatmul.mubr.msk.f32.vlgmr.msra.gmra.mxu1 %vm727_vm0, %v7306_v12  ;;  %v35845_v12 = vld [vmem:[#allocation103_spill] sm:$0xff] }
 0x4a6   : > { %27505 = vmatpush3.xpose.msk.msra.mxu1 %vm727_vm0, %v35842_v59  ;;  %27506 = vmatprep.mubr.msk.f32.mxu1 %vm29305_vm3, %v35664_v39 }
 0x4a7   : > { %27502 = vmatmul.mubr.msk.f32.vlgmr.msra.gmra.mxu0 %vm727_vm0, %v7307_v58  ;;  %27514 = vmatprep.subr.mxu1 %v35664_v39 }
 0x4a8   : > { %27510 = vmatpush3.msra.mxu0 %v35844_v48  ;;  %27511 = vmatprep.mubr.msk.f32.mxu0 %vm29305_vm3, %v35664_v39 }
 0x4a9   : > { %27507 = vmatmul.mubr.msk.f32.vlgmr.msra.gmra.mxu1 %vm727_vm0, %v7308_v19  ;;  %27519 = vmatprep.subr.mxu0 %v35664_v39 }
 0x4aa   : > { %27515 = vmatpush3.msra.mxu1 %v35845_v12  ;;  %27516 = vmatprep.mubr.msk.f32.mxu1 %vm29305_vm3, %v35664_v39 }
 0x4ab   : > { %27524 = vmatprep.subr.mxu1 %v35664_v39 }
 0x4e4   : > { %v31353_v36 = vpop.f32.mrf.mxu1 }
 0x4e5   : > { %35846 = vst [vmem:[#allocation151_spill] sm:$0xff] %v31353_v36 }
 0x4e6   : > { %v31355_v58 = vpop.f32.mrf.mxu0  ;;  %v27198_v47 = vpop.f32.mrf.mxu1 }
 0x4e7   : > { %35847 = vst [vmem:[#allocation152_spill] sm:$0xff] %v31355_v58 }
 0x4e8   : > { %v27193_v48 = vpop.f32.mrf.mxu0 }
 0x4ea   : > { %v31357_v59 = vpop.f32.mrf.mxu0 }
 0x4eb   : > { %35848 = vst [vmem:[#allocation153_spill] sm:$0xff] %v31357_v59 }
 0x4ec   : > { %v27203_v5 = vpop.f32.mrf.mxu0 }
 0x4ee   : > { %v31359_v50 = vpop.f32.mrf.mxu1 }
 0x4ef   : > { %35849 = vst [vmem:[#allocation154_spill] sm:$0xff] %v31359_v50 }
 0x4f0   : > { %v31361_v19 = vpop.f32.mrf.mxu0  ;;  %v27208_v63 = vpop.f32.mrf.mxu1 }
 0x4f1   : > { %35850 = vst [vmem:[#allocation155_spill] sm:$0xff] %v31361_v19 }
 0x4f2   : > { %v27213_v12 = vpop.f32.mrf.mxu0  ;;  %v31363_v41 = vpop.f32.mrf.mxu1 }
 0x4f3   : > { %35851 = vst [vmem:[#allocation156_spill] sm:$0xff] %v31363_v41 }
 0x4f4   : > { %v27218_v11 = vpop.f32.mrf.mxu1  ;;  %v31365_v49 = vpop.f32.mrf.mxu0 }
 0x4f5   : > { %35852 = vst [vmem:[#allocation157_spill] sm:$0xff] %v31365_v49 }
 0x4f6   : > { %v27223_v61 = vpop.f32.mrf.mxu0  ;;  %v31367_v36 = vpop.f32.mrf.mxu1 }
 0x4f7   : > { %35853 = vst [vmem:[#allocation158_spill] sm:$0xff] %v31367_v36 }
 0x4f8   : > { %v27228_v58 = vpop.f32.mrf.mxu1  ;;  %v31369_v47 = vpop.f32.mrf.mxu0 }
 0x4f9   : > { %35854 = vst [vmem:[#allocation159_spill] sm:$0xff] %v31369_v47 }
 0x4fa   : > { %v27233_v48 = vpop.f32.mrf.mxu0  ;;  %v31371_v59 = vpop.f32.mrf.mxu1 }
 0x4fb   : > { %35855 = vst [vmem:[#allocation160_spill] sm:$0xff] %v31371_v59 }
 0x4fc   : > { %v31373_v5 = vpop.f32.mrf.mxu0  ;;  %v27238_v50 = vpop.f32.mrf.mxu1 }
 0x4fd   : > { %35856 = vst [vmem:[#allocation161_spill] sm:$0xff] %v31373_v5 }
 0x4fe   : > { %v27243_v19 = vpop.f32.mrf.mxu0  ;;  %v31375_v63 = vpop.f32.mrf.mxu1 }
 0x4ff   : > { %35857 = vst [vmem:[#allocation162_spill] sm:$0xff] %v31375_v63 }
 0x500   : > { %v27248_v12 = vpop.f32.mrf.mxu1 }
 0x503   : > { %v31377_v41 = vpop.f32.mrf.mxu0 }
 0x504   : > { %35858 = vst [vmem:[#allocation163_spill] sm:$0xff] %v31377_v41 }
 0x505   : > { %v27253_v11 = vpop.f32.mrf.mxu0  ;;  %v31379_v49 = vpop.f32.mrf.mxu1 }
 0x506   : > { %35859 = vst [vmem:[#allocation164_spill] sm:$0xff] %v31379_v49 }
 0x507   : > { %v31381_v61 = vpop.f32.mrf.mxu0  ;;  %v27258_v58 = vpop.f32.mrf.mxu1 }
 0x508   : > { %35860 = vst [vmem:[#allocation165_spill] sm:$0xff] %v31381_v61 }
 0x509   : > { %v27263_v36 = vpop.f32.mrf.mxu0  ;;  %v31383_v47 = vpop.f32.mrf.mxu1 }
 0x50a   : > { %35861 = vst [vmem:[#allocation166_spill] sm:$0xff] %v31383_v47 }
 0x50b   : > { %v31385_v48 = vpop.f32.mrf.mxu0  ;;  %v27268_v59 = vpop.f32.mrf.mxu1 }
 0x50c   : > { %35862 = vst [vmem:[#allocation167_spill] sm:$0xff] %v31385_v48 }
 0x50d   : > { %v27273_v5 = vpop.f32.mrf.mxu0  ;;  %v31387_v50 = vpop.f32.mrf.mxu1 }
 0x50e   : > { %35863 = vst [vmem:[#allocation168_spill] sm:$0xff] %v31387_v50 }
 0x50f   : > { %v31389_v19 = vpop.f32.mrf.mxu0  ;;  %v27278_v12 = vpop.f32.mrf.mxu1 }
 0x510   : > { %35864 = vst [vmem:[#allocation169_spill] sm:$0xff] %v31389_v19 }
 0x511   : > { %v27283_v63 = vpop.f32.mrf.mxu0  ;;  %v31391_v41 = vpop.f32.mrf.mxu1 }
 0x512   : > { %35865 = vst [vmem:[#allocation170_spill] sm:$0xff] %v31391_v41 }
 0x513   : > { %v31393_v11 = vpop.f32.mrf.mxu0  ;;  %v27288_v49 = vpop.f32.mrf.mxu1 }
 0x514   : > { %35866 = vst [vmem:[#allocation171_spill] sm:$0xff] %v31393_v11 }
 0x515   : > { %v27293_v61 = vpop.f32.mrf.mxu0  ;;  %v31395_v58 = vpop.f32.mrf.mxu1 }
 0x516   : > { %35867 = vst [vmem:[#allocation172_spill] sm:$0xff] %v31395_v58 }
 0x517   : > { %v31397_v36 = vpop.f32.mrf.mxu0  ;;  %v27298_v47 = vpop.f32.mrf.mxu1 }
 0x518   : > { %35868 = vst [vmem:[#allocation173_spill] sm:$0xff] %v31397_v36 }
 0x519   : > { %v27303_v48 = vpop.f32.mrf.mxu0  ;;  %v31399_v59 = vpop.f32.mrf.mxu1 }
 0x51a   : > { %35869 = vst [vmem:[#allocation174_spill] sm:$0xff] %v31399_v59 }
 0x51b   : > { %v31401_v5 = vpop.f32.mrf.mxu0  ;;  %v27308_v50 = vpop.f32.mrf.mxu1 }
 0x51c   : > { %35870 = vst [vmem:[#allocation175_spill] sm:$0xff] %v31401_v5 }
 0x51d   : > { %v27313_v19 = vpop.f32.mrf.mxu0  ;;  %v31403_v12 = vpop.f32.mrf.mxu1 }
 0x51e   : > { %35871 = vst [vmem:[#allocation176_spill] sm:$0xff] %v31403_v12 }
 0x51f   : > { %v31405_v63 = vpop.f32.mrf.mxu0  ;;  %v27318_v41 = vpop.f32.mrf.mxu1 }
 0x520   : > { %35872 = vst [vmem:[#allocation177_spill] sm:$0xff] %v31405_v63 }
 0x521   : > { %v27323_v11 = vpop.f32.mrf.mxu0  ;;  %v31407_v49 = vpop.f32.mrf.mxu1 }
 0x522   : > { %35873 = vst [vmem:[#allocation178_spill] sm:$0xff] %v31407_v49 }
 0x523   : > { %v31409_v61 = vpop.f32.mrf.mxu0  ;;  %v27328_v58 = vpop.f32.mrf.mxu1 }
 0x524   : > { %35874 = vst [vmem:[#allocation179_spill] sm:$0xff] %v31409_v61  ;;  %v35879_v58 = vld [vmem:[#allocation117_spill] sm:$0xff] }
 0x525   : > { %v27333_v36 = vpop.f32.mrf.mxu0  ;;  %v31411_v47 = vpop.f32.mrf.mxu1 }
 0x526   : > { %35875 = vst [vmem:[#allocation180_spill] sm:$0xff] %v31411_v47 }
 0x527   : > { %v31413_v48 = vpop.f32.mrf.mxu0  ;;  %v27338_v59 = vpop.f32.mrf.mxu1 }
 0x528   : > { %35876 = vst [vmem:[#allocation181_spill] sm:$0xff] %v31413_v48  ;;  %v35880_v59 = vld [vmem:[#allocation120_spill] sm:$0xff] }
 0x529   : > { %v27343_v5 = vpop.f32.mrf.mxu0  ;;  %v31415_v50 = vpop.f32.mrf.mxu1 }
 0x52a   : > { %35877 = vst [vmem:[#allocation182_spill] sm:$0xff] %v31415_v50 }
 0x52b   : > { %v7378_v19 = vpop.f32.mrf.mxu0  ;;  %v27348_v12 = vpop.f32.mrf.mxu1 }
 0x52c   : > { %v31418_v63 = vadd.f32 %v7378_v19, %v35878_v45  ;;  %v35881_v45 = vld [vmem:[#allocation121_spill] sm:$0xff] }
 0x52d   : > { %v27353_v41 = vpop.f32.mrf.mxu0  ;;  %v7451_v11 = vpop.f32.mrf.mxu1 }
 0x52e   : > { %v9645_v61 = vsel %vm4524_vm6, %v31418_v63, -inf  ;;  %v31423_v36 = vadd.f32 %v7451_v11, %v35879_v58  ;;  %v35882_v58 = vld [vmem:[#allocation122_spill] sm:$0xff] }
 0x52f   : > { %9646 = vmax.xlane.f32.xlu1 %v9645_v61  ;;  %v7524_v47 = vpop.f32.mrf.mxu0  ;;  %v27358_v48 = vpop.f32.mrf.mxu1 }
 0x530   : > { %v31426_v5 = vadd.f32 %v7524_v47, %v35880_v59  ;;  %v9648_v12 = vsel %vm4524_vm6, %v31423_v36, -inf }
 0x531   : > { %v27363_v50 = vpop.f32.mrf.mxu0  ;;  %9649 = vmax.xlane.f32.xlu0 %v9648_v12  ;;  %v7597_v19 = vpop.f32.mrf.mxu1 }
 0x532   : > { %v9651_v41 = vsel %vm4524_vm6, %v31426_v5, -inf  ;;  %v31433_v49 = vadd.f32 %v7597_v19, %v35881_v45  ;;  %v35884_v45 = vld [vmem:[#allocation125_spill] sm:$0xff] }
 0x533   : > { %9652 = vmax.xlane.f32.xlu1 %v9651_v41  ;;  %v7670_v11 = vpop.f32.mrf.mxu0  ;;  %v27368_v61 = vpop.f32.mrf.mxu1 }
 0x534   : > { %v31436_v48 = vadd.f32 %v7670_v11, %v35882_v58  ;;  %v9654_v47 = vsel %vm4524_vm6, %v31433_v49, -inf }
 0x535   : > { %v27373_v59 = vpop.f32.mrf.mxu0  ;;  %9655 = vmax.xlane.f32.xlu0 %v9654_v47  ;;  %v7743_v50 = vpop.f32.mrf.mxu1 }
 0x536   : > { %v9657_v12 = vsel %vm4524_vm6, %v31436_v48, -inf  ;;  %v31443_v24 = vadd.f32 %v7743_v50, %v35883_v25  ;;  %v35886_v25 = vld [vmem:[#allocation127_spill] sm:$0xff] }
 0x537   : > { %9658 = vmax.xlane.f32.xlu1 %v9657_v12  ;;  %v7816_v19 = vpop.f32.mrf.mxu0  ;;  %v27378_v41 = vpop.f32.mrf.mxu1 }
 0x538   : > { %v31446_v61 = vadd.f32 %v7816_v19, %v35884_v45  ;;  %v9660_v11 = vsel %vm4524_vm6, %v31443_v24, -inf }
 0x539   : > { %v27383_v58 = vpop.f32.mrf.mxu0  ;;  %9661 = vmax.xlane.f32.xlu0 %v9660_v11  ;;  %v7889_v59 = vpop.f32.mrf.mxu1 }
 0x53a   : > { %v9663_v47 = vsel %vm4524_vm6, %v31446_v61, -inf  ;;  %v31453_v0 = vadd.f32 %v7889_v59, %v35885_v44  ;;  %v35888_v44 = vld [vmem:[#allocation129_spill] sm:$0xff] }
 0x53b   : > { %9664 = vmax.xlane.f32.xlu1 %v9663_v47  ;;  %v7962_v50 = vpop.f32.mrf.mxu0  ;;  %v27388_v12 = vpop.f32.mrf.mxu1 }
 0x53c   : > { %v31456_v41 = vadd.f32 %v7962_v50, %v35886_v25  ;;  %v9666_v19 = vsel %vm4524_vm6, %v31453_v0, -inf }
 0x53d   : > { %v27393_v45 = vpop.f32.mrf.mxu0  ;;  %9667 = vmax.xlane.f32.xlu0 %v9666_v19  ;;  %v8035_v58 = vpop.f32.mrf.mxu1 }
 0x53e   : > { %v9669_v11 = vsel %vm4524_vm6, %v31456_v41, -inf  ;;  %v31463_v40 = vadd.f32 %v8035_v58, %v35887_v37  ;;  %v35890_v37 = vld [vmem:[#allocation131_spill] sm:$0xff] }
 0x53f   : > { %9670 = vmax.xlane.f32.xlu1 %v9669_v11  ;;  %v8108_v59 = vpop.f32.mrf.mxu0  ;;  %v27398_v47 = vpop.f32.mrf.mxu1 }
 0x540   : > { %v31466_v12 = vadd.f32 %v8108_v59, %v35888_v44  ;;  %v9672_v50 = vsel %vm4524_vm6, %v31463_v40, -inf }
 0x541   : > { %v27403_v25 = vpop.f32.mrf.mxu0  ;;  %9673 = vmax.xlane.f32.xlu0 %v9672_v50  ;;  %v8181_v45 = vpop.f32.mrf.mxu1 }
 0x542   : > { %v9675_v19 = vsel %vm4524_vm6, %v31466_v12, -inf  ;;  %v31473_v9 = vadd.f32 %v8181_v45, %v35889_v14  ;;  %v35892_v14 = vld [vmem:[#allocation133_spill] sm:$0xff] }
 0x543   : > { %9676 = vmax.xlane.f32.xlu1 %v9675_v19  ;;  %v8254_v58 = vpop.f32.mrf.mxu0  ;;  %v27408_v11 = vpop.f32.mrf.mxu1 }
 0x544   : > { %v31476_v47 = vadd.f32 %v8254_v58, %v35890_v37  ;;  %v9678_v59 = vsel %vm4524_vm6, %v31473_v9, -inf }
 0x545   : > { %v27413_v44 = vpop.f32.mrf.mxu0  ;;  %9679 = vmax.xlane.f32.xlu0 %v9678_v59  ;;  %v8327_v25 = vpop.f32.mrf.mxu1 }
 0x546   : > { %v9681_v50 = vsel %vm4524_vm6, %v31476_v47, -inf  ;;  %v31483_v53 = vadd.f32 %v8327_v25, %v35891_v55  ;;  %v35894_v55 = vld [vmem:[#allocation135_spill] sm:$0xff] }
 0x547   : > { %9682 = vmax.xlane.f32.xlu1 %v9681_v50  ;;  %v8400_v45 = vpop.f32.mrf.mxu0  ;;  %v27418_v19 = vpop.f32.mrf.mxu1 }
 0x548   : > { %v31486_v11 = vadd.f32 %v8400_v45, %v35892_v14  ;;  %v9684_v58 = vsel %vm4524_vm6, %v31483_v53, -inf }
 0x549   : > { %v27423_v37 = vpop.f32.mrf.mxu0  ;;  %9685 = vmax.xlane.f32.xlu0 %v9684_v58  ;;  %v8473_v44 = vpop.f32.mrf.mxu1 }
 0x54a   : > { %v9687_v59 = vsel %vm4524_vm6, %v31486_v11, -inf  ;;  %v31493_v57 = vadd.f32 %v8473_v44, %v35893_v6  ;;  %v35896_v6 = vld [vmem:[#allocation137_spill] sm:$0xff] }
 0x54b   : > { %9688 = vmax.xlane.f32.xlu1 %v9687_v59  ;;  %v8546_v25 = vpop.f32.mrf.mxu0  ;;  %v27428_v50 = vpop.f32.mrf.mxu1 }
 0x54c   : > { %v31496_v19 = vadd.f32 %v8546_v25, %v35894_v55  ;;  %v9690_v45 = vsel %vm4524_vm6, %v31493_v57, -inf }
 0x54d   : > { %v27433_v14 = vpop.f32.mrf.mxu0  ;;  %9691 = vmax.xlane.f32.xlu0 %v9690_v45  ;;  %v8619_v37 = vpop.f32.mrf.mxu1 }
 0x54e   : > { %v9693_v58 = vsel %vm4524_vm6, %v31496_v19, -inf  ;;  %v31503_v32 = vadd.f32 %v8619_v37, %v35895_v60  ;;  %v35898_v60 = vld [vmem:[#allocation139_spill] sm:$0xff] }
 0x54f   : > { %9694 = vmax.xlane.f32.xlu1 %v9693_v58  ;;  %v8692_v44 = vpop.f32.mrf.mxu0  ;;  %v27438_v59 = vpop.f32.mrf.mxu1 }
 0x550   : > { %v31506_v50 = vadd.f32 %v8692_v44, %v35896_v6  ;;  %v9696_v25 = vsel %vm4524_vm6, %v31503_v32, -inf }
 0x551   : > { %v27443_v55 = vpop.f32.mrf.mxu0  ;;  %9697 = vmax.xlane.f32.xlu0 %v9696_v25  ;;  %v8765_v14 = vpop.f32.mrf.mxu1 }
 0x552   : > { %v9699_v45 = vsel %vm4524_vm6, %v31506_v50, -inf  ;;  %v31513_v10 = vadd.f32 %v8765_v14, %v35897_v30  ;;  %v35900_v30 = vld [vmem:[#allocation141_spill] sm:$0xff] }
 0x553   : > { %9700 = vmax.xlane.f32.xlu1 %v9699_v45  ;;  %v8838_v37 = vpop.f32.mrf.mxu0  ;;  %v27448_v58 = vpop.f32.mrf.mxu1 }
 0x554   : > { %v31516_v59 = vadd.f32 %v8838_v37, %v35898_v60  ;;  %v9702_v44 = vsel %vm4524_vm6, %v31513_v10, -inf }
 0x555   : > { %v27453_v6 = vpop.f32.mrf.mxu0  ;;  %9703 = vmax.xlane.f32.xlu0 %v9702_v44  ;;  %v8911_v55 = vpop.f32.mrf.mxu1 }
 0x556   : > { %v9705_v25 = vsel %vm4524_vm6, %v31516_v59, -inf  ;;  %v31523_v33 = vadd.f32 %v8911_v55, %v35899_v28  ;;  %v35902_v28 = vld [vmem:[#allocation143_spill] sm:$0xff] }
 0x557   : > { %9706 = vmax.xlane.f32.xlu1 %v9705_v25  ;;  %v8984_v14 = vpop.f32.mrf.mxu0  ;;  %v27458_v45 = vpop.f32.mrf.mxu1 }
 0x558   : > { %v31526_v58 = vadd.f32 %v8984_v14, %v35900_v30  ;;  %v9708_v37 = vsel %vm4524_vm6, %v31523_v33, -inf }
 0x559   : > { %v27463_v60 = vpop.f32.mrf.mxu0  ;;  %9709 = vmax.xlane.f32.xlu0 %v9708_v37  ;;  %v9057_v6 = vpop.f32.mrf.mxu1 }
 0x55a   : > { %v9711_v44 = vsel %vm4524_vm6, %v31526_v58, -inf  ;;  %v31533_v17 = vadd.f32 %v9057_v6, %v35901_v2  ;;  %v35904_v2 = vld [vmem:[#allocation145_spill] sm:$0xff] }
 0x55b   : > { %9712 = vmax.xlane.f32.xlu1 %v9711_v44  ;;  %v9130_v55 = vpop.f32.mrf.mxu0  ;;  %v27468_v25 = vpop.f32.mrf.mxu1 }
 0x55c   : > { %v31536_v45 = vadd.f32 %v9130_v55, %v35902_v28  ;;  %v9714_v14 = vsel %vm4524_vm6, %v31533_v17, -inf }
 0x55d   : > { %v27473_v30 = vpop.f32.mrf.mxu0  ;;  %9715 = vmax.xlane.f32.xlu0 %v9714_v14  ;;  %v9203_v60 = vpop.f32.mrf.mxu1 }
 0x55e   : > { %v9717_v37 = vsel %vm4524_vm6, %v31536_v45, -inf  ;;  %v31543_v22 = vadd.f32 %v9203_v60, %v35903_v56  ;;  %v35906_v56 = vld [vmem:[#allocation147_spill] sm:$0xff] }
 0x55f   : > { %9718 = vmax.xlane.f32.xlu1 %v9717_v37  ;;  %v9276_v6 = vpop.f32.mrf.mxu0  ;;  %v27478_v44 = vpop.f32.mrf.mxu1 }
 0x560   : > { %v31546_v25 = vadd.f32 %v9276_v6, %v35904_v2  ;;  %v9720_v55 = vsel %vm4524_vm6, %v31543_v22, -inf }
 0x561   : > { %v27483_v28 = vpop.f32.mrf.mxu0  ;;  %9721 = vmax.xlane.f32.xlu0 %v9720_v55  ;;  %v9349_v30 = vpop.f32.mrf.mxu1 }
 0x562   : > { %v9723_v14 = vsel %vm4524_vm6, %v31546_v25, -inf  ;;  %v31553_v16 = vadd.f32 %v9349_v30, %v35905_v15  ;;  %v35908_v15 = vld [vmem:[#allocation149_spill] sm:$0xff] }
 0x563   : > { %9724 = vmax.xlane.f32.xlu1 %v9723_v14  ;;  %v9422_v60 = vpop.f32.mrf.mxu0  ;;  %v27488_v37 = vpop.f32.mrf.mxu1 }
 0x564   : > { %v31556_v44 = vadd.f32 %v9422_v60, %v35906_v56  ;;  %v9726_v6 = vsel %vm4524_vm6, %v31553_v16, -inf }
 0x565   : > { %v27493_v2 = vpop.f32.mrf.mxu0  ;;  %9727 = vmax.xlane.f32.xlu0 %v9726_v6  ;;  %v9495_v28 = vpop.f32.mrf.mxu1 }
 0x566   : > { %v9729_v55 = vsel %vm4524_vm6, %v31556_v44, -inf  ;;  %v31563_v20 = vadd.f32 %v9495_v28, %v35907_v54 }
 0x567   : > { %9730 = vmax.xlane.f32.xlu1 %v9729_v55  ;;  %v9568_v30 = vpop.f32.mrf.mxu0  ;;  %v27498_v14 = vpop.f32.mrf.mxu1 }
 0x568   : > { %v31566_v37 = vadd.f32 %v9568_v30, %v35908_v15  ;;  %v9732_v60 = vsel %vm4524_vm6, %v31563_v20, -inf }
 0x569   : > { %v27503_v56 = vpop.f32.mrf.mxu0  ;;  %9733 = vmax.xlane.f32.xlu0 %v9732_v60  ;;  %v9641_v2 = vpop.f32.mrf.mxu1 }
 0x56a   : > { %v9735_v6 = vsel %vm4524_vm6, %v31566_v37, -inf  ;;  %v31573_v51 = vadd.f32 %v9641_v2, %v35909_v31 }
 0x56b   : > { %9736 = vmax.xlane.f32.xlu1 %v9735_v6  ;;  %v27508_v28 = vpop.f32.mrf.mxu1 }
 0x56c   : > { %v9738_v55 = vsel %vm4524_vm6, %v31573_v51, -inf }
 0x56d   : > { %9739 = vmax.xlane.f32.xlu0 %v9738_v55 }
 0x5b8   : > { %v9647_v30 = vpop.xlane.xlu1 %9646 }
 0x5b9   : > { %v9741_v14 = vsub.f32 %v31418_v63, %v9647_v30 }
 0x5ba   : > { %v9650_v15 = vpop.xlane.xlu0 %9649 }
 0x5bb   : > { %v9773_v54 = vmul.f32 1.442695, %v9741_v14  ;;  %v9742_v56 = vsub.f32 %v31423_v36, %v9650_v15 }
 0x5bc   : > { %v9653_v60 = vpop.xlane.xlu1 %9652 }
 0x5bd   : > { %28674 = vpow2.f32 %v9773_v54  ;;  %v9743_v52 = vsub.f32 %v31426_v5, %v9653_v60  ;;  %v9775_v27 = vmul.f32 1.442695, %v9742_v56 }
 0x5be   : > { %v9656_v2 = vpop.xlane.xlu0 %9655 }
 0x5bf   : > { %v9777_v31 = vmul.f32 1.442695, %v9743_v52  ;;  %28676 = vpow2.f32 %v9775_v27  ;;  %v9744_v6 = vsub.f32 %v31433_v49, %v9656_v2 }
 0x5c0   : > { %v9659_v28 = vpop.xlane.xlu1 %9658 }
 0x5c1   : > { %28678 = vpow2.f32 %v9777_v31  ;;  %v9745_v55 = vsub.f32 %v31436_v48, %v9659_v28  ;;  %v9779_v13 = vmul.f32 1.442695, %v9744_v6 }
 0x5c2   : > { %v9662_v63 = vpop.xlane.xlu0 %9661 }
 0x5c3   : > { %v9781_v30 = vmul.f32 1.442695, %v9745_v55  ;;  %28680 = vpow2.f32 %v9779_v13  ;;  %v9746_v15 = vsub.f32 %v31443_v24, %v9662_v63 }
 0x5c4   : > { %v9665_v36 = vpop.xlane.xlu1 %9664 }
 0x5c5   : > { %28682 = vpow2.f32 %v9781_v30  ;;  %v9747_v54 = vsub.f32 %v31446_v61, %v9665_v36  ;;  %v9783_v5 = vmul.f32 1.442695, %v9746_v15 }
 0x5c6   : > { %v9668_v14 = vpop.xlane.xlu0 %9667 }
 0x5c7   : > { %v9785_v52 = vmul.f32 1.442695, %v9747_v54  ;;  %28684 = vpow2.f32 %v9783_v5  ;;  %v9748_v27 = vsub.f32 %v31453_v0, %v9668_v14 }
 0x5c8   : > { %v9671_v49 = vpop.xlane.xlu1 %9670 }
 0x5c9   : > { %28686 = vpow2.f32 %v9785_v52  ;;  %v9749_v31 = vsub.f32 %v31456_v41, %v9671_v49  ;;  %v9787_v48 = vmul.f32 1.442695, %v9748_v27 }
 0x5ca   : > { %v31586_v56 = vpop.eup %28674  ;;  %v9674_v13 = vpop.xlane.xlu0 %9673 }
 0x5cb   : > { %v9789_v60 = vmul.f32 1.442695, %v9749_v31  ;;  %28688 = vpow2.f32 %v9787_v48  ;;  %v9837_v24 = vsel %vm4524_vm6, %v31586_v56, 0.0  ;;  %v9750_v61 = vsub.f32 %v31463_v40, %v9674_v13 }
 0x5cc   : > { %v31591_v2 = vpop.eup %28676  ;;  %v9677_v6 = vpop.xlane.xlu1 %9676  ;;  %9838 = vadd.xlane.f32.xlu1 %v9837_v24 }
 0x5cd   : > { %28690 = vpow2.f32 %v9789_v60  ;;  %v9751_v0 = vsub.f32 %v31466_v12, %v9677_v6  ;;  %v9791_v28 = vmul.f32 1.442695, %v9750_v61  ;;  %v9840_v41 = vsel %vm4524_vm6, %v31591_v2, 0.0 }
 0x5ce   : > { %v31596_v55 = vpop.eup %28678  ;;  %v9680_v63 = vpop.xlane.xlu0 %9679  ;;  %9841 = vadd.xlane.f32.xlu0 %v9840_v41 }
 0x5cf   : > { %v9793_v30 = vmul.f32 1.442695, %v9751_v0  ;;  %28692 = vpow2.f32 %v9791_v28  ;;  %v9843_v40 = vsel %vm4524_vm6, %v31596_v55, 0.0  ;;  %v9752_v15 = vsub.f32 %v31473_v9, %v9680_v63 }
 0x5d0   : > { %v31601_v36 = vpop.eup %28680  ;;  %v9683_v54 = vpop.xlane.xlu1 %9682  ;;  %9844 = vadd.xlane.f32.xlu1 %v9843_v40 }
 0x5d1   : > { %28694 = vpow2.f32 %v9793_v30  ;;  %v9753_v12 = vsub.f32 %v31476_v47, %v9683_v54  ;;  %v9795_v5 = vmul.f32 1.442695, %v9752_v15  ;;  %v9846_v14 = vsel %vm4524_vm6, %v31601_v36, 0.0 }
 0x5d2   : > { %v31606_v52 = vpop.eup %28682  ;;  %v9686_v27 = vpop.xlane.xlu0 %9685  ;;  %9847 = vadd.xlane.f32.xlu0 %v9846_v14 }
 0x5d3   : > { %v9797_v49 = vmul.f32 1.442695, %v9753_v12  ;;  %28696 = vpow2.f32 %v9795_v5  ;;  %v9849_v9 = vsel %vm4524_vm6, %v31606_v52, 0.0  ;;  %v9754_v31 = vsub.f32 %v31483_v53, %v9686_v27 }
 0x5d4   : > { %v31611_v48 = vpop.eup %28684  ;;  %v9689_v13 = vpop.xlane.xlu1 %9688  ;;  %9850 = vadd.xlane.f32.xlu1 %v9849_v9 }
 0x5d5   : > { %28698 = vpow2.f32 %v9797_v49  ;;  %v9755_v47 = vsub.f32 %v31486_v11, %v9689_v13  ;;  %v9799_v60 = vmul.f32 1.442695, %v9754_v31  ;;  %v9852_v24 = vsel %vm4524_vm6, %v31611_v48, 0.0 }
 0x5d6   : > { %v31616_v61 = vpop.eup %28686  ;;  %v9692_v6 = vpop.xlane.xlu0 %9691  ;;  %9853 = vadd.xlane.f32.xlu0 %v9852_v24 }
 0x5d7   : > { %v9801_v0 = vmul.f32 1.442695, %v9755_v47  ;;  %28700 = vpow2.f32 %v9799_v60  ;;  %v9855_v53 = vsel %vm4524_vm6, %v31616_v61, 0.0  ;;  %v9756_v28 = vsub.f32 %v31493_v57, %v9692_v6 }
 0x5d8   : > { %v31621_v41 = vpop.eup %28688  ;;  %v9695_v63 = vpop.xlane.xlu1 %9694  ;;  %9856 = vadd.xlane.f32.xlu1 %v9855_v53 }
 0x5d9   : > { %28702 = vpow2.f32 %v9801_v0  ;;  %v9757_v11 = vsub.f32 %v31496_v19, %v9695_v63  ;;  %v9803_v30 = vmul.f32 1.442695, %v9756_v28  ;;  %v9858_v40 = vsel %vm4524_vm6, %v31621_v41, 0.0 }
 0x5da   : > { %v31626_v15 = vpop.eup %28690  ;;  %v9698_v54 = vpop.xlane.xlu0 %9697  ;;  %9859 = vadd.xlane.f32.xlu0 %v9858_v40 }
 0x5db   : > { %v9805_v12 = vmul.f32 1.442695, %v9757_v11  ;;  %28704 = vpow2.f32 %v9803_v30  ;;  %v9861_v57 = vsel %vm4524_vm6, %v31626_v15, 0.0  ;;  %v9758_v5 = vsub.f32 %v31503_v32, %v9698_v54 }
 0x5dc   : > { %v31631_v14 = vpop.eup %28692  ;;  %v9701_v27 = vpop.xlane.xlu1 %9700  ;;  %9862 = vadd.xlane.f32.xlu1 %v9861_v57 }
 0x5dd   : > { %28706 = vpow2.f32 %v9805_v12  ;;  %v9759_v19 = vsub.f32 %v31506_v50, %v9701_v27  ;;  %v9807_v49 = vmul.f32 1.442695, %v9758_v5  ;;  %v9864_v9 = vsel %vm4524_vm6, %v31631_v14, 0.0 }
 0x5de   : > { %v31636_v31 = vpop.eup %28694  ;;  %v9704_v13 = vpop.xlane.xlu0 %9703  ;;  %9865 = vadd.xlane.f32.xlu0 %v9864_v9 }
 0x5df   : > { %v9809_v47 = vmul.f32 1.442695, %v9759_v19  ;;  %28708 = vpow2.f32 %v9807_v49  ;;  %v9867_v32 = vsel %vm4524_vm6, %v31636_v31, 0.0  ;;  %v9760_v60 = vsub.f32 %v31513_v10, %v9704_v13 }
 0x5e0   : > { %v31641_v24 = vpop.eup %28696  ;;  %v9707_v6 = vpop.xlane.xlu1 %9706  ;;  %9868 = vadd.xlane.f32.xlu1 %v9867_v32 }
 0x5e1   : > { %28710 = vpow2.f32 %v9809_v47  ;;  %v9761_v50 = vsub.f32 %v31516_v59, %v9707_v6  ;;  %v9811_v0 = vmul.f32 1.442695, %v9760_v60  ;;  %v9870_v53 = vsel %vm4524_vm6, %v31641_v24, 0.0 }
 0x5e2   : > { %v31646_v28 = vpop.eup %28698  ;;  %v9710_v63 = vpop.xlane.xlu0 %9709  ;;  %9871 = vadd.xlane.f32.xlu0 %v9870_v53 }
 0x5e3   : > { %v9813_v11 = vmul.f32 1.442695, %v9761_v50  ;;  %28712 = vpow2.f32 %v9811_v0  ;;  %v9873_v10 = vsel %vm4524_vm6, %v31646_v28, 0.0  ;;  %v9762_v30 = vsub.f32 %v31523_v33, %v9710_v63 }
 0x5e4   : > { %v31651_v40 = vpop.eup %28700  ;;  %v9713_v54 = vpop.xlane.xlu1 %9712  ;;  %9874 = vadd.xlane.f32.xlu1 %v9873_v10 }
 0x5e5   : > { %28714 = vpow2.f32 %v9813_v11  ;;  %v9763_v59 = vsub.f32 %v31526_v58, %v9713_v54  ;;  %v9815_v12 = vmul.f32 1.442695, %v9762_v30  ;;  %v9876_v57 = vsel %vm4524_vm6, %v31651_v40, 0.0 }
 0x5e6   : > { %v31656_v5 = vpop.eup %28702  ;;  %v9716_v27 = vpop.xlane.xlu0 %9715  ;;  %9877 = vadd.xlane.f32.xlu0 %v9876_v57 }
 0x5e7   : > { %v9817_v19 = vmul.f32 1.442695, %v9763_v59  ;;  %28716 = vpow2.f32 %v9815_v12  ;;  %v9879_v33 = vsel %vm4524_vm6, %v31656_v5, 0.0  ;;  %v9764_v49 = vsub.f32 %v31533_v17, %v9716_v27 }
 0x5e8   : > { %v31661_v9 = vpop.eup %28704  ;;  %v9719_v13 = vpop.xlane.xlu1 %9718  ;;  %9880 = vadd.xlane.f32.xlu1 %v9879_v33 }
 0x5e9   : > { %28718 = vpow2.f32 %v9817_v19  ;;  %v9765_v58 = vsub.f32 %v31536_v45, %v9719_v13  ;;  %v9819_v47 = vmul.f32 1.442695, %v9764_v49  ;;  %v9882_v32 = vsel %vm4524_vm6, %v31661_v9, 0.0 }
 0x5ea   : > { %v31666_v60 = vpop.eup %28706  ;;  %v9722_v6 = vpop.xlane.xlu0 %9721  ;;  %9883 = vadd.xlane.f32.xlu0 %v9882_v32 }
 0x5eb   : > { %v9821_v50 = vmul.f32 1.442695, %v9765_v58  ;;  %28720 = vpow2.f32 %v9819_v47  ;;  %v9885_v17 = vsel %vm4524_vm6, %v31666_v60, 0.0  ;;  %v9766_v0 = vsub.f32 %v31543_v22, %v9722_v6 }
 0x5ec   : > { %v31671_v53 = vpop.eup %28708  ;;  %v9725_v63 = vpop.xlane.xlu1 %9724  ;;  %9886 = vadd.xlane.f32.xlu1 %v9885_v17 }
 0x5ed   : > { %28722 = vpow2.f32 %v9821_v50  ;;  %v9767_v45 = vsub.f32 %v31546_v25, %v9725_v63  ;;  %v9823_v11 = vmul.f32 1.442695, %v9766_v0  ;;  %v9888_v10 = vsel %vm4524_vm6, %v31671_v53, 0.0 }
 0x5ee   : > { %v31676_v30 = vpop.eup %28710  ;;  %v9728_v54 = vpop.xlane.xlu0 %9727  ;;  %9889 = vadd.xlane.f32.xlu0 %v9888_v10 }
 0x5ef   : > { %v9825_v59 = vmul.f32 1.442695, %v9767_v45  ;;  %28724 = vpow2.f32 %v9823_v11  ;;  %v9891_v22 = vsel %vm4524_vm6, %v31676_v30, 0.0  ;;  %v9768_v12 = vsub.f32 %v31553_v16, %v9728_v54 }
 0x5f0   : > { %v31681_v57 = vpop.eup %28712  ;;  %v9731_v27 = vpop.xlane.xlu1 %9730  ;;  %9892 = vadd.xlane.f32.xlu1 %v9891_v22 }
 0x5f1   : > { %28726 = vpow2.f32 %v9825_v59  ;;  %v9769_v25 = vsub.f32 %v31556_v44, %v9731_v27  ;;  %v9827_v19 = vmul.f32 1.442695, %v9768_v12  ;;  %v9894_v33 = vsel %vm4524_vm6, %v31681_v57, 0.0 }
 0x5f2   : > { %v31686_v49 = vpop.eup %28714  ;;  %v9734_v13 = vpop.xlane.xlu0 %9733  ;;  %9895 = vadd.xlane.f32.xlu0 %v9894_v33 }
 0x5f3   : > { %v9829_v58 = vmul.f32 1.442695, %v9769_v25  ;;  %28728 = vpow2.f32 %v9827_v19  ;;  %v9897_v16 = vsel %vm4524_vm6, %v31686_v49, 0.0  ;;  %v9770_v47 = vsub.f32 %v31563_v20, %v9734_v13 }
 0x5f4   : > { %v31691_v32 = vpop.eup %28716  ;;  %9898 = vadd.xlane.f32.xlu1 %v9897_v16  ;;  %v9737_v6 = vpop.xlane.xlu1 %9736 }
 0x5f5   : > { %28730 = vpow2.f32 %v9829_v58  ;;  %v9771_v44 = vsub.f32 %v31566_v37, %v9737_v6  ;;  %v9831_v50 = vmul.f32 1.442695, %v9770_v47  ;;  %v9900_v17 = vsel %vm4524_vm6, %v31691_v32, 0.0 }
 0x5f6   : > { %v31696_v0 = vpop.eup %28718  ;;  %9901 = vadd.xlane.f32.xlu0 %v9900_v17  ;;  %v9740_v63 = vpop.xlane.xlu0 %9739 }
 0x5f7   : > { %v9833_v45 = vmul.f32 1.442695, %v9771_v44  ;;  %28732 = vpow2.f32 %v9831_v50  ;;  %v9903_v20 = vsel %vm4524_vm6, %v31696_v0, 0.0  ;;  %v9772_v11 = vsub.f32 %v31573_v51, %v9740_v63 }
 0x5f8   : > { %v31701_v10 = vpop.eup %28720  ;;  %9904 = vadd.xlane.f32.xlu1 %v9903_v20 }
 0x5f9   : > { %28734 = vpow2.f32 %v9833_v45  ;;  %v9835_v37 = vmul.f32 1.442695, %v9772_v11  ;;  %v9906_v54 = vsel %vm4524_vm6, %v31701_v10, 0.0 }
 0x5fa   : > { %v31705_v59 = vpop.eup %28722  ;;  %9907 = vadd.xlane.f32.xlu0 %v9906_v54 }
 0x5fb   : > { %28736 = vpow2.f32 %v9835_v37  ;;  %v9909_v22 = vsel %vm4524_vm6, %v31705_v59, 0.0 }
 0x5fc   : > { %v31709_v12 = vpop.eup %28724  ;;  %9910 = vadd.xlane.f32.xlu1 %v9909_v22 }
 0x5fd   : > { %v9912_v51 = vsel %vm4524_vm6, %v31709_v12, 0.0 }
 0x5fe   : > { %v31713_v27 = vpop.eup %28726  ;;  %9913 = vadd.xlane.f32.xlu0 %v9912_v51 }
 0x5ff   : > { %v9915_v25 = vsel %vm4524_vm6, %v31713_v27, 0.0 }
 0x600   : > { %v31717_v19 = vpop.eup %28728  ;;  %9916 = vadd.xlane.f32.xlu1 %v9915_v25 }
 0x601   : > { %v9918_v33 = vsel %vm4524_vm6, %v31717_v19, 0.0 }
 0x602   : > { %v31721_v13 = vpop.eup %28730  ;;  %9919 = vadd.xlane.f32.xlu0 %v9918_v33 }
 0x603   : > { %v9921_v58 = vsel %vm4524_vm6, %v31721_v13, 0.0 }
 0x604   : > { %v31725_v16 = vpop.eup %28732  ;;  %9922 = vadd.xlane.f32.xlu1 %v9921_v58 }
 0x605   : > { %v9924_v47 = vsel %vm4524_vm6, %v31725_v16, 0.0 }
 0x606   : > { %v31729_v6 = vpop.eup %28734  ;;  %9925 = vadd.xlane.f32.xlu0 %v9924_v47 }
 0x607   : > { %v9927_v44 = vsel %vm4524_vm6, %v31729_v6, 0.0 }
 0x608   : > { %v31733_v50 = vpop.eup %28736  ;;  %9928 = vadd.xlane.f32.xlu1 %v9927_v44 }
 0x609   : > { %v9930_v17 = vsel %vm4524_vm6, %v31733_v50, 0.0 }
 0x60a   : > { %9931 = vadd.xlane.f32.xlu0 %v9930_v17 }
 0x655   : > { %v9839_v63 = vpop.xlane.xlu1 %9838 }
 0x656   : > { %28738 = vrcp.f32 %v9839_v63 }
 0x657   : > { %v9842_v45 = vpop.xlane.xlu0 %9841 }
 0x658   : > { %28740 = vrcp.f32 %v9842_v45 }
 0x659   : > { %v9845_v20 = vpop.xlane.xlu1 %9844 }
 0x65a   : > { %28742 = vrcp.f32 %v9845_v20 }
 0x65b   : > { %v9848_v11 = vpop.xlane.xlu0 %9847 }
 0x65c   : > { %28744 = vrcp.f32 %v9848_v11 }
 0x65d   : > { %v9851_v37 = vpop.xlane.xlu1 %9850 }
 0x65e   : > { %28746 = vrcp.f32 %v9851_v37 }
 0x65f   : > { %v9854_v54 = vpop.xlane.xlu0 %9853 }
 0x660   : > { %28748 = vrcp.f32 %v9854_v54 }
 0x661   : > { %v9857_v22 = vpop.xlane.xlu1 %9856 }
 0x662   : > { %28750 = vrcp.f32 %v9857_v22 }
 0x663   : > { %v28739_v51 = vpop.eup %28738  ;;  %v9860_v25 = vpop.xlane.xlu0 %9859 }
 0x664   : > { %v9965_v33 = vmul.f32 %v28739_v51, %v31586_v56  ;;  %28752 = vrcp.f32 %v9860_v25 }
 0x665   : > { %v28741_v58 = vpop.eup %28740  ;;  %v9863_v47 = vpop.xlane.xlu1 %9862 }
 0x666   : > { %v9966_v44 = vmul.f32 %v28741_v58, %v31591_v2  ;;  %28754 = vrcp.f32 %v9863_v47  ;;  %27512 = vmatmul.mubr.msk.f32.vlgmr.msra.gmra.mxu0 %vm4524_vm6, %v9965_v33 }
 0x667   : > { %v28743_v17 = vpop.eup %28742  ;;  %27520 = vmatpush3.msra.mxu0 %v30845_v35  ;;  %27521 = vmatprep.mubr.msk.f32.mxu0 %vm29305_vm3, %v35664_v39  ;;  %v9866_v63 = vpop.xlane.xlu0 %9865 }
 0x668   : > { %v9967_v45 = vmul.f32 %v28743_v17, %v31596_v55  ;;  %27529 = vmatprep.subr.mxu0 %v35664_v39  ;;  %28756 = vrcp.f32 %v9866_v63  ;;  %27517 = vmatmul.mubr.msk.f32.vlgmr.msra.gmra.mxu1 %vm4524_vm6, %v9966_v44 }
 0x669   : > { %v28745_v56 = vpop.eup %28744  ;;  %v9869_v20 = vpop.xlane.xlu1 %9868  ;;  %27525 = vmatpush3.msra.mxu1 %v30281_v18  ;;  %27526 = vmatprep.mubr.msk.f32.mxu1 %vm29305_vm3, %v35664_v39 }
 0x66a   : > { %v9968_v2 = vmul.f32 %v28745_v56, %v31601_v36  ;;  %28758 = vrcp.f32 %v9869_v20  ;;  %27522 = vmatmul.mubr.msk.f32.vlgmr.msra.gmra.mxu0 %vm4524_vm6, %v9967_v45  ;;  %27534 = vmatprep.subr.mxu1 %v35664_v39 }
 0x66b   : > { %v28747_v55 = vpop.eup %28746  ;;  %27530 = vmatpush3.msra.mxu0 %v30859_v29  ;;  %27531 = vmatprep.mubr.msk.f32.mxu0 %vm29305_vm3, %v35664_v39  ;;  %v9872_v11 = vpop.xlane.xlu0 %9871 }
 0x66c   : > { %v9969_v37 = vmul.f32 %v28747_v55, %v31606_v52  ;;  %27539 = vmatprep.subr.mxu0 %v35664_v39  ;;  %28760 = vrcp.f32 %v9872_v11  ;;  %27527 = vmatmul.mubr.msk.f32.vlgmr.msra.gmra.mxu1 %vm4524_vm6, %v9968_v2 }
 0x66d   : > { %v28749_v36 = vpop.eup %28748  ;;  %v9875_v54 = vpop.xlane.xlu1 %9874  ;;  %27535 = vmatpush3.msra.mxu1 %v30306_v8  ;;  %27536 = vmatprep.mubr.msk.f32.mxu1 %vm29305_vm3, %v35664_v39 }
 0x66e   : > { %v9970_v22 = vmul.f32 %v28749_v36, %v31611_v48  ;;  %28762 = vrcp.f32 %v9875_v54  ;;  %27532 = vmatmul.mubr.msk.f32.vlgmr.msra.gmra.mxu0 %vm4524_vm6, %v9969_v37  ;;  %27544 = vmatprep.subr.mxu1 %v35664_v39 }
 0x66f   : > { %v28751_v52 = vpop.eup %28750  ;;  %27540 = vmatpush3.msra.mxu0 %v30871_v26  ;;  %27541 = vmatprep.mubr.msk.f32.mxu0 %vm29305_vm3, %v35664_v39  ;;  %v9878_v51 = vpop.xlane.xlu0 %9877 }
 0x670   : > { %v9971_v25 = vmul.f32 %v28751_v52, %v31616_v61  ;;  %27549 = vmatprep.subr.mxu0 %v35664_v39  ;;  %28764 = vrcp.f32 %v9878_v51  ;;  %27537 = vmatmul.mubr.msk.f32.vlgmr.msra.gmra.mxu1 %vm4524_vm6, %v9970_v22 }
 0x671   : > { %v28753_v48 = vpop.eup %28752  ;;  %v9881_v33 = vpop.xlane.xlu1 %9880  ;;  %27545 = vmatpush3.msra.mxu1 %v30319_v3  ;;  %27546 = vmatprep.mubr.msk.f32.mxu1 %vm29305_vm3, %v35664_v39 }
 0x672   : > { %v9972_v58 = vmul.f32 %v28753_v48, %v31621_v41  ;;  %28766 = vrcp.f32 %v9881_v33  ;;  %27542 = vmatmul.mubr.msk.f32.vlgmr.msra.gmra.mxu0 %vm4524_vm6, %v9971_v25  ;;  %27554 = vmatprep.subr.mxu1 %v35664_v39 }
 0x673   : > { %v28755_v61 = vpop.eup %28754  ;;  %27550 = vmatpush3.msra.mxu0 %v30890_v62  ;;  %27551 = vmatprep.mubr.msk.f32.mxu0 %vm29305_vm3, %v35664_v39  ;;  %v9884_v47 = vpop.xlane.xlu0 %9883 }
 0x674   : > { %v9973_v44 = vmul.f32 %v28755_v61, %v31626_v15  ;;  %27559 = vmatprep.subr.mxu0 %v35664_v39  ;;  %28768 = vrcp.f32 %v9884_v47  ;;  %27547 = vmatmul.mubr.msk.f32.vlgmr.msra.gmra.mxu1 %vm4524_vm6, %v9972_v58 }
 0x675   : > { %v28757_v41 = vpop.eup %28756  ;;  %v9887_v17 = vpop.xlane.xlu1 %9886  ;;  %27555 = vmatpush3.msra.mxu1 %v30325_v21  ;;  %27556 = vmatprep.mubr.msk.f32.mxu1 %vm29305_vm3, %v35664_v39 }
 0x676   : > { %v9974_v63 = vmul.f32 %v28757_v41, %v31631_v14  ;;  %28770 = vrcp.f32 %v9887_v17  ;;  %27552 = vmatmul.mubr.msk.f32.vlgmr.msra.gmra.mxu0 %vm4524_vm6, %v9973_v44  ;;  %27564 = vmatprep.subr.mxu1 %v35664_v39  ;;  %v35910_v41 = vld [vmem:[#allocation105_spill] sm:$0xff] }
 0x677   : > { %v28759_v15 = vpop.eup %28758  ;;  %27560 = vmatpush3.msra.mxu0 %v30906_v42  ;;  %27561 = vmatprep.mubr.msk.f32.mxu0 %vm29305_vm3, %v35664_v39  ;;  %v9890_v45 = vpop.xlane.xlu0 %9889 }
 0x678   : > { %v9975_v56 = vmul.f32 %v28759_v15, %v31636_v31  ;;  %27569 = vmatprep.subr.mxu0 %v35664_v39  ;;  %28772 = vrcp.f32 %v9890_v45  ;;  %27557 = vmatmul.mubr.msk.f32.vlgmr.msra.gmra.mxu1 %vm4524_vm6, %v9974_v63  ;;  %v35911_v63 = vld [vmem:[#allocation107_spill] sm:$0xff] }
 0x679   : > { %v28761_v14 = vpop.eup %28760  ;;  %v9893_v20 = vpop.xlane.xlu1 %9892  ;;  %27565 = vmatpush3.msra.mxu1 %v30330_v7  ;;  %27566 = vmatprep.mubr.msk.f32.mxu1 %vm29305_vm3, %v35664_v39 }
 0x67a   : > { %v9976_v2 = vmul.f32 %v28761_v14, %v31641_v24  ;;  %28774 = vrcp.f32 %v9893_v20  ;;  %27562 = vmatmul.mubr.msk.f32.vlgmr.msra.gmra.mxu0 %vm4524_vm6, %v9975_v56  ;;  %27574 = vmatprep.subr.mxu1 %v35664_v39  ;;  %v35912_v14 = vld [vmem:[#allocation106_spill] sm:$0xff] }
 0x67b   : > { %v28763_v31 = vpop.eup %28762  ;;  %27570 = vmatpush3.msra.mxu0 %v30919_v1  ;;  %27571 = vmatprep.mubr.msk.f32.mxu0 %vm29305_vm3, %v35664_v39  ;;  %v9896_v55 = vpop.xlane.xlu0 %9895 }
 0x67c   : > { %v9977_v11 = vmul.f32 %v28763_v31, %v31646_v28  ;;  %27579 = vmatprep.subr.mxu0 %v35664_v39  ;;  %28776 = vrcp.f32 %v9896_v55  ;;  %27567 = vmatmul.mubr.msk.f32.vlgmr.msra.gmra.mxu1 %vm4524_vm6, %v9976_v2  ;;  %v35913_v2 = vld [vmem:[#allocation109_spill] sm:$0xff] }
 0x67d   : > { %v28765_v24 = vpop.eup %28764  ;;  %v9899_v37 = vpop.xlane.xlu1 %9898  ;;  %27575 = vmatpush3.msra.mxu1 %v30335_v4  ;;  %27576 = vmatprep.mubr.msk.f32.mxu1 %vm29305_vm3, %v35664_v39 }
 0x67e   : > { %v9978_v36 = vmul.f32 %v28765_v24, %v31651_v40  ;;  %28778 = vrcp.f32 %v9899_v37  ;;  %27572 = vmatmul.mubr.msk.f32.vlgmr.msra.gmra.mxu0 %vm4524_vm6, %v9977_v11  ;;  %27584 = vmatprep.subr.mxu1 %v35664_v39  ;;  %v35914_v24 = vld [vmem:[#allocation108_spill] sm:$0xff] }
 0x67f   : > { %v28767_v28 = vpop.eup %28766  ;;  %27580 = vmatpush3.msra.mxu0 %v30938_v23  ;;  %27581 = vmatprep.mubr.msk.f32.mxu0 %vm29305_vm3, %v35664_v39  ;;  %v9902_v54 = vpop.xlane.xlu0 %9901 }
 0x680   : > { %v9979_v22 = vmul.f32 %v28767_v28, %v31656_v5  ;;  %27589 = vmatprep.subr.mxu0 %v35664_v39  ;;  %28780 = vrcp.f32 %v9902_v54  ;;  %27577 = vmatmul.mubr.msk.f32.vlgmr.msra.gmra.mxu1 %vm4524_vm6, %v9978_v36  ;;  %v35915_v36 = vld [vmem:[#allocation111_spill] sm:$0xff] }
 0x681   : > { %v28769_v40 = vpop.eup %28768  ;;  %v9905_v52 = vpop.xlane.xlu1 %9904  ;;  %27585 = vmatpush3.msra.mxu1 %v30340_v38  ;;  %27586 = vmatprep.mubr.msk.f32.mxu1 %vm29305_vm3, %v35664_v39 }
 0x682   : > { %v9980_v51 = vmul.f32 %v28769_v40, %v31661_v9  ;;  %28782 = vrcp.f32 %v9905_v52  ;;  %27582 = vmatmul.mubr.msk.f32.vlgmr.msra.gmra.mxu0 %vm4524_vm6, %v9979_v22  ;;  %27594 = vmatprep.subr.mxu1 %v35664_v39  ;;  %v35916_v22 = vld [vmem:[#allocation110_spill] sm:$0xff] }
 0x683   : > { %v28771_v5 = vpop.eup %28770  ;;  %27590 = vmatpush3.msra.mxu0 %v30951_v34  ;;  %27591 = vmatprep.mubr.msk.f32.mxu0 %vm29305_vm3, %v35664_v39  ;;  %v9908_v25 = vpop.xlane.xlu0 %9907 }
 0x684   : > { %v9981_v48 = vmul.f32 %v28771_v5, %v31666_v60  ;;  %27599 = vmatprep.subr.mxu0 %v35664_v39  ;;  %28784 = vrcp.f32 %v9908_v25  ;;  %27587 = vmatmul.mubr.msk.f32.vlgmr.msra.gmra.mxu1 %vm4524_vm6, %v9980_v51  ;;  %v35917_v51 = vld [vmem:[#allocation113_spill] sm:$0xff]  ;;  %v35918_v25 = vld [vmem:[#allocation112_spill] sm:$0xff] }
 0x685   : > { %v28773_v9 = vpop.eup %28772  ;;  %v9911_v33 = vpop.xlane.xlu1 %9910  ;;  %27595 = vmatpush3.msra.mxu1 %v30345_v46  ;;  %27596 = vmatprep.mubr.msk.f32.mxu1 %vm29305_vm3, %v35664_v39 }
 0x686   : > { %v9982_v58 = vmul.f32 %v28773_v9, %v31671_v53  ;;  %28786 = vrcp.f32 %v9911_v33  ;;  %27592 = vmatmul.mubr.msk.f32.vlgmr.msra.gmra.mxu0 %vm4524_vm6, %v9981_v48  ;;  %27604 = vmatprep.subr.mxu1 %v35664_v39  ;;  %v35919_v9 = vld [vmem:[#allocation115_spill] sm:$0xff] }
 0x687   : > { %v28775_v60 = vpop.eup %28774  ;;  %27600 = vmatpush3.msra.mxu0 %v30967_v43  ;;  %27601 = vmatprep.mubr.msk.f32.mxu0 %vm29305_vm3, %v35664_v39  ;;  %v9914_v61 = vpop.xlane.xlu0 %9913 }
 0x688   : > { %v9983_v47 = vmul.f32 %v28775_v60, %v31676_v30  ;;  %27609 = vmatprep.subr.mxu0 %v35664_v39  ;;  %28788 = vrcp.f32 %v9914_v61  ;;  %27597 = vmatmul.mubr.msk.f32.vlgmr.msra.gmra.mxu1 %vm4524_vm6, %v9982_v58  ;;  %v35920_v58 = vld [vmem:[#allocation5_spill] sm:$0xff]  ;;  %v35922_v61 = vld [vmem:[#allocation118_spill] sm:$0xff] }
 0x689   : > { %v28777_v53 = vpop.eup %28776  ;;  %v9917_v44 = vpop.xlane.xlu1 %9916  ;;  %27605 = vmatpush3.msra.mxu1 %v35910_v41  ;;  %27606 = vmatprep.mubr.msk.f32.mxu1 %vm29305_vm3, %v35664_v39  ;;  %vm1890_vm13 = vcmp.ge.s32.totalorder %v35920_v58, 16  ;;  %vm1891_vm14 = vcmp.lt.s32.totalorder %v35920_v58, 24  ;;  %v36082_v58 = vld [vmem:[#allocation142_spill] sm:$0xff] }
 0x68a   : > { %v9984_v17 = vmul.f32 %v28777_v53, %v31681_v57  ;;  %28790 = vrcp.f32 %v9917_v44  ;;  %27602 = vmatmul.mubr.msk.f32.vlgmr.msra.gmra.mxu0 %vm4524_vm6, %v9983_v47  ;;  %27614 = vmatprep.subr.mxu1 %v35664_v39  ;;  %vm1892_vm15 = vmand %vm1890_vm13, %vm1891_vm14  ;;  %v35923_v44 = vld [vmem:[#allocation116_spill] sm:$0xff] }
 0x68b   : > { %v28779_v30 = vpop.eup %28778  ;;  %27610 = vmatpush3.msra.mxu0 %v35911_v63  ;;  %27611 = vmatprep.mubr.msk.f32.mxu0 %vm29305_vm3, %v35664_v39  ;;  %v9920_v15 = vpop.xlane.xlu0 %9919 }
 0x68c   : > { %v9985_v45 = vmul.f32 %v28779_v30, %v31686_v49  ;;  %27619 = vmatprep.subr.mxu0 %v35664_v39  ;;  %28792 = vrcp.f32 %v9920_v15  ;;  %27607 = vmatmul.mubr.msk.f32.vlgmr.msra.gmra.mxu1 %vm4524_vm6, %v9984_v17  ;;  %v31923_v17 = vsel %vm1892_vm15, 1.0, %v35664_v39  ;;  %v35926_v30 = vld [vmem:[#allocation41_spill] sm:$0xff] }
 0x68d   : > { %v28781_v57 = vpop.eup %28780  ;;  %v9923_v56 = vpop.xlane.xlu1 %9922  ;;  %27615 = vmatpush3.msra.mxu1 %v35912_v14  ;;  %27616 = vmatprep.mubr.msk.f32.mxu1 %vm29305_vm3, %v35664_v39  ;;  %35924 = vst [vmem:[#allocation183_spill] sm:$0xff] %v31923_v17  ;;  %v12397_v15 = vmul.f32 %v31923_v17, %v35926_v30 }
 0x68e   : > { %v9986_v20 = vmul.f32 %v28781_v57, %v31691_v32  ;;  %28794 = vrcp.f32 %v9923_v56  ;;  %27612 = vmatmul.mubr.msk.f32.vlgmr.msra.gmra.mxu0 %vm4524_vm6, %v9985_v45  ;;  %27624 = vmatprep.subr.mxu1 %v35664_v39  ;;  %v35928_v45 = vld [vmem:[#allocation39_spill] sm:$0xff]  ;;  %v35929_v56 = vld [vmem:[#allocation46_spill] sm:$0xff] }
 0x68f   : > { %v28783_v49 = vpop.eup %28782  ;;  %27620 = vmatpush3.msra.mxu0 %v35913_v2  ;;  %27621 = vmatprep.mubr.msk.f32.mxu0 %vm29305_vm3, %v35664_v39  ;;  %v9926_v31 = vpop.xlane.xlu0 %9925  ;;  %v12398_v57 = vmul.f32 %v31923_v17, %v35928_v45 }
 0x690   : > { %v9987_v55 = vmul.f32 %v28783_v49, %v31696_v0  ;;  %27629 = vmatprep.subr.mxu0 %v35664_v39  ;;  %28796 = vrcp.f32 %v9926_v31  ;;  %27617 = vmatmul.mubr.msk.f32.vlgmr.msra.gmra.mxu1 %vm4524_vm6, %v9986_v20  ;;  %v35930_v20 = vld [vmem:[#allocation45_spill] sm:$0xff]  ;;  %v35931_v31 = vld [vmem:[#allocation44_spill] sm:$0xff] }
 0x691   : > { %v28785_v32 = vpop.eup %28784  ;;  %v9929_v11 = vpop.xlane.xlu1 %9928  ;;  %27625 = vmatpush3.msra.mxu1 %v35914_v24  ;;  %27626 = vmatprep.mubr.msk.f32.mxu1 %vm29305_vm3, %v35664_v39  ;;  %v12399_v49 = vmul.f32 %v31923_v17, %v35930_v20  ;;  %v36088_v24 = vld [vmem:[#allocation148_spill] sm:$0xff] }
 0x692   : > { %v9988_v37 = vmul.f32 %v28785_v32, %v31701_v10  ;;  %28798 = vrcp.f32 %v9929_v11  ;;  %27622 = vmatmul.mubr.msk.f32.vlgmr.msra.gmra.mxu0 %vm4524_vm6, %v9987_v55  ;;  %27634 = vmatprep.subr.mxu1 %v35664_v39  ;;  %v35932_v55 = vld [vmem:[#allocation43_spill] sm:$0xff]  ;;  %v35933_v11 = vld [vmem:[#allocation50_spill] sm:$0xff] }
 0x693   : > { %v28787_v0 = vpop.eup %28786  ;;  %27630 = vmatpush3.msra.mxu0 %v35915_v36  ;;  %27631 = vmatprep.mubr.msk.f32.mxu0 %vm29305_vm3, %v35664_v39  ;;  %v9932_v28 = vpop.xlane.xlu0 %9931  ;;  %v12400_v32 = vmul.f32 %v31923_v17, %v35932_v55 }
 0x694   : > { %v9989_v54 = vmul.f32 %v28787_v0, %v31705_v59  ;;  %27639 = vmatprep.subr.mxu0 %v35664_v39  ;;  %28800 = vrcp.f32 %v9932_v28  ;;  %27627 = vmatmul.mubr.msk.f32.vlgmr.msra.gmra.mxu1 %vm4524_vm6, %v9988_v37  ;;  %v35934_v37 = vld [vmem:[#allocation49_spill] sm:$0xff]  ;;  %v35935_v28 = vld [vmem:[#allocation48_spill] sm:$0xff] }
 0x695   : > { %v28789_v10 = vpop.eup %28788  ;;  %27635 = vmatpush3.msra.mxu1 %v35916_v22  ;;  %27636 = vmatprep.mubr.msk.f32.mxu1 %vm29305_vm3, %v35664_v39  ;;  %v12401_v0 = vmul.f32 %v31923_v17, %v35934_v37  ;;  %v36086_v22 = vld [vmem:[#allocation146_spill] sm:$0xff] }
 0x696   : > { %v9990_v40 = vmul.f32 %v28789_v10, %v31709_v12  ;;  %27632 = vmatmul.mubr.msk.f32.vlgmr.msra.gmra.mxu0 %vm4524_vm6, %v9989_v54  ;;  %27644 = vmatprep.subr.mxu1 %v35664_v39  ;;  %v35936_v54 = vld [vmem:[#allocation47_spill] sm:$0xff] }
 0x697   : > { %v28791_v52 = vpop.eup %28790  ;;  %27640 = vmatpush3.msra.mxu0 %v35917_v51  ;;  %27641 = vmatprep.mubr.msk.f32.mxu0 %vm29305_vm3, %v35664_v39  ;;  %v12402_v10 = vmul.f32 %v31923_v17, %v35936_v54 }
 0x698   : > { %v9991_v59 = vmul.f32 %v28791_v52, %v31713_v27  ;;  %27649 = vmatprep.subr.mxu0 %v35664_v39  ;;  %27637 = vmatmul.mubr.msk.f32.vlgmr.msra.gmra.mxu1 %vm4524_vm6, %v9990_v40  ;;  %v35937_v40 = vld [vmem:[#allocation54_spill] sm:$0xff]  ;;  %v35938_v52 = vld [vmem:[#allocation53_spill] sm:$0xff] }
 0x699   : > { %v28793_v5 = vpop.eup %28792  ;;  %27645 = vmatpush3.msra.mxu1 %v35918_v25  ;;  %27646 = vmatprep.mubr.msk.f32.mxu1 %vm29305_vm3, %v35664_v39  ;;  %v36084_v25 = vld [vmem:[#allocation144_spill] sm:$0xff] }
 0x69a   : > { %v9992_v12 = vmul.f32 %v28793_v5, %v31717_v19  ;;  %27642 = vmatmul.mubr.msk.f32.vlgmr.msra.gmra.mxu0 %vm4524_vm6, %v9991_v59  ;;  %27654 = vmatprep.subr.mxu1 %v35664_v39  ;;  %v35921_v19 = vld [vmem:[#allocation114_spill] sm:$0xff]  ;;  %v12403_v59 = vmul.f32 %v31923_v17, %v35938_v52  ;;  %v35939_v5 = vld [vmem:[#allocation51_spill] sm:$0xff] }
 0x69b   : > { %v28795_v48 = vpop.eup %28794  ;;  %27650 = vmatpush3.msra.mxu0 %v35919_v9  ;;  %27651 = vmatprep.mubr.msk.f32.mxu0 %vm29305_vm3, %v35664_v39 }
 0x69c   : > { %v9993_v27 = vmul.f32 %v28795_v48, %v31721_v13  ;;  %27659 = vmatprep.subr.mxu0 %v35664_v39  ;;  %27647 = vmatmul.mubr.msk.f32.vlgmr.msra.gmra.mxu1 %vm4524_vm6, %v9992_v12  ;;  %v35940_v12 = vld [vmem:[#allocation52_spill] sm:$0xff] }
 0x69d   : > { %v28797_v33 = vpop.eup %28796  ;;  %27655 = vmatpush3.msra.mxu1 %v35921_v19  ;;  %27656 = vmatprep.mubr.msk.f32.mxu1 %vm29305_vm3, %v35664_v39  ;;  %v12404_v48 = vmul.f32 %v31923_v17, %v35940_v12 }
 0x69e   : > { %v9994_v60 = vmul.f32 %v28797_v33, %v31725_v16  ;;  %27652 = vmatmul.mubr.msk.f32.vlgmr.msra.gmra.mxu0 %vm4524_vm6, %v9993_v27  ;;  %27664 = vmatprep.subr.mxu1 %v35664_v39  ;;  %v35941_v27 = vld [vmem:[#allocation58_spill] sm:$0xff]  ;;  %v35942_v33 = vld [vmem:[#allocation57_spill] sm:$0xff] }
 0x69f   : > { %v28799_v13 = vpop.eup %28798  ;;  %27660 = vmatpush3.msra.mxu0 %v35922_v61  ;;  %27661 = vmatprep.mubr.msk.f32.mxu0 %vm29305_vm3, %v35664_v39  ;;  %v36080_v61 = vld [vmem:[#allocation140_spill] sm:$0xff] }
 0x6a0   : > { %v9995_v47 = vmul.f32 %v28799_v13, %v31729_v6  ;;  %27669 = vmatprep.subr.mxu0 %v35664_v39  ;;  %27657 = vmatmul.mubr.msk.f32.vlgmr.msra.gmra.mxu1 %vm4524_vm6, %v9994_v60  ;;  %v35925_v6 = vld [vmem:[#allocation42_spill] sm:$0xff]  ;;  %v12405_v60 = vmul.f32 %v31923_v17, %v35942_v33  ;;  %v35943_v13 = vld [vmem:[#allocation56_spill] sm:$0xff]  ;;  %v35996_v33 = vld [vmem:[#allocation153_spill] sm:$0xff] }
 0x6a1   : > { %v28801_v53 = vpop.eup %28800  ;;  %27665 = vmatpush3.msra.mxu1 %v35923_v44  ;;  %27666 = vmatprep.mubr.msk.f32.mxu1 %vm29305_vm3, %v35664_v39 }
 0x6a2   : > { %v9996_v16 = vmul.f32 %v28801_v53, %v31733_v50  ;;  %27662 = vmatmul.mubr.msk.f32.vlgmr.msra.gmra.mxu0 %vm4524_vm6, %v9995_v47  ;;  %27674 = vmatprep.subr.mxu1 %v35664_v39  ;;  %v35927_v50 = vld [vmem:[#allocation40_spill] sm:$0xff]  ;;  %v35944_v47 = vld [vmem:[#allocation55_spill] sm:$0xff] }
 0x6a3   : > { %27670 = vmatpush3.xpose.msk.msra.mxu0 %vm727_vm0, %v35925_v6  ;;  %27671 = vmatprep.mubr.msk.f32.mxu0 %vm29305_vm3, %v35664_v39  ;;  %v12406_v53 = vmul.f32 %v31923_v17, %v35944_v47  ;;  %v36078_v6 = vld [vmem:[#allocation138_spill] sm:$0xff] }
 0x6a4   : > { %27679 = vmatprep.subr.mxu0 %v35664_v39  ;;  %27667 = vmatmul.mubr.msk.f32.vlgmr.msra.gmra.mxu1 %vm4524_vm6, %v9996_v16  ;;  %v35945_v16 = vld [vmem:[#allocation62_spill] sm:$0xff] }
 0x6a5   : > { %27675 = vmatpush3.xpose.msk.msra.mxu1 %vm727_vm0, %v35927_v50  ;;  %27676 = vmatprep.mubr.msk.f32.mxu1 %vm29305_vm3, %v35664_v39  ;;  %v36076_v50 = vld [vmem:[#allocation136_spill] sm:$0xff] }
 0x6a6   : > { %27672 = vmatmul.mubr.msk.f32.vlgmr.msra.gmra.mxu0 %vm727_vm0, %v12397_v15  ;;  %27684 = vmatprep.subr.mxu1 %v35664_v39  ;;  %v35946_v15 = vld [vmem:[#allocation61_spill] sm:$0xff] }
 0x6a7   : > { %27680 = vmatpush3.xpose.msk.msra.mxu0 %vm727_vm0, %v35929_v56  ;;  %27681 = vmatprep.mubr.msk.f32.mxu0 %vm29305_vm3, %v35664_v39  ;;  %v36074_v56 = vld [vmem:[#allocation134_spill] sm:$0xff] }
 0x6a8   : > { %27689 = vmatprep.subr.mxu0 %v35664_v39  ;;  %27677 = vmatmul.mubr.msk.f32.vlgmr.msra.gmra.mxu1 %vm727_vm0, %v12398_v57  ;;  %v12407_v57 = vmul.f32 %v31923_v17, %v35946_v15  ;;  %v35994_v15 = vld [vmem:[#allocation151_spill] sm:$0xff] }
 0x6a9   : > { %27685 = vmatpush3.xpose.msk.msra.mxu1 %vm727_vm0, %v35931_v31  ;;  %27686 = vmatprep.mubr.msk.f32.mxu1 %vm29305_vm3, %v35664_v39  ;;  %v36072_v31 = vld [vmem:[#allocation132_spill] sm:$0xff] }
 0x6aa   : > { %27682 = vmatmul.mubr.msk.f32.vlgmr.msra.gmra.mxu0 %vm727_vm0, %v12399_v49  ;;  %27694 = vmatprep.subr.mxu1 %v35664_v39  ;;  %v35947_v49 = vld [vmem:[#allocation60_spill] sm:$0xff] }
 0x6ab   : > { %27690 = vmatpush3.xpose.msk.msra.mxu0 %vm727_vm0, %v35933_v11  ;;  %27691 = vmatprep.mubr.msk.f32.mxu0 %vm29305_vm3, %v35664_v39  ;;  %v36070_v11 = vld [vmem:[#allocation130_spill] sm:$0xff] }
 0x6ac   : > { %27699 = vmatprep.subr.mxu0 %v35664_v39  ;;  %27687 = vmatmul.mubr.msk.f32.vlgmr.msra.gmra.mxu1 %vm727_vm0, %v12400_v32  ;;  %v35948_v32 = vld [vmem:[#allocation59_spill] sm:$0xff] }
 0x6ad   : > { %27695 = vmatpush3.xpose.msk.msra.mxu1 %vm727_vm0, %v35935_v28  ;;  %27696 = vmatprep.mubr.msk.f32.mxu1 %vm29305_vm3, %v35664_v39  ;;  %v36068_v28 = vld [vmem:[#allocation128_spill] sm:$0xff] }
 0x6ae   : > { %27692 = vmatmul.mubr.msk.f32.vlgmr.msra.gmra.mxu0 %vm727_vm0, %v12401_v0  ;;  %27704 = vmatprep.subr.mxu1 %v35664_v39  ;;  %v12408_v0 = vmul.f32 %v31923_v17, %v35948_v32 }
 0x6af   : > { %27700 = vmatpush3.xpose.msk.msra.mxu0 %vm727_vm0, %v35937_v40  ;;  %27701 = vmatprep.mubr.msk.f32.mxu0 %vm29305_vm3, %v35664_v39 }
 0x6b0   : > { %27709 = vmatprep.subr.mxu0 %v35664_v39  ;;  %27697 = vmatmul.mubr.msk.f32.vlgmr.msra.gmra.mxu1 %vm727_vm0, %v12402_v10  ;;  %v35949_v10 = vld [vmem:[#allocation66_spill] sm:$0xff] }
 0x6b1   : > { %27705 = vmatpush3.xpose.msk.msra.mxu1 %vm727_vm0, %v35939_v5  ;;  %27706 = vmatprep.mubr.msk.f32.mxu1 %vm29305_vm3, %v35664_v39 }
 0x6b2   : > { %27702 = vmatmul.mubr.msk.f32.vlgmr.msra.gmra.mxu0 %vm727_vm0, %v12403_v59  ;;  %27714 = vmatprep.subr.mxu1 %v35664_v39  ;;  %v35950_v59 = vld [vmem:[#allocation65_spill] sm:$0xff] }
 0x6b3   : > { %27710 = vmatpush3.xpose.msk.msra.mxu0 %vm727_vm0, %v35941_v27  ;;  %27711 = vmatprep.mubr.msk.f32.mxu0 %vm29305_vm3, %v35664_v39 }
 0x6b4   : > { %27719 = vmatprep.subr.mxu0 %v35664_v39  ;;  %27707 = vmatmul.mubr.msk.f32.vlgmr.msra.gmra.mxu1 %vm727_vm0, %v12404_v48  ;;  %v12409_v48 = vmul.f32 %v31923_v17, %v35950_v59 }
 0x6b5   : > { %27715 = vmatpush3.xpose.msk.msra.mxu1 %vm727_vm0, %v35943_v13  ;;  %27716 = vmatprep.mubr.msk.f32.mxu1 %vm29305_vm3, %v35664_v39 }
 0x6b6   : > { %27712 = vmatmul.mubr.msk.f32.vlgmr.msra.gmra.mxu0 %vm727_vm0, %v12405_v60  ;;  %27724 = vmatprep.subr.mxu1 %v35664_v39  ;;  %v35951_v60 = vld [vmem:[#allocation64_spill] sm:$0xff] }
 0x6b7   : > { %27720 = vmatpush3.xpose.msk.msra.mxu0 %vm727_vm0, %v35945_v16  ;;  %27721 = vmatprep.mubr.msk.f32.mxu0 %vm29305_vm3, %v35664_v39 }
 0x6b8   : > { %27729 = vmatprep.subr.mxu0 %v35664_v39  ;;  %27717 = vmatmul.mubr.msk.f32.vlgmr.msra.gmra.mxu1 %vm727_vm0, %v12406_v53  ;;  %v35952_v53 = vld [vmem:[#allocation63_spill] sm:$0xff] }
 0x6b9   : > { %27725 = vmatpush3.xpose.msk.msra.mxu1 %vm727_vm0, %v35947_v49  ;;  %27726 = vmatprep.mubr.msk.f32.mxu1 %vm29305_vm3, %v35664_v39 }
 0x6ba   : > { %27722 = vmatmul.mubr.msk.f32.vlgmr.msra.gmra.mxu0 %vm727_vm0, %v12407_v57  ;;  %27734 = vmatprep.subr.mxu1 %v35664_v39  ;;  %v12410_v57 = vmul.f32 %v31923_v17, %v35952_v53 }
 0x6bb   : > { %27730 = vmatpush3.xpose.msk.msra.mxu0 %vm727_vm0, %v35949_v10  ;;  %27731 = vmatprep.mubr.msk.f32.mxu0 %vm29305_vm3, %v35664_v39  ;;  %v35953_v10 = vld [vmem:[#allocation70_spill] sm:$0xff] }
 0x6bc   : > { %27739 = vmatprep.subr.mxu0 %v35664_v39  ;;  %27727 = vmatmul.mubr.msk.f32.vlgmr.msra.gmra.mxu1 %vm727_vm0, %v12408_v0  ;;  %v35954_v0 = vld [vmem:[#allocation69_spill] sm:$0xff] }
 0x6bd   : > { %27735 = vmatpush3.xpose.msk.msra.mxu1 %vm727_vm0, %v35951_v60  ;;  %27736 = vmatprep.mubr.msk.f32.mxu1 %vm29305_vm3, %v35664_v39  ;;  %v12411_v59 = vmul.f32 %v31923_v17, %v35954_v0  ;;  %v35955_v60 = vld [vmem:[#allocation68_spill] sm:$0xff] }
 0x6be   : > { %27732 = vmatmul.mubr.msk.f32.vlgmr.msra.gmra.mxu0 %vm727_vm0, %v12409_v48  ;;  %27744 = vmatprep.subr.mxu1 %v35664_v39  ;;  %v35956_v48 = vld [vmem:[#allocation67_spill] sm:$0xff] }
 0x6bf   : > { %27740 = vmatpush3.xpose.msk.msra.mxu0 %vm727_vm0, %v35953_v10  ;;  %27741 = vmatprep.mubr.msk.f32.mxu0 %vm29305_vm3, %v35664_v39  ;;  %v12412_v53 = vmul.f32 %v31923_v17, %v35956_v48  ;;  %v35957_v10 = vld [vmem:[#allocation74_spill] sm:$0xff] }
 0x6c0   : > { %27749 = vmatprep.subr.mxu0 %v35664_v39  ;;  %27737 = vmatmul.mubr.msk.f32.vlgmr.msra.gmra.mxu1 %vm727_vm0, %v12410_v57  ;;  %v35958_v57 = vld [vmem:[#allocation73_spill] sm:$0xff] }
 0x6c1   : > { %27745 = vmatpush3.xpose.msk.msra.mxu1 %vm727_vm0, %v35955_v60  ;;  %27746 = vmatprep.mubr.msk.f32.mxu1 %vm29305_vm3, %v35664_v39  ;;  %v12413_v0 = vmul.f32 %v31923_v17, %v35958_v57  ;;  %v35959_v60 = vld [vmem:[#allocation72_spill] sm:$0xff] }
 0x6c2   : > { %27742 = vmatmul.mubr.msk.f32.vlgmr.msra.gmra.mxu0 %vm727_vm0, %v12411_v59  ;;  %27754 = vmatprep.subr.mxu1 %v35664_v39  ;;  %v35960_v59 = vld [vmem:[#allocation71_spill] sm:$0xff] }
 0x6c3   : > { %27750 = vmatpush3.xpose.msk.msra.mxu0 %vm727_vm0, %v35957_v10  ;;  %27751 = vmatprep.mubr.msk.f32.mxu0 %vm29305_vm3, %v35664_v39  ;;  %v12414_v48 = vmul.f32 %v31923_v17, %v35960_v59  ;;  %v35961_v10 = vld [vmem:[#allocation78_spill] sm:$0xff] }
 0x6c4   : > { %27759 = vmatprep.subr.mxu0 %v35664_v39  ;;  %27747 = vmatmul.mubr.msk.f32.vlgmr.msra.gmra.mxu1 %vm727_vm0, %v12412_v53  ;;  %v35962_v53 = vld [vmem:[#allocation77_spill] sm:$0xff] }
 0x6c5   : > { %27755 = vmatpush3.xpose.msk.msra.mxu1 %vm727_vm0, %v35959_v60  ;;  %27756 = vmatprep.mubr.msk.f32.mxu1 %vm29305_vm3, %v35664_v39  ;;  %v12415_v57 = vmul.f32 %v31923_v17, %v35962_v53  ;;  %v35963_v60 = vld [vmem:[#allocation76_spill] sm:$0xff] }
 0x6c6   : > { %27752 = vmatmul.mubr.msk.f32.vlgmr.msra.gmra.mxu0 %vm727_vm0, %v12413_v0  ;;  %27764 = vmatprep.subr.mxu1 %v35664_v39  ;;  %v35964_v0 = vld [vmem:[#allocation75_spill] sm:$0xff] }
 0x6c7   : > { %27760 = vmatpush3.xpose.msk.msra.mxu0 %vm727_vm0, %v35961_v10  ;;  %27761 = vmatprep.mubr.msk.f32.mxu0 %vm29305_vm3, %v35664_v39  ;;  %v12416_v59 = vmul.f32 %v31923_v17, %v35964_v0  ;;  %v35965_v10 = vld [vmem:[#allocation82_spill] sm:$0xff] }
 0x6c8   : > { %27769 = vmatprep.subr.mxu0 %v35664_v39  ;;  %27757 = vmatmul.mubr.msk.f32.vlgmr.msra.gmra.mxu1 %vm727_vm0, %v12414_v48  ;;  %v35966_v48 = vld [vmem:[#allocation81_spill] sm:$0xff] }
 0x6c9   : > { %27765 = vmatpush3.xpose.msk.msra.mxu1 %vm727_vm0, %v35963_v60  ;;  %27766 = vmatprep.mubr.msk.f32.mxu1 %vm29305_vm3, %v35664_v39  ;;  %v12417_v53 = vmul.f32 %v31923_v17, %v35966_v48  ;;  %v35967_v60 = vld [vmem:[#allocation80_spill] sm:$0xff] }
 0x6ca   : > { %27762 = vmatmul.mubr.msk.f32.vlgmr.msra.gmra.mxu0 %vm727_vm0, %v12415_v57  ;;  %27774 = vmatprep.subr.mxu1 %v35664_v39  ;;  %v35968_v57 = vld [vmem:[#allocation79_spill] sm:$0xff] }
 0x6cb   : > { %27770 = vmatpush3.xpose.msk.msra.mxu0 %vm727_vm0, %v35965_v10  ;;  %27771 = vmatprep.mubr.msk.f32.mxu0 %vm29305_vm3, %v35664_v39  ;;  %v12418_v0 = vmul.f32 %v31923_v17, %v35968_v57  ;;  %v35969_v10 = vld [vmem:[#allocation86_spill] sm:$0xff] }
 0x6cc   : > { %27779 = vmatprep.subr.mxu0 %v35664_v39  ;;  %27767 = vmatmul.mubr.msk.f32.vlgmr.msra.gmra.mxu1 %vm727_vm0, %v12416_v59  ;;  %v35970_v59 = vld [vmem:[#allocation85_spill] sm:$0xff] }
 0x6cd   : > { %27775 = vmatpush3.xpose.msk.msra.mxu1 %vm727_vm0, %v35967_v60  ;;  %27776 = vmatprep.mubr.msk.f32.mxu1 %vm29305_vm3, %v35664_v39  ;;  %v12419_v48 = vmul.f32 %v31923_v17, %v35970_v59  ;;  %v35971_v60 = vld [vmem:[#allocation84_spill] sm:$0xff] }
 0x6ce   : > { %27772 = vmatmul.mubr.msk.f32.vlgmr.msra.gmra.mxu0 %vm727_vm0, %v12417_v53  ;;  %27784 = vmatprep.subr.mxu1 %v35664_v39  ;;  %v35972_v53 = vld [vmem:[#allocation83_spill] sm:$0xff] }
 0x6cf   : > { %27780 = vmatpush3.xpose.msk.msra.mxu0 %vm727_vm0, %v35969_v10  ;;  %27781 = vmatprep.mubr.msk.f32.mxu0 %vm29305_vm3, %v35664_v39  ;;  %v12420_v57 = vmul.f32 %v31923_v17, %v35972_v53  ;;  %v35973_v10 = vld [vmem:[#allocation90_spill] sm:$0xff] }
 0x6d0   : > { %27789 = vmatprep.subr.mxu0 %v35664_v39  ;;  %27777 = vmatmul.mubr.msk.f32.vlgmr.msra.gmra.mxu1 %vm727_vm0, %v12418_v0  ;;  %v35974_v0 = vld [vmem:[#allocation89_spill] sm:$0xff] }
 0x6d1   : > { %27785 = vmatpush3.xpose.msk.msra.mxu1 %vm727_vm0, %v35971_v60  ;;  %27786 = vmatprep.mubr.msk.f32.mxu1 %vm29305_vm3, %v35664_v39  ;;  %v12421_v59 = vmul.f32 %v31923_v17, %v35974_v0  ;;  %v35975_v60 = vld [vmem:[#allocation88_spill] sm:$0xff] }
 0x6d2   : > { %27782 = vmatmul.mubr.msk.f32.vlgmr.msra.gmra.mxu0 %vm727_vm0, %v12419_v48  ;;  %27794 = vmatprep.subr.mxu1 %v35664_v39  ;;  %v35976_v48 = vld [vmem:[#allocation87_spill] sm:$0xff] }
 0x6d3   : > { %27790 = vmatpush3.xpose.msk.msra.mxu0 %vm727_vm0, %v35973_v10  ;;  %27791 = vmatprep.mubr.msk.f32.mxu0 %vm29305_vm3, %v35664_v39  ;;  %v12422_v53 = vmul.f32 %v31923_v17, %v35976_v48  ;;  %v35977_v10 = vld [vmem:[#allocation94_spill] sm:$0xff] }
 0x6d4   : > { %27799 = vmatprep.subr.mxu0 %v35664_v39  ;;  %27787 = vmatmul.mubr.msk.f32.vlgmr.msra.gmra.mxu1 %vm727_vm0, %v12420_v57  ;;  %v35978_v57 = vld [vmem:[#allocation93_spill] sm:$0xff] }
 0x6d5   : > { %27795 = vmatpush3.xpose.msk.msra.mxu1 %vm727_vm0, %v35975_v60  ;;  %27796 = vmatprep.mubr.msk.f32.mxu1 %vm29305_vm3, %v35664_v39  ;;  %v12423_v0 = vmul.f32 %v31923_v17, %v35978_v57  ;;  %v35979_v60 = vld [vmem:[#allocation92_spill] sm:$0xff] }
 0x6d6   : > { %27792 = vmatmul.mubr.msk.f32.vlgmr.msra.gmra.mxu0 %vm727_vm0, %v12421_v59  ;;  %27804 = vmatprep.subr.mxu1 %v35664_v39  ;;  %v35980_v59 = vld [vmem:[#allocation91_spill] sm:$0xff] }
 0x6d7   : > { %27800 = vmatpush3.xpose.msk.msra.mxu0 %vm727_vm0, %v35977_v10  ;;  %27801 = vmatprep.mubr.msk.f32.mxu0 %vm29305_vm3, %v35664_v39  ;;  %v12424_v48 = vmul.f32 %v31923_v17, %v35980_v59  ;;  %v35981_v10 = vld [vmem:[#allocation98_spill] sm:$0xff] }
 0x6d8   : > { %27809 = vmatprep.subr.mxu0 %v35664_v39  ;;  %27797 = vmatmul.mubr.msk.f32.vlgmr.msra.gmra.mxu1 %vm727_vm0, %v12422_v53  ;;  %v35982_v53 = vld [vmem:[#allocation97_spill] sm:$0xff] }
 0x6d9   : > { %27805 = vmatpush3.xpose.msk.msra.mxu1 %vm727_vm0, %v35979_v60  ;;  %27806 = vmatprep.mubr.msk.f32.mxu1 %vm29305_vm3, %v35664_v39  ;;  %v12425_v57 = vmul.f32 %v31923_v17, %v35982_v53  ;;  %v35983_v60 = vld [vmem:[#allocation96_spill] sm:$0xff] }
 0x6da   : > { %27802 = vmatmul.mubr.msk.f32.vlgmr.msra.gmra.mxu0 %vm727_vm0, %v12423_v0  ;;  %27814 = vmatprep.subr.mxu1 %v35664_v39  ;;  %v35984_v0 = vld [vmem:[#allocation95_spill] sm:$0xff] }
 0x6db   : > { %27810 = vmatpush3.xpose.msk.msra.mxu0 %vm727_vm0, %v35981_v10  ;;  %27811 = vmatprep.mubr.msk.f32.mxu0 %vm29305_vm3, %v35664_v39  ;;  %v12426_v59 = vmul.f32 %v31923_v17, %v35984_v0  ;;  %v35985_v10 = vld [vmem:[#allocation102_spill] sm:$0xff] }
 0x6dc   : > { %27819 = vmatprep.subr.mxu0 %v35664_v39  ;;  %27807 = vmatmul.mubr.msk.f32.vlgmr.msra.gmra.mxu1 %vm727_vm0, %v12424_v48  ;;  %v35986_v48 = vld [vmem:[#allocation101_spill] sm:$0xff] }
 0x6dd   : > { %27815 = vmatpush3.xpose.msk.msra.mxu1 %vm727_vm0, %v35983_v60  ;;  %27816 = vmatprep.mubr.msk.f32.mxu1 %vm29305_vm3, %v35664_v39  ;;  %v12427_v53 = vmul.f32 %v31923_v17, %v35986_v48  ;;  %v35987_v60 = vld [vmem:[#allocation100_spill] sm:$0xff]  ;;  %v35993_v48 = vld [vmem:[#allocation150_spill] sm:$0xff] }
 0x6de   : > { %27812 = vmatmul.mubr.msk.f32.vlgmr.msra.gmra.mxu0 %vm727_vm0, %v12425_v57  ;;  %27824 = vmatprep.subr.mxu1 %v35664_v39  ;;  %v35988_v57 = vld [vmem:[#allocation99_spill] sm:$0xff] }
 0x6df   : > { %27820 = vmatpush3.xpose.msk.msra.mxu0 %vm727_vm0, %v35985_v10  ;;  %27821 = vmatprep.mubr.msk.f32.mxu0 %vm29305_vm3, %v35664_v39  ;;  %v12428_v0 = vmul.f32 %v31923_v17, %v35988_v57  ;;  %v35989_v10 = vld [vmem:[#allocation104_spill] sm:$0xff]  ;;  %v35992_v57 = vld [vmem:[#allocation38_spill] sm:$0xff] }
 0x6e0   : > { %27829 = vmatprep.subr.mxu0 %v35664_v39  ;;  %27817 = vmatmul.mubr.msk.f32.vlgmr.msra.gmra.mxu1 %vm727_vm0, %v12426_v59  ;;  %v35990_v59 = vld [vmem:[#allocation103_spill] sm:$0xff]  ;;  %v7215_v27 = vmul.f32 %v35992_v57, %v35996_v33 }
 0x6e1   : > { %27825 = vmatpush3.xpose.msk.msra.mxu1 %vm727_vm0, %v35987_v60  ;;  %27826 = vmatprep.mubr.msk.f32.mxu1 %vm29305_vm3, %v35664_v39 }
 0x6e2   : > { %27822 = vmatmul.mubr.msk.f32.vlgmr.msra.gmra.mxu0 %vm727_vm0, %v12427_v53  ;;  %27834 = vmatprep.subr.mxu1 %v35664_v39  ;;  %v35991_v53 = vld [vmem:[#allocation152_spill] sm:$0xff] }
 0x6e3   : > { %27830 = vmatpush3.msra.mxu0 %v35989_v10  ;;  %27831 = vmatprep.mubr.msk.f32.mxu0 %vm29305_vm3, %v35664_v39  ;;  %v7213_v60 = vmul.f32 %v35992_v57, %v35991_v53 }
 0x6e4   : > { %27827 = vmatmul.mubr.msk.f32.vlgmr.msra.gmra.mxu1 %vm727_vm0, %v12428_v0  ;;  %27839 = vmatprep.subr.mxu0 %v35664_v39  ;;  %v7214_v0 = vmul.f32 %v35992_v57, %v35994_v15 }
 0x6e5   : > { %27835 = vmatpush3.msra.mxu1 %v35990_v59  ;;  %27836 = vmatprep.mubr.msk.f32.mxu1 %vm29305_vm3, %v35664_v39 }
 0x6e6   : > { %27844 = vmatprep.subr.mxu1 %v35664_v39 }
 0x726   : > { %v10066_v17 = vpop.f32.mrf.mxu0 }
 0x727   : > { %v12333_v10 = vmul.f32 %v35993_v48, %v10066_v17 }
 0x728   : > { %v27513_v32 = vpop.f32.mrf.mxu0  ;;  %v10139_v49 = vpop.f32.mrf.mxu1 }
 0x729   : > { %v32195_v16 = vadd.f32 %v12333_v10, %v7213_v60  ;;  %v12334_v59 = vmul.f32 %v35993_v48, %v10139_v49  ;;  %v35998_v32 = vld [vmem:[#allocation154_spill] sm:$0xff]  ;;  %v36000_v60 = vld [vmem:[#allocation155_spill] sm:$0xff] }
 0x72a   : > { %v10212_v47 = vpop.f32.mrf.mxu0  ;;  %v27518_v13 = vpop.f32.mrf.mxu1  ;;  %v7216_v52 = vmul.f32 %v35992_v57, %v35998_v32  ;;  %v36004_v32 = vld [vmem:[#allocation157_spill] sm:$0xff] }
 0x72b   : > { %35995 = vst [vmem:[#allocation152_spill] sm:$0xff] %v32195_v16  ;;  %v32200_v12 = vadd.f32 %v12334_v59, %v7214_v0  ;;  %v12335_v53 = vmul.f32 %v35993_v48, %v10212_v47  ;;  %v7217_v13 = vmul.f32 %v35992_v57, %v36000_v60  ;;  %v36006_v60 = vld [vmem:[#allocation158_spill] sm:$0xff] }
 0x72c   : > { %v27523_v5 = vpop.f32.mrf.mxu0  ;;  %v10285_v17 = vpop.f32.mrf.mxu1 }
 0x72d   : > { %35997 = vst [vmem:[#allocation38_spill] sm:$0xff] %v32200_v12  ;;  %v32205_v40 = vadd.f32 %v12335_v53, %v7215_v27  ;;  %v12336_v15 = vmul.f32 %v35993_v48, %v10285_v17  ;;  %v36002_v5 = vld [vmem:[#allocation156_spill] sm:$0xff] }
 0x72e   : > { %v10358_v10 = vpop.f32.mrf.mxu0  ;;  %v27528_v49 = vpop.f32.mrf.mxu1  ;;  %v7218_v0 = vmul.f32 %v35992_v57, %v36002_v5  ;;  %v36008_v5 = vld [vmem:[#allocation159_spill] sm:$0xff] }
 0x72f   : > { %35999 = vst [vmem:[#allocation150_spill] sm:$0xff] %v32205_v40  ;;  %v32210_v16 = vadd.f32 %v12336_v15, %v7216_v52  ;;  %v12337_v33 = vmul.f32 %v35993_v48, %v10358_v10  ;;  %v7219_v49 = vmul.f32 %v35992_v57, %v36004_v32  ;;  %v36010_v32 = vld [vmem:[#allocation160_spill] sm:$0xff] }
 0x730   : > { %v27533_v59 = vpop.f32.mrf.mxu0  ;;  %v10431_v47 = vpop.f32.mrf.mxu1 }
 0x731   : > { %36001 = vst [vmem:[#allocation151_spill] sm:$0xff] %v32210_v16  ;;  %v32215_v12 = vadd.f32 %v12337_v33, %v7217_v13  ;;  %v12338_v27 = vmul.f32 %v35993_v48, %v10431_v47  ;;  %v7220_v59 = vmul.f32 %v35992_v57, %v36006_v60  ;;  %v36012_v60 = vld [vmem:[#allocation161_spill] sm:$0xff] }
 0x732   : > { %v10504_v53 = vpop.f32.mrf.mxu0  ;;  %v27538_v17 = vpop.f32.mrf.mxu1 }
 0x733   : > { %36003 = vst [vmem:[#allocation153_spill] sm:$0xff] %v32215_v12  ;;  %v32220_v40 = vadd.f32 %v12338_v27, %v7218_v0  ;;  %v12339_v52 = vmul.f32 %v35993_v48, %v10504_v53  ;;  %v7221_v17 = vmul.f32 %v35992_v57, %v36008_v5  ;;  %v36014_v5 = vld [vmem:[#allocation162_spill] sm:$0xff] }
 0x734   : > { %v27543_v15 = vpop.f32.mrf.mxu0  ;;  %v10577_v10 = vpop.f32.mrf.mxu1 }
 0x735   : > { %36005 = vst [vmem:[#allocation154_spill] sm:$0xff] %v32220_v40  ;;  %v32225_v16 = vadd.f32 %v12339_v52, %v7219_v49  ;;  %v12340_v13 = vmul.f32 %v35993_v48, %v10577_v10  ;;  %v7222_v15 = vmul.f32 %v35992_v57, %v36010_v32  ;;  %v36016_v32 = vld [vmem:[#allocation163_spill] sm:$0xff] }
 0x736   : > { %v10650_v33 = vpop.f32.mrf.mxu0  ;;  %v27548_v47 = vpop.f32.mrf.mxu1 }
 0x737   : > { %36007 = vst [vmem:[#allocation155_spill] sm:$0xff] %v32225_v16  ;;  %v32230_v12 = vadd.f32 %v12340_v13, %v7220_v59  ;;  %v12341_v0 = vmul.f32 %v35993_v48, %v10650_v33  ;;  %v7223_v47 = vmul.f32 %v35992_v57, %v36012_v60  ;;  %v36018_v60 = vld [vmem:[#allocation164_spill] sm:$0xff] }
 0x738   : > { %v27553_v27 = vpop.f32.mrf.mxu0  ;;  %v10723_v53 = vpop.f32.mrf.mxu1 }
 0x739   : > { %36009 = vst [vmem:[#allocation156_spill] sm:$0xff] %v32230_v12  ;;  %v32235_v40 = vadd.f32 %v12341_v0, %v7221_v17  ;;  %v12342_v49 = vmul.f32 %v35993_v48, %v10723_v53  ;;  %v7224_v27 = vmul.f32 %v35992_v57, %v36014_v5  ;;  %v36020_v5 = vld [vmem:[#allocation165_spill] sm:$0xff] }
 0x73a   : > { %v10796_v52 = vpop.f32.mrf.mxu0  ;;  %v27558_v10 = vpop.f32.mrf.mxu1 }
 0x73b   : > { %36011 = vst [vmem:[#allocation157_spill] sm:$0xff] %v32235_v40  ;;  %v32240_v16 = vadd.f32 %v12342_v49, %v7222_v15  ;;  %v12343_v59 = vmul.f32 %v35993_v48, %v10796_v52  ;;  %v7225_v10 = vmul.f32 %v35992_v57, %v36016_v32  ;;  %v36022_v32 = vld [vmem:[#allocation166_spill] sm:$0xff] }
 0x73c   : > { %v27563_v13 = vpop.f32.mrf.mxu0  ;;  %v10869_v33 = vpop.f32.mrf.mxu1 }
 0x73d   : > { %36013 = vst [vmem:[#allocation158_spill] sm:$0xff] %v32240_v16  ;;  %v32245_v12 = vadd.f32 %v12343_v59, %v7223_v47  ;;  %v12344_v17 = vmul.f32 %v35993_v48, %v10869_v33  ;;  %v7226_v13 = vmul.f32 %v35992_v57, %v36018_v60  ;;  %v36024_v60 = vld [vmem:[#allocation167_spill] sm:$0xff] }
 0x73e   : > { %v10942_v0 = vpop.f32.mrf.mxu0  ;;  %v27568_v53 = vpop.f32.mrf.mxu1 }
 0x73f   : > { %36015 = vst [vmem:[#allocation159_spill] sm:$0xff] %v32245_v12  ;;  %v32250_v40 = vadd.f32 %v12344_v17, %v7224_v27  ;;  %v12345_v15 = vmul.f32 %v35993_v48, %v10942_v0  ;;  %v7227_v53 = vmul.f32 %v35992_v57, %v36020_v5  ;;  %v36026_v5 = vld [vmem:[#allocation168_spill] sm:$0xff] }
 0x740   : > { %v27573_v49 = vpop.f32.mrf.mxu0  ;;  %v11015_v52 = vpop.f32.mrf.mxu1 }
 0x741   : > { %36017 = vst [vmem:[#allocation160_spill] sm:$0xff] %v32250_v40  ;;  %v32255_v16 = vadd.f32 %v12345_v15, %v7225_v10  ;;  %v12346_v47 = vmul.f32 %v35993_v48, %v11015_v52  ;;  %v7228_v49 = vmul.f32 %v35992_v57, %v36022_v32  ;;  %v36028_v32 = vld [vmem:[#allocation169_spill] sm:$0xff] }
 0x742   : > { %v11088_v59 = vpop.f32.mrf.mxu0  ;;  %v27578_v33 = vpop.f32.mrf.mxu1 }
 0x743   : > { %36019 = vst [vmem:[#allocation161_spill] sm:$0xff] %v32255_v16  ;;  %v32260_v12 = vadd.f32 %v12346_v47, %v7226_v13  ;;  %v12347_v27 = vmul.f32 %v35993_v48, %v11088_v59  ;;  %v7229_v33 = vmul.f32 %v35992_v57, %v36024_v60  ;;  %v36030_v60 = vld [vmem:[#allocation170_spill] sm:$0xff] }
 0x744   : > { %v27583_v17 = vpop.f32.mrf.mxu0  ;;  %v11161_v0 = vpop.f32.mrf.mxu1 }
 0x745   : > { %36021 = vst [vmem:[#allocation162_spill] sm:$0xff] %v32260_v12  ;;  %v32265_v40 = vadd.f32 %v12347_v27, %v7227_v53  ;;  %v12348_v10 = vmul.f32 %v35993_v48, %v11161_v0  ;;  %v7230_v17 = vmul.f32 %v35992_v57, %v36026_v5  ;;  %v36032_v5 = vld [vmem:[#allocation171_spill] sm:$0xff] }
 0x746   : > { %v11234_v15 = vpop.f32.mrf.mxu0  ;;  %v27588_v52 = vpop.f32.mrf.mxu1 }
 0x747   : > { %36023 = vst [vmem:[#allocation163_spill] sm:$0xff] %v32265_v40  ;;  %v32270_v16 = vadd.f32 %v12348_v10, %v7228_v49  ;;  %v12349_v13 = vmul.f32 %v35993_v48, %v11234_v15  ;;  %v7231_v52 = vmul.f32 %v35992_v57, %v36028_v32  ;;  %v36034_v32 = vld [vmem:[#allocation172_spill] sm:$0xff] }
 0x748   : > { %v27593_v47 = vpop.f32.mrf.mxu0  ;;  %v11307_v59 = vpop.f32.mrf.mxu1 }
 0x749   : > { %36025 = vst [vmem:[#allocation164_spill] sm:$0xff] %v32270_v16  ;;  %v32275_v12 = vadd.f32 %v12349_v13, %v7229_v33  ;;  %v12350_v53 = vmul.f32 %v35993_v48, %v11307_v59  ;;  %v7232_v47 = vmul.f32 %v35992_v57, %v36030_v60  ;;  %v36036_v60 = vld [vmem:[#allocation173_spill] sm:$0xff] }
 0x74a   : > { %v11380_v27 = vpop.f32.mrf.mxu0  ;;  %v27598_v0 = vpop.f32.mrf.mxu1 }
 0x74b   : > { %36027 = vst [vmem:[#allocation165_spill] sm:$0xff] %v32275_v12  ;;  %v32280_v40 = vadd.f32 %v12350_v53, %v7230_v17  ;;  %v12351_v49 = vmul.f32 %v35993_v48, %v11380_v27  ;;  %v7233_v0 = vmul.f32 %v35992_v57, %v36032_v5  ;;  %v36038_v5 = vld [vmem:[#allocation174_spill] sm:$0xff] }
 0x74c   : > { %v27603_v10 = vpop.f32.mrf.mxu0  ;;  %v11453_v15 = vpop.f32.mrf.mxu1 }
 0x74d   : > { %36029 = vst [vmem:[#allocation166_spill] sm:$0xff] %v32280_v40  ;;  %v32285_v16 = vadd.f32 %v12351_v49, %v7231_v52  ;;  %v12352_v33 = vmul.f32 %v35993_v48, %v11453_v15  ;;  %v7234_v10 = vmul.f32 %v35992_v57, %v36034_v32  ;;  %v36040_v32 = vld [vmem:[#allocation175_spill] sm:$0xff] }
 0x74e   : > { %v11526_v13 = vpop.f32.mrf.mxu0  ;;  %v27608_v59 = vpop.f32.mrf.mxu1 }
 0x74f   : > { %36031 = vst [vmem:[#allocation167_spill] sm:$0xff] %v32285_v16  ;;  %v32290_v12 = vadd.f32 %v12352_v33, %v7232_v47  ;;  %v12353_v17 = vmul.f32 %v35993_v48, %v11526_v13  ;;  %v7235_v59 = vmul.f32 %v35992_v57, %v36036_v60  ;;  %v36042_v60 = vld [vmem:[#allocation176_spill] sm:$0xff] }
 0x750   : > { %v27613_v53 = vpop.f32.mrf.mxu0  ;;  %v11599_v27 = vpop.f32.mrf.mxu1 }
 0x751   : > { %36033 = vst [vmem:[#allocation168_spill] sm:$0xff] %v32290_v12  ;;  %v32295_v40 = vadd.f32 %v12353_v17, %v7233_v0  ;;  %v12354_v52 = vmul.f32 %v35993_v48, %v11599_v27  ;;  %v7236_v53 = vmul.f32 %v35992_v57, %v36038_v5  ;;  %v36044_v5 = vld [vmem:[#allocation177_spill] sm:$0xff] }
 0x752   : > { %v11672_v49 = vpop.f32.mrf.mxu0  ;;  %v27618_v15 = vpop.f32.mrf.mxu1 }
 0x753   : > { %36035 = vst [vmem:[#allocation169_spill] sm:$0xff] %v32295_v40  ;;  %v32300_v16 = vadd.f32 %v12354_v52, %v7234_v10  ;;  %v12355_v47 = vmul.f32 %v35993_v48, %v11672_v49  ;;  %v7237_v15 = vmul.f32 %v35992_v57, %v36040_v32  ;;  %v36046_v32 = vld [vmem:[#allocation178_spill] sm:$0xff] }
 0x754   : > { %v27623_v33 = vpop.f32.mrf.mxu0  ;;  %v11745_v13 = vpop.f32.mrf.mxu1 }
 0x755   : > { %36037 = vst [vmem:[#allocation170_spill] sm:$0xff] %v32300_v16  ;;  %v32305_v12 = vadd.f32 %v12355_v47, %v7235_v59  ;;  %v12356_v0 = vmul.f32 %v35993_v48, %v11745_v13  ;;  %v7238_v33 = vmul.f32 %v35992_v57, %v36042_v60  ;;  %v36048_v60 = vld [vmem:[#allocation179_spill] sm:$0xff] }
 0x756   : > { %v11818_v17 = vpop.f32.mrf.mxu0  ;;  %v27628_v27 = vpop.f32.mrf.mxu1 }
 0x757   : > { %36039 = vst [vmem:[#allocation171_spill] sm:$0xff] %v32305_v12  ;;  %v32310_v40 = vadd.f32 %v12356_v0, %v7236_v53  ;;  %v12357_v10 = vmul.f32 %v35993_v48, %v11818_v17  ;;  %v7239_v27 = vmul.f32 %v35992_v57, %v36044_v5  ;;  %v36050_v5 = vld [vmem:[#allocation180_spill] sm:$0xff] }
 0x758   : > { %v27633_v52 = vpop.f32.mrf.mxu0  ;;  %v11891_v49 = vpop.f32.mrf.mxu1 }
 0x759   : > { %36041 = vst [vmem:[#allocation172_spill] sm:$0xff] %v32310_v40  ;;  %v32315_v16 = vadd.f32 %v12357_v10, %v7237_v15  ;;  %v12358_v59 = vmul.f32 %v35993_v48, %v11891_v49  ;;  %v7240_v52 = vmul.f32 %v35992_v57, %v36046_v32  ;;  %v36052_v32 = vld [vmem:[#allocation181_spill] sm:$0xff] }
 0x75a   : > { %v11964_v47 = vpop.f32.mrf.mxu0  ;;  %v27638_v13 = vpop.f32.mrf.mxu1 }
 0x75b   : > { %36043 = vst [vmem:[#allocation173_spill] sm:$0xff] %v32315_v16  ;;  %v32320_v12 = vadd.f32 %v12358_v59, %v7238_v33  ;;  %v12359_v53 = vmul.f32 %v35993_v48, %v11964_v47  ;;  %v7241_v13 = vmul.f32 %v35992_v57, %v36048_v60  ;;  %v36054_v60 = vld [vmem:[#allocation182_spill] sm:$0xff] }
 0x75c   : > { %v27643_v0 = vpop.f32.mrf.mxu0  ;;  %v12037_v17 = vpop.f32.mrf.mxu1 }
 0x75d   : > { %36045 = vst [vmem:[#allocation174_spill] sm:$0xff] %v32320_v12  ;;  %v32325_v40 = vadd.f32 %v12359_v53, %v7239_v27  ;;  %v12360_v15 = vmul.f32 %v35993_v48, %v12037_v17  ;;  %v7242_v0 = vmul.f32 %v35992_v57, %v36050_v5 }
 0x75e   : > { %v12110_v10 = vpop.f32.mrf.mxu0  ;;  %v27648_v49 = vpop.f32.mrf.mxu1 }
 0x75f   : > { %36047 = vst [vmem:[#allocation175_spill] sm:$0xff] %v32325_v40  ;;  %v32330_v16 = vadd.f32 %v12360_v15, %v7240_v52  ;;  %v12361_v33 = vmul.f32 %v35993_v48, %v12110_v10  ;;  %v7243_v49 = vmul.f32 %v35992_v57, %v36052_v32  ;;  %v36058_v32 = vld [vmem:[#allocation117_spill] sm:$0xff] }
 0x760   : > { %v27653_v59 = vpop.f32.mrf.mxu0  ;;  %v12183_v47 = vpop.f32.mrf.mxu1 }
 0x761   : > { %36049 = vst [vmem:[#allocation176_spill] sm:$0xff] %v32330_v16  ;;  %v32335_v12 = vadd.f32 %v12361_v33, %v7241_v13  ;;  %v12362_v27 = vmul.f32 %v35993_v48, %v12183_v47  ;;  %v7244_v59 = vmul.f32 %v35992_v57, %v36054_v60 }
 0x762   : > { %v12256_v53 = vpop.f32.mrf.mxu0  ;;  %v27658_v17 = vpop.f32.mrf.mxu1 }
 0x763   : > { %36051 = vst [vmem:[#allocation177_spill] sm:$0xff] %v32335_v12  ;;  %v32340_v40 = vadd.f32 %v12362_v27, %v7242_v0  ;;  %v12363_v52 = vmul.f32 %v35993_v48, %v12256_v53  ;;  %v36057_v17 = vld [vmem:[#allocation119_spill] sm:$0xff] }
 0x764   : > { %v27663_v15 = vpop.f32.mrf.mxu0  ;;  %v12329_v10 = vpop.f32.mrf.mxu1 }
 0x765   : > { %36053 = vst [vmem:[#allocation178_spill] sm:$0xff] %v32340_v40  ;;  %v32345_v16 = vadd.f32 %v12363_v52, %v7243_v49  ;;  %v12364_v13 = vmul.f32 %v35993_v48, %v12329_v10  ;;  %v36059_v52 = vld [vmem:[#allocation120_spill] sm:$0xff]  ;;  %v36066_v40 = vld [vmem:[#allocation126_spill] sm:$0xff] }
 0x766   : > { %v12498_v33 = vpop.f32.mrf.mxu0  ;;  %v27668_v47 = vpop.f32.mrf.mxu1 }
 0x767   : > { %36055 = vst [vmem:[#allocation179_spill] sm:$0xff] %v32345_v16  ;;  %v32348_v5 = vadd.f32 %v12364_v13, %v7244_v59  ;;  %v32351_v12 = vadd.f32 %v12498_v33, %v36057_v17  ;;  %v36060_v33 = vld [vmem:[#allocation121_spill] sm:$0xff] }
 0x768   : > { %v27673_v0 = vpop.f32.mrf.mxu0  ;;  %v12571_v27 = vpop.f32.mrf.mxu1 }
 0x769   : > { %36056 = vst [vmem:[#allocation180_spill] sm:$0xff] %v32348_v5  ;;  %v14765_v53 = vsel %vm4524_vm6, %v32351_v12, -inf  ;;  %v32356_v15 = vadd.f32 %v12571_v27, %v36058_v32  ;;  %v36062_v32 = vld [vmem:[#allocation123_spill] sm:$0xff]  ;;  %v36064_v5 = vld [vmem:[#allocation124_spill] sm:$0xff] }
 0x76a   : > { %14766 = vmax.xlane.f32.xlu1 %v14765_v53  ;;  %v12644_v57 = vpop.f32.mrf.mxu0  ;;  %v27678_v49 = vpop.f32.mrf.mxu1  ;;  %v36061_v53 = vld [vmem:[#allocation122_spill] sm:$0xff] }
 0x76b   : > { %v32359_v48 = vadd.f32 %v12644_v57, %v36059_v52  ;;  %v14768_v10 = vsel %vm4524_vm6, %v32356_v15, -inf }
 0x76c   : > { %v27683_v60 = vpop.f32.mrf.mxu0  ;;  %14769 = vmax.xlane.f32.xlu0 %v14768_v10  ;;  %v12717_v59 = vpop.f32.mrf.mxu1 }
 0x76d   : > { %v14771_v13 = vsel %vm4524_vm6, %v32359_v48, -inf  ;;  %v32366_v47 = vadd.f32 %v12717_v59, %v36060_v33  ;;  %v36063_v33 = vld [vmem:[#allocation125_spill] sm:$0xff] }
 0x76e   : > { %14772 = vmax.xlane.f32.xlu1 %v14771_v13  ;;  %v12790_v0 = vpop.f32.mrf.mxu0  ;;  %v27688_v27 = vpop.f32.mrf.mxu1 }
 0x76f   : > { %v32369_v49 = vadd.f32 %v12790_v0, %v36061_v53  ;;  %v14774_v57 = vsel %vm4524_vm6, %v32366_v47, -inf }
 0x770   : > { %v27693_v52 = vpop.f32.mrf.mxu0  ;;  %14775 = vmax.xlane.f32.xlu0 %v14774_v57  ;;  %v12863_v60 = vpop.f32.mrf.mxu1 }
 0x771   : > { %v14777_v10 = vsel %vm4524_vm6, %v32369_v49, -inf  ;;  %v32376_v17 = vadd.f32 %v12863_v60, %v36062_v32  ;;  %v36065_v32 = vld [vmem:[#allocation127_spill] sm:$0xff] }
 0x772   : > { %14778 = vmax.xlane.f32.xlu1 %v14777_v10  ;;  %v12936_v59 = vpop.f32.mrf.mxu0  ;;  %v27698_v13 = vpop.f32.mrf.mxu1 }
 0x773   : > { %v32379_v27 = vadd.f32 %v12936_v59, %v36063_v33  ;;  %v14780_v0 = vsel %vm4524_vm6, %v32376_v17, -inf }
 0x774   : > { %v27703_v53 = vpop.f32.mrf.mxu0  ;;  %14781 = vmax.xlane.f32.xlu0 %v14780_v0  ;;  %v13009_v52 = vpop.f32.mrf.mxu1 }
 0x775   : > { %v14783_v57 = vsel %vm4524_vm6, %v32379_v27, -inf  ;;  %v32386_v16 = vadd.f32 %v13009_v52, %v36064_v5  ;;  %v36067_v5 = vld [vmem:[#allocation129_spill] sm:$0xff] }
 0x776   : > { %14784 = vmax.xlane.f32.xlu1 %v14783_v57  ;;  %v13082_v60 = vpop.f32.mrf.mxu0  ;;  %v27708_v10 = vpop.f32.mrf.mxu1 }
 0x777   : > { %v32389_v13 = vadd.f32 %v13082_v60, %v36065_v32  ;;  %v14786_v59 = vsel %vm4524_vm6, %v32386_v16, -inf }
 0x778   : > { %v27713_v33 = vpop.f32.mrf.mxu0  ;;  %14787 = vmax.xlane.f32.xlu0 %v14786_v59  ;;  %v13155_v53 = vpop.f32.mrf.mxu1 }
 0x779   : > { %v14789_v0 = vsel %vm4524_vm6, %v32389_v13, -inf  ;;  %v32396_v54 = vadd.f32 %v13155_v53, %v36066_v40  ;;  %v36069_v40 = vld [vmem:[#allocation131_spill] sm:$0xff] }
 0x77a   : > { %14790 = vmax.xlane.f32.xlu1 %v14789_v0  ;;  %v13228_v52 = vpop.f32.mrf.mxu0  ;;  %v27718_v57 = vpop.f32.mrf.mxu1 }
 0x77b   : > { %v32399_v10 = vadd.f32 %v13228_v52, %v36067_v5  ;;  %v14792_v60 = vsel %vm4524_vm6, %v32396_v54, -inf }
 0x77c   : > { %v27723_v32 = vpop.f32.mrf.mxu0  ;;  %14793 = vmax.xlane.f32.xlu0 %v14792_v60  ;;  %v13301_v33 = vpop.f32.mrf.mxu1 }
 0x77d   : > { %v14795_v59 = vsel %vm4524_vm6, %v32399_v10, -inf  ;;  %v32406_v37 = vadd.f32 %v13301_v33, %v36068_v28  ;;  %v36071_v28 = vld [vmem:[#allocation133_spill] sm:$0xff] }
 0x77e   : > { %14796 = vmax.xlane.f32.xlu1 %v14795_v59  ;;  %v13374_v53 = vpop.f32.mrf.mxu0  ;;  %v27728_v0 = vpop.f32.mrf.mxu1 }
 0x77f   : > { %v32409_v57 = vadd.f32 %v13374_v53, %v36069_v40  ;;  %v14798_v52 = vsel %vm4524_vm6, %v32406_v37, -inf }
 0x780   : > { %v27733_v5 = vpop.f32.mrf.mxu0  ;;  %14799 = vmax.xlane.f32.xlu0 %v14798_v52  ;;  %v13447_v32 = vpop.f32.mrf.mxu1 }
 0x781   : > { %v14801_v60 = vsel %vm4524_vm6, %v32409_v57, -inf  ;;  %v32416_v55 = vadd.f32 %v13447_v32, %v36070_v11  ;;  %v36073_v11 = vld [vmem:[#allocation135_spill] sm:$0xff] }
 0x782   : > { %14802 = vmax.xlane.f32.xlu1 %v14801_v60  ;;  %v13520_v33 = vpop.f32.mrf.mxu0  ;;  %v27738_v59 = vpop.f32.mrf.mxu1 }
 0x783   : > { %v32419_v0 = vadd.f32 %v13520_v33, %v36071_v28  ;;  %v14804_v53 = vsel %vm4524_vm6, %v32416_v55, -inf }
 0x784   : > { %v27743_v40 = vpop.f32.mrf.mxu0  ;;  %14805 = vmax.xlane.f32.xlu0 %v14804_v53  ;;  %v13593_v5 = vpop.f32.mrf.mxu1 }
 0x785   : > { %v14807_v52 = vsel %vm4524_vm6, %v32419_v0, -inf  ;;  %v32426_v20 = vadd.f32 %v13593_v5, %v36072_v31  ;;  %v36075_v31 = vld [vmem:[#allocation137_spill] sm:$0xff] }
 0x786   : > { %14808 = vmax.xlane.f32.xlu1 %v14807_v52  ;;  %v13666_v32 = vpop.f32.mrf.mxu0  ;;  %v27748_v60 = vpop.f32.mrf.mxu1 }
 0x787   : > { %v32429_v59 = vadd.f32 %v13666_v32, %v36073_v11  ;;  %v14810_v33 = vsel %vm4524_vm6, %v32426_v20, -inf }
 0x788   : > { %v27753_v28 = vpop.f32.mrf.mxu0  ;;  %14811 = vmax.xlane.f32.xlu0 %v14810_v33  ;;  %v13739_v40 = vpop.f32.mrf.mxu1 }
 0x789   : > { %v14813_v53 = vsel %vm4524_vm6, %v32429_v59, -inf  ;;  %v32436_v45 = vadd.f32 %v13739_v40, %v36074_v56  ;;  %v36077_v56 = vld [vmem:[#allocation139_spill] sm:$0xff] }
 0x78a   : > { %14814 = vmax.xlane.f32.xlu1 %v14813_v53  ;;  %v13812_v5 = vpop.f32.mrf.mxu0  ;;  %v27758_v52 = vpop.f32.mrf.mxu1 }
 0x78b   : > { %v32439_v60 = vadd.f32 %v13812_v5, %v36075_v31  ;;  %v14816_v32 = vsel %vm4524_vm6, %v32436_v45, -inf }
 0x78c   : > { %v27763_v11 = vpop.f32.mrf.mxu0  ;;  %14817 = vmax.xlane.f32.xlu0 %v14816_v32  ;;  %v13885_v28 = vpop.f32.mrf.mxu1 }
 0x78d   : > { %v14819_v33 = vsel %vm4524_vm6, %v32439_v60, -inf  ;;  %v32446_v30 = vadd.f32 %v13885_v28, %v36076_v50  ;;  %v36079_v50 = vld [vmem:[#allocation141_spill] sm:$0xff] }
 0x78e   : > { %14820 = vmax.xlane.f32.xlu1 %v14819_v33  ;;  %v13958_v40 = vpop.f32.mrf.mxu0  ;;  %v27768_v53 = vpop.f32.mrf.mxu1 }
 0x78f   : > { %v32449_v52 = vadd.f32 %v13958_v40, %v36077_v56  ;;  %v14822_v5 = vsel %vm4524_vm6, %v32446_v30, -inf }
 0x790   : > { %v27773_v31 = vpop.f32.mrf.mxu0  ;;  %14823 = vmax.xlane.f32.xlu0 %v14822_v5  ;;  %v14031_v11 = vpop.f32.mrf.mxu1 }
 0x791   : > { %v14825_v32 = vsel %vm4524_vm6, %v32449_v52, -inf  ;;  %v32456_v44 = vadd.f32 %v14031_v11, %v36078_v6  ;;  %v36081_v6 = vld [vmem:[#allocation143_spill] sm:$0xff] }
 0x792   : > { %14826 = vmax.xlane.f32.xlu1 %v14825_v32  ;;  %v14104_v28 = vpop.f32.mrf.mxu0  ;;  %v27778_v33 = vpop.f32.mrf.mxu1 }
 0x793   : > { %v32459_v53 = vadd.f32 %v14104_v28, %v36079_v50  ;;  %v14828_v40 = vsel %vm4524_vm6, %v32456_v44, -inf }
 0x794   : > { %v27783_v56 = vpop.f32.mrf.mxu0  ;;  %14829 = vmax.xlane.f32.xlu0 %v14828_v40  ;;  %v14177_v31 = vpop.f32.mrf.mxu1 }
 0x795   : > { %v14831_v5 = vsel %vm4524_vm6, %v32459_v53, -inf  ;;  %v32466_v19 = vadd.f32 %v14177_v31, %v36080_v61  ;;  %v36083_v61 = vld [vmem:[#allocation145_spill] sm:$0xff] }
 0x796   : > { %14832 = vmax.xlane.f32.xlu1 %v14831_v5  ;;  %v14250_v11 = vpop.f32.mrf.mxu0  ;;  %v27788_v32 = vpop.f32.mrf.mxu1 }
 0x797   : > { %v32469_v33 = vadd.f32 %v14250_v11, %v36081_v6  ;;  %v14834_v28 = vsel %vm4524_vm6, %v32466_v19, -inf }
 0x798   : > { %v27793_v50 = vpop.f32.mrf.mxu0  ;;  %14835 = vmax.xlane.f32.xlu0 %v14834_v28  ;;  %v14323_v56 = vpop.f32.mrf.mxu1 }
 0x799   : > { %v14837_v40 = vsel %vm4524_vm6, %v32469_v33, -inf  ;;  %v32476_v9 = vadd.f32 %v14323_v56, %v36082_v58  ;;  %v36085_v58 = vld [vmem:[#allocation147_spill] sm:$0xff] }
 0x79a   : > { %14838 = vmax.xlane.f32.xlu1 %v14837_v40  ;;  %v14396_v31 = vpop.f32.mrf.mxu0  ;;  %v27798_v5 = vpop.f32.mrf.mxu1 }
 0x79b   : > { %v32479_v32 = vadd.f32 %v14396_v31, %v36083_v61  ;;  %v14840_v11 = vsel %vm4524_vm6, %v32476_v9, -inf }
 0x79c   : > { %v27803_v6 = vpop.f32.mrf.mxu0  ;;  %14841 = vmax.xlane.f32.xlu0 %v14840_v11  ;;  %v14469_v50 = vpop.f32.mrf.mxu1 }
 0x79d   : > { %v14843_v28 = vsel %vm4524_vm6, %v32479_v32, -inf  ;;  %v32486_v51 = vadd.f32 %v14469_v50, %v36084_v25  ;;  %v36087_v25 = vld [vmem:[#allocation149_spill] sm:$0xff] }
 0x79e   : > { %14844 = vmax.xlane.f32.xlu1 %v14843_v28  ;;  %v14542_v56 = vpop.f32.mrf.mxu0  ;;  %v27808_v40 = vpop.f32.mrf.mxu1 }
 0x79f   : > { %v32489_v5 = vadd.f32 %v14542_v56, %v36085_v58  ;;  %v14846_v31 = vsel %vm4524_vm6, %v32486_v51, -inf }
 0x7a0   : > { %v27813_v61 = vpop.f32.mrf.mxu0  ;;  %14847 = vmax.xlane.f32.xlu0 %v14846_v31  ;;  %v14615_v6 = vpop.f32.mrf.mxu1 }
 0x7a1   : > { %v14849_v11 = vsel %vm4524_vm6, %v32489_v5, -inf  ;;  %v32496_v36 = vadd.f32 %v14615_v6, %v36086_v22 }
 0x7a2   : > { %14850 = vmax.xlane.f32.xlu1 %v14849_v11  ;;  %v14688_v50 = vpop.f32.mrf.mxu0  ;;  %v27818_v28 = vpop.f32.mrf.mxu1 }
 0x7a3   : > { %v32499_v40 = vadd.f32 %v14688_v50, %v36087_v25  ;;  %v14852_v56 = vsel %vm4524_vm6, %v32496_v36, -inf }
 0x7a4   : > { %v27823_v58 = vpop.f32.mrf.mxu0  ;;  %14853 = vmax.xlane.f32.xlu0 %v14852_v56  ;;  %v14761_v61 = vpop.f32.mrf.mxu1 }
 0x7a5   : > { %v14855_v31 = vsel %vm4524_vm6, %v32499_v40, -inf  ;;  %v32506_v2 = vadd.f32 %v14761_v61, %v36088_v24 }
 0x7a6   : > { %14856 = vmax.xlane.f32.xlu1 %v14855_v31  ;;  %v27828_v6 = vpop.f32.mrf.mxu1 }
 0x7a7   : > { %v14858_v11 = vsel %vm4524_vm6, %v32506_v2, -inf }
 0x7a8   : > { %14859 = vmax.xlane.f32.xlu0 %v14858_v11 }
 0x7f3   : > { %v14767_v50 = vpop.xlane.xlu1 %14766 }
 0x7f4   : > { %v14861_v28 = vsub.f32 %v32351_v12, %v14767_v50 }
 0x7f5   : > { %v14770_v25 = vpop.xlane.xlu0 %14769 }
 0x7f6   : > { %v14893_v22 = vmul.f32 1.442695, %v14861_v28  ;;  %v14862_v58 = vsub.f32 %v32356_v15, %v14770_v25 }
 0x7f7   : > { %v14773_v56 = vpop.xlane.xlu1 %14772 }
 0x7f8   : > { %28802 = vpow2.f32 %v14893_v22  ;;  %v14863_v14 = vsub.f32 %v32359_v48, %v14773_v56  ;;  %v14895_v63 = vmul.f32 1.442695, %v14862_v58 }
 0x7f9   : > { %v14776_v61 = vpop.xlane.xlu0 %14775 }
 0x7fa   : > { %v14897_v24 = vmul.f32 1.442695, %v14863_v14  ;;  %28804 = vpow2.f32 %v14895_v63  ;;  %v14864_v31 = vsub.f32 %v32366_v47, %v14776_v61 }
 0x7fb   : > { %v14779_v6 = vpop.xlane.xlu1 %14778 }
 0x7fc   : > { %28806 = vpow2.f32 %v14897_v24  ;;  %v14865_v11 = vsub.f32 %v32369_v49, %v14779_v6  ;;  %v14899_v41 = vmul.f32 1.442695, %v14864_v31 }
 0x7fd   : > { %v14782_v12 = vpop.xlane.xlu0 %14781 }
 0x7fe   : > { %v14901_v50 = vmul.f32 1.442695, %v14865_v11  ;;  %28808 = vpow2.f32 %v14899_v41  ;;  %v14866_v25 = vsub.f32 %v32376_v17, %v14782_v12 }
 0x7ff   : > { %v14785_v15 = vpop.xlane.xlu1 %14784 }
 0x800   : > { %28810 = vpow2.f32 %v14901_v50  ;;  %v14867_v22 = vsub.f32 %v32379_v27, %v14785_v15  ;;  %v14903_v48 = vmul.f32 1.442695, %v14866_v25 }
 0x801   : > { %v14788_v28 = vpop.xlane.xlu0 %14787 }
 0x802   : > { %v14905_v14 = vmul.f32 1.442695, %v14867_v22  ;;  %28812 = vpow2.f32 %v14903_v48  ;;  %v14868_v63 = vsub.f32 %v32386_v16, %v14788_v28 }
 0x803   : > { %v14791_v47 = vpop.xlane.xlu1 %14790 }
 0x804   : > { %28814 = vpow2.f32 %v14905_v14  ;;  %v14869_v24 = vsub.f32 %v32389_v13, %v14791_v47  ;;  %v14907_v49 = vmul.f32 1.442695, %v14868_v63 }
 0x805   : > { %v32519_v58 = vpop.eup %28802  ;;  %v14794_v41 = vpop.xlane.xlu0 %14793 }
 0x806   : > { %v14909_v56 = vmul.f32 1.442695, %v14869_v24  ;;  %28816 = vpow2.f32 %v14907_v49  ;;  %v14957_v17 = vsel %vm4524_vm6, %v32519_v58, 0.0  ;;  %v14870_v27 = vsub.f32 %v32396_v54, %v14794_v41 }
 0x807   : > { %v32524_v61 = vpop.eup %28804  ;;  %v14797_v31 = vpop.xlane.xlu1 %14796  ;;  %14958 = vadd.xlane.f32.xlu1 %v14957_v17 }
 0x808   : > { %28818 = vpow2.f32 %v14909_v56  ;;  %v14871_v16 = vsub.f32 %v32399_v10, %v14797_v31  ;;  %v14911_v6 = vmul.f32 1.442695, %v14870_v27  ;;  %v14960_v13 = vsel %vm4524_vm6, %v32524_v61, 0.0 }
 0x809   : > { %v32529_v11 = vpop.eup %28806  ;;  %v14800_v12 = vpop.xlane.xlu0 %14799  ;;  %14961 = vadd.xlane.f32.xlu0 %v14960_v13 }
 0x80a   : > { %v14913_v50 = vmul.f32 1.442695, %v14871_v16  ;;  %28820 = vpow2.f32 %v14911_v6  ;;  %v14963_v54 = vsel %vm4524_vm6, %v32529_v11, 0.0  ;;  %v14872_v25 = vsub.f32 %v32406_v37, %v14800_v12 }
 0x80b   : > { %v32534_v15 = vpop.eup %28808  ;;  %v14803_v22 = vpop.xlane.xlu1 %14802  ;;  %14964 = vadd.xlane.f32.xlu1 %v14963_v54 }
 0x80c   : > { %28822 = vpow2.f32 %v14913_v50  ;;  %v14873_v10 = vsub.f32 %v32409_v57, %v14803_v22  ;;  %v14915_v48 = vmul.f32 1.442695, %v14872_v25  ;;  %v14966_v28 = vsel %vm4524_vm6, %v32534_v15, 0.0 }
 0x80d   : > { %v32539_v14 = vpop.eup %28810  ;;  %v14806_v63 = vpop.xlane.xlu0 %14805  ;;  %14967 = vadd.xlane.f32.xlu0 %v14966_v28 }
 0x80e   : > { %v14917_v47 = vmul.f32 1.442695, %v14873_v10  ;;  %28824 = vpow2.f32 %v14915_v48  ;;  %v14969_v37 = vsel %vm4524_vm6, %v32539_v14, 0.0  ;;  %v14874_v24 = vsub.f32 %v32416_v55, %v14806_v63 }
 0x80f   : > { %v32544_v49 = vpop.eup %28812  ;;  %v14809_v41 = vpop.xlane.xlu1 %14808  ;;  %14970 = vadd.xlane.f32.xlu1 %v14969_v37 }
 0x810   : > { %28826 = vpow2.f32 %v14917_v47  ;;  %v14875_v57 = vsub.f32 %v32419_v0, %v14809_v41  ;;  %v14919_v56 = vmul.f32 1.442695, %v14874_v24  ;;  %v14972_v17 = vsel %vm4524_vm6, %v32544_v49, 0.0 }
 0x811   : > { %v32549_v27 = vpop.eup %28814  ;;  %v14812_v31 = vpop.xlane.xlu0 %14811  ;;  %14973 = vadd.xlane.f32.xlu0 %v14972_v17 }
 0x812   : > { %v14921_v16 = vmul.f32 1.442695, %v14875_v57  ;;  %28828 = vpow2.f32 %v14919_v56  ;;  %v14975_v55 = vsel %vm4524_vm6, %v32549_v27, 0.0  ;;  %v14876_v6 = vsub.f32 %v32426_v20, %v14812_v31 }
 0x813   : > { %v32554_v13 = vpop.eup %28816  ;;  %v14815_v12 = vpop.xlane.xlu1 %14814  ;;  %14976 = vadd.xlane.f32.xlu1 %v14975_v55 }
 0x814   : > { %28830 = vpow2.f32 %v14921_v16  ;;  %v14877_v0 = vsub.f32 %v32429_v59, %v14815_v12  ;;  %v14923_v50 = vmul.f32 1.442695, %v14876_v6  ;;  %v14978_v54 = vsel %vm4524_vm6, %v32554_v13, 0.0 }
 0x815   : > { %v32559_v25 = vpop.eup %28818  ;;  %v14818_v22 = vpop.xlane.xlu0 %14817  ;;  %14979 = vadd.xlane.f32.xlu0 %v14978_v54 }
 0x816   : > { %v14925_v10 = vmul.f32 1.442695, %v14877_v0  ;;  %28832 = vpow2.f32 %v14923_v50  ;;  %v14981_v20 = vsel %vm4524_vm6, %v32559_v25, 0.0  ;;  %v14878_v48 = vsub.f32 %v32436_v45, %v14818_v22 }
 0x817   : > { %v32564_v28 = vpop.eup %28820  ;;  %v14821_v63 = vpop.xlane.xlu1 %14820  ;;  %14982 = vadd.xlane.f32.xlu1 %v14981_v20 }
 0x818   : > { %28834 = vpow2.f32 %v14925_v10  ;;  %v14879_v59 = vsub.f32 %v32439_v60, %v14821_v63  ;;  %v14927_v47 = vmul.f32 1.442695, %v14878_v48  ;;  %v14984_v37 = vsel %vm4524_vm6, %v32564_v28, 0.0 }
 0x819   : > { %v32569_v24 = vpop.eup %28822  ;;  %v14824_v41 = vpop.xlane.xlu0 %14823  ;;  %14985 = vadd.xlane.f32.xlu0 %v14984_v37 }
 0x81a   : > { %v14929_v57 = vmul.f32 1.442695, %v14879_v59  ;;  %28836 = vpow2.f32 %v14927_v47  ;;  %v14987_v45 = vsel %vm4524_vm6, %v32569_v24, 0.0  ;;  %v14880_v56 = vsub.f32 %v32446_v30, %v14824_v41 }
 0x81b   : > { %v32574_v17 = vpop.eup %28824  ;;  %v14827_v31 = vpop.xlane.xlu1 %14826  ;;  %14988 = vadd.xlane.f32.xlu1 %v14987_v45 }
 0x81c   : > { %28838 = vpow2.f32 %v14929_v57  ;;  %v14881_v60 = vsub.f32 %v32449_v52, %v14827_v31  ;;  %v14931_v16 = vmul.f32 1.442695, %v14880_v56  ;;  %v14990_v55 = vsel %vm4524_vm6, %v32574_v17, 0.0 }
 0x81d   : > { %v32579_v6 = vpop.eup %28826  ;;  %v14830_v12 = vpop.xlane.xlu0 %14829  ;;  %14991 = vadd.xlane.f32.xlu0 %v14990_v55 }
 0x81e   : > { %v14933_v0 = vmul.f32 1.442695, %v14881_v60  ;;  %28840 = vpow2.f32 %v14931_v16  ;;  %v14993_v30 = vsel %vm4524_vm6, %v32579_v6, 0.0  ;;  %v14882_v50 = vsub.f32 %v32456_v44, %v14830_v12 }
 0x81f   : > { %v32584_v54 = vpop.eup %28828  ;;  %v14833_v22 = vpop.xlane.xlu1 %14832  ;;  %14994 = vadd.xlane.f32.xlu1 %v14993_v30 }
 0x820   : > { %28842 = vpow2.f32 %v14933_v0  ;;  %v14883_v52 = vsub.f32 %v32459_v53, %v14833_v22  ;;  %v14935_v10 = vmul.f32 1.442695, %v14882_v50  ;;  %v14996_v20 = vsel %vm4524_vm6, %v32584_v54, 0.0 }
 0x821   : > { %v32589_v48 = vpop.eup %28830  ;;  %v14836_v63 = vpop.xlane.xlu0 %14835  ;;  %14997 = vadd.xlane.f32.xlu0 %v14996_v20 }
 0x822   : > { %v14937_v59 = vmul.f32 1.442695, %v14883_v52  ;;  %28844 = vpow2.f32 %v14935_v10  ;;  %v14999_v44 = vsel %vm4524_vm6, %v32589_v48, 0.0  ;;  %v14884_v47 = vsub.f32 %v32466_v19, %v14836_v63 }
 0x823   : > { %v32594_v37 = vpop.eup %28832  ;;  %v14839_v41 = vpop.xlane.xlu1 %14838  ;;  %15000 = vadd.xlane.f32.xlu1 %v14999_v44 }
 0x824   : > { %28846 = vpow2.f32 %v14937_v59  ;;  %v14885_v53 = vsub.f32 %v32469_v33, %v14839_v41  ;;  %v14939_v57 = vmul.f32 1.442695, %v14884_v47  ;;  %v15002_v45 = vsel %vm4524_vm6, %v32594_v37, 0.0 }
 0x825   : > { %v32599_v56 = vpop.eup %28834  ;;  %v14842_v31 = vpop.xlane.xlu0 %14841  ;;  %15003 = vadd.xlane.f32.xlu0 %v15002_v45 }
 0x826   : > { %v14941_v60 = vmul.f32 1.442695, %v14885_v53  ;;  %28848 = vpow2.f32 %v14939_v57  ;;  %v15005_v19 = vsel %vm4524_vm6, %v32599_v56, 0.0  ;;  %v14886_v16 = vsub.f32 %v32476_v9, %v14842_v31 }
 0x827   : > { %v32604_v55 = vpop.eup %28836  ;;  %v14845_v12 = vpop.xlane.xlu1 %14844  ;;  %15006 = vadd.xlane.f32.xlu1 %v15005_v19 }
 0x828   : > { %28850 = vpow2.f32 %v14941_v60  ;;  %v14887_v33 = vsub.f32 %v32479_v32, %v14845_v12  ;;  %v14943_v0 = vmul.f32 1.442695, %v14886_v16  ;;  %v15008_v30 = vsel %vm4524_vm6, %v32604_v55, 0.0 }
 0x829   : > { %v32609_v50 = vpop.eup %28838  ;;  %v14848_v22 = vpop.xlane.xlu0 %14847  ;;  %15009 = vadd.xlane.f32.xlu0 %v15008_v30 }
 0x82a   : > { %v14945_v52 = vmul.f32 1.442695, %v14887_v33  ;;  %28852 = vpow2.f32 %v14943_v0  ;;  %v15011_v9 = vsel %vm4524_vm6, %v32609_v50, 0.0  ;;  %v14888_v10 = vsub.f32 %v32486_v51, %v14848_v22 }
 0x82b   : > { %v32614_v20 = vpop.eup %28840  ;;  %v14851_v63 = vpop.xlane.xlu1 %14850  ;;  %15012 = vadd.xlane.f32.xlu1 %v15011_v9 }
 0x82c   : > { %28854 = vpow2.f32 %v14945_v52  ;;  %v14889_v32 = vsub.f32 %v32489_v5, %v14851_v63  ;;  %v14947_v59 = vmul.f32 1.442695, %v14888_v10  ;;  %v15014_v44 = vsel %vm4524_vm6, %v32614_v20, 0.0 }
 0x82d   : > { %v32619_v47 = vpop.eup %28842  ;;  %v14854_v41 = vpop.xlane.xlu0 %14853  ;;  %15015 = vadd.xlane.f32.xlu0 %v15014_v44 }
 0x82e   : > { %v14949_v53 = vmul.f32 1.442695, %v14889_v32  ;;  %28856 = vpow2.f32 %v14947_v59  ;;  %v15017_v51 = vsel %vm4524_vm6, %v32619_v47, 0.0  ;;  %v14890_v57 = vsub.f32 %v32496_v36, %v14854_v41 }
 0x82f   : > { %v32624_v45 = vpop.eup %28844  ;;  %15018 = vadd.xlane.f32.xlu1 %v15017_v51  ;;  %v14857_v31 = vpop.xlane.xlu1 %14856 }
 0x830   : > { %28858 = vpow2.f32 %v14949_v53  ;;  %v14891_v5 = vsub.f32 %v32499_v40, %v14857_v31  ;;  %v14951_v60 = vmul.f32 1.442695, %v14890_v57  ;;  %v15020_v19 = vsel %vm4524_vm6, %v32624_v45, 0.0 }
 0x831   : > { %v32629_v16 = vpop.eup %28846  ;;  %15021 = vadd.xlane.f32.xlu0 %v15020_v19  ;;  %v14860_v12 = vpop.xlane.xlu0 %14859 }
 0x832   : > { %v14953_v33 = vmul.f32 1.442695, %v14891_v5  ;;  %28860 = vpow2.f32 %v14951_v60  ;;  %v15023_v36 = vsel %vm4524_vm6, %v32629_v16, 0.0  ;;  %v14892_v0 = vsub.f32 %v32506_v2, %v14860_v12 }
 0x833   : > { %v32634_v30 = vpop.eup %28848  ;;  %15024 = vadd.xlane.f32.xlu1 %v15023_v36 }
 0x834   : > { %28862 = vpow2.f32 %v14953_v33  ;;  %v14955_v40 = vmul.f32 1.442695, %v14892_v0  ;;  %v15026_v22 = vsel %vm4524_vm6, %v32634_v30, 0.0 }
 0x835   : > { %v32638_v52 = vpop.eup %28850  ;;  %15027 = vadd.xlane.f32.xlu0 %v15026_v22 }
 0x836   : > { %28864 = vpow2.f32 %v14955_v40  ;;  %v15029_v9 = vsel %vm4524_vm6, %v32638_v52, 0.0 }
 0x837   : > { %v32642_v10 = vpop.eup %28852  ;;  %15030 = vadd.xlane.f32.xlu1 %v15029_v9 }
 0x838   : > { %v15032_v2 = vsel %vm4524_vm6, %v32642_v10, 0.0 }
 0x839   : > { %v32646_v63 = vpop.eup %28854  ;;  %15033 = vadd.xlane.f32.xlu0 %v15032_v2 }
 0x83a   : > { %v15035_v32 = vsel %vm4524_vm6, %v32646_v63, 0.0 }
 0x83b   : > { %v32650_v59 = vpop.eup %28856  ;;  %15036 = vadd.xlane.f32.xlu1 %v15035_v32 }
 0x83c   : > { %v15038_v44 = vsel %vm4524_vm6, %v32650_v59, 0.0 }
 0x83d   : > { %v32654_v41 = vpop.eup %28858  ;;  %15039 = vadd.xlane.f32.xlu0 %v15038_v44 }
 0x83e   : > { %v15041_v53 = vsel %vm4524_vm6, %v32654_v41, 0.0 }
 0x83f   : > { %v32658_v51 = vpop.eup %28860  ;;  %15042 = vadd.xlane.f32.xlu1 %v15041_v53 }
 0x840   : > { %v15044_v57 = vsel %vm4524_vm6, %v32658_v51, 0.0 }
 0x841   : > { %v32662_v31 = vpop.eup %28862  ;;  %15045 = vadd.xlane.f32.xlu0 %v15044_v57 }
 0x842   : > { %v15047_v5 = vsel %vm4524_vm6, %v32662_v31, 0.0 }
 0x843   : > { %v32666_v60 = vpop.eup %28864  ;;  %15048 = vadd.xlane.f32.xlu1 %v15047_v5 }
 0x844   : > { %v15050_v19 = vsel %vm4524_vm6, %v32666_v60, 0.0 }
 0x845   : > { %15051 = vadd.xlane.f32.xlu0 %v15050_v19 }
 0x890   : > { %v14959_v12 = vpop.xlane.xlu1 %14958 }
 0x891   : > { %28866 = vrcp.f32 %v14959_v12 }
 0x892   : > { %v14962_v33 = vpop.xlane.xlu0 %14961 }
 0x893   : > { %28868 = vrcp.f32 %v14962_v33 }
 0x894   : > { %v14965_v36 = vpop.xlane.xlu1 %14964 }
 0x895   : > { %28870 = vrcp.f32 %v14965_v36 }
 0x896   : > { %v14968_v0 = vpop.xlane.xlu0 %14967 }
 0x897   : > { %28872 = vrcp.f32 %v14968_v0 }
 0x898   : > { %v14971_v40 = vpop.xlane.xlu1 %14970 }
 0x899   : > { %28874 = vrcp.f32 %v14971_v40 }
 0x89a   : > { %v14974_v22 = vpop.xlane.xlu0 %14973 }
 0x89b   : > { %28876 = vrcp.f32 %v14974_v22 }
 0x89c   : > { %v14977_v9 = vpop.xlane.xlu1 %14976 }
 0x89d   : > { %28878 = vrcp.f32 %v14977_v9 }
 0x89e   : > { %v28867_v2 = vpop.eup %28866  ;;  %v14980_v32 = vpop.xlane.xlu0 %14979 }
 0x89f   : > { %v15085_v44 = vmul.f32 %v28867_v2, %v32519_v58  ;;  %28880 = vrcp.f32 %v14980_v32 }
 0x8a0   : > { %v28869_v53 = vpop.eup %28868  ;;  %v14983_v57 = vpop.xlane.xlu1 %14982 }
 0x8a1   : > { %v15086_v5 = vmul.f32 %v28869_v53, %v32524_v61  ;;  %28882 = vrcp.f32 %v14983_v57  ;;  %27832 = vmatmul.mubr.msk.f32.vlgmr.msra.gmra.mxu0 %vm4524_vm6, %v15085_v44 }
 0x8a2   : > { %v28871_v19 = vpop.eup %28870  ;;  %27840 = vmatpush3.msra.mxu0 %v30845_v35  ;;  %27841 = vmatprep.mubr.msk.f32.mxu0 %vm29305_vm3, %v35664_v39  ;;  %v14986_v12 = vpop.xlane.xlu0 %14985 }
 0x8a3   : > { %v15087_v33 = vmul.f32 %v28871_v19, %v32529_v11  ;;  %27849 = vmatprep.subr.mxu0 %v35664_v39  ;;  %28884 = vrcp.f32 %v14986_v12  ;;  %27837 = vmatmul.mubr.msk.f32.vlgmr.msra.gmra.mxu1 %vm4524_vm6, %v15086_v5 }
 0x8a4   : > { %v28873_v58 = vpop.eup %28872  ;;  %v14989_v36 = vpop.xlane.xlu1 %14988  ;;  %27845 = vmatpush3.msra.mxu1 %v30281_v18  ;;  %27846 = vmatprep.mubr.msk.f32.mxu1 %vm29305_vm3, %v35664_v39 }
 0x8a5   : > { %v15088_v61 = vmul.f32 %v28873_v58, %v32534_v15  ;;  %28886 = vrcp.f32 %v14989_v36  ;;  %27842 = vmatmul.mubr.msk.f32.vlgmr.msra.gmra.mxu0 %vm4524_vm6, %v15087_v33  ;;  %27854 = vmatprep.subr.mxu1 %v35664_v39 }
 0x8a6   : > { %v28875_v11 = vpop.eup %28874  ;;  %27850 = vmatpush3.msra.mxu0 %v30859_v29  ;;  %27851 = vmatprep.mubr.msk.f32.mxu0 %vm29305_vm3, %v35664_v39  ;;  %v14992_v0 = vpop.xlane.xlu0 %14991 }
 0x8a7   : > { %v15089_v40 = vmul.f32 %v28875_v11, %v32539_v14  ;;  %27859 = vmatprep.subr.mxu0 %v35664_v39  ;;  %28888 = vrcp.f32 %v14992_v0  ;;  %27847 = vmatmul.mubr.msk.f32.vlgmr.msra.gmra.mxu1 %vm4524_vm6, %v15088_v61 }
 0x8a8   : > { %v28877_v15 = vpop.eup %28876  ;;  %v14995_v22 = vpop.xlane.xlu1 %14994  ;;  %27855 = vmatpush3.msra.mxu1 %v30306_v8  ;;  %27856 = vmatprep.mubr.msk.f32.mxu1 %vm29305_vm3, %v35664_v39 }
 0x8a9   : > { %v15090_v9 = vmul.f32 %v28877_v15, %v32544_v49  ;;  %28890 = vrcp.f32 %v14995_v22  ;;  %27852 = vmatmul.mubr.msk.f32.vlgmr.msra.gmra.mxu0 %vm4524_vm6, %v15089_v40  ;;  %27864 = vmatprep.subr.mxu1 %v35664_v39 }
 0x8aa   : > { %v28879_v14 = vpop.eup %28878  ;;  %27860 = vmatpush3.msra.mxu0 %v30871_v26  ;;  %27861 = vmatprep.mubr.msk.f32.mxu0 %vm29305_vm3, %v35664_v39  ;;  %v14998_v2 = vpop.xlane.xlu0 %14997 }
 0x8ab   : > { %v15091_v32 = vmul.f32 %v28879_v14, %v32549_v27  ;;  %27869 = vmatprep.subr.mxu0 %v35664_v39  ;;  %28892 = vrcp.f32 %v14998_v2  ;;  %27857 = vmatmul.mubr.msk.f32.vlgmr.msra.gmra.mxu1 %vm4524_vm6, %v15090_v9 }
 0x8ac   : > { %v28881_v49 = vpop.eup %28880  ;;  %v15001_v44 = vpop.xlane.xlu1 %15000  ;;  %27865 = vmatpush3.msra.mxu1 %v30319_v3  ;;  %27866 = vmatprep.mubr.msk.f32.mxu1 %vm29305_vm3, %v35664_v39 }
 0x8ad   : > { %v15092_v53 = vmul.f32 %v28881_v49, %v32554_v13  ;;  %28894 = vrcp.f32 %v15001_v44  ;;  %27862 = vmatmul.mubr.msk.f32.vlgmr.msra.gmra.mxu0 %vm4524_vm6, %v15091_v32  ;;  %27874 = vmatprep.subr.mxu1 %v35664_v39 }
 0x8ae   : > { %v28883_v27 = vpop.eup %28882  ;;  %27870 = vmatpush3.msra.mxu0 %v30890_v62  ;;  %27871 = vmatprep.mubr.msk.f32.mxu0 %vm29305_vm3, %v35664_v39  ;;  %v15004_v57 = vpop.xlane.xlu0 %15003 }
 0x8af   : > { %v15093_v5 = vmul.f32 %v28883_v27, %v32559_v25  ;;  %27879 = vmatprep.subr.mxu0 %v35664_v39  ;;  %28896 = vrcp.f32 %v15004_v57  ;;  %27867 = vmatmul.mubr.msk.f32.vlgmr.msra.gmra.mxu1 %vm4524_vm6, %v15092_v53 }
 0x8b0   : > { %v28885_v13 = vpop.eup %28884  ;;  %v15007_v19 = vpop.xlane.xlu1 %15006  ;;  %27875 = vmatpush3.msra.mxu1 %v30325_v21  ;;  %27876 = vmatprep.mubr.msk.f32.mxu1 %vm29305_vm3, %v35664_v39 }
 0x8b1   : > { %v15094_v12 = vmul.f32 %v28885_v13, %v32564_v28  ;;  %28898 = vrcp.f32 %v15007_v19  ;;  %27872 = vmatmul.mubr.msk.f32.vlgmr.msra.gmra.mxu0 %vm4524_vm6, %v15093_v5  ;;  %27884 = vmatprep.subr.mxu1 %v35664_v39  ;;  %v36089_v13 = vld [vmem:[#allocation105_spill] sm:$0xff] }
 0x8b2   : > { %v28887_v25 = vpop.eup %28886  ;;  %27880 = vmatpush3.msra.mxu0 %v30906_v42  ;;  %27881 = vmatprep.mubr.msk.f32.mxu0 %vm29305_vm3, %v35664_v39  ;;  %v15010_v33 = vpop.xlane.xlu0 %15009 }
 0x8b3   : > { %v15095_v58 = vmul.f32 %v28887_v25, %v32569_v24  ;;  %27889 = vmatprep.subr.mxu0 %v35664_v39  ;;  %28900 = vrcp.f32 %v15010_v33  ;;  %27877 = vmatmul.mubr.msk.f32.vlgmr.msra.gmra.mxu1 %vm4524_vm6, %v15094_v12  ;;  %v36090_v12 = vld [vmem:[#allocation107_spill] sm:$0xff] }
 0x8b4   : > { %v28889_v28 = vpop.eup %28888  ;;  %v15013_v36 = vpop.xlane.xlu1 %15012  ;;  %27885 = vmatpush3.msra.mxu1 %v30330_v7  ;;  %27886 = vmatprep.mubr.msk.f32.mxu1 %vm29305_vm3, %v35664_v39 }
 0x8b5   : > { %v15096_v61 = vmul.f32 %v28889_v28, %v32574_v17  ;;  %28902 = vrcp.f32 %v15013_v36  ;;  %27882 = vmatmul.mubr.msk.f32.vlgmr.msra.gmra.mxu0 %vm4524_vm6, %v15095_v58  ;;  %27894 = vmatprep.subr.mxu1 %v35664_v39  ;;  %v36091_v28 = vld [vmem:[#allocation106_spill] sm:$0xff] }
 0x8b6   : > { %v28891_v24 = vpop.eup %28890  ;;  %27890 = vmatpush3.msra.mxu0 %v30919_v1  ;;  %27891 = vmatprep.mubr.msk.f32.mxu0 %vm29305_vm3, %v35664_v39  ;;  %v15016_v11 = vpop.xlane.xlu0 %15015 }
 0x8b7   : > { %v15097_v0 = vmul.f32 %v28891_v24, %v32579_v6  ;;  %27899 = vmatprep.subr.mxu0 %v35664_v39  ;;  %28904 = vrcp.f32 %v15016_v11  ;;  %27887 = vmatmul.mubr.msk.f32.vlgmr.msra.gmra.mxu1 %vm4524_vm6, %v15096_v61  ;;  %v36092_v61 = vld [vmem:[#allocation109_spill] sm:$0xff] }
 0x8b8   : > { %v28893_v17 = vpop.eup %28892  ;;  %v15019_v40 = vpop.xlane.xlu1 %15018  ;;  %27895 = vmatpush3.msra.mxu1 %v30335_v4  ;;  %27896 = vmatprep.mubr.msk.f32.mxu1 %vm29305_vm3, %v35664_v39 }
 0x8b9   : > { %v15098_v15 = vmul.f32 %v28893_v17, %v32584_v54  ;;  %28906 = vrcp.f32 %v15019_v40  ;;  %27892 = vmatmul.mubr.msk.f32.vlgmr.msra.gmra.mxu0 %vm4524_vm6, %v15097_v0  ;;  %27904 = vmatprep.subr.mxu1 %v35664_v39  ;;  %v36093_v17 = vld [vmem:[#allocation108_spill] sm:$0xff] }
 0x8ba   : > { %v28895_v6 = vpop.eup %28894  ;;  %27900 = vmatpush3.msra.mxu0 %v30938_v23  ;;  %27901 = vmatprep.mubr.msk.f32.mxu0 %vm29305_vm3, %v35664_v39  ;;  %v15022_v22 = vpop.xlane.xlu0 %15021 }
 0x8bb   : > { %v15099_v9 = vmul.f32 %v28895_v6, %v32589_v48  ;;  %27909 = vmatprep.subr.mxu0 %v35664_v39  ;;  %28908 = vrcp.f32 %v15022_v22  ;;  %27897 = vmatmul.mubr.msk.f32.vlgmr.msra.gmra.mxu1 %vm4524_vm6, %v15098_v15  ;;  %v36094_v15 = vld [vmem:[#allocation111_spill] sm:$0xff] }
 0x8bc   : > { %v28897_v54 = vpop.eup %28896  ;;  %v15025_v14 = vpop.xlane.xlu1 %15024  ;;  %27905 = vmatpush3.msra.mxu1 %v30340_v38  ;;  %27906 = vmatprep.mubr.msk.f32.mxu1 %vm29305_vm3, %v35664_v39 }
 0x8bd   : > { %v15100_v2 = vmul.f32 %v28897_v54, %v32594_v37  ;;  %28910 = vrcp.f32 %v15025_v14  ;;  %27902 = vmatmul.mubr.msk.f32.vlgmr.msra.gmra.mxu0 %vm4524_vm6, %v15099_v9  ;;  %27914 = vmatprep.subr.mxu1 %v35664_v39  ;;  %v36095_v9 = vld [vmem:[#allocation110_spill] sm:$0xff] }
 0x8be   : > { %v28899_v48 = vpop.eup %28898  ;;  %27910 = vmatpush3.msra.mxu0 %v30951_v34  ;;  %27911 = vmatprep.mubr.msk.f32.mxu0 %vm29305_vm3, %v35664_v39  ;;  %v15028_v32 = vpop.xlane.xlu0 %15027 }
 0x8bf   : > { %v15101_v49 = vmul.f32 %v28899_v48, %v32599_v56  ;;  %27919 = vmatprep.subr.mxu0 %v35664_v39  ;;  %28912 = vrcp.f32 %v15028_v32  ;;  %27907 = vmatmul.mubr.msk.f32.vlgmr.msra.gmra.mxu1 %vm4524_vm6, %v15100_v2  ;;  %v36096_v2 = vld [vmem:[#allocation113_spill] sm:$0xff]  ;;  %v36097_v32 = vld [vmem:[#allocation112_spill] sm:$0xff] }
 0x8c0   : > { %v28901_v37 = vpop.eup %28900  ;;  %v15031_v44 = vpop.xlane.xlu1 %15030  ;;  %27915 = vmatpush3.msra.mxu1 %v30345_v46  ;;  %27916 = vmatprep.mubr.msk.f32.mxu1 %vm29305_vm3, %v35664_v39 }
 0x8c1   : > { %v15102_v53 = vmul.f32 %v28901_v37, %v32604_v55  ;;  %28914 = vrcp.f32 %v15031_v44  ;;  %27912 = vmatmul.mubr.msk.f32.vlgmr.msra.gmra.mxu0 %vm4524_vm6, %v15101_v49  ;;  %27924 = vmatprep.subr.mxu1 %v35664_v39  ;;  %v36098_v37 = vld [vmem:[#allocation115_spill] sm:$0xff] }
 0x8c2   : > { %v28903_v56 = vpop.eup %28902  ;;  %27920 = vmatpush3.msra.mxu0 %v30967_v43  ;;  %27921 = vmatprep.mubr.msk.f32.mxu0 %vm29305_vm3, %v35664_v39  ;;  %v15034_v27 = vpop.xlane.xlu0 %15033 }
 0x8c3   : > { %v15103_v57 = vmul.f32 %v28903_v56, %v32609_v50  ;;  %27929 = vmatprep.subr.mxu0 %v35664_v39  ;;  %28916 = vrcp.f32 %v15034_v27  ;;  %27917 = vmatmul.mubr.msk.f32.vlgmr.msra.gmra.mxu1 %vm4524_vm6, %v15102_v53  ;;  %v36099_v53 = vld [vmem:[#allocation5_spill] sm:$0xff]  ;;  %v36101_v27 = vld [vmem:[#allocation118_spill] sm:$0xff] }
 0x8c4   : > { %v28905_v55 = vpop.eup %28904  ;;  %v15037_v5 = vpop.xlane.xlu1 %15036  ;;  %27925 = vmatpush3.msra.mxu1 %v36089_v13  ;;  %27926 = vmatprep.mubr.msk.f32.mxu1 %vm29305_vm3, %v35664_v39  ;;  %vm1895_vm1 = vcmp.ge.s32.totalorder %v36099_v53, 24  ;;  %vm1896_vm2 = vcmp.lt.s32.totalorder %v36099_v53, 32 }
 0x8c5   : > { %v15104_v19 = vmul.f32 %v28905_v55, %v32614_v20  ;;  %28918 = vrcp.f32 %v15037_v5  ;;  %27922 = vmatmul.mubr.msk.f32.vlgmr.msra.gmra.mxu0 %vm4524_vm6, %v15103_v57  ;;  %27934 = vmatprep.subr.mxu1 %v35664_v39  ;;  %vm1897_vm4 = vmand %vm1895_vm1, %vm1896_vm2  ;;  %v36102_v5 = vld [vmem:[#allocation116_spill] sm:$0xff] }
 0x8c6   : > { %v28907_v50 = vpop.eup %28906  ;;  %27930 = vmatpush3.msra.mxu0 %v36090_v12  ;;  %27931 = vmatprep.mubr.msk.f32.mxu0 %vm29305_vm3, %v35664_v39  ;;  %v15040_v25 = vpop.xlane.xlu0 %15039 }
 0x8c7   : > { %v15105_v33 = vmul.f32 %v28907_v50, %v32619_v47  ;;  %27939 = vmatprep.subr.mxu0 %v35664_v39  ;;  %28920 = vrcp.f32 %v15040_v25  ;;  %27927 = vmatmul.mubr.msk.f32.vlgmr.msra.gmra.mxu1 %vm4524_vm6, %v15104_v19  ;;  %v32856_v19 = vsel %vm1897_vm4, 1.0, %v35664_v39  ;;  %v36105_v50 = vld [vmem:[#allocation41_spill] sm:$0xff] }
 0x8c8   : > { %v28909_v20 = vpop.eup %28908  ;;  %v15043_v58 = vpop.xlane.xlu1 %15042  ;;  %27935 = vmatpush3.msra.mxu1 %v36091_v28  ;;  %27936 = vmatprep.mubr.msk.f32.mxu1 %vm29305_vm3, %v35664_v39  ;;  %36103 = vst [vmem:[#allocation181_spill] sm:$0xff] %v32856_v19  ;;  %v17517_v25 = vmul.f32 %v32856_v19, %v36105_v50  ;;  %v36126_v50 = vld [vmem:[#allocation60_spill] sm:$0xff] }
 0x8c9   : > { %v15106_v36 = vmul.f32 %v28909_v20, %v32624_v45  ;;  %28922 = vrcp.f32 %v15043_v58  ;;  %27932 = vmatmul.mubr.msk.f32.vlgmr.msra.gmra.mxu0 %vm4524_vm6, %v15105_v33  ;;  %27944 = vmatprep.subr.mxu1 %v35664_v39  ;;  %v36107_v33 = vld [vmem:[#allocation39_spill] sm:$0xff]  ;;  %v36108_v58 = vld [vmem:[#allocation46_spill] sm:$0xff] }
 0x8ca   : > { %v28911_v47 = vpop.eup %28910  ;;  %27940 = vmatpush3.msra.mxu0 %v36092_v61  ;;  %27941 = vmatprep.mubr.msk.f32.mxu0 %vm29305_vm3, %v35664_v39  ;;  %v15046_v24 = vpop.xlane.xlu0 %15045  ;;  %v17518_v20 = vmul.f32 %v32856_v19, %v36107_v33  ;;  %v36128_v33 = vld [vmem:[#allocation66_spill] sm:$0xff] }
 0x8cb   : > { %v15107_v11 = vmul.f32 %v28911_v47, %v32629_v16  ;;  %27949 = vmatprep.subr.mxu0 %v35664_v39  ;;  %28924 = vrcp.f32 %v15046_v24  ;;  %27937 = vmatmul.mubr.msk.f32.vlgmr.msra.gmra.mxu1 %vm4524_vm6, %v15106_v36  ;;  %v36109_v36 = vld [vmem:[#allocation45_spill] sm:$0xff]  ;;  %v36110_v24 = vld [vmem:[#allocation44_spill] sm:$0xff] }
 0x8cc   : > { %v28913_v45 = vpop.eup %28912  ;;  %v15049_v0 = vpop.xlane.xlu1 %15048  ;;  %27945 = vmatpush3.msra.mxu1 %v36093_v17  ;;  %27946 = vmatprep.mubr.msk.f32.mxu1 %vm29305_vm3, %v35664_v39  ;;  %v17519_v47 = vmul.f32 %v32856_v19, %v36109_v36  ;;  %v36130_v36 = vld [vmem:[#allocation64_spill] sm:$0xff] }
 0x8cd   : > { %v15108_v40 = vmul.f32 %v28913_v45, %v32634_v30  ;;  %28926 = vrcp.f32 %v15049_v0  ;;  %27942 = vmatmul.mubr.msk.f32.vlgmr.msra.gmra.mxu0 %vm4524_vm6, %v15107_v11  ;;  %27954 = vmatprep.subr.mxu1 %v35664_v39  ;;  %v36111_v11 = vld [vmem:[#allocation43_spill] sm:$0xff]  ;;  %v36112_v0 = vld [vmem:[#allocation50_spill] sm:$0xff]  ;;  %v36266_v17 = vld [vmem:[#allocation148_spill] sm:$0xff] }
 0x8ce   : > { %v28915_v16 = vpop.eup %28914  ;;  %27950 = vmatpush3.msra.mxu0 %v36094_v15  ;;  %27951 = vmatprep.mubr.msk.f32.mxu0 %vm29305_vm3, %v35664_v39  ;;  %v15052_v6 = vpop.xlane.xlu0 %15051  ;;  %v17520_v45 = vmul.f32 %v32856_v19, %v36111_v11  ;;  %v36132_v11 = vld [vmem:[#allocation70_spill] sm:$0xff] }
 0x8cf   : > { %v15109_v22 = vmul.f32 %v28915_v16, %v32638_v52  ;;  %27959 = vmatprep.subr.mxu0 %v35664_v39  ;;  %28928 = vrcp.f32 %v15052_v6  ;;  %27947 = vmatmul.mubr.msk.f32.vlgmr.msra.gmra.mxu1 %vm4524_vm6, %v15108_v40  ;;  %v36113_v40 = vld [vmem:[#allocation49_spill] sm:$0xff]  ;;  %v36114_v6 = vld [vmem:[#allocation48_spill] sm:$0xff] }
 0x8d0   : > { %v28917_v30 = vpop.eup %28916  ;;  %27955 = vmatpush3.msra.mxu1 %v36095_v9  ;;  %27956 = vmatprep.mubr.msk.f32.mxu1 %vm29305_vm3, %v35664_v39  ;;  %v17521_v16 = vmul.f32 %v32856_v19, %v36113_v40  ;;  %v36134_v40 = vld [vmem:[#allocation68_spill] sm:$0xff]  ;;  %v36264_v9 = vld [vmem:[#allocation146_spill] sm:$0xff] }
 0x8d1   : > { %v15110_v54 = vmul.f32 %v28917_v30, %v32642_v10  ;;  %27952 = vmatmul.mubr.msk.f32.vlgmr.msra.gmra.mxu0 %vm4524_vm6, %v15109_v22  ;;  %27964 = vmatprep.subr.mxu1 %v35664_v39  ;;  %v36115_v22 = vld [vmem:[#allocation47_spill] sm:$0xff] }
 0x8d2   : > { %v28919_v14 = vpop.eup %28918  ;;  %27960 = vmatpush3.msra.mxu0 %v36096_v2  ;;  %27961 = vmatprep.mubr.msk.f32.mxu0 %vm29305_vm3, %v35664_v39  ;;  %v17522_v30 = vmul.f32 %v32856_v19, %v36115_v22  ;;  %v36136_v22 = vld [vmem:[#allocation74_spill] sm:$0xff] }
 0x8d3   : > { %v15111_v52 = vmul.f32 %v28919_v14, %v32646_v63  ;;  %27969 = vmatprep.subr.mxu0 %v35664_v39  ;;  %27957 = vmatmul.mubr.msk.f32.vlgmr.msra.gmra.mxu1 %vm4524_vm6, %v15110_v54  ;;  %v36116_v54 = vld [vmem:[#allocation54_spill] sm:$0xff]  ;;  %v36117_v14 = vld [vmem:[#allocation53_spill] sm:$0xff] }
 0x8d4   : > { %v28921_v48 = vpop.eup %28920  ;;  %27965 = vmatpush3.msra.mxu1 %v36097_v32  ;;  %27966 = vmatprep.mubr.msk.f32.mxu1 %vm29305_vm3, %v35664_v39  ;;  %v36262_v32 = vld [vmem:[#allocation144_spill] sm:$0xff] }
 0x8d5   : > { %v15112_v10 = vmul.f32 %v28921_v48, %v32650_v59  ;;  %27962 = vmatmul.mubr.msk.f32.vlgmr.msra.gmra.mxu0 %vm4524_vm6, %v15111_v52  ;;  %27974 = vmatprep.subr.mxu1 %v35664_v39  ;;  %v36100_v59 = vld [vmem:[#allocation114_spill] sm:$0xff]  ;;  %v17523_v52 = vmul.f32 %v32856_v19, %v36117_v14  ;;  %v36118_v48 = vld [vmem:[#allocation51_spill] sm:$0xff]  ;;  %v36138_v14 = vld [vmem:[#allocation72_spill] sm:$0xff] }
 0x8d6   : > { %v28923_v49 = vpop.eup %28922  ;;  %27970 = vmatpush3.msra.mxu0 %v36098_v37  ;;  %27971 = vmatprep.mubr.msk.f32.mxu0 %vm29305_vm3, %v35664_v39 }
 0x8d7   : > { %v15113_v63 = vmul.f32 %v28923_v49, %v32654_v41  ;;  %27979 = vmatprep.subr.mxu0 %v35664_v39  ;;  %27967 = vmatmul.mubr.msk.f32.vlgmr.msra.gmra.mxu1 %vm4524_vm6, %v15112_v10  ;;  %v36119_v10 = vld [vmem:[#allocation52_spill] sm:$0xff] }
 0x8d8   : > { %v28925_v44 = vpop.eup %28924  ;;  %27975 = vmatpush3.msra.mxu1 %v36100_v59  ;;  %27976 = vmatprep.mubr.msk.f32.mxu1 %vm29305_vm3, %v35664_v39  ;;  %v17524_v49 = vmul.f32 %v32856_v19, %v36119_v10  ;;  %v36140_v10 = vld [vmem:[#allocation78_spill] sm:$0xff] }
 0x8d9   : > { %v15114_v56 = vmul.f32 %v28925_v44, %v32658_v51  ;;  %27972 = vmatmul.mubr.msk.f32.vlgmr.msra.gmra.mxu0 %vm4524_vm6, %v15113_v63  ;;  %27984 = vmatprep.subr.mxu1 %v35664_v39  ;;  %v36120_v63 = vld [vmem:[#allocation58_spill] sm:$0xff]  ;;  %v36121_v44 = vld [vmem:[#allocation57_spill] sm:$0xff] }
 0x8da   : > { %v28927_v41 = vpop.eup %28926  ;;  %27980 = vmatpush3.msra.mxu0 %v36101_v27  ;;  %27981 = vmatprep.mubr.msk.f32.mxu0 %vm29305_vm3, %v35664_v39  ;;  %v17525_v53 = vmul.f32 %v32856_v19, %v36121_v44  ;;  %v36142_v44 = vld [vmem:[#allocation76_spill] sm:$0xff]  ;;  %v36260_v59 = vld [vmem:[#allocation142_spill] sm:$0xff] }
 0x8db   : > { %v15115_v57 = vmul.f32 %v28927_v41, %v32662_v31  ;;  %27989 = vmatprep.subr.mxu0 %v35664_v39  ;;  %27977 = vmatmul.mubr.msk.f32.vlgmr.msra.gmra.mxu1 %vm4524_vm6, %v15114_v56  ;;  %v36104_v31 = vld [vmem:[#allocation42_spill] sm:$0xff]  ;;  %v36122_v56 = vld [vmem:[#allocation56_spill] sm:$0xff]  ;;  %v36123_v41 = vld [vmem:[#allocation55_spill] sm:$0xff] }
 0x8dc   : > { %v28929_v55 = vpop.eup %28928  ;;  %27985 = vmatpush3.msra.mxu1 %v36102_v5  ;;  %27986 = vmatprep.mubr.msk.f32.mxu1 %vm29305_vm3, %v35664_v39  ;;  %v36258_v5 = vld [vmem:[#allocation140_spill] sm:$0xff] }
 0x8dd   : > { %v15116_v51 = vmul.f32 %v28929_v55, %v32666_v60  ;;  %27982 = vmatmul.mubr.msk.f32.vlgmr.msra.gmra.mxu0 %vm4524_vm6, %v15115_v57  ;;  %27994 = vmatprep.subr.mxu1 %v35664_v39  ;;  %v36106_v60 = vld [vmem:[#allocation40_spill] sm:$0xff]  ;;  %v17526_v57 = vmul.f32 %v32856_v19, %v36123_v41  ;;  %v36124_v55 = vld [vmem:[#allocation62_spill] sm:$0xff] }
 0x8de   : > { %27990 = vmatpush3.xpose.msk.msra.mxu0 %vm727_vm0, %v36104_v31  ;;  %27991 = vmatprep.mubr.msk.f32.mxu0 %vm29305_vm3, %v35664_v39  ;;  %v36144_v41 = vld [vmem:[#allocation82_spill] sm:$0xff] }
 0x8df   : > { %27999 = vmatprep.subr.mxu0 %v35664_v39  ;;  %27987 = vmatmul.mubr.msk.f32.vlgmr.msra.gmra.mxu1 %vm4524_vm6, %v15116_v51  ;;  %v36125_v51 = vld [vmem:[#allocation61_spill] sm:$0xff] }
 0x8e0   : > { %27995 = vmatpush3.xpose.msk.msra.mxu1 %vm727_vm0, %v36106_v60  ;;  %27996 = vmatprep.mubr.msk.f32.mxu1 %vm29305_vm3, %v35664_v39  ;;  %v17527_v31 = vmul.f32 %v32856_v19, %v36125_v51  ;;  %v36146_v51 = vld [vmem:[#allocation80_spill] sm:$0xff] }
 0x8e1   : > { %27992 = vmatmul.mubr.msk.f32.vlgmr.msra.gmra.mxu0 %vm727_vm0, %v17517_v25  ;;  %28004 = vmatprep.subr.mxu1 %v35664_v39  ;;  %v36127_v25 = vld [vmem:[#allocation59_spill] sm:$0xff] }
 0x8e2   : > { %28000 = vmatpush3.xpose.msk.msra.mxu0 %vm727_vm0, %v36108_v58  ;;  %28001 = vmatprep.mubr.msk.f32.mxu0 %vm29305_vm3, %v35664_v39  ;;  %v17528_v60 = vmul.f32 %v32856_v19, %v36127_v25  ;;  %v36148_v25 = vld [vmem:[#allocation86_spill] sm:$0xff] }
 0x8e3   : > { %28009 = vmatprep.subr.mxu0 %v35664_v39  ;;  %27997 = vmatmul.mubr.msk.f32.vlgmr.msra.gmra.mxu1 %vm727_vm0, %v17518_v20  ;;  %v36129_v20 = vld [vmem:[#allocation65_spill] sm:$0xff] }
 0x8e4   : > { %28005 = vmatpush3.xpose.msk.msra.mxu1 %vm727_vm0, %v36110_v24  ;;  %28006 = vmatprep.mubr.msk.f32.mxu1 %vm29305_vm3, %v35664_v39  ;;  %v17529_v58 = vmul.f32 %v32856_v19, %v36129_v20  ;;  %v36150_v20 = vld [vmem:[#allocation84_spill] sm:$0xff] }
 0x8e5   : > { %28002 = vmatmul.mubr.msk.f32.vlgmr.msra.gmra.mxu0 %vm727_vm0, %v17519_v47  ;;  %28014 = vmatprep.subr.mxu1 %v35664_v39  ;;  %v36131_v47 = vld [vmem:[#allocation63_spill] sm:$0xff] }
 0x8e6   : > { %28010 = vmatpush3.xpose.msk.msra.mxu0 %vm727_vm0, %v36112_v0  ;;  %28011 = vmatprep.mubr.msk.f32.mxu0 %vm29305_vm3, %v35664_v39  ;;  %v17530_v24 = vmul.f32 %v32856_v19, %v36131_v47  ;;  %v36152_v47 = vld [vmem:[#allocation90_spill] sm:$0xff] }
 0x8e7   : > { %28019 = vmatprep.subr.mxu0 %v35664_v39  ;;  %28007 = vmatmul.mubr.msk.f32.vlgmr.msra.gmra.mxu1 %vm727_vm0, %v17520_v45  ;;  %v36133_v45 = vld [vmem:[#allocation69_spill] sm:$0xff] }
 0x8e8   : > { %28015 = vmatpush3.xpose.msk.msra.mxu1 %vm727_vm0, %v36114_v6  ;;  %28016 = vmatprep.mubr.msk.f32.mxu1 %vm29305_vm3, %v35664_v39  ;;  %v17531_v0 = vmul.f32 %v32856_v19, %v36133_v45  ;;  %v36154_v45 = vld [vmem:[#allocation88_spill] sm:$0xff] }
 0x8e9   : > { %28012 = vmatmul.mubr.msk.f32.vlgmr.msra.gmra.mxu0 %vm727_vm0, %v17521_v16  ;;  %28024 = vmatprep.subr.mxu1 %v35664_v39  ;;  %v36135_v16 = vld [vmem:[#allocation67_spill] sm:$0xff] }
 0x8ea   : > { %28020 = vmatpush3.xpose.msk.msra.mxu0 %vm727_vm0, %v36116_v54  ;;  %28021 = vmatprep.mubr.msk.f32.mxu0 %vm29305_vm3, %v35664_v39  ;;  %v17532_v6 = vmul.f32 %v32856_v19, %v36135_v16  ;;  %v36156_v16 = vld [vmem:[#allocation94_spill] sm:$0xff] }
 0x8eb   : > { %28029 = vmatprep.subr.mxu0 %v35664_v39  ;;  %28017 = vmatmul.mubr.msk.f32.vlgmr.msra.gmra.mxu1 %vm727_vm0, %v17522_v30  ;;  %v36137_v30 = vld [vmem:[#allocation73_spill] sm:$0xff] }
 0x8ec   : > { %28025 = vmatpush3.xpose.msk.msra.mxu1 %vm727_vm0, %v36118_v48  ;;  %28026 = vmatprep.mubr.msk.f32.mxu1 %vm29305_vm3, %v35664_v39  ;;  %v17533_v54 = vmul.f32 %v32856_v19, %v36137_v30  ;;  %v36158_v30 = vld [vmem:[#allocation92_spill] sm:$0xff] }
 0x8ed   : > { %28022 = vmatmul.mubr.msk.f32.vlgmr.msra.gmra.mxu0 %vm727_vm0, %v17523_v52  ;;  %28034 = vmatprep.subr.mxu1 %v35664_v39  ;;  %v36139_v52 = vld [vmem:[#allocation71_spill] sm:$0xff] }
 0x8ee   : > { %28030 = vmatpush3.xpose.msk.msra.mxu0 %vm727_vm0, %v36120_v63  ;;  %28031 = vmatprep.mubr.msk.f32.mxu0 %vm29305_vm3, %v35664_v39  ;;  %v17534_v48 = vmul.f32 %v32856_v19, %v36139_v52  ;;  %v36160_v52 = vld [vmem:[#allocation98_spill] sm:$0xff] }
 0x8ef   : > { %28039 = vmatprep.subr.mxu0 %v35664_v39  ;;  %28027 = vmatmul.mubr.msk.f32.vlgmr.msra.gmra.mxu1 %vm727_vm0, %v17524_v49  ;;  %v36141_v49 = vld [vmem:[#allocation77_spill] sm:$0xff] }
 0x8f0   : > { %28035 = vmatpush3.xpose.msk.msra.mxu1 %vm727_vm0, %v36122_v56  ;;  %28036 = vmatprep.mubr.msk.f32.mxu1 %vm29305_vm3, %v35664_v39  ;;  %v17535_v63 = vmul.f32 %v32856_v19, %v36141_v49  ;;  %v36162_v49 = vld [vmem:[#allocation96_spill] sm:$0xff] }
 0x8f1   : > { %28032 = vmatmul.mubr.msk.f32.vlgmr.msra.gmra.mxu0 %vm727_vm0, %v17525_v53  ;;  %28044 = vmatprep.subr.mxu1 %v35664_v39  ;;  %v36143_v53 = vld [vmem:[#allocation75_spill] sm:$0xff] }
 0x8f2   : > { %28040 = vmatpush3.xpose.msk.msra.mxu0 %vm727_vm0, %v36124_v55  ;;  %28041 = vmatprep.mubr.msk.f32.mxu0 %vm29305_vm3, %v35664_v39  ;;  %v17536_v56 = vmul.f32 %v32856_v19, %v36143_v53  ;;  %v36164_v53 = vld [vmem:[#allocation102_spill] sm:$0xff] }
 0x8f3   : > { %28049 = vmatprep.subr.mxu0 %v35664_v39  ;;  %28037 = vmatmul.mubr.msk.f32.vlgmr.msra.gmra.mxu1 %vm727_vm0, %v17526_v57  ;;  %v36145_v57 = vld [vmem:[#allocation81_spill] sm:$0xff] }
 0x8f4   : > { %28045 = vmatpush3.xpose.msk.msra.mxu1 %vm727_vm0, %v36126_v50  ;;  %28046 = vmatprep.mubr.msk.f32.mxu1 %vm29305_vm3, %v35664_v39  ;;  %v17537_v55 = vmul.f32 %v32856_v19, %v36145_v57  ;;  %v36166_v57 = vld [vmem:[#allocation100_spill] sm:$0xff] }
 0x8f5   : > { %28042 = vmatmul.mubr.msk.f32.vlgmr.msra.gmra.mxu0 %vm727_vm0, %v17527_v31  ;;  %28054 = vmatprep.subr.mxu1 %v35664_v39  ;;  %v36147_v31 = vld [vmem:[#allocation79_spill] sm:$0xff] }
 0x8f6   : > { %28050 = vmatpush3.xpose.msk.msra.mxu0 %vm727_vm0, %v36128_v33  ;;  %28051 = vmatprep.mubr.msk.f32.mxu0 %vm29305_vm3, %v35664_v39  ;;  %v17538_v50 = vmul.f32 %v32856_v19, %v36147_v31  ;;  %v36168_v31 = vld [vmem:[#allocation104_spill] sm:$0xff] }
 0x8f7   : > { %28059 = vmatprep.subr.mxu0 %v35664_v39  ;;  %28047 = vmatmul.mubr.msk.f32.vlgmr.msra.gmra.mxu1 %vm727_vm0, %v17528_v60  ;;  %v36149_v60 = vld [vmem:[#allocation85_spill] sm:$0xff] }
 0x8f8   : > { %28055 = vmatpush3.xpose.msk.msra.mxu1 %vm727_vm0, %v36130_v36  ;;  %28056 = vmatprep.mubr.msk.f32.mxu1 %vm29305_vm3, %v35664_v39  ;;  %v17539_v33 = vmul.f32 %v32856_v19, %v36149_v60  ;;  %v36170_v60 = vld [vmem:[#allocation183_spill] sm:$0xff] }
 0x8f9   : > { %28052 = vmatmul.mubr.msk.f32.vlgmr.msra.gmra.mxu0 %vm727_vm0, %v17529_v58  ;;  %28064 = vmatprep.subr.mxu1 %v35664_v39  ;;  %v36151_v58 = vld [vmem:[#allocation83_spill] sm:$0xff] }
 0x8fa   : > { %28060 = vmatpush3.xpose.msk.msra.mxu0 %vm727_vm0, %v36132_v11  ;;  %28061 = vmatprep.mubr.msk.f32.mxu0 %vm29305_vm3, %v35664_v39  ;;  %v17540_v36 = vmul.f32 %v32856_v19, %v36151_v58 }
 0x8fb   : > { %28069 = vmatprep.subr.mxu0 %v35664_v39  ;;  %28057 = vmatmul.mubr.msk.f32.vlgmr.msra.gmra.mxu1 %vm727_vm0, %v17530_v24  ;;  %v36153_v24 = vld [vmem:[#allocation89_spill] sm:$0xff] }
 0x8fc   : > { %28065 = vmatpush3.xpose.msk.msra.mxu1 %vm727_vm0, %v36134_v40  ;;  %28066 = vmatprep.mubr.msk.f32.mxu1 %vm29305_vm3, %v35664_v39  ;;  %v17541_v11 = vmul.f32 %v32856_v19, %v36153_v24 }
 0x8fd   : > { %28062 = vmatmul.mubr.msk.f32.vlgmr.msra.gmra.mxu0 %vm727_vm0, %v17531_v0  ;;  %28074 = vmatprep.subr.mxu1 %v35664_v39  ;;  %v36155_v0 = vld [vmem:[#allocation87_spill] sm:$0xff] }
 0x8fe   : > { %28070 = vmatpush3.xpose.msk.msra.mxu0 %vm727_vm0, %v36136_v22  ;;  %28071 = vmatprep.mubr.msk.f32.mxu0 %vm29305_vm3, %v35664_v39  ;;  %v17542_v40 = vmul.f32 %v32856_v19, %v36155_v0  ;;  %v36173_v0 = vld [vmem:[#allocation38_spill] sm:$0xff] }
 0x8ff   : > { %28079 = vmatprep.subr.mxu0 %v35664_v39  ;;  %28067 = vmatmul.mubr.msk.f32.vlgmr.msra.gmra.mxu1 %vm727_vm0, %v17532_v6  ;;  %v36157_v6 = vld [vmem:[#allocation93_spill] sm:$0xff] }
 0x900   : > { %28075 = vmatpush3.xpose.msk.msra.mxu1 %vm727_vm0, %v36138_v14  ;;  %28076 = vmatprep.mubr.msk.f32.mxu1 %vm29305_vm3, %v35664_v39  ;;  %v17543_v22 = vmul.f32 %v32856_v19, %v36157_v6 }
 0x901   : > { %28072 = vmatmul.mubr.msk.f32.vlgmr.msra.gmra.mxu0 %vm727_vm0, %v17533_v54  ;;  %28084 = vmatprep.subr.mxu1 %v35664_v39  ;;  %v36159_v54 = vld [vmem:[#allocation91_spill] sm:$0xff] }
 0x902   : > { %28080 = vmatpush3.xpose.msk.msra.mxu0 %vm727_vm0, %v36140_v10  ;;  %28081 = vmatprep.mubr.msk.f32.mxu0 %vm29305_vm3, %v35664_v39  ;;  %v17544_v14 = vmul.f32 %v32856_v19, %v36159_v54 }
 0x903   : > { %28089 = vmatprep.subr.mxu0 %v35664_v39  ;;  %28077 = vmatmul.mubr.msk.f32.vlgmr.msra.gmra.mxu1 %vm727_vm0, %v17534_v48  ;;  %v36161_v48 = vld [vmem:[#allocation97_spill] sm:$0xff] }
 0x904   : > { %28085 = vmatpush3.xpose.msk.msra.mxu1 %vm727_vm0, %v36142_v44  ;;  %28086 = vmatprep.mubr.msk.f32.mxu1 %vm29305_vm3, %v35664_v39  ;;  %v17545_v10 = vmul.f32 %v32856_v19, %v36161_v48 }
 0x905   : > { %28082 = vmatmul.mubr.msk.f32.vlgmr.msra.gmra.mxu0 %vm727_vm0, %v17535_v63  ;;  %28094 = vmatprep.subr.mxu1 %v35664_v39  ;;  %v36163_v63 = vld [vmem:[#allocation95_spill] sm:$0xff] }
 0x906   : > { %28090 = vmatpush3.xpose.msk.msra.mxu0 %vm727_vm0, %v36144_v41  ;;  %28091 = vmatprep.mubr.msk.f32.mxu0 %vm29305_vm3, %v35664_v39  ;;  %v17546_v44 = vmul.f32 %v32856_v19, %v36163_v63 }
 0x907   : > { %28099 = vmatprep.subr.mxu0 %v35664_v39  ;;  %28087 = vmatmul.mubr.msk.f32.vlgmr.msra.gmra.mxu1 %vm727_vm0, %v17536_v56  ;;  %v36165_v56 = vld [vmem:[#allocation101_spill] sm:$0xff] }
 0x908   : > { %28095 = vmatpush3.xpose.msk.msra.mxu1 %vm727_vm0, %v36146_v51  ;;  %28096 = vmatprep.mubr.msk.f32.mxu1 %vm29305_vm3, %v35664_v39  ;;  %v17547_v41 = vmul.f32 %v32856_v19, %v36165_v56  ;;  %v36179_v56 = vld [vmem:[#allocation153_spill] sm:$0xff] }
 0x909   : > { %28092 = vmatmul.mubr.msk.f32.vlgmr.msra.gmra.mxu0 %vm727_vm0, %v17537_v55  ;;  %28104 = vmatprep.subr.mxu1 %v35664_v39  ;;  %v36167_v55 = vld [vmem:[#allocation99_spill] sm:$0xff] }
 0x90a   : > { %28100 = vmatpush3.xpose.msk.msra.mxu0 %vm727_vm0, %v36148_v25  ;;  %28101 = vmatprep.mubr.msk.f32.mxu0 %vm29305_vm3, %v35664_v39  ;;  %v17548_v51 = vmul.f32 %v32856_v19, %v36167_v55 }
 0x90b   : > { %28109 = vmatprep.subr.mxu0 %v35664_v39  ;;  %28097 = vmatmul.mubr.msk.f32.vlgmr.msra.gmra.mxu1 %vm727_vm0, %v17538_v50  ;;  %v36169_v50 = vld [vmem:[#allocation103_spill] sm:$0xff] }
 0x90c   : > { %28105 = vmatpush3.xpose.msk.msra.mxu1 %vm727_vm0, %v36150_v20  ;;  %28106 = vmatprep.mubr.msk.f32.mxu1 %vm29305_vm3, %v35664_v39 }
 0x90d   : > { %28102 = vmatmul.mubr.msk.f32.vlgmr.msra.gmra.mxu0 %vm727_vm0, %v17539_v33  ;;  %28114 = vmatprep.subr.mxu1 %v35664_v39 }
 0x90e   : > { %28110 = vmatpush3.xpose.msk.msra.mxu0 %vm727_vm0, %v36152_v47  ;;  %28111 = vmatprep.mubr.msk.f32.mxu0 %vm29305_vm3, %v35664_v39 }
 0x90f   : > { %28119 = vmatprep.subr.mxu0 %v35664_v39  ;;  %28107 = vmatmul.mubr.msk.f32.vlgmr.msra.gmra.mxu1 %vm727_vm0, %v17540_v36  ;;  %v36171_v36 = vld [vmem:[#allocation152_spill] sm:$0xff] }
 0x910   : > { %28115 = vmatpush3.xpose.msk.msra.mxu1 %vm727_vm0, %v36154_v45  ;;  %28116 = vmatprep.mubr.msk.f32.mxu1 %vm29305_vm3, %v35664_v39 }
 0x911   : > { %28112 = vmatmul.mubr.msk.f32.vlgmr.msra.gmra.mxu0 %vm727_vm0, %v17541_v11  ;;  %28124 = vmatprep.subr.mxu1 %v35664_v39 }
 0x912   : > { %28120 = vmatpush3.xpose.msk.msra.mxu0 %vm727_vm0, %v36156_v16  ;;  %28121 = vmatprep.mubr.msk.f32.mxu0 %vm29305_vm3, %v35664_v39 }
 0x913   : > { %28129 = vmatprep.subr.mxu0 %v35664_v39  ;;  %28117 = vmatmul.mubr.msk.f32.vlgmr.msra.gmra.mxu1 %vm727_vm0, %v17542_v40 }
 0x914   : > { %28125 = vmatpush3.xpose.msk.msra.mxu1 %vm727_vm0, %v36158_v30  ;;  %28126 = vmatprep.mubr.msk.f32.mxu1 %vm29305_vm3, %v35664_v39  ;;  %v36175_v30 = vld [vmem:[#allocation150_spill] sm:$0xff] }
 0x915   : > { %28122 = vmatmul.mubr.msk.f32.vlgmr.msra.gmra.mxu0 %vm727_vm0, %v17543_v22  ;;  %28134 = vmatprep.subr.mxu1 %v35664_v39 }
 0x916   : > { %28130 = vmatpush3.xpose.msk.msra.mxu0 %vm727_vm0, %v36160_v52  ;;  %28131 = vmatprep.mubr.msk.f32.mxu0 %vm29305_vm3, %v35664_v39 }
 0x917   : > { %28139 = vmatprep.subr.mxu0 %v35664_v39  ;;  %28127 = vmatmul.mubr.msk.f32.vlgmr.msra.gmra.mxu1 %vm727_vm0, %v17544_v14 }
 0x918   : > { %28135 = vmatpush3.xpose.msk.msra.mxu1 %vm727_vm0, %v36162_v49  ;;  %28136 = vmatprep.mubr.msk.f32.mxu1 %vm29305_vm3, %v35664_v39 }
 0x919   : > { %28132 = vmatmul.mubr.msk.f32.vlgmr.msra.gmra.mxu0 %vm727_vm0, %v17545_v10  ;;  %28144 = vmatprep.subr.mxu1 %v35664_v39  ;;  %v36177_v10 = vld [vmem:[#allocation151_spill] sm:$0xff] }
 0x91a   : > { %28140 = vmatpush3.xpose.msk.msra.mxu0 %vm727_vm0, %v36164_v53  ;;  %28141 = vmatprep.mubr.msk.f32.mxu0 %vm29305_vm3, %v35664_v39 }
 0x91b   : > { %28149 = vmatprep.subr.mxu0 %v35664_v39  ;;  %28137 = vmatmul.mubr.msk.f32.vlgmr.msra.gmra.mxu1 %vm727_vm0, %v17546_v44 }
 0x91c   : > { %28145 = vmatpush3.xpose.msk.msra.mxu1 %vm727_vm0, %v36166_v57  ;;  %28146 = vmatprep.mubr.msk.f32.mxu1 %vm29305_vm3, %v35664_v39 }
 0x91d   : > { %28142 = vmatmul.mubr.msk.f32.vlgmr.msra.gmra.mxu0 %vm727_vm0, %v17547_v41  ;;  %28154 = vmatprep.subr.mxu1 %v35664_v39 }
 0x91e   : > { %28150 = vmatpush3.msra.mxu0 %v36168_v31  ;;  %28151 = vmatprep.mubr.msk.f32.mxu0 %vm29305_vm3, %v35664_v39  ;;  %v36181_v31 = vld [vmem:[#allocation154_spill] sm:$0xff] }
 0x91f   : > { %28147 = vmatmul.mubr.msk.f32.vlgmr.msra.gmra.mxu1 %vm727_vm0, %v17548_v51  ;;  %28159 = vmatprep.subr.mxu0 %v35664_v39 }
 0x920   : > { %28155 = vmatpush3.msra.mxu1 %v36169_v50  ;;  %28156 = vmatprep.mubr.msk.f32.mxu1 %vm29305_vm3, %v35664_v39 }
 0x921   : > { %28164 = vmatprep.subr.mxu1 %v35664_v39 }
 0x961   : > { %v15186_v25 = vpop.f32.mrf.mxu0 }
 0x962   : > { %v17453_v33 = vmul.f32 %v36170_v60, %v15186_v25 }
 0x963   : > { %v27833_v20 = vpop.f32.mrf.mxu0  ;;  %v15259_v58 = vpop.f32.mrf.mxu1 }
 0x964   : > { %v33125_v47 = vadd.f32 %v17453_v33, %v36171_v36  ;;  %v17454_v24 = vmul.f32 %v36170_v60, %v15259_v58  ;;  %v36183_v58 = vld [vmem:[#allocation155_spill] sm:$0xff] }
 0x965   : > { %v15332_v11 = vpop.f32.mrf.mxu0  ;;  %v27838_v45 = vpop.f32.mrf.mxu1 }
 0x966   : > { %36172 = vst [vmem:[#allocation182_spill] sm:$0xff] %v33125_v47  ;;  %v33129_v40 = vadd.f32 %v17454_v24, %v36173_v0  ;;  %v17455_v16 = vmul.f32 %v36170_v60, %v15332_v11  ;;  %v36185_v0 = vld [vmem:[#allocation156_spill] sm:$0xff]  ;;  %v36256_v47 = vld [vmem:[#allocation138_spill] sm:$0xff] }
 0x967   : > { %v27843_v6 = vpop.f32.mrf.mxu0  ;;  %v15405_v22 = vpop.f32.mrf.mxu1 }
 0x968   : > { %36174 = vst [vmem:[#allocation5_spill] sm:$0xff] %v33129_v40  ;;  %v33133_v54 = vadd.f32 %v17455_v16, %v36175_v30  ;;  %v17456_v14 = vmul.f32 %v36170_v60, %v15405_v22 }
 0x969   : > { %v15478_v52 = vpop.f32.mrf.mxu0  ;;  %v27848_v48 = vpop.f32.mrf.mxu1 }
 0x96a   : > { %36176 = vst [vmem:[#allocation42_spill] sm:$0xff] %v33133_v54  ;;  %v33137_v49 = vadd.f32 %v17456_v14, %v36177_v10  ;;  %v17457_v63 = vmul.f32 %v36170_v60, %v15478_v52  ;;  %v36187_v14 = vld [vmem:[#allocation157_spill] sm:$0xff]  ;;  %v36254_v54 = vld [vmem:[#allocation136_spill] sm:$0xff] }
 0x96b   : > { %v27853_v44 = vpop.f32.mrf.mxu0  ;;  %v15551_v53 = vpop.f32.mrf.mxu1 }
 0x96c   : > { %36178 = vst [vmem:[#allocation41_spill] sm:$0xff] %v33137_v49  ;;  %v33141_v41 = vadd.f32 %v17457_v63, %v36179_v56  ;;  %v17458_v57 = vmul.f32 %v36170_v60, %v15551_v53  ;;  %v36189_v44 = vld [vmem:[#allocation158_spill] sm:$0xff] }
 0x96d   : > { %v15624_v55 = vpop.f32.mrf.mxu0  ;;  %v27858_v51 = vpop.f32.mrf.mxu1 }
 0x96e   : > { %36180 = vst [vmem:[#allocation40_spill] sm:$0xff] %v33141_v41  ;;  %v33145_v50 = vadd.f32 %v17458_v57, %v36181_v31  ;;  %v17459_v25 = vmul.f32 %v36170_v60, %v15624_v55  ;;  %v36191_v51 = vld [vmem:[#allocation159_spill] sm:$0xff]  ;;  %v36252_v41 = vld [vmem:[#allocation134_spill] sm:$0xff] }
 0x96f   : > { %v27863_v33 = vpop.f32.mrf.mxu0  ;;  %v15697_v20 = vpop.f32.mrf.mxu1 }
 0x970   : > { %36182 = vst [vmem:[#allocation39_spill] sm:$0xff] %v33145_v50  ;;  %v33149_v36 = vadd.f32 %v17459_v25, %v36183_v58  ;;  %v17460_v24 = vmul.f32 %v36170_v60, %v15697_v20  ;;  %v36193_v58 = vld [vmem:[#allocation160_spill] sm:$0xff] }
 0x971   : > { %v15770_v11 = vpop.f32.mrf.mxu0  ;;  %v27868_v45 = vpop.f32.mrf.mxu1 }
 0x972   : > { %36184 = vst [vmem:[#allocation46_spill] sm:$0xff] %v33149_v36  ;;  %v33153_v16 = vadd.f32 %v17460_v24, %v36185_v0  ;;  %v17461_v6 = vmul.f32 %v36170_v60, %v15770_v11  ;;  %v36250_v36 = vld [vmem:[#allocation132_spill] sm:$0xff] }
 0x973   : > { %v27873_v22 = vpop.f32.mrf.mxu0  ;;  %v15843_v30 = vpop.f32.mrf.mxu1 }
 0x974   : > { %36186 = vst [vmem:[#allocation45_spill] sm:$0xff] %v33153_v16  ;;  %v33157_v52 = vadd.f32 %v17461_v6, %v36187_v14  ;;  %v17462_v48 = vmul.f32 %v36170_v60, %v15843_v30  ;;  %v36195_v6 = vld [vmem:[#allocation161_spill] sm:$0xff] }
 0x975   : > { %v15916_v10 = vpop.f32.mrf.mxu0  ;;  %v27878_v63 = vpop.f32.mrf.mxu1 }
 0x976   : > { %36188 = vst [vmem:[#allocation44_spill] sm:$0xff] %v33157_v52  ;;  %v33161_v53 = vadd.f32 %v17462_v48, %v36189_v44  ;;  %v17463_v56 = vmul.f32 %v36170_v60, %v15916_v10  ;;  %v36197_v10 = vld [vmem:[#allocation162_spill] sm:$0xff] }
 0x977   : > { %v27883_v57 = vpop.f32.mrf.mxu0  ;;  %v15989_v55 = vpop.f32.mrf.mxu1  ;;  %v36248_v52 = vld [vmem:[#allocation130_spill] sm:$0xff] }
 0x978   : > { %36190 = vst [vmem:[#allocation43_spill] sm:$0xff] %v33161_v53  ;;  %v33165_v31 = vadd.f32 %v17463_v56, %v36191_v51  ;;  %v17464_v25 = vmul.f32 %v36170_v60, %v15989_v55  ;;  %v36199_v55 = vld [vmem:[#allocation163_spill] sm:$0xff] }
 0x979   : > { %v16062_v33 = vpop.f32.mrf.mxu0  ;;  %v27888_v20 = vpop.f32.mrf.mxu1 }
 0x97a   : > { %36192 = vst [vmem:[#allocation50_spill] sm:$0xff] %v33165_v31  ;;  %v33169_v24 = vadd.f32 %v17464_v25, %v36193_v58  ;;  %v17465_v11 = vmul.f32 %v36170_v60, %v16062_v33  ;;  %v36201_v58 = vld [vmem:[#allocation164_spill] sm:$0xff] }
 0x97b   : > { %v27893_v45 = vpop.f32.mrf.mxu0  ;;  %v16135_v0 = vpop.f32.mrf.mxu1  ;;  %v36246_v31 = vld [vmem:[#allocation128_spill] sm:$0xff] }
 0x97c   : > { %36194 = vst [vmem:[#allocation49_spill] sm:$0xff] %v33169_v24  ;;  %v33173_v22 = vadd.f32 %v17465_v11, %v36195_v6  ;;  %v17466_v30 = vmul.f32 %v36170_v60, %v16135_v0 }
 0x97d   : > { %v16208_v14 = vpop.f32.mrf.mxu0  ;;  %v27898_v48 = vpop.f32.mrf.mxu1 }
 0x97e   : > { %36196 = vst [vmem:[#allocation48_spill] sm:$0xff] %v33173_v22  ;;  %v33177_v63 = vadd.f32 %v17466_v30, %v36197_v10  ;;  %v17467_v44 = vmul.f32 %v36170_v60, %v16208_v14  ;;  %v36203_v30 = vld [vmem:[#allocation165_spill] sm:$0xff]  ;;  %v36244_v22 = vld [vmem:[#allocation126_spill] sm:$0xff] }
 0x97f   : > { %v27903_v56 = vpop.f32.mrf.mxu0  ;;  %v16281_v57 = vpop.f32.mrf.mxu1 }
 0x980   : > { %36198 = vst [vmem:[#allocation47_spill] sm:$0xff] %v33177_v63  ;;  %v33181_v51 = vadd.f32 %v17467_v44, %v36199_v55  ;;  %v17468_v25 = vmul.f32 %v36170_v60, %v16281_v57  ;;  %v36205_v44 = vld [vmem:[#allocation166_spill] sm:$0xff] }
 0x981   : > { %v16354_v33 = vpop.f32.mrf.mxu0  ;;  %v27908_v20 = vpop.f32.mrf.mxu1 }
 0x982   : > { %36200 = vst [vmem:[#allocation54_spill] sm:$0xff] %v33181_v51  ;;  %v33185_v11 = vadd.f32 %v17468_v25, %v36201_v58  ;;  %v17469_v45 = vmul.f32 %v36170_v60, %v16354_v33  ;;  %v36207_v25 = vld [vmem:[#allocation167_spill] sm:$0xff] }
 0x983   : > { %v27913_v0 = vpop.f32.mrf.mxu0  ;;  %v16427_v6 = vpop.f32.mrf.mxu1 }
 0x984   : > { %36202 = vst [vmem:[#allocation53_spill] sm:$0xff] %v33185_v11  ;;  %v33189_v48 = vadd.f32 %v17469_v45, %v36203_v30  ;;  %v17470_v14 = vmul.f32 %v36170_v60, %v16427_v6  ;;  %v36209_v45 = vld [vmem:[#allocation168_spill] sm:$0xff] }
 0x985   : > { %v16500_v10 = vpop.f32.mrf.mxu0  ;;  %v27918_v56 = vpop.f32.mrf.mxu1 }
 0x986   : > { %36204 = vst [vmem:[#allocation51_spill] sm:$0xff] %v33189_v48  ;;  %v33193_v55 = vadd.f32 %v17470_v14, %v36205_v44  ;;  %v17471_v57 = vmul.f32 %v36170_v60, %v16500_v10  ;;  %v36211_v14 = vld [vmem:[#allocation169_spill] sm:$0xff] }
 0x987   : > { %v27923_v20 = vpop.f32.mrf.mxu0  ;;  %v16573_v51 = vpop.f32.mrf.mxu1 }
 0x988   : > { %36206 = vst [vmem:[#allocation52_spill] sm:$0xff] %v33193_v55  ;;  %v33197_v58 = vadd.f32 %v17471_v57, %v36207_v25  ;;  %v17472_v33 = vmul.f32 %v36170_v60, %v16573_v51  ;;  %v36213_v57 = vld [vmem:[#allocation170_spill] sm:$0xff] }
 0x989   : > { %v16646_v0 = vpop.f32.mrf.mxu0  ;;  %v27928_v11 = vpop.f32.mrf.mxu1 }
 0x98a   : > { %36208 = vst [vmem:[#allocation58_spill] sm:$0xff] %v33197_v58  ;;  %v33201_v30 = vadd.f32 %v17472_v33, %v36209_v45  ;;  %v17473_v6 = vmul.f32 %v36170_v60, %v16646_v0  ;;  %v36215_v33 = vld [vmem:[#allocation171_spill] sm:$0xff] }
 0x98b   : > { %v27933_v56 = vpop.f32.mrf.mxu0  ;;  %v16719_v48 = vpop.f32.mrf.mxu1 }
 0x98c   : > { %36210 = vst [vmem:[#allocation57_spill] sm:$0xff] %v33201_v30  ;;  %v33205_v44 = vadd.f32 %v17473_v6, %v36211_v14  ;;  %v17474_v10 = vmul.f32 %v36170_v60, %v16719_v48  ;;  %v36217_v6 = vld [vmem:[#allocation172_spill] sm:$0xff] }
 0x98d   : > { %v16792_v20 = vpop.f32.mrf.mxu0  ;;  %v27938_v55 = vpop.f32.mrf.mxu1 }
 0x98e   : > { %36212 = vst [vmem:[#allocation56_spill] sm:$0xff] %v33205_v44  ;;  %v33209_v25 = vadd.f32 %v17474_v10, %v36213_v57  ;;  %v17475_v51 = vmul.f32 %v36170_v60, %v16792_v20  ;;  %v36219_v10 = vld [vmem:[#allocation173_spill] sm:$0xff] }
 0x98f   : > { %v27943_v11 = vpop.f32.mrf.mxu0  ;;  %v16865_v58 = vpop.f32.mrf.mxu1 }
 0x990   : > { %36214 = vst [vmem:[#allocation55_spill] sm:$0xff] %v33209_v25  ;;  %v33213_v45 = vadd.f32 %v17475_v51, %v36215_v33  ;;  %v17476_v0 = vmul.f32 %v36170_v60, %v16865_v58  ;;  %v36221_v51 = vld [vmem:[#allocation174_spill] sm:$0xff] }
 0x991   : > { %v16938_v56 = vpop.f32.mrf.mxu0  ;;  %v27948_v30 = vpop.f32.mrf.mxu1 }
 0x992   : > { %36216 = vst [vmem:[#allocation62_spill] sm:$0xff] %v33213_v45  ;;  %v33217_v14 = vadd.f32 %v17476_v0, %v36217_v6  ;;  %v17477_v48 = vmul.f32 %v36170_v60, %v16938_v56  ;;  %v36223_v0 = vld [vmem:[#allocation175_spill] sm:$0xff] }
 0x993   : > { %v27953_v55 = vpop.f32.mrf.mxu0  ;;  %v17011_v44 = vpop.f32.mrf.mxu1 }
 0x994   : > { %36218 = vst [vmem:[#allocation61_spill] sm:$0xff] %v33217_v14  ;;  %v33221_v57 = vadd.f32 %v17477_v48, %v36219_v10  ;;  %v17478_v20 = vmul.f32 %v36170_v60, %v17011_v44  ;;  %v36225_v48 = vld [vmem:[#allocation176_spill] sm:$0xff] }
 0x995   : > { %v17084_v11 = vpop.f32.mrf.mxu0  ;;  %v27958_v25 = vpop.f32.mrf.mxu1 }
 0x996   : > { %36220 = vst [vmem:[#allocation60_spill] sm:$0xff] %v33221_v57  ;;  %v33225_v33 = vadd.f32 %v17478_v20, %v36221_v51  ;;  %v17479_v58 = vmul.f32 %v36170_v60, %v17084_v11  ;;  %v36227_v20 = vld [vmem:[#allocation177_spill] sm:$0xff] }
 0x997   : > { %v27963_v30 = vpop.f32.mrf.mxu0  ;;  %v17157_v45 = vpop.f32.mrf.mxu1 }
 0x998   : > { %36222 = vst [vmem:[#allocation59_spill] sm:$0xff] %v33225_v33  ;;  %v33229_v6 = vadd.f32 %v17479_v58, %v36223_v0  ;;  %v17480_v56 = vmul.f32 %v36170_v60, %v17157_v45  ;;  %v36229_v58 = vld [vmem:[#allocation178_spill] sm:$0xff] }
 0x999   : > { %v17230_v55 = vpop.f32.mrf.mxu0  ;;  %v27968_v14 = vpop.f32.mrf.mxu1 }
 0x99a   : > { %36224 = vst [vmem:[#allocation66_spill] sm:$0xff] %v33229_v6  ;;  %v33233_v10 = vadd.f32 %v17480_v56, %v36225_v48  ;;  %v17481_v44 = vmul.f32 %v36170_v60, %v17230_v55  ;;  %v36231_v56 = vld [vmem:[#allocation179_spill] sm:$0xff] }
 0x99b   : > { %v27973_v25 = vpop.f32.mrf.mxu0  ;;  %v17303_v57 = vpop.f32.mrf.mxu1 }
 0x99c   : > { %36226 = vst [vmem:[#allocation65_spill] sm:$0xff] %v33233_v10  ;;  %v33237_v51 = vadd.f32 %v17481_v44, %v36227_v20  ;;  %v17482_v11 = vmul.f32 %v36170_v60, %v17303_v57  ;;  %v36233_v44 = vld [vmem:[#allocation180_spill] sm:$0xff]  ;;  %v36235_v57 = vld [vmem:[#allocation119_spill] sm:$0xff] }
 0x99d   : > { %v17376_v30 = vpop.f32.mrf.mxu0  ;;  %v27978_v33 = vpop.f32.mrf.mxu1 }
 0x99e   : > { %36228 = vst [vmem:[#allocation64_spill] sm:$0xff] %v33237_v51  ;;  %v33241_v0 = vadd.f32 %v17482_v11, %v36229_v58  ;;  %v17483_v45 = vmul.f32 %v36170_v60, %v17376_v30  ;;  %v36236_v58 = vld [vmem:[#allocation117_spill] sm:$0xff] }
 0x99f   : > { %v27983_v14 = vpop.f32.mrf.mxu0  ;;  %v17449_v6 = vpop.f32.mrf.mxu1 }
 0x9a0   : > { %36230 = vst [vmem:[#allocation63_spill] sm:$0xff] %v33241_v0  ;;  %v33245_v48 = vadd.f32 %v17483_v45, %v36231_v56  ;;  %v17484_v55 = vmul.f32 %v36170_v60, %v17449_v6  ;;  %v36237_v60 = vld [vmem:[#allocation120_spill] sm:$0xff] }
 0x9a1   : > { %v17618_v25 = vpop.f32.mrf.mxu0  ;;  %v27988_v10 = vpop.f32.mrf.mxu1  ;;  %v36242_v0 = vld [vmem:[#allocation124_spill] sm:$0xff] }
 0x9a2   : > { %36232 = vst [vmem:[#allocation70_spill] sm:$0xff] %v33245_v48  ;;  %v33249_v20 = vadd.f32 %v17484_v55, %v36233_v44  ;;  %v33252_v51 = vadd.f32 %v17618_v25, %v36235_v57  ;;  %v36238_v57 = vld [vmem:[#allocation121_spill] sm:$0xff] }
 0x9a3   : > { %v27993_v33 = vpop.f32.mrf.mxu0  ;;  %v17691_v11 = vpop.f32.mrf.mxu1 }
 0x9a4   : > { %36234 = vst [vmem:[#allocation69_spill] sm:$0xff] %v33249_v20  ;;  %v19885_v30 = vsel %vm4524_vm6, %v33252_v51, -inf  ;;  %v33257_v14 = vadd.f32 %v17691_v11, %v36236_v58  ;;  %v36239_v58 = vld [vmem:[#allocation122_spill] sm:$0xff]  ;;  %v36240_v20 = vld [vmem:[#allocation123_spill] sm:$0xff] }
 0x9a5   : > { %19886 = vmax.xlane.f32.xlu1 %v19885_v30  ;;  %v17764_v45 = vpop.f32.mrf.mxu0  ;;  %v27998_v56 = vpop.f32.mrf.mxu1 }
 0x9a6   : > { %v33260_v6 = vadd.f32 %v17764_v45, %v36237_v60  ;;  %v19888_v10 = vsel %vm4524_vm6, %v33257_v14, -inf }
 0x9a7   : > { %v28003_v55 = vpop.f32.mrf.mxu0  ;;  %19889 = vmax.xlane.f32.xlu0 %v19888_v10  ;;  %v17837_v25 = vpop.f32.mrf.mxu1 }
 0x9a8   : > { %v19891_v44 = vsel %vm4524_vm6, %v33260_v6, -inf  ;;  %v33267_v33 = vadd.f32 %v17837_v25, %v36238_v57  ;;  %v36241_v57 = vld [vmem:[#allocation125_spill] sm:$0xff] }
 0x9a9   : > { %19892 = vmax.xlane.f32.xlu1 %v19891_v44  ;;  %v17910_v11 = vpop.f32.mrf.mxu0  ;;  %v28008_v30 = vpop.f32.mrf.mxu1 }
 0x9aa   : > { %v33270_v56 = vadd.f32 %v17910_v11, %v36239_v58  ;;  %v19894_v45 = vsel %vm4524_vm6, %v33267_v33, -inf }
 0x9ab   : > { %v28013_v60 = vpop.f32.mrf.mxu0  ;;  %19895 = vmax.xlane.f32.xlu0 %v19894_v45  ;;  %v17983_v55 = vpop.f32.mrf.mxu1 }
 0x9ac   : > { %v19897_v10 = vsel %vm4524_vm6, %v33270_v56, -inf  ;;  %v33277_v48 = vadd.f32 %v17983_v55, %v36240_v20 }
 0x9ad   : > { %19898 = vmax.xlane.f32.xlu1 %v19897_v10  ;;  %v18056_v25 = vpop.f32.mrf.mxu0  ;;  %v28018_v44 = vpop.f32.mrf.mxu1  ;;  %v36243_v10 = vld [vmem:[#allocation127_spill] sm:$0xff] }
 0x9ae   : > { %v33280_v30 = vadd.f32 %v18056_v25, %v36241_v57  ;;  %v19900_v11 = vsel %vm4524_vm6, %v33277_v48, -inf }
 0x9af   : > { %v28023_v58 = vpop.f32.mrf.mxu0  ;;  %19901 = vmax.xlane.f32.xlu0 %v19900_v11  ;;  %v18129_v60 = vpop.f32.mrf.mxu1 }
 0x9b0   : > { %v19903_v45 = vsel %vm4524_vm6, %v33280_v30, -inf  ;;  %v33287_v63 = vadd.f32 %v18129_v60, %v36242_v0 }
 0x9b1   : > { %19904 = vmax.xlane.f32.xlu1 %v19903_v45  ;;  %v18202_v20 = vpop.f32.mrf.mxu0  ;;  %v28028_v55 = vpop.f32.mrf.mxu1  ;;  %v36245_v45 = vld [vmem:[#allocation129_spill] sm:$0xff] }
 0x9b2   : > { %v33290_v44 = vadd.f32 %v18202_v20, %v36243_v10  ;;  %v19906_v25 = vsel %vm4524_vm6, %v33287_v63, -inf }
 0x9b3   : > { %v28033_v57 = vpop.f32.mrf.mxu0  ;;  %19907 = vmax.xlane.f32.xlu0 %v19906_v25  ;;  %v18275_v58 = vpop.f32.mrf.mxu1 }
 0x9b4   : > { %v19909_v11 = vsel %vm4524_vm6, %v33290_v44, -inf  ;;  %v33297_v24 = vadd.f32 %v18275_v58, %v36244_v22 }
 0x9b5   : > { %19910 = vmax.xlane.f32.xlu1 %v19909_v11  ;;  %v18348_v0 = vpop.f32.mrf.mxu0  ;;  %v28038_v60 = vpop.f32.mrf.mxu1  ;;  %v36247_v11 = vld [vmem:[#allocation131_spill] sm:$0xff] }
 0x9b6   : > { %v33300_v55 = vadd.f32 %v18348_v0, %v36245_v45  ;;  %v19912_v20 = vsel %vm4524_vm6, %v33297_v24, -inf }
 0x9b7   : > { %v28043_v10 = vpop.f32.mrf.mxu0  ;;  %19913 = vmax.xlane.f32.xlu0 %v19912_v20  ;;  %v18421_v57 = vpop.f32.mrf.mxu1 }
 0x9b8   : > { %v19915_v25 = vsel %vm4524_vm6, %v33300_v55, -inf  ;;  %v33307_v53 = vadd.f32 %v18421_v57, %v36246_v31 }
 0x9b9   : > { %19916 = vmax.xlane.f32.xlu1 %v19915_v25  ;;  %v18494_v22 = vpop.f32.mrf.mxu0  ;;  %v28048_v58 = vpop.f32.mrf.mxu1  ;;  %v36249_v25 = vld [vmem:[#allocation133_spill] sm:$0xff] }
 0x9ba   : > { %v33310_v60 = vadd.f32 %v18494_v22, %v36247_v11  ;;  %v19918_v0 = vsel %vm4524_vm6, %v33307_v53, -inf }
 0x9bb   : > { %v28053_v45 = vpop.f32.mrf.mxu0  ;;  %19919 = vmax.xlane.f32.xlu0 %v19918_v0  ;;  %v18567_v10 = vpop.f32.mrf.mxu1 }
 0x9bc   : > { %v19921_v20 = vsel %vm4524_vm6, %v33310_v60, -inf  ;;  %v33317_v16 = vadd.f32 %v18567_v10, %v36248_v52 }
 0x9bd   : > { %19922 = vmax.xlane.f32.xlu1 %v19921_v20  ;;  %v18640_v31 = vpop.f32.mrf.mxu0  ;;  %v28058_v57 = vpop.f32.mrf.mxu1  ;;  %v36251_v20 = vld [vmem:[#allocation135_spill] sm:$0xff] }
 0x9be   : > { %v33320_v58 = vadd.f32 %v18640_v31, %v36249_v25  ;;  %v19924_v22 = vsel %vm4524_vm6, %v33317_v16, -inf }
 0x9bf   : > { %v28063_v11 = vpop.f32.mrf.mxu0  ;;  %19925 = vmax.xlane.f32.xlu0 %v19924_v22  ;;  %v18713_v45 = vpop.f32.mrf.mxu1 }
 0x9c0   : > { %v19927_v0 = vsel %vm4524_vm6, %v33320_v58, -inf  ;;  %v33327_v50 = vadd.f32 %v18713_v45, %v36250_v36 }
 0x9c1   : > { %19928 = vmax.xlane.f32.xlu1 %v19927_v0  ;;  %v18786_v52 = vpop.f32.mrf.mxu0  ;;  %v28068_v10 = vpop.f32.mrf.mxu1  ;;  %v36253_v0 = vld [vmem:[#allocation137_spill] sm:$0xff] }
 0x9c2   : > { %v33330_v57 = vadd.f32 %v18786_v52, %v36251_v20  ;;  %v19930_v31 = vsel %vm4524_vm6, %v33327_v50, -inf }
 0x9c3   : > { %v28073_v25 = vpop.f32.mrf.mxu0  ;;  %19931 = vmax.xlane.f32.xlu0 %v19930_v31  ;;  %v18859_v11 = vpop.f32.mrf.mxu1 }
 0x9c4   : > { %v19933_v22 = vsel %vm4524_vm6, %v33330_v57, -inf  ;;  %v33337_v49 = vadd.f32 %v18859_v11, %v36252_v41 }
 0x9c5   : > { %19934 = vmax.xlane.f32.xlu1 %v19933_v22  ;;  %v18932_v36 = vpop.f32.mrf.mxu0  ;;  %v28078_v45 = vpop.f32.mrf.mxu1  ;;  %v36255_v22 = vld [vmem:[#allocation139_spill] sm:$0xff] }
 0x9c6   : > { %v33340_v10 = vadd.f32 %v18932_v36, %v36253_v0  ;;  %v19936_v52 = vsel %vm4524_vm6, %v33337_v49, -inf }
 0x9c7   : > { %v28083_v20 = vpop.f32.mrf.mxu0  ;;  %19937 = vmax.xlane.f32.xlu0 %v19936_v52  ;;  %v19005_v25 = vpop.f32.mrf.mxu1 }
 0x9c8   : > { %v19939_v31 = vsel %vm4524_vm6, %v33340_v10, -inf  ;;  %v33347_v40 = vadd.f32 %v19005_v25, %v36254_v54 }
 0x9c9   : > { %19940 = vmax.xlane.f32.xlu1 %v19939_v31  ;;  %v19078_v41 = vpop.f32.mrf.mxu0  ;;  %v28088_v11 = vpop.f32.mrf.mxu1  ;;  %v36257_v31 = vld [vmem:[#allocation141_spill] sm:$0xff] }
 0x9ca   : > { %v33350_v45 = vadd.f32 %v19078_v41, %v36255_v22  ;;  %v19942_v36 = vsel %vm4524_vm6, %v33347_v40, -inf }
 0x9cb   : > { %v28093_v0 = vpop.f32.mrf.mxu0  ;;  %19943 = vmax.xlane.f32.xlu0 %v19942_v36  ;;  %v19151_v20 = vpop.f32.mrf.mxu1 }
 0x9cc   : > { %v19945_v52 = vsel %vm4524_vm6, %v33350_v45, -inf  ;;  %v33357_v19 = vadd.f32 %v19151_v20, %v36256_v47 }
 0x9cd   : > { %19946 = vmax.xlane.f32.xlu1 %v19945_v52  ;;  %v19224_v54 = vpop.f32.mrf.mxu0  ;;  %v28098_v25 = vpop.f32.mrf.mxu1  ;;  %v36259_v52 = vld [vmem:[#allocation143_spill] sm:$0xff] }
 0x9ce   : > { %v33360_v11 = vadd.f32 %v19224_v54, %v36257_v31  ;;  %v19948_v41 = vsel %vm4524_vm6, %v33357_v19, -inf }
 0x9cf   : > { %v28103_v22 = vpop.f32.mrf.mxu0  ;;  %19949 = vmax.xlane.f32.xlu0 %v19948_v41  ;;  %v19297_v0 = vpop.f32.mrf.mxu1 }
 0x9d0   : > { %v19951_v36 = vsel %vm4524_vm6, %v33360_v11, -inf  ;;  %v33367_v27 = vadd.f32 %v19297_v0, %v36258_v5 }
 0x9d1   : > { %19952 = vmax.xlane.f32.xlu1 %v19951_v36  ;;  %v19370_v47 = vpop.f32.mrf.mxu0  ;;  %v28108_v20 = vpop.f32.mrf.mxu1  ;;  %v36261_v36 = vld [vmem:[#allocation145_spill] sm:$0xff] }
 0x9d2   : > { %v33370_v25 = vadd.f32 %v19370_v47, %v36259_v52  ;;  %v19954_v54 = vsel %vm4524_vm6, %v33367_v27, -inf }
 0x9d3   : > { %v28113_v31 = vpop.f32.mrf.mxu0  ;;  %19955 = vmax.xlane.f32.xlu0 %v19954_v54  ;;  %v19443_v22 = vpop.f32.mrf.mxu1 }
 0x9d4   : > { %v19957_v41 = vsel %vm4524_vm6, %v33370_v25, -inf  ;;  %v33377_v37 = vadd.f32 %v19443_v22, %v36260_v59 }
 0x9d5   : > { %19958 = vmax.xlane.f32.xlu1 %v19957_v41  ;;  %v19516_v5 = vpop.f32.mrf.mxu0  ;;  %v28118_v0 = vpop.f32.mrf.mxu1  ;;  %v36263_v41 = vld [vmem:[#allocation147_spill] sm:$0xff] }
 0x9d6   : > { %v33380_v20 = vadd.f32 %v19516_v5, %v36261_v36  ;;  %v19960_v47 = vsel %vm4524_vm6, %v33377_v37, -inf }
 0x9d7   : > { %v28123_v52 = vpop.f32.mrf.mxu0  ;;  %19961 = vmax.xlane.f32.xlu0 %v19960_v47  ;;  %v19589_v31 = vpop.f32.mrf.mxu1 }
 0x9d8   : > { %v19963_v54 = vsel %vm4524_vm6, %v33380_v20, -inf  ;;  %v33387_v2 = vadd.f32 %v19589_v31, %v36262_v32 }
 0x9d9   : > { %19964 = vmax.xlane.f32.xlu1 %v19963_v54  ;;  %v19662_v59 = vpop.f32.mrf.mxu0  ;;  %v28128_v22 = vpop.f32.mrf.mxu1  ;;  %v36265_v54 = vld [vmem:[#allocation149_spill] sm:$0xff] }
 0x9da   : > { %v33390_v0 = vadd.f32 %v19662_v59, %v36263_v41  ;;  %v19966_v5 = vsel %vm4524_vm6, %v33387_v2, -inf }
 0x9db   : > { %v28133_v36 = vpop.f32.mrf.mxu0  ;;  %19967 = vmax.xlane.f32.xlu0 %v19966_v5  ;;  %v19735_v52 = vpop.f32.mrf.mxu1 }
 0x9dc   : > { %v19969_v47 = vsel %vm4524_vm6, %v33390_v0, -inf  ;;  %v33397_v15 = vadd.f32 %v19735_v52, %v36264_v9 }
 0x9dd   : > { %19970 = vmax.xlane.f32.xlu1 %v19969_v47  ;;  %v19808_v32 = vpop.f32.mrf.mxu0  ;;  %v28138_v31 = vpop.f32.mrf.mxu1 }
 0x9de   : > { %v33400_v22 = vadd.f32 %v19808_v32, %v36265_v54  ;;  %v19972_v59 = vsel %vm4524_vm6, %v33397_v15, -inf }
 0x9df   : > { %v28143_v41 = vpop.f32.mrf.mxu0  ;;  %19973 = vmax.xlane.f32.xlu0 %v19972_v59  ;;  %v19881_v36 = vpop.f32.mrf.mxu1 }
 0x9e0   : > { %v19975_v5 = vsel %vm4524_vm6, %v33400_v22, -inf  ;;  %v33407_v61 = vadd.f32 %v19881_v36, %v36266_v17 }
 0x9e1   : > { %19976 = vmax.xlane.f32.xlu1 %v19975_v5  ;;  %v28148_v9 = vpop.f32.mrf.mxu1 }
 0x9e2   : > { %v19978_v52 = vsel %vm4524_vm6, %v33407_v61, -inf }
 0x9e3   : > { %19979 = vmax.xlane.f32.xlu0 %v19978_v52 }
 0xa2e   : > { %v19887_v47 = vpop.xlane.xlu1 %19886 }
 0xa2f   : > { %v19981_v32 = vsub.f32 %v33252_v51, %v19887_v47 }
 0xa30   : > { %v19890_v31 = vpop.xlane.xlu0 %19889 }
 0xa31   : > { %v20013_v54 = vmul.f32 1.442695, %v19981_v32  ;;  %v19982_v59 = vsub.f32 %v33257_v14, %v19890_v31 }
 0xa32   : > { %v19893_v41 = vpop.xlane.xlu1 %19892 }
 0xa33   : > { %28930 = vpow2.f32 %v20013_v54  ;;  %v19983_v28 = vsub.f32 %v33260_v6, %v19893_v41  ;;  %v20015_v12 = vmul.f32 1.442695, %v19982_v59 }
 0xa34   : > { %v19896_v17 = vpop.xlane.xlu0 %19895 }
 0xa35   : > { %v20017_v36 = vmul.f32 1.442695, %v19983_v28  ;;  %28932 = vpow2.f32 %v20015_v12  ;;  %v19984_v5 = vsub.f32 %v33267_v33, %v19896_v17 }
 0xa36   : > { %v19899_v9 = vpop.xlane.xlu1 %19898 }
 0xa37   : > { %28934 = vpow2.f32 %v20017_v36  ;;  %v19985_v52 = vsub.f32 %v33270_v56, %v19899_v9  ;;  %v20019_v13 = vmul.f32 1.442695, %v19984_v5 }
 0xa38   : > { %v19902_v51 = vpop.xlane.xlu0 %19901 }
 0xa39   : > { %v20021_v47 = vmul.f32 1.442695, %v19985_v52  ;;  %28936 = vpow2.f32 %v20019_v13  ;;  %v19986_v14 = vsub.f32 %v33277_v48, %v19902_v51 }
 0xa3a   : > { %v19905_v32 = vpop.xlane.xlu1 %19904 }
 0xa3b   : > { %28938 = vpow2.f32 %v20021_v47  ;;  %v19987_v6 = vsub.f32 %v33280_v30, %v19905_v32  ;;  %v20023_v31 = vmul.f32 1.442695, %v19986_v14 }
 0xa3c   : > { %v19908_v54 = vpop.xlane.xlu0 %19907 }
 0xa3d   : > { %v20025_v28 = vmul.f32 1.442695, %v19987_v6  ;;  %28940 = vpow2.f32 %v20023_v31  ;;  %v19988_v12 = vsub.f32 %v33287_v63, %v19908_v54 }
 0xa3e   : > { %v19911_v33 = vpop.xlane.xlu1 %19910 }
 0xa3f   : > { %28942 = vpow2.f32 %v20025_v28  ;;  %v19989_v56 = vsub.f32 %v33290_v44, %v19911_v33  ;;  %v20027_v59 = vmul.f32 1.442695, %v19988_v12 }
 0xa40   : > { %v33420_v41 = vpop.eup %28930  ;;  %v19914_v13 = vpop.xlane.xlu0 %19913 }
 0xa41   : > { %v20029_v17 = vmul.f32 1.442695, %v19989_v56  ;;  %28944 = vpow2.f32 %v20027_v59  ;;  %v20077_v48 = vsel %vm4524_vm6, %v33420_v41, 0.0  ;;  %v19990_v30 = vsub.f32 %v33297_v24, %v19914_v13 }
 0xa42   : > { %v33425_v36 = vpop.eup %28932  ;;  %v19917_v5 = vpop.xlane.xlu1 %19916  ;;  %20078 = vadd.xlane.f32.xlu1 %v20077_v48 }
 0xa43   : > { %28946 = vpow2.f32 %v20029_v17  ;;  %v19991_v63 = vsub.f32 %v33300_v55, %v19917_v5  ;;  %v20031_v9 = vmul.f32 1.442695, %v19990_v30  ;;  %v20080_v44 = vsel %vm4524_vm6, %v33425_v36, 0.0 }
 0xa44   : > { %v33430_v52 = vpop.eup %28934  ;;  %v19920_v51 = vpop.xlane.xlu0 %19919  ;;  %20081 = vadd.xlane.f32.xlu0 %v20080_v44 }
 0xa45   : > { %v20033_v47 = vmul.f32 1.442695, %v19991_v63  ;;  %28948 = vpow2.f32 %v20031_v9  ;;  %v20083_v24 = vsel %vm4524_vm6, %v33430_v52, 0.0  ;;  %v19992_v14 = vsub.f32 %v33307_v53, %v19920_v51 }
 0xa46   : > { %v33435_v32 = vpop.eup %28936  ;;  %v19923_v6 = vpop.xlane.xlu1 %19922  ;;  %20084 = vadd.xlane.f32.xlu1 %v20083_v24 }
 0xa47   : > { %28950 = vpow2.f32 %v20033_v47  ;;  %v19993_v55 = vsub.f32 %v33310_v60, %v19923_v6  ;;  %v20035_v31 = vmul.f32 1.442695, %v19992_v14  ;;  %v20086_v54 = vsel %vm4524_vm6, %v33435_v32, 0.0 }
 0xa48   : > { %v33440_v28 = vpop.eup %28938  ;;  %v19926_v12 = vpop.xlane.xlu0 %19925  ;;  %20087 = vadd.xlane.f32.xlu0 %v20086_v54 }
 0xa49   : > { %v20037_v33 = vmul.f32 1.442695, %v19993_v55  ;;  %28952 = vpow2.f32 %v20035_v31  ;;  %v20089_v53 = vsel %vm4524_vm6, %v33440_v28, 0.0  ;;  %v19994_v56 = vsub.f32 %v33317_v16, %v19926_v12 }
 0xa4a   : > { %v33445_v59 = vpop.eup %28940  ;;  %v19929_v13 = vpop.xlane.xlu1 %19928  ;;  %20090 = vadd.xlane.f32.xlu1 %v20089_v53 }
 0xa4b   : > { %28954 = vpow2.f32 %v20037_v33  ;;  %v19995_v60 = vsub.f32 %v33320_v58, %v19929_v13  ;;  %v20039_v17 = vmul.f32 1.442695, %v19994_v56  ;;  %v20092_v48 = vsel %vm4524_vm6, %v33445_v59, 0.0 }
 0xa4c   : > { %v33450_v30 = vpop.eup %28942  ;;  %v19932_v5 = vpop.xlane.xlu0 %19931  ;;  %20093 = vadd.xlane.f32.xlu0 %v20092_v48 }
 0xa4d   : > { %v20041_v63 = vmul.f32 1.442695, %v19995_v60  ;;  %28956 = vpow2.f32 %v20039_v17  ;;  %v20095_v16 = vsel %vm4524_vm6, %v33450_v30, 0.0  ;;  %v19996_v9 = vsub.f32 %v33327_v50, %v19932_v5 }
 0xa4e   : > { %v33455_v44 = vpop.eup %28944  ;;  %v19935_v51 = vpop.xlane.xlu1 %19934  ;;  %20096 = vadd.xlane.f32.xlu1 %v20095_v16 }
 0xa4f   : > { %28958 = vpow2.f32 %v20041_v63  ;;  %v19997_v58 = vsub.f32 %v33330_v57, %v19935_v51  ;;  %v20043_v47 = vmul.f32 1.442695, %v19996_v9  ;;  %v20098_v24 = vsel %vm4524_vm6, %v33455_v44, 0.0 }
 0xa50   : > { %v33460_v14 = vpop.eup %28946  ;;  %v19938_v6 = vpop.xlane.xlu0 %19937  ;;  %20099 = vadd.xlane.f32.xlu0 %v20098_v24 }
 0xa51   : > { %v20045_v55 = vmul.f32 1.442695, %v19997_v58  ;;  %28960 = vpow2.f32 %v20043_v47  ;;  %v20101_v50 = vsel %vm4524_vm6, %v33460_v14, 0.0  ;;  %v19998_v31 = vsub.f32 %v33337_v49, %v19938_v6 }
 0xa52   : > { %v33465_v54 = vpop.eup %28948  ;;  %v19941_v12 = vpop.xlane.xlu1 %19940  ;;  %20102 = vadd.xlane.f32.xlu1 %v20101_v50 }
 0xa53   : > { %28962 = vpow2.f32 %v20045_v55  ;;  %v19999_v57 = vsub.f32 %v33340_v10, %v19941_v12  ;;  %v20047_v33 = vmul.f32 1.442695, %v19998_v31  ;;  %v20104_v53 = vsel %vm4524_vm6, %v33465_v54, 0.0 }
 0xa54   : > { %v33470_v56 = vpop.eup %28950  ;;  %v19944_v13 = vpop.xlane.xlu0 %19943  ;;  %20105 = vadd.xlane.f32.xlu0 %v20104_v53 }
 0xa55   : > { %v20049_v60 = vmul.f32 1.442695, %v19999_v57  ;;  %28964 = vpow2.f32 %v20047_v33  ;;  %v20107_v49 = vsel %vm4524_vm6, %v33470_v56, 0.0  ;;  %v20000_v17 = vsub.f32 %v33347_v40, %v19944_v13 }
 0xa56   : > { %v33475_v48 = vpop.eup %28952  ;;  %v19947_v5 = vpop.xlane.xlu1 %19946  ;;  %20108 = vadd.xlane.f32.xlu1 %v20107_v49 }
 0xa57   : > { %28966 = vpow2.f32 %v20049_v60  ;;  %v20001_v10 = vsub.f32 %v33350_v45, %v19947_v5  ;;  %v20051_v63 = vmul.f32 1.442695, %v20000_v17  ;;  %v20110_v16 = vsel %vm4524_vm6, %v33475_v48, 0.0 }
 0xa58   : > { %v33480_v9 = vpop.eup %28954  ;;  %v19950_v51 = vpop.xlane.xlu0 %19949  ;;  %20111 = vadd.xlane.f32.xlu0 %v20110_v16 }
 0xa59   : > { %v20053_v58 = vmul.f32 1.442695, %v20001_v10  ;;  %28968 = vpow2.f32 %v20051_v63  ;;  %v20113_v40 = vsel %vm4524_vm6, %v33480_v9, 0.0  ;;  %v20002_v47 = vsub.f32 %v33357_v19, %v19950_v51 }
 0xa5a   : > { %v33485_v24 = vpop.eup %28956  ;;  %v19953_v6 = vpop.xlane.xlu1 %19952  ;;  %20114 = vadd.xlane.f32.xlu1 %v20113_v40 }
 0xa5b   : > { %28970 = vpow2.f32 %v20053_v58  ;;  %v20003_v45 = vsub.f32 %v33360_v11, %v19953_v6  ;;  %v20055_v55 = vmul.f32 1.442695, %v20002_v47  ;;  %v20116_v50 = vsel %vm4524_vm6, %v33485_v24, 0.0 }
 0xa5c   : > { %v33490_v31 = vpop.eup %28958  ;;  %v19956_v12 = vpop.xlane.xlu0 %19955  ;;  %20117 = vadd.xlane.f32.xlu0 %v20116_v50 }
 0xa5d   : > { %v20057_v57 = vmul.f32 1.442695, %v20003_v45  ;;  %28972 = vpow2.f32 %v20055_v55  ;;  %v20119_v19 = vsel %vm4524_vm6, %v33490_v31, 0.0  ;;  %v20004_v33 = vsub.f32 %v33367_v27, %v19956_v12 }
 0xa5e   : > { %v33495_v53 = vpop.eup %28960  ;;  %v19959_v13 = vpop.xlane.xlu1 %19958  ;;  %20120 = vadd.xlane.f32.xlu1 %v20119_v19 }
 0xa5f   : > { %28974 = vpow2.f32 %v20057_v57  ;;  %v20005_v11 = vsub.f32 %v33370_v25, %v19959_v13  ;;  %v20059_v60 = vmul.f32 1.442695, %v20004_v33  ;;  %v20122_v49 = vsel %vm4524_vm6, %v33495_v53, 0.0 }
 0xa60   : > { %v33500_v17 = vpop.eup %28962  ;;  %v19962_v5 = vpop.xlane.xlu0 %19961  ;;  %20123 = vadd.xlane.f32.xlu0 %v20122_v49 }
 0xa61   : > { %v20061_v10 = vmul.f32 1.442695, %v20005_v11  ;;  %28976 = vpow2.f32 %v20059_v60  ;;  %v20125_v27 = vsel %vm4524_vm6, %v33500_v17, 0.0  ;;  %v20006_v63 = vsub.f32 %v33377_v37, %v19962_v5 }
 0xa62   : > { %v33505_v16 = vpop.eup %28964  ;;  %v19965_v51 = vpop.xlane.xlu1 %19964  ;;  %20126 = vadd.xlane.f32.xlu1 %v20125_v27 }
 0xa63   : > { %28978 = vpow2.f32 %v20061_v10  ;;  %v20007_v25 = vsub.f32 %v33380_v20, %v19965_v51  ;;  %v20063_v58 = vmul.f32 1.442695, %v20006_v63  ;;  %v20128_v40 = vsel %vm4524_vm6, %v33505_v16, 0.0 }
 0xa64   : > { %v33510_v47 = vpop.eup %28966  ;;  %v19968_v6 = vpop.xlane.xlu0 %19967  ;;  %20129 = vadd.xlane.f32.xlu0 %v20128_v40 }
 0xa65   : > { %v20065_v45 = vmul.f32 1.442695, %v20007_v25  ;;  %28980 = vpow2.f32 %v20063_v58  ;;  %v20131_v37 = vsel %vm4524_vm6, %v33510_v47, 0.0  ;;  %v20008_v55 = vsub.f32 %v33387_v2, %v19968_v6 }
 0xa66   : > { %v33515_v50 = vpop.eup %28968  ;;  %v19971_v12 = vpop.xlane.xlu1 %19970  ;;  %20132 = vadd.xlane.f32.xlu1 %v20131_v37 }
 0xa67   : > { %28982 = vpow2.f32 %v20065_v45  ;;  %v20009_v20 = vsub.f32 %v33390_v0, %v19971_v12  ;;  %v20067_v57 = vmul.f32 1.442695, %v20008_v55  ;;  %v20134_v19 = vsel %vm4524_vm6, %v33515_v50, 0.0 }
 0xa68   : > { %v33520_v33 = vpop.eup %28970  ;;  %v19974_v13 = vpop.xlane.xlu0 %19973  ;;  %20135 = vadd.xlane.f32.xlu0 %v20134_v19 }
 0xa69   : > { %v20069_v11 = vmul.f32 1.442695, %v20009_v20  ;;  %28984 = vpow2.f32 %v20067_v57  ;;  %v20137_v2 = vsel %vm4524_vm6, %v33520_v33, 0.0  ;;  %v20010_v60 = vsub.f32 %v33397_v15, %v19974_v13 }
 0xa6a   : > { %v33525_v49 = vpop.eup %28972  ;;  %20138 = vadd.xlane.f32.xlu1 %v20137_v2  ;;  %v19977_v5 = vpop.xlane.xlu1 %19976 }
 0xa6b   : > { %28986 = vpow2.f32 %v20069_v11  ;;  %v20011_v0 = vsub.f32 %v33400_v22, %v19977_v5  ;;  %v20071_v10 = vmul.f32 1.442695, %v20010_v60  ;;  %v20140_v27 = vsel %vm4524_vm6, %v33525_v49, 0.0 }
 0xa6c   : > { %v33530_v63 = vpop.eup %28974  ;;  %20141 = vadd.xlane.f32.xlu0 %v20140_v27  ;;  %v19980_v51 = vpop.xlane.xlu0 %19979 }
 0xa6d   : > { %v20073_v25 = vmul.f32 1.442695, %v20011_v0  ;;  %28988 = vpow2.f32 %v20071_v10  ;;  %v20143_v15 = vsel %vm4524_vm6, %v33530_v63, 0.0  ;;  %v20012_v58 = vsub.f32 %v33407_v61, %v19980_v51 }
 0xa6e   : > { %v33535_v40 = vpop.eup %28976  ;;  %20144 = vadd.xlane.f32.xlu1 %v20143_v15 }
 0xa6f   : > { %28990 = vpow2.f32 %v20073_v25  ;;  %v20075_v22 = vmul.f32 1.442695, %v20012_v58  ;;  %v20146_v6 = vsel %vm4524_vm6, %v33535_v40, 0.0 }
 0xa70   : > { %v33539_v45 = vpop.eup %28978  ;;  %20147 = vadd.xlane.f32.xlu0 %v20146_v6 }
 0xa71   : > { %28992 = vpow2.f32 %v20075_v22  ;;  %v20149_v37 = vsel %vm4524_vm6, %v33539_v45, 0.0 }
 0xa72   : > { %v33543_v55 = vpop.eup %28980  ;;  %20150 = vadd.xlane.f32.xlu1 %v20149_v37 }
 0xa73   : > { %v20152_v61 = vsel %vm4524_vm6, %v33543_v55, 0.0 }
 0xa74   : > { %v33547_v12 = vpop.eup %28982  ;;  %20153 = vadd.xlane.f32.xlu0 %v20152_v61 }
 0xa75   : > { %v20155_v20 = vsel %vm4524_vm6, %v33547_v12, 0.0 }
 0xa76   : > { %v33551_v57 = vpop.eup %28984  ;;  %20156 = vadd.xlane.f32.xlu1 %v20155_v20 }
 0xa77   : > { %v20158_v19 = vsel %vm4524_vm6, %v33551_v57, 0.0 }
 0xa78   : > { %v33555_v13 = vpop.eup %28986  ;;  %20159 = vadd.xlane.f32.xlu0 %v20158_v19 }
 0xa79   : > { %v20161_v11 = vsel %vm4524_vm6, %v33555_v13, 0.0 }
 0xa7a   : > { %v33559_v2 = vpop.eup %28988  ;;  %20162 = vadd.xlane.f32.xlu1 %v20161_v11 }
 0xa7b   : > { %v20164_v60 = vsel %vm4524_vm6, %v33559_v2, 0.0 }
 0xa7c   : > { %v33563_v5 = vpop.eup %28990  ;;  %20165 = vadd.xlane.f32.xlu0 %v20164_v60 }
 0xa7d   : > { %v20167_v0 = vsel %vm4524_vm6, %v33563_v5, 0.0 }
 0xa7e   : > { %v33567_v10 = vpop.eup %28992  ;;  %20168 = vadd.xlane.f32.xlu1 %v20167_v0 }
 0xa7f   : > { %v20170_v27 = vsel %vm4524_vm6, %v33567_v10, 0.0 }
 0xa80   : > { %20171 = vadd.xlane.f32.xlu0 %v20170_v27 }
 0xacb   : > { %v20079_v51 = vpop.xlane.xlu1 %20078 }
 0xacc   : > { %28994 = vrcp.f32 %v20079_v51 }
 0xacd   : > { %v20082_v25 = vpop.xlane.xlu0 %20081 }
 0xace   : > { %28996 = vrcp.f32 %v20082_v25 }
 0xacf   : > { %v20085_v15 = vpop.xlane.xlu1 %20084 }
 0xad0   : > { %28998 = vrcp.f32 %v20085_v15 }
 0xad1   : > { %v20088_v58 = vpop.xlane.xlu0 %20087 }
 0xad2   : > { %29000 = vrcp.f32 %v20088_v58 }
 0xad3   : > { %v20091_v22 = vpop.xlane.xlu1 %20090 }
 0xad4   : > { %29002 = vrcp.f32 %v20091_v22 }
 0xad5   : > { %v20094_v6 = vpop.xlane.xlu0 %20093 }
 0xad6   : > { %29004 = vrcp.f32 %v20094_v6 }
 0xad7   : > { %v20097_v37 = vpop.xlane.xlu1 %20096 }
 0xad8   : > { %29006 = vrcp.f32 %v20097_v37 }
 0xad9   : > { %v28995_v61 = vpop.eup %28994  ;;  %v20100_v20 = vpop.xlane.xlu0 %20099 }
 0xada   : > { %v20205_v19 = vmul.f32 %v28995_v61, %v33420_v41  ;;  %29008 = vrcp.f32 %v20100_v20 }
 0xadb   : > { %v28997_v11 = vpop.eup %28996  ;;  %v20103_v60 = vpop.xlane.xlu1 %20102 }
 0xadc   : > { %v20206_v0 = vmul.f32 %v28997_v11, %v33425_v36  ;;  %29010 = vrcp.f32 %v20103_v60  ;;  %28152 = vmatmul.mubr.msk.f32.vlgmr.msra.gmra.mxu0 %vm4524_vm6, %v20205_v19 }
 0xadd   : > { %v28999_v27 = vpop.eup %28998  ;;  %28160 = vmatpush3.msra.mxu0 %v30845_v35  ;;  %28161 = vmatprep.mubr.msk.f32.mxu0 %vm29305_vm3, %v35664_v39  ;;  %v20106_v51 = vpop.xlane.xlu0 %20105 }
 0xade   : > { %v20207_v25 = vmul.f32 %v28999_v27, %v33430_v52  ;;  %28169 = vmatprep.subr.mxu0 %v35664_v39  ;;  %29012 = vrcp.f32 %v20106_v51  ;;  %28157 = vmatmul.mubr.msk.f32.vlgmr.msra.gmra.mxu1 %vm4524_vm6, %v20206_v0 }
 0xadf   : > { %v29001_v41 = vpop.eup %29000  ;;  %v20109_v15 = vpop.xlane.xlu1 %20108  ;;  %28165 = vmatpush3.msra.mxu1 %v30281_v18  ;;  %28166 = vmatprep.mubr.msk.f32.mxu1 %vm29305_vm3, %v35664_v39 }
 0xae0   : > { %v20208_v35 = vmul.f32 %v29001_v41, %v33435_v32  ;;  %29014 = vrcp.f32 %v20109_v15  ;;  %28162 = vmatmul.mubr.msk.f32.vlgmr.msra.gmra.mxu0 %vm4524_vm6, %v20207_v25  ;;  %28174 = vmatprep.subr.mxu1 %v35664_v39 }
 0xae1   : > { %v29003_v36 = vpop.eup %29002  ;;  %28170 = vmatpush3.msra.mxu0 %v30859_v29  ;;  %28171 = vmatprep.mubr.msk.f32.mxu0 %vm29305_vm3, %v35664_v39  ;;  %v20112_v52 = vpop.xlane.xlu0 %20111 }
 0xae2   : > { %v20209_v58 = vmul.f32 %v29003_v36, %v33440_v28  ;;  %28179 = vmatprep.subr.mxu0 %v35664_v39  ;;  %29016 = vrcp.f32 %v20112_v52  ;;  %28167 = vmatmul.mubr.msk.f32.vlgmr.msra.gmra.mxu1 %vm4524_vm6, %v20208_v35  ;;  %v36267_v35 = vld [vmem:[#allocation105_spill] sm:$0xff]  ;;  %v36268_v36 = vld [vmem:[#allocation107_spill] sm:$0xff] }
 0xae3   : > { %v29005_v18 = vpop.eup %29004  ;;  %v20115_v32 = vpop.xlane.xlu1 %20114  ;;  %28175 = vmatpush3.msra.mxu1 %v30306_v8  ;;  %28176 = vmatprep.mubr.msk.f32.mxu1 %vm29305_vm3, %v35664_v39 }
 0xae4   : > { %v20210_v29 = vmul.f32 %v29005_v18, %v33445_v59  ;;  %29018 = vrcp.f32 %v20115_v32  ;;  %28172 = vmatmul.mubr.msk.f32.vlgmr.msra.gmra.mxu0 %vm4524_vm6, %v20209_v58  ;;  %28184 = vmatprep.subr.mxu1 %v35664_v39  ;;  %v36269_v32 = vld [vmem:[#allocation106_spill] sm:$0xff] }
 0xae5   : > { %v29007_v28 = vpop.eup %29006  ;;  %28180 = vmatpush3.msra.mxu0 %v30871_v26  ;;  %28181 = vmatprep.mubr.msk.f32.mxu0 %vm29305_vm3, %v35664_v39  ;;  %v20118_v22 = vpop.xlane.xlu0 %20117 }
 0xae6   : > { %v20211_v6 = vmul.f32 %v29007_v28, %v33450_v30  ;;  %28189 = vmatprep.subr.mxu0 %v35664_v39  ;;  %29020 = vrcp.f32 %v20118_v22  ;;  %28177 = vmatmul.mubr.msk.f32.vlgmr.msra.gmra.mxu1 %vm4524_vm6, %v20210_v29  ;;  %v36270_v28 = vld [vmem:[#allocation109_spill] sm:$0xff] }
 0xae7   : > { %v29009_v8 = vpop.eup %29008  ;;  %v20121_v59 = vpop.xlane.xlu1 %20120  ;;  %28185 = vmatpush3.msra.mxu1 %v30319_v3  ;;  %28186 = vmatprep.mubr.msk.f32.mxu1 %vm29305_vm3, %v35664_v39 }
 0xae8   : > { %v20212_v26 = vmul.f32 %v29009_v8, %v33455_v44  ;;  %29022 = vrcp.f32 %v20121_v59  ;;  %28182 = vmatmul.mubr.msk.f32.vlgmr.msra.gmra.mxu0 %vm4524_vm6, %v20211_v6  ;;  %28194 = vmatprep.subr.mxu1 %v35664_v39  ;;  %v36271_v59 = vld [vmem:[#allocation108_spill] sm:$0xff] }
 0xae9   : > { %v29011_v30 = vpop.eup %29010  ;;  %28190 = vmatpush3.msra.mxu0 %v30890_v62  ;;  %28191 = vmatprep.mubr.msk.f32.mxu0 %vm29305_vm3, %v35664_v39  ;;  %v20124_v37 = vpop.xlane.xlu0 %20123 }
 0xaea   : > { %v20213_v61 = vmul.f32 %v29011_v30, %v33460_v14  ;;  %28199 = vmatprep.subr.mxu0 %v35664_v39  ;;  %29024 = vrcp.f32 %v20124_v37  ;;  %28187 = vmatmul.mubr.msk.f32.vlgmr.msra.gmra.mxu1 %vm4524_vm6, %v20212_v26  ;;  %v36272_v30 = vld [vmem:[#allocation111_spill] sm:$0xff] }
 0xaeb   : > { %v29013_v3 = vpop.eup %29012  ;;  %v20127_v44 = vpop.xlane.xlu1 %20126  ;;  %28195 = vmatpush3.msra.mxu1 %v30325_v21  ;;  %28196 = vmatprep.mubr.msk.f32.mxu1 %vm29305_vm3, %v35664_v39 }
 0xaec   : > { %v20214_v62 = vmul.f32 %v29013_v3, %v33465_v54  ;;  %29026 = vrcp.f32 %v20127_v44  ;;  %28192 = vmatmul.mubr.msk.f32.vlgmr.msra.gmra.mxu0 %vm4524_vm6, %v20213_v61  ;;  %28204 = vmatprep.subr.mxu1 %v35664_v39  ;;  %v36273_v3 = vld [vmem:[#allocation110_spill] sm:$0xff] }
 0xaed   : > { %v29015_v14 = vpop.eup %29014  ;;  %28200 = vmatpush3.msra.mxu0 %v30906_v42  ;;  %28201 = vmatprep.mubr.msk.f32.mxu0 %vm29305_vm3, %v35664_v39  ;;  %v20130_v20 = vpop.xlane.xlu0 %20129 }
 0xaee   : > { %v20215_v19 = vmul.f32 %v29015_v14, %v33470_v56  ;;  %28209 = vmatprep.subr.mxu0 %v35664_v39  ;;  %29028 = vrcp.f32 %v20130_v20  ;;  %28197 = vmatmul.mubr.msk.f32.vlgmr.msra.gmra.mxu1 %vm4524_vm6, %v20214_v62  ;;  %v36274_v14 = vld [vmem:[#allocation113_spill] sm:$0xff] }
 0xaef   : > { %v29017_v21 = vpop.eup %29016  ;;  %v20133_v54 = vpop.xlane.xlu1 %20132  ;;  %28205 = vmatpush3.msra.mxu1 %v30330_v7  ;;  %28206 = vmatprep.mubr.msk.f32.mxu1 %vm29305_vm3, %v35664_v39 }
 0xaf0   : > { %v20216_v42 = vmul.f32 %v29017_v21, %v33475_v48  ;;  %29030 = vrcp.f32 %v20133_v54  ;;  %28202 = vmatmul.mubr.msk.f32.vlgmr.msra.gmra.mxu0 %vm4524_vm6, %v20215_v19  ;;  %28214 = vmatprep.subr.mxu1 %v35664_v39  ;;  %v36275_v19 = vld [vmem:[#allocation112_spill] sm:$0xff]  ;;  %v36276_v54 = vld [vmem:[#allocation115_spill] sm:$0xff] }
 0xaf1   : > { %v29019_v56 = vpop.eup %29018  ;;  %28210 = vmatpush3.msra.mxu0 %v30919_v1  ;;  %28211 = vmatprep.mubr.msk.f32.mxu0 %vm29305_vm3, %v35664_v39  ;;  %v20136_v11 = vpop.xlane.xlu0 %20135 }
 0xaf2   : > { %v20217_v60 = vmul.f32 %v29019_v56, %v33480_v9  ;;  %28219 = vmatprep.subr.mxu0 %v35664_v39  ;;  %29032 = vrcp.f32 %v20136_v11  ;;  %28207 = vmatmul.mubr.msk.f32.vlgmr.msra.gmra.mxu1 %vm4524_vm6, %v20216_v42  ;;  %v36277_v56 = vld [vmem:[#allocation114_spill] sm:$0xff] }
 0xaf3   : > { %v29021_v7 = vpop.eup %29020  ;;  %v20139_v48 = vpop.xlane.xlu1 %20138  ;;  %28215 = vmatpush3.msra.mxu1 %v30335_v4  ;;  %28216 = vmatprep.mubr.msk.f32.mxu1 %vm29305_vm3, %v35664_v39 }
 0xaf4   : > { %v20218_v1 = vmul.f32 %v29021_v7, %v33485_v24  ;;  %29034 = vrcp.f32 %v20139_v48  ;;  %28212 = vmatmul.mubr.msk.f32.vlgmr.msra.gmra.mxu0 %vm4524_vm6, %v20217_v60  ;;  %28224 = vmatprep.subr.mxu1 %v35664_v39  ;;  %v36278_v60 = vld [vmem:[#allocation118_spill] sm:$0xff]  ;;  %v36279_v48 = vld [vmem:[#allocation116_spill] sm:$0xff] }
 0xaf5   : > { %v29023_v9 = vpop.eup %29022  ;;  %28220 = vmatpush3.msra.mxu0 %v30938_v23  ;;  %28221 = vmatprep.mubr.msk.f32.mxu0 %vm29305_vm3, %v35664_v39  ;;  %v20142_v0 = vpop.xlane.xlu0 %20141 }
 0xaf6   : > { %v20219_v27 = vmul.f32 %v29023_v9, %v33490_v31  ;;  %28229 = vmatprep.subr.mxu0 %v35664_v39  ;;  %29036 = vrcp.f32 %v20142_v0  ;;  %28217 = vmatmul.mubr.msk.f32.vlgmr.msra.gmra.mxu1 %vm4524_vm6, %v20218_v1  ;;  %v22640_v1 = vld [vmem:[#allocation2 + $0x98] sm:$0xff]  ;;  %v22639_v9 = vld [vmem:[#allocation2 + $0x90] sm:$0xff]  ;;  %v22637_v0 = vld [vmem:[#allocation2 + $0x80] sm:$0xff] }
 0xaf7   : > { %v29025_v4 = vpop.eup %29024  ;;  %v20145_v24 = vpop.xlane.xlu1 %20144  ;;  %28225 = vmatpush3.msra.mxu1 %v30340_v38  ;;  %28226 = vmatprep.mubr.msk.f32.mxu1 %vm29305_vm3, %v35664_v39 }
 0xaf8   : > { %v20220_v23 = vmul.f32 %v29025_v4, %v33495_v53  ;;  %29038 = vrcp.f32 %v20145_v24  ;;  %28222 = vmatmul.mubr.msk.f32.vlgmr.msra.gmra.mxu0 %vm4524_vm6, %v20219_v27  ;;  %28234 = vmatprep.subr.mxu1 %v35664_v39 }
 0xaf9   : > { %v29027_v31 = vpop.eup %29026  ;;  %28230 = vmatpush3.msra.mxu0 %v30951_v34  ;;  %28231 = vmatprep.mubr.msk.f32.mxu0 %vm29305_vm3, %v35664_v39  ;;  %v20148_v51 = vpop.xlane.xlu0 %20147 }
 0xafa   : > { %v20221_v25 = vmul.f32 %v29027_v31, %v33500_v17  ;;  %28239 = vmatprep.subr.mxu0 %v35664_v39  ;;  %29040 = vrcp.f32 %v20148_v51  ;;  %28227 = vmatmul.mubr.msk.f32.vlgmr.msra.gmra.mxu1 %vm4524_vm6, %v20220_v23  ;;  %v36281_v23 = vld [vmem:[#allocation182_spill] sm:$0xff] }
 0xafb   : > { %v29029_v38 = vpop.eup %29028  ;;  %v20151_v53 = vpop.xlane.xlu1 %20150  ;;  %28235 = vmatpush3.msra.mxu1 %v30345_v46  ;;  %28236 = vmatprep.mubr.msk.f32.mxu1 %vm29305_vm3, %v35664_v39 }
 0xafc   : > { %v20222_v34 = vmul.f32 %v29029_v38, %v33505_v16  ;;  %29042 = vrcp.f32 %v20151_v53  ;;  %28232 = vmatmul.mubr.msk.f32.vlgmr.msra.gmra.mxu0 %vm4524_vm6, %v20221_v25  ;;  %28244 = vmatprep.subr.mxu1 %v35664_v39  ;;  %v36282_v53 = vld [vmem:[#allocation5_spill] sm:$0xff] }
 0xafd   : > { %v29031_v17 = vpop.eup %29030  ;;  %28240 = vmatpush3.msra.mxu0 %v30967_v43  ;;  %28241 = vmatprep.mubr.msk.f32.mxu0 %vm29305_vm3, %v35664_v39  ;;  %v20154_v41 = vpop.xlane.xlu0 %20153 }
 0xafe   : > { %v20223_v15 = vmul.f32 %v29031_v17, %v33510_v47  ;;  %28249 = vmatprep.subr.mxu0 %v35664_v39  ;;  %29044 = vrcp.f32 %v20154_v41  ;;  %28237 = vmatmul.mubr.msk.f32.vlgmr.msra.gmra.mxu1 %vm4524_vm6, %v20222_v34 }
 0xaff   : > { %v29033_v46 = vpop.eup %29032  ;;  %v20157_v16 = vpop.xlane.xlu1 %20156  ;;  %28245 = vmatpush3.msra.mxu1 %v36267_v35  ;;  %28246 = vmatprep.mubr.msk.f32.mxu1 %vm29305_vm3, %v35664_v39 }
 0xb00   : > { %v20224_v43 = vmul.f32 %v29033_v46, %v33515_v50  ;;  %29046 = vrcp.f32 %v20157_v16  ;;  %28242 = vmatmul.mubr.msk.f32.vlgmr.msra.gmra.mxu0 %vm4524_vm6, %v20223_v15  ;;  %28254 = vmatprep.subr.mxu1 %v35664_v39  ;;  %v36283_v46 = vld [vmem:[#allocation42_spill] sm:$0xff] }
 0xb01   : > { %v29035_v47 = vpop.eup %29034  ;;  %28250 = vmatpush3.msra.mxu0 %v36268_v36  ;;  %28251 = vmatprep.mubr.msk.f32.mxu0 %vm29305_vm3, %v35664_v39  ;;  %v20160_v52 = vpop.xlane.xlu0 %20159  ;;  %v36284_v36 = vld [vmem:[#allocation41_spill] sm:$0xff] }
 0xb02   : > { %v20225_v58 = vmul.f32 %v29035_v47, %v33520_v33  ;;  %28259 = vmatprep.subr.mxu0 %v35664_v39  ;;  %29048 = vrcp.f32 %v20160_v52  ;;  %28247 = vmatmul.mubr.msk.f32.vlgmr.msra.gmra.mxu1 %vm4524_vm6, %v20224_v43 }
 0xb03   : > { %v29037_v50 = vpop.eup %29036  ;;  %v20163_v18 = vpop.xlane.xlu1 %20162  ;;  %28255 = vmatpush3.msra.mxu1 %v36269_v32  ;;  %28256 = vmatprep.mubr.msk.f32.mxu1 %vm29305_vm3, %v35664_v39  ;;  %v36285_v32 = vld [vmem:[#allocation40_spill] sm:$0xff] }
 0xb04   : > { %v20226_v29 = vmul.f32 %v29037_v50, %v33525_v49  ;;  %29050 = vrcp.f32 %v20163_v18  ;;  %28252 = vmatmul.mubr.msk.f32.vlgmr.msra.gmra.mxu0 %vm4524_vm6, %v20225_v58  ;;  %28264 = vmatprep.subr.mxu1 %v35664_v39 }
 0xb05   : > { %v29039_v33 = vpop.eup %29038  ;;  %28260 = vmatpush3.msra.mxu0 %v36270_v28  ;;  %28261 = vmatprep.mubr.msk.f32.mxu0 %vm29305_vm3, %v35664_v39  ;;  %v20166_v22 = vpop.xlane.xlu0 %20165 }
 0xb06   : > { %v20227_v6 = vmul.f32 %v29039_v33, %v33530_v63  ;;  %28269 = vmatprep.subr.mxu0 %v35664_v39  ;;  %29052 = vrcp.f32 %v20166_v22  ;;  %28257 = vmatmul.mubr.msk.f32.vlgmr.msra.gmra.mxu1 %vm4524_vm6, %v20226_v29 }
 0xb07   : > { %v29041_v49 = vpop.eup %29040  ;;  %v20169_v8 = vpop.xlane.xlu1 %20168  ;;  %28265 = vmatpush3.msra.mxu1 %v36271_v59  ;;  %28266 = vmatprep.mubr.msk.f32.mxu1 %vm29305_vm3, %v35664_v39 }
 0xb08   : > { %v20228_v26 = vmul.f32 %v29041_v49, %v33535_v40  ;;  %29054 = vrcp.f32 %v20169_v8  ;;  %28262 = vmatmul.mubr.msk.f32.vlgmr.msra.gmra.mxu0 %vm4524_vm6, %v20227_v6  ;;  %28274 = vmatprep.subr.mxu1 %v35664_v39  ;;  %v36286_v6 = vld [vmem:[#allocation39_spill] sm:$0xff] }
 0xb09   : > { %v29043_v63 = vpop.eup %29042  ;;  %28270 = vmatpush3.msra.mxu0 %v36272_v30  ;;  %28271 = vmatprep.mubr.msk.f32.mxu0 %vm29305_vm3, %v35664_v39  ;;  %v20172_v37 = vpop.xlane.xlu0 %20171 }
 0xb0a   : > { %v20229_v61 = vmul.f32 %v29043_v63, %v33539_v45  ;;  %28279 = vmatprep.subr.mxu0 %v35664_v39  ;;  %29056 = vrcp.f32 %v20172_v37  ;;  %28267 = vmatmul.mubr.msk.f32.vlgmr.msra.gmra.mxu1 %vm4524_vm6, %v20228_v26  ;;  %v36287_v63 = vld [vmem:[#allocation46_spill] sm:$0xff] }
 0xb0b   : > { %v29045_v40 = vpop.eup %29044  ;;  %28275 = vmatpush3.msra.mxu1 %v36273_v3  ;;  %28276 = vmatprep.mubr.msk.f32.mxu1 %vm29305_vm3, %v35664_v39  ;;  %v36288_v3 = vld [vmem:[#allocation45_spill] sm:$0xff] }
 0xb0c   : > { %v20230_v44 = vmul.f32 %v29045_v40, %v33543_v55  ;;  %28272 = vmatmul.mubr.msk.f32.vlgmr.msra.gmra.mxu0 %vm4524_vm6, %v20229_v61  ;;  %28284 = vmatprep.subr.mxu1 %v35664_v39 }
 0xb0d   : > { %v29047_v62 = vpop.eup %29046  ;;  %28280 = vmatpush3.msra.mxu0 %v36274_v14  ;;  %28281 = vmatprep.mubr.msk.f32.mxu0 %vm29305_vm3, %v35664_v39 }
 0xb0e   : > { %v20231_v45 = vmul.f32 %v29047_v62, %v33547_v12  ;;  %28289 = vmatprep.subr.mxu0 %v35664_v39  ;;  %28277 = vmatmul.mubr.msk.f32.vlgmr.msra.gmra.mxu1 %vm4524_vm6, %v20230_v44 }
 0xb0f   : > { %v29049_v20 = vpop.eup %29048  ;;  %28285 = vmatpush3.msra.mxu1 %v36275_v19  ;;  %28286 = vmatprep.mubr.msk.f32.mxu1 %vm29305_vm3, %v35664_v39 }
 0xb10   : > { %v20232_v55 = vmul.f32 %v29049_v20, %v33551_v57  ;;  %28282 = vmatmul.mubr.msk.f32.vlgmr.msra.gmra.mxu0 %vm4524_vm6, %v20231_v45  ;;  %28294 = vmatprep.subr.mxu1 %v35664_v39  ;;  %v36289_v20 = vld [vmem:[#allocation44_spill] sm:$0xff] }
 0xb11   : > { %v29051_v21 = vpop.eup %29050  ;;  %28290 = vmatpush3.msra.mxu0 %v36276_v54  ;;  %28291 = vmatprep.mubr.msk.f32.mxu0 %vm29305_vm3, %v35664_v39 }
 0xb12   : > { %v20233_v12 = vmul.f32 %v29051_v21, %v33555_v13  ;;  %28299 = vmatprep.subr.mxu0 %v35664_v39  ;;  %28287 = vmatmul.mubr.msk.f32.vlgmr.msra.gmra.mxu1 %vm4524_vm6, %v20232_v55 }
 0xb13   : > { %v29053_v42 = vpop.eup %29052  ;;  %28295 = vmatpush3.msra.mxu1 %v36277_v56  ;;  %28296 = vmatprep.mubr.msk.f32.mxu1 %vm29305_vm3, %v35664_v39 }
 0xb14   : > { %v20234_v57 = vmul.f32 %v29053_v42, %v33559_v2  ;;  %28292 = vmatmul.mubr.msk.f32.vlgmr.msra.gmra.mxu0 %vm4524_vm6, %v20233_v12  ;;  %28304 = vmatprep.subr.mxu1 %v35664_v39  ;;  %v36290_v12 = vld [vmem:[#allocation43_spill] sm:$0xff] }
 0xb15   : > { %v29055_v11 = vpop.eup %29054  ;;  %28300 = vmatpush3.msra.mxu0 %v36278_v60  ;;  %28301 = vmatprep.mubr.msk.f32.mxu0 %vm29305_vm3, %v35664_v39  ;;  %v36291_v60 = vld [vmem:[#allocation50_spill] sm:$0xff] }
 0xb16   : > { %v20235_v13 = vmul.f32 %v29055_v11, %v33563_v5  ;;  %28297 = vmatmul.mubr.msk.f32.vlgmr.msra.gmra.mxu1 %vm4524_vm6, %v20234_v57  ;;  %28309 = vmatprep.subr.mxu0 %v22640_v1  ;;  %v22638_v5 = vld [vmem:[#allocation2 + $0x88] sm:$0xff] }
 0xb17   : > { %v29057_v7 = vpop.eup %29056  ;;  %28305 = vmatpush3.msra.mxu1 %v36279_v48  ;;  %28306 = vmatprep.mubr.msk.f32.mxu1 %vm29305_vm3, %v35664_v39  ;;  %v36280_v39 = vld [vmem:[#allocation181_spill] sm:$0xff]  ;;  %vm24121_vm3 = vcmask 523264  }
 0xb18   : > { %v20236_v2 = vmul.f32 %v29057_v7, %v33567_v10  ;;  %28302 = vmatmul.mubr.msk.f32.vlgmr.msra.gmra.mxu0 %vm4524_vm6, %v20235_v13 }
 0xb19   : > { %28310 = vmatpush3.msra.mxu0 %v22640_v1  ;;  %v36292_v1 = vld [vmem:[#allocation49_spill] sm:$0xff] }
 0xb1a   : > { %28307 = vmatmul.mubr.msk.f32.vlgmr.msra.gmra.mxu1 %vm4524_vm6, %v20236_v2  ;;  %28311 = vmatprep.subr.mxu0 %v22639_v9  ;;  %vm25010_vm6 = vcmask 1042434  }
 0xb1b   : > { %28312 = vmatpush3.msra.mxu0 %v22639_v9 }
 0xb1c   : > { %28313 = vmatprep.subr.mxu0 %v22638_v5 }
 0xb1d   : > { %28314 = vmatpush3.msra.mxu0 %v22638_v5 }
 0xb1e   : > { %28315 = vmatprep.subr.mxu0 %v22637_v0 }
 0xb1f   : > { %28316 = vmatpush3.msra.mxu0 %v22637_v0 }
 0xb9c   : > { %v20306_v27 = vpop.f32.mrf.mxu0 }
 0xb9d   : > { %v22573_v4 = vmul.f32 %v36280_v39, %v20306_v27 }
 0xb9e   : > { %v28153_v10 = vpop.f32.mrf.mxu0  ;;  %v20379_v24 = vpop.f32.mrf.mxu1 }
 0xb9f   : > { %v22605_v31 = vadd.f32 %v22573_v4, %v36281_v23  ;;  %v22574_v51 = vmul.f32 %v36280_v39, %v20379_v24  ;;  %v36293_v4 = vld [vmem:[#allocation48_spill] sm:$0xff] }
 0xba0   : > { %v20452_v25 = vpop.f32.mrf.mxu0  ;;  %v28158_v38 = vpop.f32.mrf.mxu1 }
 0xba1   : > { %v22606_v34 = vadd.f32 %v22574_v51, %v36282_v53  ;;  %v22575_v17 = vmul.f32 %v36280_v39, %v20452_v25  ;;  %28317 = vmatprep.mubr.msk.f32.mxu0 %vm727_vm0, %v22605_v31  ;;  %v36294_v51 = vld [vmem:[#allocation47_spill] sm:$0xff] }
 0xba2   : > { %v28163_v41 = vpop.f32.mrf.mxu0  ;;  %v20525_v15 = vpop.f32.mrf.mxu1 }
 0xba3   : > { %v22607_v16 = vadd.f32 %v22575_v17, %v36283_v46  ;;  %v22576_v35 = vmul.f32 %v36280_v39, %v20525_v15  ;;  %28318 = vmatmul.mubr.msk.f32.vlgmr.msra.gmra.mxu0 %vm727_vm0, %v22606_v34  ;;  %v36295_v17 = vld [vmem:[#allocation54_spill] sm:$0xff] }
 0xba4   : > { %v20598_v43 = vpop.f32.mrf.mxu0  ;;  %v28168_v47 = vpop.f32.mrf.mxu1 }
 0xba5   : > { %v22608_v52 = vadd.f32 %v22576_v35, %v36284_v36  ;;  %v22577_v58 = vmul.f32 %v36280_v39, %v20598_v43  ;;  %28320 = vmatprep.mubr.msk.f32.mxu0 %vm727_vm0, %v22607_v16  ;;  %v36296_v35 = vld [vmem:[#allocation53_spill] sm:$0xff] }
 0xba6   : > { %v28173_v50 = vpop.f32.mrf.mxu0  ;;  %v20671_v18 = vpop.f32.mrf.mxu1 }
 0xba7   : > { %v22609_v29 = vadd.f32 %v22577_v58, %v36285_v32  ;;  %v22578_v33 = vmul.f32 %v36280_v39, %v20671_v18  ;;  %28321 = vmatmul.mubr.msk.f32.gmra.mxu0 %vm727_vm0, %v22608_v52  ;;  %v36297_v58 = vld [vmem:[#allocation51_spill] sm:$0xff] }
 0xba8   : > { %v20744_v28 = vpop.f32.mrf.mxu0  ;;  %v28178_v22 = vpop.f32.mrf.mxu1 }
 0xba9   : > { %v22610_v49 = vadd.f32 %v22578_v33, %v36286_v6  ;;  %v22579_v8 = vmul.f32 %v36280_v39, %v20744_v28  ;;  %28323 = vmatprep.mubr.msk.f32.mxu0 %vm727_vm0, %v22609_v29  ;;  %v36298_v33 = vld [vmem:[#allocation52_spill] sm:$0xff] }
 0xbaa   : > { %v28183_v59 = vpop.f32.mrf.mxu0  ;;  %v20817_v26 = vpop.f32.mrf.mxu1 }
 0xbab   : > { %v22611_v30 = vadd.f32 %v22579_v8, %v36287_v63  ;;  %v22580_v37 = vmul.f32 %v36280_v39, %v20817_v26  ;;  %28324 = vmatmul.mubr.msk.f32.gmra.mxu0 %vm727_vm0, %v22610_v49  ;;  %v36299_v8 = vld [vmem:[#allocation58_spill] sm:$0xff] }
 0xbac   : > { %v20890_v61 = vpop.f32.mrf.mxu0  ;;  %v28188_v40 = vpop.f32.mrf.mxu1 }
 0xbad   : > { %v22612_v44 = vadd.f32 %v22580_v37, %v36288_v3  ;;  %v22581_v62 = vmul.f32 %v36280_v39, %v20890_v61  ;;  %28326 = vmatprep.mubr.msk.f32.mxu0 %vm727_vm0, %v22611_v30  ;;  %v36300_v37 = vld [vmem:[#allocation57_spill] sm:$0xff] }
 0xbae   : > { %v28193_v14 = vpop.f32.mrf.mxu0  ;;  %v20963_v45 = vpop.f32.mrf.mxu1 }
 0xbaf   : > { %v22613_v19 = vadd.f32 %v22581_v62, %v36289_v20  ;;  %v22582_v55 = vmul.f32 %v36280_v39, %v20963_v45  ;;  %28327 = vmatmul.mubr.msk.f32.gmra.mxu0 %vm727_vm0, %v22612_v44  ;;  %v36301_v62 = vld [vmem:[#allocation56_spill] sm:$0xff] }
 0xbb0   : > { %v21036_v21 = vpop.f32.mrf.mxu0  ;;  %v28198_v54 = vpop.f32.mrf.mxu1 }
 0xbb1   : > { %v22614_v42 = vadd.f32 %v22582_v55, %v36290_v12  ;;  %v22583_v56 = vmul.f32 %v36280_v39, %v21036_v21  ;;  %28329 = vmatprep.mubr.msk.f32.mxu0 %vm727_vm0, %v22613_v19  ;;  %v36302_v55 = vld [vmem:[#allocation55_spill] sm:$0xff] }
 0xbb2   : > { %v28203_v57 = vpop.f32.mrf.mxu0  ;;  %v21109_v11 = vpop.f32.mrf.mxu1 }
 0xbb3   : > { %v22615_v13 = vadd.f32 %v22583_v56, %v36291_v60  ;;  %v22584_v7 = vmul.f32 %v36280_v39, %v21109_v11  ;;  %28330 = vmatmul.mubr.msk.f32.gmra.mxu0 %vm727_vm0, %v22614_v42  ;;  %v36303_v56 = vld [vmem:[#allocation62_spill] sm:$0xff] }
 0xbb4   : > { %v21182_v48 = vpop.f32.mrf.mxu0  ;;  %v28208_v2 = vpop.f32.mrf.mxu1 }
 0xbb5   : > { %v22616_v9 = vadd.f32 %v22584_v7, %v36292_v1  ;;  %v22585_v5 = vmul.f32 %v36280_v39, %v21182_v48  ;;  %28332 = vmatprep.mubr.msk.f32.mxu0 %vm727_vm0, %v22615_v13  ;;  %v36304_v7 = vld [vmem:[#allocation61_spill] sm:$0xff] }
 0xbb6   : > { %v28213_v0 = vpop.f32.mrf.mxu0  ;;  %v21255_v27 = vpop.f32.mrf.mxu1 }
 0xbb7   : > { %v22617_v10 = vadd.f32 %v22585_v5, %v36293_v4  ;;  %v22586_v24 = vmul.f32 %v36280_v39, %v21255_v27  ;;  %28333 = vmatmul.mubr.msk.f32.gmra.mxu0 %vm727_vm0, %v22616_v9  ;;  %v36305_v5 = vld [vmem:[#allocation60_spill] sm:$0xff] }
 0xbb8   : > { %v21328_v23 = vpop.f32.mrf.mxu0  ;;  %v28218_v31 = vpop.f32.mrf.mxu1 }
 0xbb9   : > { %v22618_v25 = vadd.f32 %v22586_v24, %v36294_v51  ;;  %v22587_v38 = vmul.f32 %v36280_v39, %v21328_v23  ;;  %28335 = vmatprep.mubr.msk.f32.mxu0 %vm727_vm0, %v22617_v10  ;;  %v36306_v24 = vld [vmem:[#allocation59_spill] sm:$0xff] }
 0xbba   : > { %v28223_v53 = vpop.f32.mrf.mxu0  ;;  %v21401_v34 = vpop.f32.mrf.mxu1 }
 0xbbb   : > { %v22619_v41 = vadd.f32 %v22587_v38, %v36295_v17  ;;  %v22588_v15 = vmul.f32 %v36280_v39, %v21401_v34  ;;  %28336 = vmatmul.mubr.msk.f32.gmra.mxu0 %vm727_vm0, %v22618_v25  ;;  %v36307_v38 = vld [vmem:[#allocation66_spill] sm:$0xff] }
 0xbbc   : > { %v21474_v46 = vpop.f32.mrf.mxu0  ;;  %v28228_v16 = vpop.f32.mrf.mxu1 }
 0xbbd   : > { %v22620_v43 = vadd.f32 %v22588_v15, %v36296_v35  ;;  %v22589_v47 = vmul.f32 %v36280_v39, %v21474_v46  ;;  %28338 = vmatprep.mubr.msk.f32.mxu0 %vm727_vm0, %v22619_v41  ;;  %v36308_v15 = vld [vmem:[#allocation65_spill] sm:$0xff] }
 0xbbe   : > { %v28233_v36 = vpop.f32.mrf.mxu0  ;;  %v21547_v52 = vpop.f32.mrf.mxu1 }
 0xbbf   : > { %v22621_v50 = vadd.f32 %v22589_v47, %v36297_v58  ;;  %v22590_v18 = vmul.f32 %v36280_v39, %v21547_v52  ;;  %28339 = vmatmul.mubr.msk.f32.gmra.mxu0 %vm727_vm0, %v22620_v43  ;;  %v36309_v47 = vld [vmem:[#allocation64_spill] sm:$0xff] }
 0xbc0   : > { %v21620_v32 = vpop.f32.mrf.mxu0  ;;  %v28238_v29 = vpop.f32.mrf.mxu1 }
 0xbc1   : > { %v22622_v28 = vadd.f32 %v22590_v18, %v36298_v33  ;;  %v22591_v22 = vmul.f32 %v36280_v39, %v21620_v32  ;;  %28341 = vmatprep.mubr.msk.f32.mxu0 %vm727_vm0, %v22621_v50  ;;  %v36310_v18 = vld [vmem:[#allocation63_spill] sm:$0xff] }
 0xbc2   : > { %v28243_v6 = vpop.f32.mrf.mxu0  ;;  %v21693_v49 = vpop.f32.mrf.mxu1 }
 0xbc3   : > { %v22623_v59 = vadd.f32 %v22591_v22, %v36299_v8  ;;  %v22592_v26 = vmul.f32 %v36280_v39, %v21693_v49  ;;  %28342 = vmatmul.mubr.msk.f32.gmra.mxu0 %vm727_vm0, %v22622_v28  ;;  %v36311_v22 = vld [vmem:[#allocation70_spill] sm:$0xff] }
 0xbc4   : > { %v21766_v63 = vpop.f32.mrf.mxu0  ;;  %v28248_v30 = vpop.f32.mrf.mxu1 }
 0xbc5   : > { %v22624_v61 = vadd.f32 %v22592_v26, %v36300_v37  ;;  %v22593_v40 = vmul.f32 %v36280_v39, %v21766_v63  ;;  %28344 = vmatprep.mubr.msk.f32.mxu0 %vm727_vm0, %v22623_v59  ;;  %v36312_v59 = vld [vmem:[#allocation69_spill] sm:$0xff] }
 0xbc6   : > { %v28253_v3 = vpop.f32.mrf.mxu0  ;;  %v21839_v44 = vpop.f32.mrf.mxu1  ;;  %v33852_v63 = vld [vmem:[%s35327_s2 + $0x3] ss:$0 sm:$0xff] }
 0xbc7   : > { %v22625_v14 = vadd.f32 %v22593_v40, %v36301_v62  ;;  %v22594_v45 = vmul.f32 %v36280_v39, %v21839_v44  ;;  %28345 = vmatmul.mubr.msk.f32.gmra.mxu0 %vm727_vm0, %v22624_v61  ;;  %v36313_v40 = vld [vmem:[#allocation7_spill] sm:$0xff]  ;;  %v36314_v62 = vld [vmem:[#allocation6_spill] sm:$0xff] }
 0xbc8   : > { %v21912_v20 = vpop.f32.mrf.mxu0  ;;  %v28258_v19 = vpop.f32.mrf.mxu1 }
 0xbc9   : > { %v22626_v21 = vadd.f32 %v22594_v45, %v36302_v55  ;;  %v22595_v54 = vmul.f32 %v36280_v39, %v21912_v20  ;;  %28347 = vmatprep.mubr.msk.f32.mxu0 %vm727_vm0, %v22625_v14  ;;  %v36315_v55 = vld [vmem:[#allocation9_spill] sm:$0xff] }
 0xbca   : > { %v28263_v12 = vpop.f32.mrf.mxu0  ;;  %v21985_v42 = vpop.f32.mrf.mxu1 }
 0xbcb   : > { %v22627_v57 = vadd.f32 %v22595_v54, %v36303_v56  ;;  %v22596_v11 = vmul.f32 %v36280_v39, %v21985_v42  ;;  %28348 = vmatmul.mubr.msk.f32.gmra.mxu0 %vm727_vm0, %v22626_v21  ;;  %v36316_v56 = vld [vmem:[#allocation8_spill] sm:$0xff] }
 0xbcc   : > { %v22058_v60 = vpop.f32.mrf.mxu0  ;;  %v28268_v13 = vpop.f32.mrf.mxu1 }
 0xbcd   : > { %v22628_v48 = vadd.f32 %v22596_v11, %v36304_v7  ;;  %v22597_v2 = vmul.f32 %v36280_v39, %v22058_v60  ;;  %28350 = vmatprep.mubr.msk.f32.mxu0 %vm727_vm0, %v22627_v57  ;;  %v36317_v7 = vld [vmem:[#allocation10_spill] sm:$0xff] }
 0xbce   : > { %v28273_v1 = vpop.f32.mrf.mxu0  ;;  %v22131_v9 = vpop.f32.mrf.mxu1 }
 0xbcf   : > { %v22629_v0 = vadd.f32 %v22597_v2, %v36305_v5  ;;  %v22598_v27 = vmul.f32 %v36280_v39, %v22131_v9  ;;  %28351 = vmatmul.mubr.msk.f32.gmra.mxu0 %vm727_vm0, %v22628_v48  ;;  %v36318_v5 = vld [vmem:[#allocation11_spill] sm:$0xff] }
 0xbd0   : > { %v22204_v4 = vpop.f32.mrf.mxu0  ;;  %v28278_v10 = vpop.f32.mrf.mxu1 }
 0xbd1   : > { %v22630_v23 = vadd.f32 %v22598_v27, %v36306_v24  ;;  %v22599_v31 = vmul.f32 %v36280_v39, %v22204_v4  ;;  %28353 = vmatprep.mubr.msk.f32.mxu0 %vm727_vm0, %v22629_v0  ;;  %v36319_v24 = vld [vmem:[#allocation12_spill] sm:$0xff] }
 0xbd2   : > { %v28283_v51 = vpop.f32.mrf.mxu0  ;;  %v22277_v25 = vpop.f32.mrf.mxu1 }
 0xbd3   : > { %v22631_v53 = vadd.f32 %v22599_v31, %v36307_v38  ;;  %v22600_v34 = vmul.f32 %v36280_v39, %v22277_v25  ;;  %28354 = vmatmul.mubr.msk.f32.gmra.mxu0 %vm727_vm0, %v22630_v23  ;;  %v36320_v38 = vld [vmem:[#allocation13_spill] sm:$0xff] }
 0xbd4   : > { %v22350_v17 = vpop.f32.mrf.mxu0  ;;  %v28288_v41 = vpop.f32.mrf.mxu1 }
 0xbd5   : > { %v22632_v46 = vadd.f32 %v22600_v34, %v36308_v15  ;;  %v22601_v16 = vmul.f32 %v36280_v39, %v22350_v17  ;;  %28356 = vmatprep.mubr.msk.f32.mxu0 %vm727_vm0, %v22631_v53  ;;  %v36321_v15 = vld [vmem:[#allocation14_spill] sm:$0xff] }
 0xbd6   : > { %v28293_v35 = vpop.f32.mrf.mxu0  ;;  %v22423_v43 = vpop.f32.mrf.mxu1 }
 0xbd7   : > { %v22633_v36 = vadd.f32 %v22601_v16, %v36309_v47  ;;  %v22602_v52 = vmul.f32 %v36280_v39, %v22423_v43  ;;  %28357 = vmatmul.mubr.msk.f32.gmra.mxu0 %vm727_vm0, %v22632_v46  ;;  %v36322_v47 = vld [vmem:[#allocation15_spill] sm:$0xff] }
 0xbd8   : > { %v22496_v58 = vpop.f32.mrf.mxu0  ;;  %v28298_v50 = vpop.f32.mrf.mxu1 }
 0xbd9   : > { %v22634_v32 = vadd.f32 %v22602_v52, %v36310_v18  ;;  %v22603_v29 = vmul.f32 %v36280_v39, %v22496_v58  ;;  %28359 = vmatprep.mubr.msk.f32.mxu0 %vm727_vm0, %v22633_v36  ;;  %v36323_v18 = vld [vmem:[#allocation16_spill] sm:$0xff] }
 0xbda   : > { %v28303_v33 = vpop.f32.mrf.mxu0  ;;  %v22569_v28 = vpop.f32.mrf.mxu1 }
 0xbdb   : > { %v22635_v6 = vadd.f32 %v22603_v29, %v36311_v22  ;;  %v22604_v49 = vmul.f32 %v36280_v39, %v22569_v28  ;;  %28360 = vmatmul.mubr.msk.f32.gmra.mxu0 %vm727_vm0, %v22634_v32  ;;  %v36324_v22 = vld [vmem:[#allocation17_spill] sm:$0xff] }
 0xbdc   : > { %v28308_v8 = vpop.f32.mrf.mxu1 }
 0xbdd   : > { %v22636_v26 = vadd.f32 %v22604_v49, %v36312_v59  ;;  %28362 = vmatprep.mubr.msk.f32.mxu0 %vm727_vm0, %v22635_v6 }
 0xbdf   : > { %28363 = vmatmul.mubr.msk.f32.gmra.mxu0 %vm727_vm0, %v22636_v26  ;;  %v36325_v26 = vld [vmem:[#allocation18_spill] sm:$0xff] }
 0xc63   : > { %v28319_v30 = vpop.f32.mrf.mxu0 }
 0xc64   : > { %v22814_v37 = vadd.f32 %v28319_v30, %v33852_v63 }
 0xc65   : > { %v22808_v61 = vpop.f32.mrf.mxu0 }
 0xc66   : > { %v33856_v39 = vadd.f32 %v22814_v37, %v36313_v40  ;;  %v22809_v3 = vadd.f32 %v33852_v63, %v22808_v61 }
 0xc67   : > { %v28322_v44 = vpop.f32.mrf.mxu0 }
 0xc68   : > { %v33860_v14 = vadd.f32 %v22809_v3, %v36314_v62  ;;  %v22824_v45 = vadd.f32 %v28322_v44, %v33852_v63  ;;  %v23004_v20 = vsel %vm727_vm0, %v33856_v39, 0.0  ;;  %v36326_v3 = vld [vmem:[#allocation19_spill] sm:$0xff] }
 0xc69   : > { %23005 = vadd.xlane.f32.xlu0 %v23004_v20  ;;  %v22818_v19 = vpop.f32.mrf.mxu0 }
 0xc6a   : > { %v33866_v21 = vadd.f32 %v22824_v45, %v36315_v55  ;;  %v22819_v54 = vadd.f32 %v33852_v63, %v22818_v19  ;;  %v23001_v12 = vsel %vm727_vm0, %v33860_v14, 0.0  ;;  %v36327_v19 = vld [vmem:[#allocation20_spill] sm:$0xff] }
 0xc6b   : > { %23002 = vadd.xlane.f32.xlu1 %v23001_v12  ;;  %v28325_v42 = vpop.f32.mrf.mxu0 }
 0xc6c   : > { %v33872_v57 = vadd.f32 %v22819_v54, %v36316_v56  ;;  %v22834_v11 = vadd.f32 %v28325_v42, %v33852_v63  ;;  %v23010_v60 = vsel %vm727_vm0, %v33866_v21, 0.0  ;;  %v36328_v56 = vld [vmem:[#allocation21_spill] sm:$0xff] }
 0xc6d   : > { %23011 = vadd.xlane.f32.xlu0 %v23010_v60  ;;  %v22828_v13 = vpop.f32.mrf.mxu0 }
 0xc6e   : > { %v33878_v48 = vadd.f32 %v22834_v11, %v36317_v7  ;;  %v22829_v2 = vadd.f32 %v33852_v63, %v22828_v13  ;;  %v23007_v1 = vsel %vm727_vm0, %v33872_v57, 0.0 }
 0xc6f   : > { %23008 = vadd.xlane.f32.xlu1 %v23007_v1  ;;  %v28328_v9 = vpop.f32.mrf.mxu0 }
 0xc70   : > { %v33884_v0 = vadd.f32 %v22829_v2, %v36318_v5  ;;  %v22844_v27 = vadd.f32 %v28328_v9, %v33852_v63  ;;  %v23016_v4 = vsel %vm727_vm0, %v33878_v48, 0.0  ;;  %v36329_v2 = vld [vmem:[#allocation22_spill] sm:$0xff] }
 0xc71   : > { %23017 = vadd.xlane.f32.xlu0 %v23016_v4  ;;  %v22838_v10 = vpop.f32.mrf.mxu0  ;;  %v36330_v4 = vld [vmem:[#allocation23_spill] sm:$0xff] }
 0xc72   : > { %v33890_v23 = vadd.f32 %v22844_v27, %v36319_v24  ;;  %v22839_v31 = vadd.f32 %v33852_v63, %v22838_v10  ;;  %v23013_v51 = vsel %vm727_vm0, %v33884_v0, 0.0 }
 0xc73   : > { %23014 = vadd.xlane.f32.xlu1 %v23013_v51  ;;  %v28331_v25 = vpop.f32.mrf.mxu0 }
 0xc74   : > { %v33896_v53 = vadd.f32 %v22839_v31, %v36320_v38  ;;  %v22854_v34 = vadd.f32 %v28331_v25, %v33852_v63  ;;  %v23022_v17 = vsel %vm727_vm0, %v33890_v23, 0.0  ;;  %v36331_v25 = vld [vmem:[#allocation24_spill] sm:$0xff] }
 0xc75   : > { %23023 = vadd.xlane.f32.xlu0 %v23022_v17  ;;  %v22848_v41 = vpop.f32.mrf.mxu0 }
 0xc76   : > { %v33902_v46 = vadd.f32 %v22854_v34, %v36321_v15  ;;  %v22849_v16 = vadd.f32 %v33852_v63, %v22848_v41  ;;  %v23019_v35 = vsel %vm727_vm0, %v33896_v53, 0.0  ;;  %v36332_v15 = vld [vmem:[#allocation25_spill] sm:$0xff] }
 0xc77   : > { %23020 = vadd.xlane.f32.xlu1 %v23019_v35  ;;  %v28334_v43 = vpop.f32.mrf.mxu0 }
 0xc78   : > { %v33908_v36 = vadd.f32 %v22849_v16, %v36322_v47  ;;  %v22864_v52 = vadd.f32 %v28334_v43, %v33852_v63  ;;  %v23028_v58 = vsel %vm727_vm0, %v33902_v46, 0.0 }
 0xc79   : > { %23029 = vadd.xlane.f32.xlu0 %v23028_v58  ;;  %v22858_v50 = vpop.f32.mrf.mxu0 }
 0xc7a   : > { %v33914_v32 = vadd.f32 %v22864_v52, %v36323_v18  ;;  %v22859_v29 = vadd.f32 %v33852_v63, %v22858_v50  ;;  %v23025_v33 = vsel %vm727_vm0, %v33908_v36, 0.0  ;;  %v36333_v52 = vld [vmem:[#allocation27_spill] sm:$0xff] }
 0xc7b   : > { %23026 = vadd.xlane.f32.xlu1 %v23025_v33  ;;  %v28337_v28 = vpop.f32.mrf.mxu0  ;;  %v36334_v33 = vld [vmem:[#allocation26_spill] sm:$0xff] }
 0xc7c   : > { %v33920_v6 = vadd.f32 %v22859_v29, %v36324_v22  ;;  %v22874_v49 = vadd.f32 %v28337_v28, %v33852_v63  ;;  %v23034_v8 = vsel %vm727_vm0, %v33914_v32, 0.0 }
 0xc7d   : > { %23035 = vadd.xlane.f32.xlu0 %v23034_v8  ;;  %v22868_v59 = vpop.f32.mrf.mxu0 }
 0xc7e   : > { %v33926_v30 = vadd.f32 %v22874_v49, %v36325_v26  ;;  %v22869_v37 = vadd.f32 %v33852_v63, %v22868_v59  ;;  %v23031_v61 = vsel %vm727_vm0, %v33920_v6, 0.0  ;;  %v36335_v59 = vld [vmem:[#allocation29_spill] sm:$0xff] }
 0xc7f   : > { %23032 = vadd.xlane.f32.xlu1 %v23031_v61  ;;  %v28340_v40 = vpop.f32.mrf.mxu0 }
 0xc80   : > { %v33932_v44 = vadd.f32 %v22869_v37, %v36326_v3  ;;  %v22884_v62 = vadd.f32 %v28340_v40, %v33852_v63  ;;  %v23040_v45 = vsel %vm727_vm0, %v33926_v30, 0.0  ;;  %v36336_v3 = vld [vmem:[#allocation28_spill] sm:$0xff] }
 0xc81   : > { %23041 = vadd.xlane.f32.xlu0 %v23040_v45  ;;  %v22878_v20 = vpop.f32.mrf.mxu0 }
 0xc82   : > { %v33938_v55 = vadd.f32 %v22884_v62, %v36327_v19  ;;  %v22879_v54 = vadd.f32 %v33852_v63, %v22878_v20  ;;  %v23037_v12 = vsel %vm727_vm0, %v33932_v44, 0.0 }
 0xc83   : > { %23038 = vadd.xlane.f32.xlu1 %v23037_v12  ;;  %v28343_v42 = vpop.f32.mrf.mxu0 }
 0xc84   : > { %v33944_v11 = vadd.f32 %v22879_v54, %v36328_v56  ;;  %v22894_v60 = vadd.f32 %v28343_v42, %v33852_v63  ;;  %v23046_v13 = vsel %vm727_vm0, %v33938_v55, 0.0  ;;  %v36337_v54 = vld [vmem:[#allocation31_spill] sm:$0xff] }
 0xc85   : > { %23047 = vadd.xlane.f32.xlu0 %v23046_v13  ;;  %v22888_v7 = vpop.f32.mrf.mxu0  ;;  %v36338_v13 = vld [vmem:[#allocation30_spill] sm:$0xff] }
 0xc86   : > { %v33950_v1 = vadd.f32 %v22894_v60, %v36329_v2  ;;  %v22889_v9 = vadd.f32 %v33852_v63, %v22888_v7  ;;  %v23043_v5 = vsel %vm727_vm0, %v33944_v11, 0.0 }
 0xc87   : > { %23044 = vadd.xlane.f32.xlu1 %v23043_v5  ;;  %v28346_v27 = vpop.f32.mrf.mxu0 }
 0xc88   : > { %v33956_v10 = vadd.f32 %v22889_v9, %v36330_v4  ;;  %v22904_v24 = vadd.f32 %v28346_v27, %v33852_v63  ;;  %v23052_v31 = vsel %vm727_vm0, %v33950_v1, 0.0  ;;  %v36339_v27 = vld [vmem:[#allocation33_spill] sm:$0xff] }
 0xc89   : > { %23053 = vadd.xlane.f32.xlu0 %v23052_v31  ;;  %v22898_v51 = vpop.f32.mrf.mxu0 }
 0xc8a   : > { %v33962_v38 = vadd.f32 %v22904_v24, %v36331_v25  ;;  %v22899_v34 = vadd.f32 %v33852_v63, %v22898_v51  ;;  %v23049_v17 = vsel %vm727_vm0, %v33956_v10, 0.0  ;;  %v36340_v25 = vld [vmem:[#allocation32_spill] sm:$0xff] }
 0xc8b   : > { %23050 = vadd.xlane.f32.xlu1 %v23049_v17  ;;  %v28349_v41 = vpop.f32.mrf.mxu0 }
 0xc8c   : > { %v33968_v16 = vadd.f32 %v22899_v34, %v36332_v15  ;;  %v22914_v35 = vadd.f32 %v28349_v41, %v33852_v63  ;;  %v23058_v43 = vsel %vm727_vm0, %v33962_v38, 0.0 }
 0xc8d   : > { %23059 = vadd.xlane.f32.xlu0 %v23058_v43  ;;  %v22908_v47 = vpop.f32.mrf.mxu0 }
 0xc8e   : > { %v33974_v58 = vadd.f32 %v22914_v35, %v36333_v52  ;;  %v22909_v50 = vadd.f32 %v33852_v63, %v22908_v47  ;;  %v23055_v18 = vsel %vm727_vm0, %v33968_v16, 0.0  ;;  %v36341_v35 = vld [vmem:[#allocation35_spill] sm:$0xff] }
 0xc8f   : > { %23056 = vadd.xlane.f32.xlu1 %v23055_v18  ;;  %v28352_v29 = vpop.f32.mrf.mxu0  ;;  %v36342_v18 = vld [vmem:[#allocation34_spill] sm:$0xff] }
 0xc90   : > { %v33980_v28 = vadd.f32 %v22909_v50, %v36334_v33  ;;  %v22924_v22 = vadd.f32 %v28352_v29, %v33852_v63  ;;  %v23064_v49 = vsel %vm727_vm0, %v33974_v58, 0.0 }
 0xc91   : > { %23065 = vadd.xlane.f32.xlu0 %v23064_v49  ;;  %v22918_v8 = vpop.f32.mrf.mxu0 }
 0xc92   : > { %v33986_v26 = vadd.f32 %v22924_v22, %v36335_v59  ;;  %v22919_v37 = vadd.f32 %v33852_v63, %v22918_v8  ;;  %v23061_v61 = vsel %vm727_vm0, %v33980_v28, 0.0  ;;  %v36343_v8 = vld [vmem:[#allocation37_spill] sm:$0xff] }
 0xc93   : > { %23062 = vadd.xlane.f32.xlu1 %v23061_v61  ;;  %v28355_v40 = vpop.f32.mrf.mxu0 }
 0xc94   : > { %v33992_v62 = vadd.f32 %v22919_v37, %v36336_v3  ;;  %v22934_v45 = vadd.f32 %v28355_v40, %v33852_v63  ;;  %v23070_v20 = vsel %vm727_vm0, %v33986_v26, 0.0  ;;  %v36344_v40 = vld [vmem:[#allocation36_spill] sm:$0xff] }
 0xc95   : > { %23071 = vadd.xlane.f32.xlu0 %v23070_v20  ;;  %v22928_v19 = vpop.f32.mrf.mxu0 }
 0xc96   : > { %v33998_v12 = vadd.f32 %v22934_v45, %v36337_v54  ;;  %v22929_v42 = vadd.f32 %v33852_v63, %v22928_v19  ;;  %v23067_v56 = vsel %vm727_vm0, %v33992_v62, 0.0 }
 0xc97   : > { %23068 = vadd.xlane.f32.xlu1 %v23067_v56  ;;  %v28358_v60 = vpop.f32.mrf.mxu0 }
 0xc98   : > { %v34004_v7 = vadd.f32 %v22929_v42, %v36338_v13  ;;  %v22944_v2 = vadd.f32 %v28358_v60, %v33852_v63  ;;  %v23076_v9 = vsel %vm727_vm0, %v33998_v12, 0.0 }
 0xc99   : > { %23077 = vadd.xlane.f32.xlu0 %v23076_v9  ;;  %v22938_v5 = vpop.f32.mrf.mxu0 }
 0xc9a   : > { %v34010_v4 = vadd.f32 %v22944_v2, %v36339_v27  ;;  %v22939_v24 = vadd.f32 %v33852_v63, %v22938_v5  ;;  %v23073_v31 = vsel %vm727_vm0, %v34004_v7, 0.0 }
 0xc9b   : > { %23074 = vadd.xlane.f32.xlu1 %v23073_v31  ;;  %v28361_v51 = vpop.f32.mrf.mxu0 }
 0xc9c   : > { %v34016_v34 = vadd.f32 %v22939_v24, %v36340_v25  ;;  %v22954_v17 = vadd.f32 %v28361_v51, %v33852_v63  ;;  %v23082_v41 = vsel %vm727_vm0, %v34010_v4, 0.0 }
 0xc9d   : > { %23083 = vadd.xlane.f32.xlu0 %v23082_v41  ;;  %v22948_v15 = vpop.f32.mrf.mxu0 }
 0xc9e   : > { %v34022_v43 = vadd.f32 %v22954_v17, %v36341_v35  ;;  %v22949_v47 = vadd.f32 %v33852_v63, %v22948_v15  ;;  %v23079_v52 = vsel %vm727_vm0, %v34016_v34, 0.0 }
 0xc9f   : > { %23080 = vadd.xlane.f32.xlu1 %v23079_v52  ;;  %v28364_v50 = vpop.f32.mrf.mxu0 }
 0xca0   : > { %v34028_v29 = vadd.f32 %v22949_v47, %v36342_v18  ;;  %v22964_v33 = vadd.f32 %v28364_v50, %v33852_v63  ;;  %v23088_v22 = vsel %vm727_vm0, %v34022_v43, 0.0 }
 0xca1   : > { %23089 = vadd.xlane.f32.xlu0 %v23088_v22  ;;  %v22958_v49 = vpop.f32.mrf.mxu0 }
 0xca2   : > { %v34034_v59 = vadd.f32 %v22964_v33, %v36343_v8  ;;  %v22959_v37 = vadd.f32 %v33852_v63, %v22958_v49  ;;  %v23085_v61 = vsel %vm727_vm0, %v34028_v29, 0.0 }
 0xca3   : > { %23086 = vadd.xlane.f32.xlu1 %v23085_v61 }
 0xca4   : > { %v34040_v3 = vadd.f32 %v22959_v37, %v36344_v40  ;;  %v23094_v45 = vsel %vm727_vm0, %v34034_v59, 0.0 }
 0xca5   : > { %23095 = vadd.xlane.f32.xlu0 %v23094_v45 }
 0xca6   : > { %v23091_v20 = vsel %vm727_vm0, %v34040_v3, 0.0 }
 0xca7   : > { %23092 = vadd.xlane.f32.xlu1 %v23091_v20 }
 0xcf2   : > { %v23006_v19 = vpop.xlane.xlu0 %23005 }
 0xcf3   : > { %v23099_v54 = vmul.f32 0.03125, %v23006_v19 }
 0xcf4   : > { %v23003_v42 = vpop.xlane.xlu1 %23002 }
 0xcf5   : > { %v34047_v63 = vsub.f32 %v33856_v39, %v23099_v54  ;;  %v23098_v56 = vmul.f32 0.03125, %v23003_v42 }
 0xcf6   : > { %v23012_v60 = vpop.xlane.xlu0 %23011 }
 0xcf7   : > { %v34050_v13 = vsub.f32 %v33860_v14, %v23098_v56  ;;  %v23101_v2 = vmul.f32 0.03125, %v23012_v60  ;;  %v23163_v9 = vmul.f32 %v34047_v63, %v34047_v63 }
 0xcf8   : > { %v23009_v5 = vpop.xlane.xlu1 %23008 }
 0xcf9   : > { %v34055_v27 = vsub.f32 %v33866_v21, %v23101_v2  ;;  %v23100_v24 = vmul.f32 0.03125, %v23009_v5  ;;  %v23197_v31 = vsel %vm727_vm0, %v23163_v9, 0.0  ;;  %v23162_v39 = vmul.f32 %v34050_v13, %v34050_v13 }
 0xcfa   : > { %v23018_v51 = vpop.xlane.xlu0 %23017  ;;  %23198 = vadd.xlane.f32.xlu0 %v23197_v31 }
 0xcfb   : > { %v34061_v25 = vsub.f32 %v33872_v57, %v23100_v24  ;;  %v23103_v14 = vmul.f32 0.03125, %v23018_v51  ;;  %v23194_v17 = vsel %vm727_vm0, %v23162_v39, 0.0  ;;  %v23165_v41 = vmul.f32 %v34055_v27, %v34055_v27 }
 0xcfc   : > { %v23015_v15 = vpop.xlane.xlu1 %23014  ;;  %23195 = vadd.xlane.f32.xlu1 %v23194_v17 }
 0xcfd   : > { %v34067_v21 = vsub.f32 %v33878_v48, %v23103_v14  ;;  %v23102_v35 = vmul.f32 0.03125, %v23015_v15  ;;  %v23203_v47 = vsel %vm727_vm0, %v23165_v41, 0.0  ;;  %v23164_v52 = vmul.f32 %v34061_v25, %v34061_v25 }
 0xcfe   : > { %v23024_v50 = vpop.xlane.xlu0 %23023  ;;  %23204 = vadd.xlane.f32.xlu0 %v23203_v47 }
 0xcff   : > { %v34073_v57 = vsub.f32 %v33884_v0, %v23102_v35  ;;  %v23105_v18 = vmul.f32 0.03125, %v23024_v50  ;;  %v23200_v33 = vsel %vm727_vm0, %v23164_v52, 0.0  ;;  %v23167_v22 = vmul.f32 %v34067_v21, %v34067_v21 }
 0xd00   : > { %v23021_v49 = vpop.xlane.xlu1 %23020  ;;  %23201 = vadd.xlane.f32.xlu1 %v23200_v33 }
 0xd01   : > { %v34079_v48 = vsub.f32 %v33890_v23, %v23105_v18  ;;  %v23104_v8 = vmul.f32 0.03125, %v23021_v49  ;;  %v23209_v37 = vsel %vm727_vm0, %v23167_v22, 0.0  ;;  %v23166_v61 = vmul.f32 %v34073_v57, %v34073_v57 }
 0xd02   : > { %v23030_v40 = vpop.xlane.xlu0 %23029  ;;  %23210 = vadd.xlane.f32.xlu0 %v23209_v37 }
 0xd03   : > { %v34085_v0 = vsub.f32 %v33896_v53, %v23104_v8  ;;  %v23107_v45 = vmul.f32 0.03125, %v23030_v40  ;;  %v23206_v20 = vsel %vm727_vm0, %v23166_v61, 0.0  ;;  %v23169_v19 = vmul.f32 %v34079_v48, %v34079_v48 }
 0xd04   : > { %v23027_v54 = vpop.xlane.xlu1 %23026  ;;  %23207 = vadd.xlane.f32.xlu1 %v23206_v20 }
 0xd05   : > { %v34091_v23 = vsub.f32 %v33902_v46, %v23107_v45  ;;  %v23106_v42 = vmul.f32 0.03125, %v23027_v54  ;;  %v23215_v56 = vsel %vm727_vm0, %v23169_v19, 0.0  ;;  %v23168_v60 = vmul.f32 %v34085_v0, %v34085_v0 }
 0xd06   : > { %v23036_v2 = vpop.xlane.xlu0 %23035  ;;  %23216 = vadd.xlane.f32.xlu0 %v23215_v56 }
 0xd07   : > { %v34097_v53 = vsub.f32 %v33908_v36, %v23106_v42  ;;  %v23109_v9 = vmul.f32 0.03125, %v23036_v2  ;;  %v23212_v5 = vsel %vm727_vm0, %v23168_v60, 0.0  ;;  %v23171_v24 = vmul.f32 %v34091_v23, %v34091_v23 }
 0xd08   : > { %v23033_v31 = vpop.xlane.xlu1 %23032  ;;  %23213 = vadd.xlane.f32.xlu1 %v23212_v5 }
 0xd09   : > { %v34103_v46 = vsub.f32 %v33914_v32, %v23109_v9  ;;  %v23108_v39 = vmul.f32 0.03125, %v23033_v31  ;;  %v23221_v51 = vsel %vm727_vm0, %v23171_v24, 0.0  ;;  %v23170_v14 = vmul.f32 %v34097_v53, %v34097_v53 }
 0xd0a   : > { %v23042_v17 = vpop.xlane.xlu0 %23041  ;;  %23222 = vadd.xlane.f32.xlu0 %v23221_v51 }
 0xd0b   : > { %v34109_v36 = vsub.f32 %v33920_v6, %v23108_v39  ;;  %v23111_v41 = vmul.f32 0.03125, %v23042_v17  ;;  %v23218_v15 = vsel %vm727_vm0, %v23170_v14, 0.0  ;;  %v23173_v35 = vmul.f32 %v34103_v46, %v34103_v46 }
 0xd0c   : > { %v23039_v47 = vpop.xlane.xlu1 %23038  ;;  %23219 = vadd.xlane.f32.xlu1 %v23218_v15  ;;  %v23493_v15 = vld [vmem:[#allocation2 + $0xb8] sm:$0xff] }
 0xd0d   : > { %v34115_v32 = vsub.f32 %v33926_v30, %v23111_v41  ;;  %v23110_v52 = vmul.f32 0.03125, %v23039_v47  ;;  %v23227_v50 = vsel %vm727_vm0, %v23173_v35, 0.0  ;;  %v23172_v18 = vmul.f32 %v34109_v36, %v34109_v36  ;;  %28365 = vmatprep.subr.mxu1 %v23493_v15 }
 0xd0e   : > { %v23048_v33 = vpop.xlane.xlu0 %23047  ;;  %23228 = vadd.xlane.f32.xlu0 %v23227_v50  ;;  %28366 = vmatpush3.msra.mxu1 %v23493_v15  ;;  %v23492_v50 = vld [vmem:[#allocation2 + $0xb0] sm:$0xff] }
 0xd0f   : > { %v34121_v6 = vsub.f32 %v33932_v44, %v23110_v52  ;;  %v23113_v22 = vmul.f32 0.03125, %v23048_v33  ;;  %v23224_v49 = vsel %vm727_vm0, %v23172_v18, 0.0  ;;  %v23175_v8 = vmul.f32 %v34115_v32, %v34115_v32  ;;  %28367 = vmatprep.subr.mxu1 %v23492_v50 }
 0xd10   : > { %v23045_v37 = vpop.xlane.xlu1 %23044  ;;  %23225 = vadd.xlane.f32.xlu1 %v23224_v49  ;;  %28368 = vmatpush3.msra.mxu1 %v23492_v50 }
 0xd11   : > { %v34127_v30 = vsub.f32 %v33938_v55, %v23113_v22  ;;  %v23112_v61 = vmul.f32 0.03125, %v23045_v37  ;;  %v23233_v40 = vsel %vm727_vm0, %v23175_v8, 0.0  ;;  %v23174_v45 = vmul.f32 %v34121_v6, %v34121_v6  ;;  %v23491_v8 = vld [vmem:[#allocation2 + $0xa8] sm:$0xff] }
 0xd12   : > { %v23054_v20 = vpop.xlane.xlu0 %23053  ;;  %23234 = vadd.xlane.f32.xlu0 %v23233_v40  ;;  %28369 = vmatprep.subr.mxu1 %v23491_v8 }
 0xd13   : > { %v34133_v44 = vsub.f32 %v33944_v11, %v23112_v61  ;;  %v23115_v19 = vmul.f32 0.03125, %v23054_v20  ;;  %v23230_v54 = vsel %vm727_vm0, %v23174_v45, 0.0  ;;  %v23177_v42 = vmul.f32 %v34127_v30, %v34127_v30  ;;  %28370 = vmatpush3.msra.mxu1 %v23491_v8  ;;  %v23490_v20 = vld [vmem:[#allocation2 + $0xa0] sm:$0xff] }
 0xd14   : > { %v23051_v56 = vpop.xlane.xlu1 %23050  ;;  %23231 = vadd.xlane.f32.xlu1 %v23230_v54  ;;  %28371 = vmatprep.subr.mxu1 %v23490_v20 }
 0xd15   : > { %v34139_v55 = vsub.f32 %v33950_v1, %v23115_v19  ;;  %v23114_v60 = vmul.f32 0.03125, %v23051_v56  ;;  %v23239_v2 = vsel %vm727_vm0, %v23177_v42, 0.0  ;;  %v23176_v9 = vmul.f32 %v34133_v44, %v34133_v44  ;;  %28372 = vmatpush3.msra.mxu1 %v23490_v20 }
 0xd16   : > { %v23060_v5 = vpop.xlane.xlu0 %23059  ;;  %23240 = vadd.xlane.f32.xlu0 %v23239_v2 }
 0xd17   : > { %v34145_v11 = vsub.f32 %v33956_v10, %v23114_v60  ;;  %v23117_v24 = vmul.f32 0.03125, %v23060_v5  ;;  %v23236_v31 = vsel %vm727_vm0, %v23176_v9, 0.0  ;;  %v23179_v39 = vmul.f32 %v34139_v55, %v34139_v55 }
 0xd18   : > { %v23057_v51 = vpop.xlane.xlu1 %23056  ;;  %23237 = vadd.xlane.f32.xlu1 %v23236_v31 }
 0xd19   : > { %v34151_v1 = vsub.f32 %v33962_v38, %v23117_v24  ;;  %v23116_v14 = vmul.f32 0.03125, %v23057_v51  ;;  %v23245_v17 = vsel %vm727_vm0, %v23179_v39, 0.0  ;;  %v23178_v41 = vmul.f32 %v34145_v11, %v34145_v11 }
 0xd1a   : > { %v23066_v10 = vpop.xlane.xlu0 %23065  ;;  %23246 = vadd.xlane.f32.xlu0 %v23245_v17 }
 0xd1b   : > { %v34157_v35 = vsub.f32 %v33968_v16, %v23116_v14  ;;  %v23119_v47 = vmul.f32 0.03125, %v23066_v10  ;;  %v23242_v52 = vsel %vm727_vm0, %v23178_v41, 0.0  ;;  %v23181_v38 = vmul.f32 %v34151_v1, %v34151_v1 }
 0xd1c   : > { %v23063_v18 = vpop.xlane.xlu1 %23062  ;;  %23243 = vadd.xlane.f32.xlu1 %v23242_v52 }
 0xd1d   : > { %v34163_v33 = vsub.f32 %v33974_v58, %v23119_v47  ;;  %v23118_v22 = vmul.f32 0.03125, %v23063_v18  ;;  %v23251_v49 = vsel %vm727_vm0, %v23181_v38, 0.0  ;;  %v23180_v16 = vmul.f32 %v34157_v35, %v34157_v35 }
 0xd1e   : > { %v23072_v37 = vpop.xlane.xlu0 %23071  ;;  %23252 = vadd.xlane.f32.xlu0 %v23251_v49 }
 0xd1f   : > { %v34169_v61 = vsub.f32 %v33980_v28, %v23118_v22  ;;  %v23121_v40 = vmul.f32 0.03125, %v23072_v37  ;;  %v23248_v45 = vsel %vm727_vm0, %v23180_v16, 0.0  ;;  %v23183_v58 = vmul.f32 %v34163_v33, %v34163_v33 }
 0xd20   : > { %v23069_v19 = vpop.xlane.xlu1 %23068  ;;  %23249 = vadd.xlane.f32.xlu1 %v23248_v45 }
 0xd21   : > { %v34175_v54 = vsub.f32 %v33986_v26, %v23121_v40  ;;  %v23120_v42 = vmul.f32 0.03125, %v23069_v19  ;;  %v23257_v56 = vsel %vm727_vm0, %v23183_v58, 0.0  ;;  %v23182_v28 = vmul.f32 %v34169_v61, %v34169_v61 }
 0xd22   : > { %v23078_v60 = vpop.xlane.xlu0 %23077  ;;  %23258 = vadd.xlane.f32.xlu0 %v23257_v56 }
 0xd23   : > { %v34181_v2 = vsub.f32 %v33992_v62, %v23120_v42  ;;  %v23123_v9 = vmul.f32 0.03125, %v23078_v60  ;;  %v23254_v5 = vsel %vm727_vm0, %v23182_v28, 0.0  ;;  %v23185_v24 = vmul.f32 %v34175_v54, %v34175_v54 }
 0xd24   : > { %v23075_v26 = vpop.xlane.xlu1 %23074  ;;  %23255 = vadd.xlane.f32.xlu1 %v23254_v5 }
 0xd25   : > { %v34187_v31 = vsub.f32 %v33998_v12, %v23123_v9  ;;  %v23122_v39 = vmul.f32 0.03125, %v23075_v26  ;;  %v23263_v51 = vsel %vm727_vm0, %v23185_v24, 0.0  ;;  %v23184_v14 = vmul.f32 %v34181_v2, %v34181_v2 }
 0xd26   : > { %v23084_v17 = vpop.xlane.xlu0 %23083  ;;  %23264 = vadd.xlane.f32.xlu0 %v23263_v51 }
 0xd27   : > { %v34193_v62 = vsub.f32 %v34004_v7, %v23122_v39  ;;  %v23125_v41 = vmul.f32 0.03125, %v23084_v17  ;;  %v23260_v15 = vsel %vm727_vm0, %v23184_v14, 0.0  ;;  %v23187_v10 = vmul.f32 %v34187_v31, %v34187_v31 }
 0xd28   : > { %v23081_v47 = vpop.xlane.xlu1 %23080  ;;  %23261 = vadd.xlane.f32.xlu1 %v23260_v15 }
 0xd29   : > { %v34199_v12 = vsub.f32 %v34010_v4, %v23125_v41  ;;  %v23124_v52 = vmul.f32 0.03125, %v23081_v47  ;;  %v23269_v38 = vsel %vm727_vm0, %v23187_v10, 0.0  ;;  %v23186_v50 = vmul.f32 %v34193_v62, %v34193_v62 }
 0xd2a   : > { %v23090_v18 = vpop.xlane.xlu0 %23089  ;;  %23270 = vadd.xlane.f32.xlu0 %v23269_v38 }
 0xd2b   : > { %v34205_v7 = vsub.f32 %v34016_v34, %v23124_v52  ;;  %v23127_v22 = vmul.f32 0.03125, %v23090_v18  ;;  %v23266_v49 = vsel %vm727_vm0, %v23186_v50, 0.0  ;;  %v23189_v16 = vmul.f32 %v34199_v12, %v34199_v12 }
 0xd2c   : > { %v23087_v8 = vpop.xlane.xlu1 %23086  ;;  %23267 = vadd.xlane.f32.xlu1 %v23266_v49 }
 0xd2d   : > { %v34211_v4 = vsub.f32 %v34022_v43, %v23127_v22  ;;  %v23126_v37 = vmul.f32 0.03125, %v23087_v8  ;;  %v23275_v40 = vsel %vm727_vm0, %v23189_v16, 0.0  ;;  %v23188_v45 = vmul.f32 %v34205_v7, %v34205_v7 }
 0xd2e   : > { %23276 = vadd.xlane.f32.xlu0 %v23275_v40  ;;  %v23096_v34 = vpop.xlane.xlu0 %23095 }
 0xd2f   : > { %v34217_v58 = vsub.f32 %v34028_v29, %v23126_v37  ;;  %v23129_v20 = vmul.f32 0.03125, %v23096_v34  ;;  %v23272_v19 = vsel %vm727_vm0, %v23188_v45, 0.0  ;;  %v23191_v42 = vmul.f32 %v34211_v4, %v34211_v4 }
 0xd30   : > { %23273 = vadd.xlane.f32.xlu1 %v23272_v19  ;;  %v23093_v43 = vpop.xlane.xlu1 %23092 }
 0xd31   : > { %v34223_v56 = vsub.f32 %v34034_v59, %v23129_v20  ;;  %v23128_v28 = vmul.f32 0.03125, %v23093_v43  ;;  %v23281_v60 = vsel %vm727_vm0, %v23191_v42, 0.0  ;;  %v23190_v9 = vmul.f32 %v34217_v58, %v34217_v58 }
 0xd32   : > { %23282 = vadd.xlane.f32.xlu0 %v23281_v60 }
 0xd33   : > { %v34229_v29 = vsub.f32 %v34040_v3, %v23128_v28  ;;  %v23278_v5 = vsel %vm727_vm0, %v23190_v9, 0.0  ;;  %v23193_v24 = vmul.f32 %v34223_v56, %v34223_v56 }
 0xd34   : > { %23279 = vadd.xlane.f32.xlu1 %v23278_v5 }
 0xd35   : > { %v23287_v26 = vsel %vm727_vm0, %v23193_v24, 0.0  ;;  %v23192_v59 = vmul.f32 %v34229_v29, %v34229_v29  ;;  %v34241_v24 = vld [vmem:[%s35327_s2 + $0x4] ss:$0 sm:$0xff] }
 0xd36   : > { %23288 = vadd.xlane.f32.xlu0 %v23287_v26 }
 0xd37   : > { %v23284_v39 = vsel %vm727_vm0, %v23192_v59, 0.0 }
 0xd38   : > { %23285 = vadd.xlane.f32.xlu1 %v23284_v39 }
 0xd83   : > { %v23199_v51 = vpop.xlane.xlu0 %23198 }
 0xd84   : > { %v23291_v14 = vmul.f32 0.03125, %v23199_v51 }
 0xd85   : > { %v23196_v17 = vpop.xlane.xlu1 %23195 }
 0xd86   : > { %v23323_v3 = vadd.f32 1e-05, %v23291_v14  ;;  %v23290_v41 = vmul.f32 0.03125, %v23196_v17 }
 0xd87   : > { %v23205_v15 = vpop.xlane.xlu0 %23204 }
 0xd88   : > { %29058 = vrsqrt.f32 %v23323_v3  ;;  %v23322_v10 = vadd.f32 1e-05, %v23290_v41  ;;  %v23293_v47 = vmul.f32 0.03125, %v23205_v15 }
 0xd89   : > { %v23202_v52 = vpop.xlane.xlu1 %23201 }
 0xd8a   : > { %29060 = vrsqrt.f32 %v23322_v10  ;;  %v23325_v38 = vadd.f32 1e-05, %v23293_v47  ;;  %v23292_v50 = vmul.f32 0.03125, %v23202_v52 }
 0xd8b   : > { %v23211_v18 = vpop.xlane.xlu0 %23210 }
 0xd8c   : > { %29062 = vrsqrt.f32 %v23325_v38  ;;  %v23324_v22 = vadd.f32 1e-05, %v23292_v50  ;;  %v23295_v49 = vmul.f32 0.03125, %v23211_v18 }
 0xd8d   : > { %v23208_v16 = vpop.xlane.xlu1 %23207 }
 0xd8e   : > { %29064 = vrsqrt.f32 %v23324_v22  ;;  %v23327_v8 = vadd.f32 1e-05, %v23295_v49  ;;  %v23294_v37 = vmul.f32 0.03125, %v23208_v16 }
 0xd8f   : > { %v23217_v40 = vpop.xlane.xlu0 %23216 }
 0xd90   : > { %29066 = vrsqrt.f32 %v23327_v8  ;;  %v23326_v45 = vadd.f32 1e-05, %v23294_v37  ;;  %v23297_v34 = vmul.f32 0.03125, %v23217_v40 }
 0xd91   : > { %v23214_v20 = vpop.xlane.xlu1 %23213 }
 0xd92   : > { %29068 = vrsqrt.f32 %v23326_v45  ;;  %v23329_v19 = vadd.f32 1e-05, %v23297_v34  ;;  %v23296_v42 = vmul.f32 0.03125, %v23214_v20 }
 0xd93   : > { %v23223_v43 = vpop.xlane.xlu0 %23222 }
 0xd94   : > { %29070 = vrsqrt.f32 %v23329_v19  ;;  %v23328_v28 = vadd.f32 1e-05, %v23296_v42  ;;  %v23299_v60 = vmul.f32 0.03125, %v23223_v43 }
 0xd95   : > { %v29059_v9 = vpop.eup %29058  ;;  %v23220_v5 = vpop.xlane.xlu1 %23219 }
 0xd96   : > { %v23387_v26 = vmul.f32 %v29059_v9, %v34047_v63  ;;  %29072 = vrsqrt.f32 %v23328_v28  ;;  %v23331_v59 = vadd.f32 1e-05, %v23299_v60  ;;  %v23298_v39 = vmul.f32 0.03125, %v23220_v5  ;;  %v34250_v63 = vld [vmem:[%s35327_s2 + $0x5] ss:$0 sm:$0xff] }
 0xd97   : > { %v29061_v51 = vpop.eup %29060  ;;  %v23229_v14 = vpop.xlane.xlu0 %23228 }
 0xd98   : > { %29074 = vrsqrt.f32 %v23331_v59  ;;  %v23330_v17 = vadd.f32 1e-05, %v23298_v39  ;;  %v23301_v3 = vmul.f32 0.03125, %v23229_v14  ;;  %v23423_v15 = vmul.f32 %v34241_v24, %v23387_v26 }
 0xd99   : > { %v29063_v41 = vpop.eup %29062  ;;  %v23226_v10 = vpop.xlane.xlu1 %23225  ;;  %v23386_v47 = vmul.f32 %v29061_v51, %v34050_v13 }
 0xd9a   : > { %v23389_v52 = vmul.f32 %v29063_v41, %v34055_v27  ;;  %29076 = vrsqrt.f32 %v23330_v17  ;;  %v23333_v38 = vadd.f32 1e-05, %v23301_v3  ;;  %v23300_v50 = vmul.f32 0.03125, %v23226_v10 }
 0xd9b   : > { %v29065_v18 = vpop.eup %29064  ;;  %v23235_v22 = vpop.xlane.xlu0 %23234  ;;  %v23422_v49 = vmul.f32 %v34241_v24, %v23386_v47  ;;  %v34258_v45 = vadd.f32 %v34250_v63, %v23423_v15 }
 0xd9c   : > { %29078 = vrsqrt.f32 %v23333_v38  ;;  %v23332_v16 = vadd.f32 1e-05, %v23300_v50  ;;  %v23303_v8 = vmul.f32 0.03125, %v23235_v22  ;;  %v23388_v37 = vmul.f32 %v29065_v18, %v34061_v25 }
 0xd9d   : > { %v29067_v13 = vpop.eup %29066  ;;  %v23232_v40 = vpop.xlane.xlu1 %23231  ;;  %v34255_v27 = vadd.f32 %v34250_v63, %v23422_v49  ;;  %v23425_v34 = vmul.f32 %v34241_v24, %v23389_v52 }
 0xd9e   : > { %v23391_v20 = vmul.f32 %v29067_v13, %v34067_v21  ;;  %29080 = vrsqrt.f32 %v23332_v16  ;;  %v23335_v19 = vadd.f32 1e-05, %v23303_v8  ;;  %v23302_v42 = vmul.f32 0.03125, %v23232_v40 }
 0xd9f   : > { %v29069_v43 = vpop.eup %29068  ;;  %28373 = vmatprep.mubr.msk.f32.mxu1 %vm727_vm0, %v34255_v27  ;;  %v23241_v25 = vpop.xlane.xlu0 %23240  ;;  %v23424_v28 = vmul.f32 %v34241_v24, %v23388_v37  ;;  %v34272_v39 = vadd.f32 %v34250_v63, %v23425_v34 }
 0xda0   : > { %29082 = vrsqrt.f32 %v23335_v19  ;;  %v23334_v60 = vadd.f32 1e-05, %v23302_v42  ;;  %v23305_v9 = vmul.f32 0.03125, %v23241_v25  ;;  %28374 = vmatmul.mubr.msk.f32.vlgmr.msra.gmra.mxu1 %vm727_vm0, %v34258_v45  ;;  %v23390_v5 = vmul.f32 %v29069_v43, %v34073_v57 }
 0xda1   : > { %v29071_v26 = vpop.eup %29070  ;;  %v23238_v21 = vpop.xlane.xlu1 %23237  ;;  %v34269_v59 = vadd.f32 %v34250_v63, %v23424_v28  ;;  %v23427_v51 = vmul.f32 %v34241_v24, %v23391_v20 }
 0xda2   : > { %v23393_v14 = vmul.f32 %v29071_v26, %v34079_v48  ;;  %29084 = vrsqrt.f32 %v23334_v60  ;;  %v23337_v17 = vadd.f32 1e-05, %v23305_v9  ;;  %v23304_v3 = vmul.f32 0.03125, %v23238_v21 }
 0xda3   : > { %v29073_v41 = vpop.eup %29072  ;;  %28376 = vmatprep.mubr.msk.f32.mxu1 %vm727_vm0, %v34269_v59  ;;  %v23247_v57 = vpop.xlane.xlu0 %23246  ;;  %v23426_v15 = vmul.f32 %v34241_v24, %v23390_v5  ;;  %v34286_v18 = vadd.f32 %v34250_v63, %v23427_v51 }
 0xda4   : > { %29086 = vrsqrt.f32 %v23337_v17  ;;  %v23336_v10 = vadd.f32 1e-05, %v23304_v3  ;;  %v23307_v47 = vmul.f32 0.03125, %v23247_v57  ;;  %28377 = vmatmul.mubr.msk.f32.gmra.mxu1 %vm727_vm0, %v34272_v39  ;;  %v23392_v52 = vmul.f32 %v29073_v41, %v34085_v0 }
 0xda5   : > { %v29075_v38 = vpop.eup %29074  ;;  %v23244_v48 = vpop.xlane.xlu1 %23243  ;;  %v34283_v50 = vadd.f32 %v34250_v63, %v23426_v15  ;;  %v23429_v22 = vmul.f32 %v34241_v24, %v23393_v14 }
 0xda6   : > { %v23395_v49 = vmul.f32 %v29075_v38, %v34091_v23  ;;  %29088 = vrsqrt.f32 %v23336_v10  ;;  %v23339_v16 = vadd.f32 1e-05, %v23307_v47  ;;  %v23306_v8 = vmul.f32 0.03125, %v23244_v48 }
 0xda7   : > { %v29077_v37 = vpop.eup %29076  ;;  %28379 = vmatprep.mubr.msk.f32.mxu1 %vm727_vm0, %v34283_v50  ;;  %v23253_v0 = vpop.xlane.xlu0 %23252  ;;  %v23428_v13 = vmul.f32 %v34241_v24, %v23392_v52  ;;  %v34300_v43 = vadd.f32 %v34250_v63, %v23429_v22 }
 0xda8   : > { %29090 = vrsqrt.f32 %v23339_v16  ;;  %v23338_v40 = vadd.f32 1e-05, %v23306_v8  ;;  %v23309_v34 = vmul.f32 0.03125, %v23253_v0  ;;  %28380 = vmatmul.mubr.msk.f32.gmra.mxu1 %vm727_vm0, %v34286_v18  ;;  %v23394_v20 = vmul.f32 %v29077_v37, %v34097_v53 }
 0xda9   : > { %v29079_v19 = vpop.eup %29078  ;;  %v23250_v23 = vpop.xlane.xlu1 %23249  ;;  %v34297_v42 = vadd.f32 %v34250_v63, %v23428_v13  ;;  %v23431_v25 = vmul.f32 %v34241_v24, %v23395_v49 }
 0xdaa   : > { %v23397_v28 = vmul.f32 %v29079_v19, %v34103_v46  ;;  %29092 = vrsqrt.f32 %v23338_v40  ;;  %v23341_v60 = vadd.f32 1e-05, %v23309_v34  ;;  %v23308_v9 = vmul.f32 0.03125, %v23250_v23 }
 0xdab   : > { %v29081_v5 = vpop.eup %29080  ;;  %28382 = vmatprep.mubr.msk.f32.mxu1 %vm727_vm0, %v34297_v42  ;;  %v23259_v53 = vpop.xlane.xlu0 %23258  ;;  %v23430_v26 = vmul.f32 %v34241_v24, %v23394_v20  ;;  %v34314_v41 = vadd.f32 %v34250_v63, %v23431_v25 }
 0xdac   : > { %29094 = vrsqrt.f32 %v23341_v60  ;;  %v23340_v21 = vadd.f32 1e-05, %v23308_v9  ;;  %v23311_v51 = vmul.f32 0.03125, %v23259_v53  ;;  %28383 = vmatmul.mubr.msk.f32.gmra.mxu1 %vm727_vm0, %v34300_v43  ;;  %v23396_v14 = vmul.f32 %v29081_v5, %v34109_v36 }
 0xdad   : > { %v29083_v17 = vpop.eup %29082  ;;  %v23256_v46 = vpop.xlane.xlu1 %23255  ;;  %v34311_v3 = vadd.f32 %v34250_v63, %v23430_v26  ;;  %v23433_v57 = vmul.f32 %v34241_v24, %v23397_v28 }
 0xdae   : > { %v23399_v15 = vmul.f32 %v29083_v17, %v34115_v32  ;;  %29096 = vrsqrt.f32 %v23340_v21  ;;  %v23343_v10 = vadd.f32 1e-05, %v23311_v51  ;;  %v23310_v47 = vmul.f32 0.03125, %v23256_v46 }
 0xdaf   : > { %v29085_v52 = vpop.eup %29084  ;;  %28385 = vmatprep.mubr.msk.f32.mxu1 %vm727_vm0, %v34311_v3  ;;  %v23265_v36 = vpop.xlane.xlu0 %23264  ;;  %v23432_v38 = vmul.f32 %v34241_v24, %v23396_v14  ;;  %v34328_v37 = vadd.f32 %v34250_v63, %v23433_v57 }
 0xdb0   : > { %29098 = vrsqrt.f32 %v23343_v10  ;;  %v23342_v48 = vadd.f32 1e-05, %v23310_v47  ;;  %v23313_v22 = vmul.f32 0.03125, %v23265_v36  ;;  %28386 = vmatmul.mubr.msk.f32.gmra.mxu1 %vm727_vm0, %v34314_v41  ;;  %v23398_v49 = vmul.f32 %v29085_v52, %v34121_v6 }
 0xdb1   : > { %v29087_v16 = vpop.eup %29086  ;;  %v23262_v32 = vpop.xlane.xlu1 %23261  ;;  %v34325_v8 = vadd.f32 %v34250_v63, %v23432_v38  ;;  %v23435_v0 = vmul.f32 %v34241_v24, %v23399_v15 }
 0xdb2   : > { %v23401_v13 = vmul.f32 %v29087_v16, %v34127_v30  ;;  %29100 = vrsqrt.f32 %v23342_v48  ;;  %v23345_v40 = vadd.f32 1e-05, %v23313_v22  ;;  %v23312_v34 = vmul.f32 0.03125, %v23262_v32 }
 0xdb3   : > { %v29089_v20 = vpop.eup %29088  ;;  %28388 = vmatprep.mubr.msk.f32.mxu1 %vm727_vm0, %v34325_v8  ;;  %v23271_v6 = vpop.xlane.xlu0 %23270  ;;  %v23434_v19 = vmul.f32 %v34241_v24, %v23398_v49  ;;  %v34342_v5 = vadd.f32 %v34250_v63, %v23435_v0 }
 0xdb4   : > { %29102 = vrsqrt.f32 %v23345_v40  ;;  %v23344_v23 = vadd.f32 1e-05, %v23312_v34  ;;  %v23315_v25 = vmul.f32 0.03125, %v23271_v6  ;;  %28389 = vmatmul.mubr.msk.f32.gmra.mxu1 %vm727_vm0, %v34328_v37  ;;  %v23400_v28 = vmul.f32 %v29089_v20, %v34133_v44 }
 0xdb5   : > { %v29091_v60 = vpop.eup %29090  ;;  %v23268_v30 = vpop.xlane.xlu1 %23267  ;;  %v34339_v9 = vadd.f32 %v34250_v63, %v23434_v19  ;;  %v23437_v53 = vmul.f32 %v34241_v24, %v23401_v13 }
 0xdb6   : > { %v23403_v26 = vmul.f32 %v29091_v60, %v34139_v55  ;;  %29104 = vrsqrt.f32 %v23344_v23  ;;  %v23347_v21 = vadd.f32 1e-05, %v23315_v25  ;;  %v23314_v51 = vmul.f32 0.03125, %v23268_v30 }
 0xdb7   : > { %v29093_v14 = vpop.eup %29092  ;;  %28391 = vmatprep.mubr.msk.f32.mxu1 %vm727_vm0, %v34339_v9  ;;  %v23277_v44 = vpop.xlane.xlu0 %23276  ;;  %v23436_v17 = vmul.f32 %v34241_v24, %v23400_v28  ;;  %v34356_v52 = vadd.f32 %v34250_v63, %v23437_v53 }
 0xdb8   : > { %29106 = vrsqrt.f32 %v23347_v21  ;;  %v23346_v46 = vadd.f32 1e-05, %v23314_v51  ;;  %v23317_v57 = vmul.f32 0.03125, %v23277_v44  ;;  %28392 = vmatmul.mubr.msk.f32.gmra.mxu1 %vm727_vm0, %v34342_v5  ;;  %v23402_v15 = vmul.f32 %v29093_v14, %v34145_v11 }
 0xdb9   : > { %v29095_v10 = vpop.eup %29094  ;;  %v23274_v55 = vpop.xlane.xlu1 %23273  ;;  %v34353_v47 = vadd.f32 %v34250_v63, %v23436_v17  ;;  %36346 = vst [vmem:[#allocation67_spill] sm:$0xff] %v34356_v52  ;;  %v23439_v36 = vmul.f32 %v34241_v24, %v23403_v26 }
 0xdba   : > { %v23405_v38 = vmul.f32 %v29095_v10, %v34151_v1  ;;  %29108 = vrsqrt.f32 %v23346_v46  ;;  %v23349_v48 = vadd.f32 1e-05, %v23317_v57  ;;  %v23316_v22 = vmul.f32 0.03125, %v23274_v55 }
 0xdbb   : > { %36345 = vst [vmem:[#allocation68_spill] sm:$0xff] %v34353_v47  ;;  %v29097_v49 = vpop.eup %29096  ;;  %28394 = vmatprep.mubr.msk.f32.mxu1 %vm727_vm0, %v34353_v47  ;;  %v23283_v11 = vpop.xlane.xlu0 %23282  ;;  %v23438_v16 = vmul.f32 %v34241_v24, %v23402_v15  ;;  %v34370_v20 = vadd.f32 %v34250_v63, %v23439_v36 }
 0xdbc   : > { %29110 = vrsqrt.f32 %v23349_v48  ;;  %v23348_v32 = vadd.f32 1e-05, %v23316_v22  ;;  %v23319_v0 = vmul.f32 0.03125, %v23283_v11  ;;  %28395 = vmatmul.mubr.msk.f32.gmra.mxu1 %vm727_vm0, %v34356_v52  ;;  %v23404_v13 = vmul.f32 %v29097_v49, %v34157_v35 }
 0xdbd   : > { %v29099_v40 = vpop.eup %29098  ;;  %v23280_v1 = vpop.xlane.xlu1 %23279  ;;  %v34367_v34 = vadd.f32 %v34250_v63, %v23438_v16  ;;  %36348 = vst [vmem:[#allocation73_spill] sm:$0xff] %v34370_v20  ;;  %v23441_v6 = vmul.f32 %v34241_v24, %v23405_v38 }
 0xdbe   : > { %v23407_v19 = vmul.f32 %v29099_v40, %v34163_v33  ;;  %29112 = vrsqrt.f32 %v23348_v32  ;;  %v23351_v23 = vadd.f32 1e-05, %v23319_v0  ;;  %v23318_v25 = vmul.f32 0.03125, %v23280_v1 }
 0xdbf   : > { %36347 = vst [vmem:[#allocation74_spill] sm:$0xff] %v34367_v34  ;;  %v29101_v28 = vpop.eup %29100  ;;  %28397 = vmatprep.mubr.msk.f32.mxu1 %vm727_vm0, %v34367_v34  ;;  %v23289_v35 = vpop.xlane.xlu0 %23288  ;;  %v23440_v60 = vmul.f32 %v34241_v24, %v23404_v13  ;;  %v34384_v14 = vadd.f32 %v34250_v63, %v23441_v6 }
 0xdc0   : > { %29114 = vrsqrt.f32 %v23351_v23  ;;  %v23350_v30 = vadd.f32 1e-05, %v23318_v25  ;;  %v23321_v53 = vmul.f32 0.03125, %v23289_v35  ;;  %28398 = vmatmul.mubr.msk.f32.gmra.mxu1 %vm727_vm0, %v34370_v20  ;;  %v23406_v26 = vmul.f32 %v29101_v28, %v34169_v61 }
 0xdc1   : > { %v29103_v21 = vpop.eup %29102  ;;  %v23286_v33 = vpop.xlane.xlu1 %23285  ;;  %v34381_v51 = vadd.f32 %v34250_v63, %v23440_v60  ;;  %36350 = vst [vmem:[#allocation71_spill] sm:$0xff] %v34384_v14  ;;  %v23443_v44 = vmul.f32 %v34241_v24, %v23407_v19 }
 0xdc2   : > { %v23409_v17 = vmul.f32 %v29103_v21, %v34175_v54  ;;  %29116 = vrsqrt.f32 %v23350_v30  ;;  %v23353_v46 = vadd.f32 1e-05, %v23321_v53  ;;  %v23320_v57 = vmul.f32 0.03125, %v23286_v33 }
 0xdc3   : > { %36349 = vst [vmem:[#allocation72_spill] sm:$0xff] %v34381_v51  ;;  %v29105_v15 = vpop.eup %29104  ;;  %28400 = vmatprep.mubr.msk.f32.mxu1 %vm727_vm0, %v34381_v51  ;;  %v23442_v61 = vmul.f32 %v34241_v24, %v23406_v26  ;;  %v34398_v54 = vadd.f32 %v34250_v63, %v23443_v44 }
 0xdc4   : > { %29118 = vrsqrt.f32 %v23353_v46  ;;  %v23352_v10 = vadd.f32 1e-05, %v23320_v57  ;;  %28401 = vmatmul.mubr.msk.f32.gmra.mxu1 %vm727_vm0, %v34384_v14  ;;  %v23408_v55 = vmul.f32 %v29105_v15, %v34181_v2  ;;  %v23445_v49 = vmul.f32 %v34241_v24, %v23409_v17  ;;  %v24115_v15 = vld [vmem:[#allocation2 + $0xf8] sm:$0xff] }
 0xdc5   : > { %v29107_v36 = vpop.eup %29106  ;;  %v34395_v38 = vadd.f32 %v34250_v63, %v23442_v61  ;;  %36352 = vst [vmem:[#allocation77_spill] sm:$0xff] %v34398_v54  ;;  %28421 = vmatprep.subr.mxu0 %v24115_v15  ;;  %v24114_v61 = vld [vmem:[#allocation2 + $0xf0] sm:$0xff] }
 0xdc6   : > { %v23411_v48 = vmul.f32 %v29107_v36, %v34187_v31  ;;  %29120 = vrsqrt.f32 %v23352_v10  ;;  %v23444_v22 = vmul.f32 %v34241_v24, %v23408_v55  ;;  %v34415_v0 = vadd.f32 %v34250_v63, %v23445_v49  ;;  %28422 = vmatpush3.msra.mxu0 %v24115_v15  ;;  %v24112_v10 = vld [vmem:[#allocation2 + $0xe0] sm:$0xff]  ;;  %v24111_v55 = vld [vmem:[#allocation2 + $0xd8] sm:$0xff]  ;;  %v24109_v36 = vld [vmem:[#allocation2 + $0xc8] sm:$0xff] }
 0xdc7   : > { %36351 = vst [vmem:[#allocation78_spill] sm:$0xff] %v34395_v38  ;;  %v29109_v11 = vpop.eup %29108  ;;  %28403 = vmatprep.mubr.msk.f32.mxu1 %vm727_vm0, %v34395_v38  ;;  %28423 = vmatprep.subr.mxu0 %v24114_v61 }
 0xdc8   : > { %28404 = vmatmul.mubr.msk.f32.gmra.mxu1 %vm727_vm0, %v34398_v54  ;;  %v34408_v2 = vadd.f32 %v34250_v63, %v23444_v22  ;;  %v23410_v16 = vmul.f32 %v29109_v11, %v34193_v62  ;;  %36354 = vst [vmem:[#allocation75_spill] sm:$0xff] %v34415_v0  ;;  %v23447_v40 = vmul.f32 %v34241_v24, %v23411_v48  ;;  %v24108_v48 = vld [vmem:[#allocation2 + $0xc0] sm:$0xff] }
 0xdc9   : > { %v29111_v32 = vpop.eup %29110  ;;  %28424 = vmatpush3.msra.mxu0 %v24114_v61  ;;  %v34475_v22 = vld [vmem:[%s35327_s2 + $0x6] ss:$0 sm:$0xff] }
 0xdca   : > { %36353 = vst [vmem:[#allocation76_spill] sm:$0xff] %v34408_v2  ;;  %v23413_v31 = vmul.f32 %v29111_v32, %v34199_v12  ;;  %28406 = vmatprep.mubr.msk.f32.mxu1 %vm727_vm0, %v34408_v2  ;;  %v23446_v13 = vmul.f32 %v34241_v24, %v23410_v16  ;;  %v34429_v23 = vadd.f32 %v34250_v63, %v23447_v40 }
 0xdcb   : > { %v29113_v1 = vpop.eup %29112 }
 0xdcc   : > { %28407 = vmatmul.mubr.msk.f32.gmra.mxu1 %vm727_vm0, %v34415_v0  ;;  %v34422_v6 = vadd.f32 %v34250_v63, %v23446_v13  ;;  %v23412_v62 = vmul.f32 %v29113_v1, %v34205_v7  ;;  %36356 = vst [vmem:[#allocation81_spill] sm:$0xff] %v34429_v23  ;;  %v23449_v28 = vmul.f32 %v34241_v24, %v23413_v31 }
 0xdcd   : > { %v29115_v12 = vpop.eup %29114 }
 0xdce   : > { %36355 = vst [vmem:[#allocation82_spill] sm:$0xff] %v34422_v6  ;;  %v23415_v19 = vmul.f32 %v29115_v12, %v34211_v4  ;;  %28409 = vmatprep.mubr.msk.f32.mxu1 %vm727_vm0, %v34422_v6  ;;  %v23448_v25 = vmul.f32 %v34241_v24, %v23412_v62  ;;  %v34443_v53 = vadd.f32 %v34250_v63, %v23449_v28 }
 0xdcf   : > { %v29117_v35 = vpop.eup %29116 }
 0xdd0   : > { %28410 = vmatmul.mubr.msk.f32.gmra.mxu1 %vm727_vm0, %v34429_v23  ;;  %v34436_v60 = vadd.f32 %v34250_v63, %v23448_v25  ;;  %v23414_v7 = vmul.f32 %v29117_v35, %v34217_v58  ;;  %36358 = vst [vmem:[#allocation79_spill] sm:$0xff] %v34443_v53  ;;  %v23451_v21 = vmul.f32 %v34241_v24, %v23415_v19 }
 0xdd1   : > { %v29119_v4 = vpop.eup %29118 }
 0xdd2   : > { %36357 = vst [vmem:[#allocation80_spill] sm:$0xff] %v34436_v60  ;;  %v23417_v30 = vmul.f32 %v29119_v4, %v34223_v56  ;;  %28412 = vmatprep.mubr.msk.f32.mxu1 %vm727_vm0, %v34436_v60  ;;  %v23450_v26 = vmul.f32 %v34241_v24, %v23414_v7  ;;  %v34456_v56 = vadd.f32 %v34250_v63, %v23451_v21 }
 0xdd3   : > { %v29121_v33 = vpop.eup %29120 }
 0xdd4   : > { %28413 = vmatmul.mubr.msk.f32.gmra.mxu1 %vm727_vm0, %v34443_v53  ;;  %v34450_v44 = vadd.f32 %v34250_v63, %v23450_v26  ;;  %v23416_v58 = vmul.f32 %v29121_v33, %v34229_v29  ;;  %36360 = vst [vmem:[#allocation85_spill] sm:$0xff] %v34456_v56  ;;  %v23453_v46 = vmul.f32 %v34241_v24, %v23417_v30 }
 0xdd6   : > { %36359 = vst [vmem:[#allocation86_spill] sm:$0xff] %v34450_v44  ;;  %28415 = vmatprep.mubr.msk.f32.mxu1 %vm727_vm0, %v34450_v44  ;;  %v23452_v17 = vmul.f32 %v34241_v24, %v23416_v58  ;;  %v34468_v29 = vadd.f32 %v34250_v63, %v23453_v46  ;;  %v24113_v24 = vld [vmem:[#allocation2 + $0xe8] sm:$0xff] }
 0xdd7   : > { %28425 = vmatprep.subr.mxu0 %v24113_v24 }
 0xdd8   : > { %28416 = vmatmul.mubr.msk.f32.gmra.mxu1 %vm727_vm0, %v34456_v56  ;;  %v34463_v57 = vadd.f32 %v34250_v63, %v23452_v17  ;;  %36362 = vst [vmem:[#allocation83_spill] sm:$0xff] %v34468_v29  ;;  %28426 = vmatpush3.msra.mxu0 %v24113_v24  ;;  %v24110_v63 = vld [vmem:[#allocation2 + $0xd0] sm:$0xff] }
 0xdd9   : > { %28427 = vmatprep.subr.mxu0 %v24112_v10 }
 0xdda   : > { %36361 = vst [vmem:[#allocation84_spill] sm:$0xff] %v34463_v57  ;;  %28418 = vmatprep.mubr.msk.f32.mxu1 %vm727_vm0, %v34463_v57  ;;  %28428 = vmatpush3.msra.mxu0 %v24112_v10 }
 0xddb   : > { %28429 = vmatprep.subr.mxu0 %v24111_v55 }
 0xddc   : > { %28419 = vmatmul.mubr.msk.f32.gmra.mxu1 %vm727_vm0, %v34468_v29  ;;  %28430 = vmatpush3.msra.mxu0 %v24111_v55 }
 0xddd   : > { %28431 = vmatprep.subr.mxu0 %v24110_v63 }
 0xdde   : > { %28432 = vmatpush3.msra.mxu0 %v24110_v63 }
 0xddf   : > { %28433 = vmatprep.subr.mxu0 %v24109_v36 }
 0xde0   : > { %28434 = vmatpush3.msra.mxu0 %v24109_v36 }
 0xde1   : > { %28435 = vmatprep.subr.mxu0 %v24108_v48 }
 0xde2   : > { %28436 = vmatpush3.msra.mxu0 %v24108_v48 }
 0xe60   : > { %v28375_v49 = vpop.f32.mrf.mxu1 }
 0xe61   : > { %v34478_v11 = vadd.f32 %v28375_v49, %v34475_v22 }
 0xe62   : > { %v23661_v16 = vpop.f32.mrf.mxu1 }
 0xe63   : > { %v23853_v32 = vmul.f32 0.044715, %v34478_v11  ;;  %v34482_v31 = vadd.f32 %v34475_v22, %v23661_v16 }
 0xe64   : > { %v28378_v13 = vpop.f32.mrf.mxu1 }
 0xe65   : > { %v23885_v40 = vmul.f32 %v23853_v32, %v34478_v11  ;;  %v23852_v1 = vmul.f32 0.044715, %v34482_v31  ;;  %v34487_v62 = vadd.f32 %v28378_v13, %v34475_v22 }
 0xe66   : > { %v23671_v12 = vpop.f32.mrf.mxu1 }
 0xe67   : > { %v23917_v19 = vmul.f32 %v23885_v40, %v34478_v11  ;;  %v23884_v25 = vmul.f32 %v23852_v1, %v34482_v31  ;;  %v23855_v28 = vmul.f32 0.044715, %v34487_v62  ;;  %v34493_v35 = vadd.f32 %v34475_v22, %v23671_v12 }
 0xe68   : > { %v28381_v7 = vpop.f32.mrf.mxu1 }
 0xe69   : > { %v23949_v4 = vadd.f32 %v23917_v19, %v34478_v11  ;;  %v23916_v30 = vmul.f32 %v23884_v25, %v34482_v31  ;;  %v23887_v26 = vmul.f32 %v23855_v28, %v34487_v62  ;;  %v34499_v21 = vadd.f32 %v28381_v7, %v34475_v22 }
 0xe6a   : > { %v23854_v33 = vmul.f32 0.044715, %v34493_v35  ;;  %v23681_v58 = vpop.f32.mrf.mxu1  ;;  %v23822_v29 = vmul.f32 0.5, %v34493_v35 }
 0xe6b   : > { %v23981_v17 = vmul.f32 0.7978846, %v23949_v4  ;;  %v23948_v46 = vadd.f32 %v23916_v30, %v34482_v31  ;;  %v23919_v15 = vmul.f32 %v23887_v26, %v34487_v62  ;;  %v23857_v24 = vmul.f32 0.044715, %v34499_v21 }
 0xe6c   : > { %v23886_v61 = vmul.f32 %v23854_v33, %v34493_v35  ;;  %v34507_v10 = vadd.f32 %v34475_v22, %v23681_v58  ;;  %v28384_v55 = vpop.f32.mrf.mxu1 }
 0xe6d   : > { %29122 = vtanh.f32 %v23981_v17  ;;  %v23951_v63 = vadd.f32 %v23919_v15, %v34487_v62  ;;  %v23980_v36 = vmul.f32 0.7978846, %v23948_v46  ;;  %v23889_v49 = vmul.f32 %v23857_v24, %v34499_v21 }
 0xe6e   : > { %v23918_v48 = vmul.f32 %v23886_v61, %v34493_v35  ;;  %v23856_v16 = vmul.f32 0.044715, %v34507_v10  ;;  %v23691_v32 = vpop.f32.mrf.mxu1  ;;  %v34514_v40 = vadd.f32 %v28384_v55, %v34475_v22  ;;  %v23824_v6 = vmul.f32 0.5, %v34507_v10 }
 0xe6f   : > { %v23983_v13 = vmul.f32 0.7978846, %v23951_v63  ;;  %v34517_v1 = vadd.f32 %v34475_v22, %v23691_v32  ;;  %v23921_v19 = vmul.f32 %v23889_v49, %v34499_v21  ;;  %29124 = vtanh.f32 %v23980_v36 }
 0xe70   : > { %v23950_v12 = vadd.f32 %v23918_v48, %v34493_v35  ;;  %v23888_v25 = vmul.f32 %v23856_v16, %v34507_v10  ;;  %v28387_v28 = vpop.f32.mrf.mxu1  ;;  %v23859_v33 = vmul.f32 0.044715, %v34514_v40 }
 0xe71   : > { %29126 = vtanh.f32 %v23983_v13  ;;  %v23953_v7 = vadd.f32 %v23921_v19, %v34499_v21  ;;  %v23858_v17 = vmul.f32 0.044715, %v34517_v1  ;;  %v34529_v63 = vadd.f32 %v28387_v28, %v34475_v22 }
 0xe72   : > { %v23920_v4 = vmul.f32 %v23888_v25, %v34507_v10  ;;  %v23701_v30 = vpop.f32.mrf.mxu1  ;;  %v23982_v26 = vmul.f32 0.7978846, %v23950_v12  ;;  %v23891_v55 = vmul.f32 %v23859_v33, %v34514_v40 }
 0xe73   : > { %v23985_v15 = vmul.f32 0.7978846, %v23953_v7  ;;  %v23890_v36 = vmul.f32 %v23858_v17, %v34517_v1  ;;  %v34533_v49 = vadd.f32 %v34475_v22, %v23701_v30  ;;  %v23861_v12 = vmul.f32 0.044715, %v34529_v63 }
 0xe74   : > { %v23952_v58 = vadd.f32 %v23920_v4, %v34507_v10  ;;  %v28390_v46 = vpop.f32.mrf.mxu1  ;;  %29128 = vtanh.f32 %v23982_v26  ;;  %v23923_v13 = vmul.f32 %v23891_v55, %v34514_v40 }
 0xe75   : > { %v34538_v19 = vadd.f32 %v28390_v46, %v34475_v22  ;;  %v23922_v25 = vmul.f32 %v23890_v36, %v34517_v1  ;;  %v23860_v26 = vmul.f32 0.044715, %v34533_v49  ;;  %v23821_v46 = vmul.f32 0.5, %v34478_v11 }
 0xe76   : > { %v23711_v61 = vpop.f32.mrf.mxu1  ;;  %v23984_v24 = vmul.f32 0.7978846, %v23952_v58  ;;  %v23820_v58 = vmul.f32 0.5, %v34482_v31  ;;  %v23893_v55 = vmul.f32 %v23861_v12, %v34529_v63 }
 0xe77   : > { %v23863_v36 = vmul.f32 0.044715, %v34538_v19  ;;  %v23892_v31 = vmul.f32 %v23860_v26, %v34533_v49 }
 0xe78   : > { %v28393_v48 = vpop.f32.mrf.mxu1  ;;  %29130 = vtanh.f32 %v23984_v24  ;;  %v23955_v24 = vadd.f32 %v23923_v13, %v34514_v40 }
 0xe79   : > { %29132 = vtanh.f32 %v23985_v15  ;;  %v34543_v33 = vadd.f32 %v28393_v48, %v34475_v22  ;;  %v23895_v26 = vmul.f32 %v23863_v36, %v34538_v19 }
 0xe7a   : > { %v29123_v16 = vpop.eup %29122  ;;  %v23721_v32 = vpop.f32.mrf.mxu1 }
 0xe7b   : > { %v24045_v4 = vadd.f32 1.0, %v29123_v16  ;;  %v23954_v16 = vadd.f32 %v23922_v25, %v34517_v1  ;;  %v23865_v11 = vmul.f32 0.044715, %v34543_v33 }
 0xe7c   : > { %v28396_v28 = vpop.f32.mrf.mxu1  ;;  %v29125_v7 = vpop.eup %29124 }
 0xe7d   : > { %v24044_v17 = vadd.f32 1.0, %v29125_v7  ;;  %v24077_v56 = vmul.f32 %v24045_v4, %v23821_v46  ;;  %v34556_v7 = vadd.f32 %v34475_v22, %v23711_v61  ;;  %v34560_v13 = vadd.f32 %v28396_v28, %v34475_v22 }
 0xe7e   : > { %v34545_v30 = vpop.f32.mrf.mxu1  ;;  %v29127_v15 = vpop.eup %29126  ;;  %v23925_v4 = vmul.f32 %v23893_v55, %v34529_v63  ;;  %v23823_v61 = vmul.f32 0.5, %v34487_v62 }
 0xe7f   : > { %v24076_v48 = vmul.f32 %v24044_v17, %v23820_v58  ;;  %v24047_v35 = vadd.f32 1.0, %v29127_v15  ;;  %v23987_v17 = vmul.f32 0.7978846, %v23955_v24  ;;  %v23897_v15 = vmul.f32 %v23865_v11, %v34543_v33 }
 0xe80   : > { %v28399_v57 = vpop.f32.mrf.mxu1  ;;  %v34575_v24 = vadd.f32 %v34475_v22, %v23721_v32  ;;  %v23825_v11 = vmul.f32 0.5, %v34499_v21 }
 0xe81   : > { %v29129_v44 = vpop.eup %29128  ;;  %v34563_v12 = vadd.f32 %v28399_v57, %v34475_v22  ;;  %28437 = vmatprep.mubr.msk.f32.mxu0 %vm24121_vm3, %v24076_v48  ;;  %v23986_v57 = vmul.f32 0.7978846, %v23954_v16  ;;  %v23924_v48 = vmul.f32 %v23892_v31, %v34533_v49  ;;  %v24079_v10 = vmul.f32 %v24047_v35, %v23823_v61 }
 0xe82   : > { %v23741_v25 = vpop.f32.mrf.mxu1  ;;  %v24046_v58 = vadd.f32 1.0, %v29129_v44  ;;  %28438 = vmatmul.mubr.msk.f32.vlgmr.msra.gmra.mxu0 %vm24121_vm3, %v24077_v56  ;;  %v23862_v44 = vmul.f32 0.044715, %v34556_v7  ;;  %v23867_v56 = vmul.f32 0.044715, %v34560_v13  ;;  %29134 = vtanh.f32 %v23987_v17 }
 0xe83   : > { %v23869_v62 = vmul.f32 0.044715, %v34563_v12  ;;  %v23957_v16 = vadd.f32 %v23925_v4, %v34529_v63  ;;  %v23927_v31 = vmul.f32 %v23895_v26, %v34538_v19  ;;  %v23956_v17 = vadd.f32 %v23924_v48, %v34533_v49 }
 0xe84   : > { %v28402_v46 = vpop.f32.mrf.mxu1  ;;  %v24078_v28 = vmul.f32 %v24046_v58, %v23822_v29  ;;  %v23894_v53 = vmul.f32 %v23862_v44, %v34556_v7  ;;  %v23899_v4 = vmul.f32 %v23867_v56, %v34560_v13  ;;  %29136 = vtanh.f32 %v23986_v57 }
 0xe85   : > { %v29131_v60 = vpop.eup %29130  ;;  %v34584_v32 = vadd.f32 %v28402_v46, %v34475_v22  ;;  %v23901_v21 = vmul.f32 %v23869_v62, %v34563_v12  ;;  %v23989_v61 = vmul.f32 0.7978846, %v23957_v16  ;;  %v34601_v56 = vadd.f32 %v34475_v22, %v34545_v30 }
 0xe86   : > { %v29133_v55 = vpop.eup %29132  ;;  %28440 = vmatprep.mubr.msk.f32.mxu0 %vm24121_vm3, %v24078_v28  ;;  %v23751_v29 = vpop.f32.mrf.mxu1  ;;  %v24048_v36 = vadd.f32 1.0, %v29131_v60  ;;  %v23929_v28 = vmul.f32 %v23897_v15, %v34543_v33  ;;  %v23864_v60 = vmul.f32 0.044715, %v34575_v24  ;;  %v34606_v62 = vadd.f32 %v34475_v22, %v23741_v25 }
 0xe87   : > { %28441 = vmatmul.mubr.msk.f32.gmra.mxu0 %vm24121_vm3, %v24079_v10  ;;  %v24049_v35 = vadd.f32 1.0, %v29133_v55  ;;  %v23871_v46 = vmul.f32 0.044715, %v34584_v32  ;;  %v23926_v10 = vmul.f32 %v23894_v53, %v34556_v7  ;;  %v23933_v57 = vmul.f32 %v23901_v21, %v34563_v12 }
 0xe88   : > { %v28405_v58 = vpop.f32.mrf.mxu1  ;;  %v24080_v23 = vmul.f32 %v24048_v36, %v23824_v6  ;;  %v23959_v6 = vadd.f32 %v23927_v31, %v34538_v19  ;;  %v23961_v55 = vadd.f32 %v23929_v28, %v34543_v33  ;;  %v23896_v48 = vmul.f32 %v23864_v60, %v34575_v24 }
 0xe89   : > { %v24081_v44 = vmul.f32 %v24049_v35, %v23825_v11  ;;  %v23988_v16 = vmul.f32 0.7978846, %v23956_v17  ;;  %29138 = vtanh.f32 %v23989_v61  ;;  %v34610_v31 = vadd.f32 %v34475_v22, %v23751_v29 }
 0xe8a   : > { %28443 = vmatprep.mubr.msk.f32.mxu0 %vm24121_vm3, %v24080_v23  ;;  %v23761_v26 = vpop.f32.mrf.mxu1  ;;  %v23931_v23 = vmul.f32 %v23899_v4, %v34560_v13  ;;  %v23991_v53 = vmul.f32 0.7978846, %v23959_v6  ;;  %v34613_v11 = vadd.f32 %v28405_v58, %v34475_v22  ;;  %v23827_v30 = vmul.f32 0.5, %v34514_v40 }
 0xe8b   : > { %28444 = vmatmul.mubr.msk.f32.gmra.mxu0 %vm24121_vm3, %v24081_v44  ;;  %v34617_v28 = vmul.f32 0.5, %v34529_v63  ;;  %v23903_v25 = vmul.f32 %v23871_v46, %v34584_v32  ;;  %v23826_v60 = vmul.f32 0.5, %v34517_v1  ;;  %v23958_v17 = vadd.f32 %v23926_v10, %v34556_v7 }
 0xe8c   : > { %v28408_v15 = vpop.f32.mrf.mxu1  ;;  %v23993_v4 = vmul.f32 0.7978846, %v23961_v55  ;;  %v23928_v21 = vmul.f32 %v23896_v48, %v34575_v24  ;;  %v23866_v29 = vmul.f32 0.044715, %v34601_v56  ;;  %v23963_v58 = vadd.f32 %v23931_v23, %v34560_v13 }
 0xe8d   : > { %v23965_v61 = vadd.f32 %v23933_v57, %v34563_v12  ;;  %v23868_v40 = vmul.f32 0.044715, %v34606_v62  ;;  %29140 = vtanh.f32 %v23988_v16  ;;  %v23870_v6 = vmul.f32 0.044715, %v34610_v31 }
 0xe8e   : > { %v23771_v36 = vpop.f32.mrf.mxu1  ;;  %29142 = vtanh.f32 %v23991_v53  ;;  %v23873_v1 = vmul.f32 0.044715, %v34613_v11  ;;  %v34630_v46 = vmul.f32 0.5, %v34533_v49  ;;  %v34633_v10 = vmul.f32 0.5, %v34538_v19 }
 0xe8f   : > { %v29135_v44 = vpop.eup %29134  ;;  %v23935_v55 = vmul.f32 %v23903_v25, %v34584_v32  ;;  %v34637_v48 = vadd.f32 %v34475_v22, %v23761_v26  ;;  %v34640_v57 = vmul.f32 0.5, %v34556_v7  ;;  %v23960_v16 = vadd.f32 %v23928_v21, %v34575_v24 }
 0xe90   : > { %v28411_v35 = vpop.f32.mrf.mxu1  ;;  %v23898_v53 = vmul.f32 %v23866_v29, %v34601_v56  ;;  %v34645_v49 = vadd.f32 %v34475_v22, %v23771_v36  ;;  %v23990_v2 = vmul.f32 0.7978846, %v23958_v17  ;;  %29144 = vtanh.f32 %v23993_v4 }
 0xe91   : > { %v23995_v19 = vmul.f32 0.7978846, %v23963_v58  ;;  %v23997_v0 = vmul.f32 0.7978846, %v23965_v61  ;;  %v23900_v25 = vmul.f32 %v23868_v40, %v34606_v62  ;;  %v29137_v26 = vpop.eup %29136  ;;  %v23902_v54 = vmul.f32 %v23870_v6, %v34610_v31 }
 0xe92   : > { %v23781_v63 = vpop.f32.mrf.mxu1  ;;  %v23905_v7 = vmul.f32 %v23873_v1, %v34613_v11  ;;  %v24051_v51 = vadd.f32 1.0, %v29135_v44  ;;  %29146 = vtanh.f32 %v23990_v2  ;;  %v23967_v21 = vadd.f32 %v23935_v55, %v34584_v32 }
 0xe93   : > { %v23872_v29 = vmul.f32 0.044715, %v34637_v48  ;;  %v24050_v36 = vadd.f32 1.0, %v29137_v26  ;;  %v34653_v17 = vadd.f32 %v34475_v22, %v23781_v63  ;;  %v23930_v58 = vmul.f32 %v23898_v53, %v34601_v56 }
 0xe94   : > { %v28414_v23 = vpop.f32.mrf.mxu1  ;;  %v34657_v61 = vadd.f32 %v28408_v15, %v34475_v22  ;;  %v23874_v40 = vmul.f32 0.044715, %v34645_v49  ;;  %v34661_v6 = vadd.f32 %v28411_v35, %v34475_v22  ;;  %29148 = vtanh.f32 %v23995_v19 }
 0xe95   : > { %v23932_v2 = vmul.f32 %v23900_v25, %v34606_v62  ;;  %v24082_v1 = vmul.f32 %v24050_v36, %v23826_v60  ;;  %29150 = vtanh.f32 %v23997_v0  ;;  %v23934_v55 = vmul.f32 %v23902_v54, %v34610_v31 }
 0xe96   : > { %v23791_v38 = vpop.f32.mrf.mxu1  ;;  %v23937_v53 = vmul.f32 %v23905_v7, %v34613_v11  ;;  %v24083_v15 = vmul.f32 %v24051_v51, %v23827_v30  ;;  %v29139_v26 = vpop.eup %29138  ;;  %v23999_v14 = vmul.f32 0.7978846, %v23967_v21  ;;  %v23904_v34 = vmul.f32 %v23872_v29, %v34637_v48 }
 0xe97   : > { %v34665_v44 = vadd.f32 %v34475_v22, %v23791_v38  ;;  %28446 = vmatprep.mubr.msk.f32.mxu0 %vm24121_vm3, %v24082_v1  ;;  %v23876_v35 = vmul.f32 0.044715, %v34653_v17  ;;  %v23992_v19 = vmul.f32 0.7978846, %v23960_v16  ;;  %v23875_v60 = vmul.f32 0.044715, %v34657_v61 }
 0xe98   : > { %v28417_v4 = vpop.f32.mrf.mxu1  ;;  %v23906_v38 = vmul.f32 %v23874_v40, %v34645_v49  ;;  %28447 = vmatmul.mubr.msk.f32.gmra.mxu0 %vm24121_vm3, %v24083_v15  ;;  %v23877_v54 = vmul.f32 0.044715, %v34661_v6  ;;  %v34677_v0 = vadd.f32 %v28414_v23, %v34475_v22  ;;  %v23962_v30 = vadd.f32 %v23930_v58, %v34601_v56 }
 0xe99   : > { %v23964_v25 = vadd.f32 %v23932_v2, %v34606_v62  ;;  %v23878_v7 = vmul.f32 0.044715, %v34665_v44  ;;  %29152 = vtanh.f32 %v23992_v19  ;;  %v23966_v21 = vadd.f32 %v23934_v55, %v34610_v31 }
 0xe9a   : > { %v23801_v63 = vpop.f32.mrf.mxu1  ;;  %v29141_v16 = vpop.eup %29140  ;;  %v23969_v29 = vadd.f32 %v23937_v53, %v34613_v11  ;;  %v24053_v36 = vadd.f32 1.0, %v29139_v26  ;;  %29154 = vtanh.f32 %v23999_v14  ;;  %v23936_v23 = vmul.f32 %v23904_v34, %v34637_v48 }
 0xe9b   : > { %v34685_v40 = vadd.f32 %v34475_v22, %v23801_v63  ;;  %v29143_v1 = vpop.eup %29142  ;;  %v24052_v15 = vadd.f32 1.0, %v29141_v16  ;;  %v23908_v58 = vmul.f32 %v23876_v35, %v34653_v17  ;;  %v23907_v2 = vmul.f32 %v23875_v60, %v34657_v61 }
 0xe9c   : > { %v28420_v51 = vpop.f32.mrf.mxu1  ;;  %v23938_v19 = vmul.f32 %v23906_v38, %v34645_v49  ;;  %v23909_v20 = vmul.f32 %v23877_v54, %v34661_v6  ;;  %v23879_v55 = vmul.f32 0.044715, %v34677_v0  ;;  %v23910_v63 = vmul.f32 %v23878_v7, %v34665_v44 }
 0xe9d   : > { %v24084_v26 = vmul.f32 %v24052_v15, %v34630_v46  ;;  %v34696_v14 = vadd.f32 %v28417_v4, %v34475_v22  ;;  %v23994_v34 = vmul.f32 0.7978846, %v23962_v30  ;;  %v29145_v16 = vpop.eup %29144  ;;  %v24001_v47 = vmul.f32 0.7978846, %v23969_v29 }
 0xe9e   : > { %v23811_v53 = vpop.f32.mrf.mxu1  ;;  %v24085_v35 = vmul.f32 %v24053_v36, %v34617_v28  ;;  %v24055_v60 = vadd.f32 1.0, %v29143_v1  ;;  %v23880_v38 = vmul.f32 0.044715, %v34685_v40  ;;  %v23940_v54 = vmul.f32 %v23908_v58, %v34653_v17 }
 0xe9f   : > { %v29147_v52 = vpop.eup %29146  ;;  %28449 = vmatprep.mubr.msk.f32.mxu0 %vm24121_vm3, %v24084_v26  ;;  %29156 = vtanh.f32 %v23994_v34  ;;  %v34703_v46 = vadd.f32 %v34475_v22, %v23811_v53  ;;  %v23996_v7 = vmul.f32 0.7978846, %v23964_v25  ;;  %v23968_v4 = vadd.f32 %v23936_v23, %v34637_v48 }
 0xea0   : > { %v23939_v30 = vmul.f32 %v23907_v2, %v34657_v61  ;;  %v23941_v29 = vmul.f32 %v23909_v20, %v34661_v6  ;;  %28450 = vmatmul.mubr.msk.f32.gmra.mxu0 %vm24121_vm3, %v24085_v35  ;;  %v24054_v28 = vadd.f32 1.0, %v29147_v52  ;;  %v23970_v36 = vadd.f32 %v23938_v19, %v34645_v49 }
 0xea1   : > { %v23911_v1 = vmul.f32 %v23879_v55, %v34677_v0  ;;  %v23942_v15 = vmul.f32 %v23910_v63, %v34665_v44  ;;  %v23881_v58 = vmul.f32 0.044715, %v34696_v14  ;;  %v29149_v53 = vpop.eup %29148  ;;  %v23912_v23 = vmul.f32 %v23880_v38, %v34685_v40 }
 0xea2   : > { %v24086_v25 = vmul.f32 %v24054_v28, %v34640_v57  ;;  %29158 = vtanh.f32 %v23996_v7  ;;  %v23998_v2 = vmul.f32 0.7978846, %v23966_v21  ;;  %v29151_v26 = vpop.eup %29150  ;;  %v23972_v20 = vadd.f32 %v23940_v54, %v34653_v17 }
 0xea3   : > { %29160 = vtanh.f32 %v24001_v47  ;;  %v24087_v52 = vmul.f32 %v24055_v60, %v34633_v10  ;;  %v23882_v19 = vmul.f32 0.044715, %v34703_v46  ;;  %v23971_v55 = vadd.f32 %v23939_v30, %v34657_v61 }
 0xea4   : > { %28452 = vmatprep.mubr.msk.f32.mxu0 %vm24121_vm3, %v24086_v25  ;;  %v34721_v63 = vadd.f32 %v28420_v51, %v34475_v22  ;;  %29162 = vtanh.f32 %v23998_v2  ;;  %v24000_v57 = vmul.f32 0.7978846, %v23968_v4  ;;  %v23973_v34 = vadd.f32 %v23941_v29, %v34661_v6 }
 0xea5   : > { %v23943_v21 = vmul.f32 %v23911_v1, %v34677_v0  ;;  %28453 = vmatmul.mubr.msk.f32.gmra.mxu0 %vm24121_vm3, %v24087_v52  ;;  %v23832_v47 = vmul.f32 0.5, %v34575_v24  ;;  %v24002_v10 = vmul.f32 0.7978846, %v23970_v36  ;;  %v23974_v60 = vadd.f32 %v23942_v15, %v34665_v44 }
 0xea6   : > { %v29153_v35 = vpop.eup %29152  ;;  %v23913_v38 = vmul.f32 %v23881_v58, %v34696_v14  ;;  %v23944_v54 = vmul.f32 %v23912_v23, %v34685_v40  ;;  %v24057_v22 = vadd.f32 1.0, %v29145_v16  ;;  %v23914_v7 = vmul.f32 %v23882_v19, %v34703_v46 }
 0xea7   : > { %v24056_v51 = vadd.f32 1.0, %v29153_v35  ;;  %29164 = vtanh.f32 %v24000_v57  ;;  %v24004_v4 = vmul.f32 0.7978846, %v23972_v20  ;;  %v29155_v30 = vpop.eup %29154  ;;  %v23833_v29 = vmul.f32 0.5, %v34543_v33 }
 0xea8   : > { %v24003_v28 = vmul.f32 0.7978846, %v23971_v55  ;;  %v23883_v24 = vmul.f32 0.044715, %v34721_v63  ;;  %29166 = vtanh.f32 %v24002_v10  ;;  %v24005_v1 = vmul.f32 0.7978846, %v23973_v34 }
 0xea9   : > { %v24088_v36 = vmul.f32 %v24056_v51, %v23832_v47  ;;  %v23975_v15 = vadd.f32 %v23943_v21, %v34677_v0  ;;  %v23945_v58 = vmul.f32 %v23913_v38, %v34696_v14  ;;  %v24089_v25 = vmul.f32 %v24057_v22, %v23833_v29 }
 0xeaa   : > { %v23976_v16 = vadd.f32 %v23944_v54, %v34685_v40  ;;  %v23946_v23 = vmul.f32 %v23914_v7, %v34703_v46  ;;  %29168 = vtanh.f32 %v24004_v4  ;;  %v24006_v2 = vmul.f32 0.7978846, %v23974_v60 }
 0xeab   : > { %28455 = vmatprep.mubr.msk.f32.mxu0 %vm24121_vm3, %v24088_v36  ;;  %29170 = vtanh.f32 %v24003_v28  ;;  %v23915_v20 = vmul.f32 %v23883_v24, %v34721_v63  ;;  %v24059_v52 = vadd.f32 1.0, %v29149_v53  ;;  %v23835_v19 = vmul.f32 0.5, %v34560_v13 }
 0xeac   : > { %v29157_v33 = vpop.eup %29156  ;;  %28456 = vmatmul.mubr.msk.f32.gmra.mxu0 %vm24121_vm3, %v24089_v25  ;;  %v23834_v55 = vmul.f32 0.5, %v34601_v56  ;;  %29172 = vtanh.f32 %v24005_v1  ;;  %v24007_v34 = vmul.f32 0.7978846, %v23975_v15  ;;  %v23977_v21 = vadd.f32 %v23945_v58, %v34696_v14 }
 0xead   : > { %v24058_v57 = vadd.f32 1.0, %v29157_v33  ;;  %v23836_v47 = vmul.f32 0.5, %v34606_v62  ;;  %v23978_v60 = vadd.f32 %v23946_v23, %v34703_v46  ;;  %29174 = vtanh.f32 %v24006_v2 }
 0xeae   : > { %v24008_v38 = vmul.f32 0.7978846, %v23976_v16  ;;  %v23947_v53 = vmul.f32 %v23915_v20, %v34721_v63  ;;  %v24091_v22 = vmul.f32 %v24059_v52, %v23835_v19  ;;  %v24061_v51 = vadd.f32 1.0, %v29151_v26 }
 0xeaf   : > { %v29159_v10 = vpop.eup %29158  ;;  %v24090_v35 = vmul.f32 %v24058_v57, %v23834_v55  ;;  %v23837_v7 = vmul.f32 0.5, %v34563_v12  ;;  %29176 = vtanh.f32 %v24007_v34  ;;  %v23838_v4 = vmul.f32 0.5, %v34610_v31 }
 0xeb0   : > { %v29161_v54 = vpop.eup %29160  ;;  %v24060_v13 = vadd.f32 1.0, %v29159_v10  ;;  %v24009_v28 = vmul.f32 0.7978846, %v23977_v21  ;;  %29178 = vtanh.f32 %v24008_v38  ;;  %v24010_v24 = vmul.f32 0.7978846, %v23978_v60 }
 0xeb1   : > { %v29163_v56 = vpop.eup %29162  ;;  %28458 = vmatprep.mubr.msk.f32.mxu0 %vm24121_vm3, %v24090_v35  ;;  %v23979_v1 = vadd.f32 %v23947_v53, %v34721_v63  ;;  %v24093_v26 = vmul.f32 %v24061_v51, %v23837_v7  ;;  %v24063_v12 = vadd.f32 1.0, %v29155_v30  ;;  %v23840_v25 = vmul.f32 0.5, %v34637_v48 }
 0xeb2   : > { %28459 = vmatmul.mubr.msk.f32.gmra.mxu0 %vm24121_vm3, %v24091_v22  ;;  %v24092_v62 = vmul.f32 %v24060_v13, %v23836_v47  ;;  %v24062_v29 = vadd.f32 1.0, %v29163_v56  ;;  %v23839_v23 = vmul.f32 0.5, %v34584_v32  ;;  %29180 = vtanh.f32 %v24010_v24 }
 0xeb3   : > { %29182 = vtanh.f32 %v24009_v28  ;;  %v24011_v20 = vmul.f32 0.7978846, %v23979_v1  ;;  %v24065_v19 = vadd.f32 1.0, %v29161_v54  ;;  %v23842_v30 = vmul.f32 0.5, %v34645_v49 }
 0xeb4   : > { %v29165_v36 = vpop.eup %29164  ;;  %28461 = vmatprep.mubr.msk.f32.mxu0 %vm24121_vm3, %v24092_v62  ;;  %v24094_v15 = vmul.f32 %v24062_v29, %v23838_v4  ;;  %v24095_v52 = vmul.f32 %v24063_v12, %v23839_v23  ;;  %v23841_v48 = vmul.f32 0.5, %v34613_v11  ;;  %v23844_v35 = vmul.f32 0.5, %v34653_v17 }
 0xeb5   : > { %v29167_v58 = vpop.eup %29166  ;;  %v24064_v16 = vadd.f32 1.0, %v29165_v36  ;;  %29184 = vtanh.f32 %v24011_v20  ;;  %v23843_v60 = vmul.f32 0.5, %v34657_v61  ;;  %v23846_v13 = vmul.f32 0.5, %v34665_v44 }
 0xeb6   : > { %28462 = vmatmul.mubr.msk.f32.gmra.mxu0 %vm24121_vm3, %v24093_v26  ;;  %v24066_v2 = vadd.f32 1.0, %v29167_v58  ;;  %v24097_v47 = vmul.f32 %v24065_v19, %v23841_v48  ;;  %v23845_v51 = vmul.f32 0.5, %v34661_v6  ;;  %v23848_v29 = vmul.f32 0.5, %v34685_v40 }
 0xeb7   : > { %28464 = vmatprep.mubr.msk.f32.mxu0 %vm24121_vm3, %v24094_v15  ;;  %v24096_v31 = vmul.f32 %v24064_v16, %v23840_v25  ;;  %v29169_v33 = vpop.eup %29168  ;;  %v23847_v28 = vmul.f32 0.5, %v34677_v0  ;;  %v23850_v26 = vmul.f32 0.5, %v34703_v46  ;;  %v23849_v15 = vmul.f32 0.5, %v34696_v14  ;;  %v34783_v14 = vld [vmem:[%s35327_s2 + $0x7] ss:$0 sm:$0xff] }
 0xeb8   : > { %v29171_v55 = vpop.eup %29170  ;;  %v24098_v57 = vmul.f32 %v24066_v2, %v23842_v30  ;;  %v24068_v34 = vadd.f32 1.0, %v29169_v33  ;;  %v23851_v58 = vmul.f32 0.5, %v34721_v63 }
 0xeb9   : > { %v29173_v32 = vpop.eup %29172  ;;  %v24067_v10 = vadd.f32 1.0, %v29171_v55 }
 0xeba   : > { %28465 = vmatmul.mubr.msk.f32.gmra.mxu0 %vm24121_vm3, %v24095_v52  ;;  %v29175_v21 = vpop.eup %29174  ;;  %v24100_v11 = vmul.f32 %v24068_v34, %v23844_v35  ;;  %v24069_v22 = vadd.f32 1.0, %v29173_v32 }
 0xebb   : > { %28467 = vmatprep.mubr.msk.f32.mxu0 %vm24121_vm3, %v24096_v31  ;;  %v24070_v38 = vadd.f32 1.0, %v29175_v21  ;;  %v24099_v53 = vmul.f32 %v24067_v10, %v23843_v60 }
 0xebc   : > { %v29177_v49 = vpop.eup %29176  ;;  %v24101_v7 = vmul.f32 %v24069_v22, %v23845_v51 }
 0xebd   : > { %v29179_v54 = vpop.eup %29178  ;;  %v24102_v17 = vmul.f32 %v24070_v38, %v23846_v13  ;;  %v24071_v62 = vadd.f32 1.0, %v29177_v49 }
 0xebe   : > { %28468 = vmatmul.mubr.msk.f32.gmra.mxu0 %vm24121_vm3, %v24097_v47  ;;  %v24072_v61 = vadd.f32 1.0, %v29179_v54 }
 0xebf   : > { %28470 = vmatprep.mubr.msk.f32.mxu0 %vm24121_vm3, %v24098_v57  ;;  %v29181_v56 = vpop.eup %29180  ;;  %v24103_v24 = vmul.f32 %v24071_v62, %v23847_v28 }
 0xec0   : > { %v29183_v4 = vpop.eup %29182  ;;  %v24104_v44 = vmul.f32 %v24072_v61, %v23848_v29  ;;  %v24074_v6 = vadd.f32 1.0, %v29181_v56 }
 0xec1   : > { %v24073_v36 = vadd.f32 1.0, %v29183_v4 }
 0xec2   : > { %28471 = vmatmul.mubr.msk.f32.gmra.mxu0 %vm24121_vm3, %v24099_v53  ;;  %v29185_v1 = vpop.eup %29184  ;;  %v24106_v40 = vmul.f32 %v24074_v6, %v23850_v26 }
 0xec3   : > { %28473 = vmatprep.mubr.msk.f32.mxu0 %vm24121_vm3, %v24100_v11  ;;  %v24105_v12 = vmul.f32 %v24073_v36, %v23849_v15  ;;  %v24075_v0 = vadd.f32 1.0, %v29185_v1 }
 0xec5   : > { %v24107_v25 = vmul.f32 %v24075_v0, %v23851_v58  ;;  %v36363_v58 = vld [vmem:[#allocation67_spill] sm:$0xff] }
 0xec6   : > { %28474 = vmatmul.mubr.msk.f32.gmra.mxu0 %vm24121_vm3, %v24101_v7 }
 0xec7   : > { %28476 = vmatprep.mubr.msk.f32.mxu0 %vm24121_vm3, %v24102_v17 }
 0xeca   : > { %28477 = vmatmul.mubr.msk.f32.gmra.mxu0 %vm24121_vm3, %v24103_v24 }
 0xecb   : > { %28479 = vmatprep.mubr.msk.f32.mxu0 %vm24121_vm3, %v24104_v44 }
 0xece   : > { %28480 = vmatmul.mubr.msk.f32.gmra.mxu0 %vm24121_vm3, %v24105_v12 }
 0xecf   : > { %28482 = vmatprep.mubr.msk.f32.mxu0 %vm24121_vm3, %v24106_v40 }
 0xed2   : > { %28483 = vmatmul.mubr.msk.f32.gmra.mxu0 %vm24121_vm3, %v24107_v25 }
 0xf42   : > { %v28439_v46 = vpop.f32.mrf.mxu0 }
 0xf43   : > { %v24290_v16 = vadd.f32 %v28439_v46, %v34783_v14 }
 0xf44   : > { %v24284_v23 = vpop.f32.mrf.mxu0 }
 0xf45   : > { %v34787_v31 = vadd.f32 %v24290_v16, %v34258_v45  ;;  %v24285_v63 = vadd.f32 %v34783_v14, %v24284_v23 }
 0xf47   : > { %v34791_v2 = vadd.f32 %v24285_v63, %v34255_v27  ;;  %v28442_v33 = vpop.f32.mrf.mxu0  ;;  %v24480_v20 = vsel %vm727_vm0, %v34787_v31, 0.0 }
 0xf48   : > { %v24300_v52 = vadd.f32 %v28442_v33, %v34783_v14  ;;  %24481 = vadd.xlane.f32.xlu1 %v24480_v20 }
 0xf49   : > { %v24294_v19 = vpop.f32.mrf.mxu0  ;;  %v24477_v55 = vsel %vm727_vm0, %v34791_v2, 0.0 }
 0xf4a   : > { %v34799_v30 = vadd.f32 %v24300_v52, %v34272_v39  ;;  %v24295_v45 = vadd.f32 %v34783_v14, %v24294_v19  ;;  %24478 = vadd.xlane.f32.xlu0 %v24477_v55  ;;  %v36365_v19 = vld [vmem:[#allocation73_spill] sm:$0xff] }
 0xf4b   : > { %v28445_v32 = vpop.f32.mrf.mxu0 }
 0xf4c   : > { %v34803_v27 = vadd.f32 %v24295_v45, %v34269_v59  ;;  %v24486_v48 = vsel %vm727_vm0, %v34799_v30, 0.0  ;;  %v24310_v57 = vadd.f32 %v28445_v32, %v34783_v14  ;;  %v36366_v45 = vld [vmem:[#allocation74_spill] sm:$0xff] }
 0xf4d   : > { %24487 = vadd.xlane.f32.xlu1 %v24486_v48  ;;  %v24304_v21 = vpop.f32.mrf.mxu0 }
 0xf4e   : > { %v24483_v34 = vsel %vm727_vm0, %v34803_v27, 0.0  ;;  %v34811_v39 = vadd.f32 %v24310_v57, %v34286_v18  ;;  %v24305_v47 = vadd.f32 %v34783_v14, %v24304_v21 }
 0xf4f   : > { %24484 = vadd.xlane.f32.xlu0 %v24483_v34 }
 0xf50   : > { %v34815_v59 = vadd.f32 %v24305_v47, %v34283_v50  ;;  %v24492_v10 = vsel %vm727_vm0, %v34811_v39, 0.0 }
 0xf52   : > { %v24489_v35 = vsel %vm727_vm0, %v34815_v59, 0.0 }
 0xf53   : > { %24493 = vadd.xlane.f32.xlu0 %v24492_v10  ;;  %24490 = vadd.xlane.f32.xlu1 %v24489_v35  ;;  %v36367_v35 = vld [vmem:[#allocation71_spill] sm:$0xff] }
 0xf58   : > { %v28448_v60 = vpop.f32.mrf.mxu0 }
 0xf59   : > { %v24320_v49 = vadd.f32 %v28448_v60, %v34783_v14 }
 0xf5a   : > { %v24314_v11 = vpop.f32.mrf.mxu0 }
 0xf5b   : > { %v34823_v18 = vadd.f32 %v24320_v49, %v34300_v43  ;;  %v24315_v38 = vadd.f32 %v34783_v14, %v24314_v11  ;;  %v36368_v49 = vld [vmem:[#allocation72_spill] sm:$0xff] }
 0xf5d   : > { %v34827_v50 = vadd.f32 %v24315_v38, %v34297_v42  ;;  %v24498_v54 = vsel %vm727_vm0, %v34823_v18, 0.0 }
 0xf5e   : > { %24499 = vadd.xlane.f32.xlu1 %v24498_v54 }
 0xf5f   : > { %v24495_v13 = vsel %vm727_vm0, %v34827_v50, 0.0 }
 0xf60   : > { %v28451_v53 = vpop.f32.mrf.mxu0 }
 0xf61   : > { %v24330_v22 = vadd.f32 %v28451_v53, %v34783_v14 }
 0xf62   : > { %v24324_v51 = vpop.f32.mrf.mxu0  ;;  %24496 = vadd.xlane.f32.xlu1 %v24495_v13 }
 0xf63   : > { %v34835_v43 = vadd.f32 %v24330_v22, %v34314_v41  ;;  %v24325_v17 = vadd.f32 %v34783_v14, %v24324_v51 }
 0xf65   : > { %v34839_v42 = vadd.f32 %v24325_v17, %v34311_v3  ;;  %v28454_v61 = vpop.f32.mrf.mxu0  ;;  %v24504_v56 = vsel %vm727_vm0, %v34835_v43, 0.0  ;;  %v36369_v17 = vld [vmem:[#allocation77_spill] sm:$0xff] }
 0xf66   : > { %v24340_v7 = vadd.f32 %v28454_v61, %v34783_v14  ;;  %24505 = vadd.xlane.f32.xlu1 %v24504_v56  ;;  %v36370_v56 = vld [vmem:[#allocation78_spill] sm:$0xff] }
 0xf67   : > { %v24334_v62 = vpop.f32.mrf.mxu0  ;;  %v24501_v4 = vsel %vm727_vm0, %v34839_v42, 0.0 }
 0xf68   : > { %v34847_v29 = vadd.f32 %v24340_v7, %v34328_v37  ;;  %v24335_v41 = vadd.f32 %v34783_v14, %v24334_v62  ;;  %24502 = vadd.xlane.f32.xlu0 %v24501_v4 }
 0xf6a   : > { %v34851_v3 = vadd.f32 %v24335_v41, %v34325_v8  ;;  %v24510_v28 = vsel %vm727_vm0, %v34847_v29, 0.0 }
 0xf6b   : > { %24511 = vadd.xlane.f32.xlu1 %v24510_v28 }
 0xf6c   : > { %v28457_v44 = vpop.f32.mrf.mxu0  ;;  %v24507_v6 = vsel %vm727_vm0, %v34851_v3, 0.0 }
 0xf6d   : > { %v24350_v24 = vadd.f32 %v28457_v44, %v34783_v14  ;;  %24508 = vadd.xlane.f32.xlu0 %v24507_v6  ;;  %v36371_v6 = vld [vmem:[#allocation75_spill] sm:$0xff] }
 0xf6e   : > { %v24344_v36 = vpop.f32.mrf.mxu0 }
 0xf6f   : > { %v34859_v37 = vadd.f32 %v24350_v24, %v34342_v5  ;;  %v24345_v1 = vadd.f32 %v34783_v14, %v24344_v36 }
 0xf71   : > { %v34863_v8 = vadd.f32 %v24345_v1, %v34339_v9  ;;  %v24516_v26 = vsel %vm727_vm0, %v34859_v37, 0.0  ;;  %v36364_v9 = vld [vmem:[#allocation68_spill] sm:$0xff] }
 0xf72   : > { %v28460_v15 = vpop.f32.mrf.mxu0  ;;  %24517 = vadd.xlane.f32.xlu0 %v24516_v26 }
 0xf73   : > { %v24360_v40 = vadd.f32 %v28460_v15, %v34783_v14  ;;  %v24513_v12 = vsel %vm727_vm0, %v34863_v8, 0.0 }
 0xf74   : > { %v24354_v0 = vpop.f32.mrf.mxu0  ;;  %24514 = vadd.xlane.f32.xlu1 %v24513_v12  ;;  %v36372_v12 = vld [vmem:[#allocation76_spill] sm:$0xff] }
 0xf75   : > { %v34871_v5 = vadd.f32 %v24360_v40, %v36363_v58  ;;  %v24355_v25 = vadd.f32 %v34783_v14, %v24354_v0 }
 0xf76   : > { %v28463_v46 = vpop.f32.mrf.mxu0 }
 0xf77   : > { %v34875_v16 = vadd.f32 %v24355_v25, %v36364_v9  ;;  %v24370_v23 = vadd.f32 %v28463_v46, %v34783_v14  ;;  %v24522_v63 = vsel %vm727_vm0, %v34871_v5, 0.0  ;;  %v36373_v9 = vld [vmem:[#allocation79_spill] sm:$0xff] }
 0xf78   : > { %v24364_v33 = vpop.f32.mrf.mxu0  ;;  %24523 = vadd.xlane.f32.xlu0 %v24522_v63 }
 0xf79   : > { %v24365_v20 = vadd.f32 %v34783_v14, %v24364_v33  ;;  %v34882_v55 = vadd.f32 %v24370_v23, %v36365_v19  ;;  %v24519_v57 = vsel %vm727_vm0, %v34875_v16, 0.0  ;;  %v36374_v33 = vld [vmem:[#allocation81_spill] sm:$0xff] }
 0xf7a   : > { %v28466_v52 = vpop.f32.mrf.mxu0 }
 0xf7b   : > { %v34885_v48 = vadd.f32 %v24365_v20, %v36366_v45  ;;  %v24380_v32 = vadd.f32 %v28466_v52, %v34783_v14  ;;  %v24528_v54 = vsel %vm727_vm0, %v34882_v55, 0.0  ;;  %v36375_v45 = vld [vmem:[#allocation80_spill] sm:$0xff] }
 0xf7c   : > { %v24374_v34 = vpop.f32.mrf.mxu0  ;;  %24520 = vadd.xlane.f32.xlu0 %v24519_v57 }
 0xf7d   : > { %v24375_v21 = vadd.f32 %v34783_v14, %v24374_v34  ;;  %v24525_v47 = vsel %vm727_vm0, %v34885_v48, 0.0  ;;  %v34894_v60 = vadd.f32 %v24380_v32, %v36367_v35 }
 0xf7e   : > { %v28469_v10 = vpop.f32.mrf.mxu0  ;;  %24526 = vadd.xlane.f32.xlu1 %v24525_v47 }
 0xf7f   : > { %v34897_v11 = vadd.f32 %v24375_v21, %v36368_v49  ;;  %v24390_v38 = vadd.f32 %v28469_v10, %v34783_v14  ;;  %v24534_v4 = vsel %vm727_vm0, %v34894_v60, 0.0  ;;  %v36376_v10 = vld [vmem:[#allocation82_spill] sm:$0xff] }
 0xf80   : > { %v24384_v53 = vpop.f32.mrf.mxu0  ;;  %24529 = vadd.xlane.f32.xlu0 %v24528_v54  ;;  %v36377_v54 = vld [vmem:[#allocation85_spill] sm:$0xff] }
 0xf81   : > { %v24385_v22 = vadd.f32 %v34783_v14, %v24384_v53  ;;  %v24531_v13 = vsel %vm727_vm0, %v34897_v11, 0.0  ;;  %v34906_v61 = vadd.f32 %v24390_v38, %v36369_v17 }
 0xf82   : > { %v28472_v51 = vpop.f32.mrf.mxu0  ;;  %24532 = vadd.xlane.f32.xlu1 %v24531_v13 }
 0xf83   : > { %v34909_v7 = vadd.f32 %v24385_v22, %v36370_v56  ;;  %v24400_v62 = vadd.f32 %v28472_v51, %v34783_v14  ;;  %v24540_v1 = vsel %vm727_vm0, %v34906_v61, 0.0 }
 0xf84   : > { %v24394_v41 = vpop.f32.mrf.mxu0  ;;  %24535 = vadd.xlane.f32.xlu0 %v24534_v4 }
 0xf85   : > { %v24537_v28 = vsel %vm727_vm0, %v34909_v7, 0.0  ;;  %v34917_v24 = vadd.f32 %v24400_v62, %v36371_v6  ;;  %v24395_v36 = vadd.f32 %v34783_v14, %v24394_v41  ;;  %v36378_v62 = vld [vmem:[#allocation86_spill] sm:$0xff]  ;;  %v36379_v41 = vld [vmem:[#allocation83_spill] sm:$0xff] }
 0xf86   : > { %v28475_v44 = vpop.f32.mrf.mxu0  ;;  %24538 = vadd.xlane.f32.xlu1 %v24537_v28 }
 0xf87   : > { %v24410_v15 = vadd.f32 %v28475_v44, %v34783_v14  ;;  %v34924_v0 = vadd.f32 %v24395_v36, %v36372_v12  ;;  %v24546_v25 = vsel %vm727_vm0, %v34917_v24, 0.0  ;;  %v36380_v36 = vld [vmem:[#allocation84_spill] sm:$0xff] }
 0xf88   : > { %v24404_v26 = vpop.f32.mrf.mxu0  ;;  %24541 = vadd.xlane.f32.xlu0 %v24540_v1 }
 0xf89   : > { %v34934_v20 = vadd.f32 %v24410_v15, %v36374_v33  ;;  %v24405_v52 = vadd.f32 %v34783_v14, %v24404_v26  ;;  %v24543_v21 = vsel %vm727_vm0, %v34924_v0, 0.0 }
 0xf8a   : > { %v28478_v40 = vpop.f32.mrf.mxu0 }
 0xf8b   : > { %v24420_v58 = vadd.f32 %v28478_v40, %v34783_v14  ;;  %v34946_v35 = vadd.f32 %v24405_v52, %v36376_v10  ;;  %v24552_v38 = vsel %vm727_vm0, %v34934_v20, 0.0 }
 0xf8c   : > { %v24414_v46 = vpop.f32.mrf.mxu0  ;;  %24547 = vadd.xlane.f32.xlu0 %v24546_v25 }
 0xf8d   : > { %v34930_v23 = vadd.f32 %v24420_v58, %v36373_v9  ;;  %v24415_v63 = vadd.f32 %v34783_v14, %v24414_v46  ;;  %v24549_v56 = vsel %vm727_vm0, %v34946_v35, 0.0 }
 0xf8e   : > { %v28481_v19 = vpop.f32.mrf.mxu0 }
 0xf8f   : > { %v34938_v32 = vadd.f32 %v24415_v63, %v36375_v45  ;;  %v24430_v57 = vadd.f32 %v28481_v19, %v34783_v14  ;;  %v24558_v34 = vsel %vm727_vm0, %v34930_v23, 0.0 }
 0xf90   : > { %v24424_v47 = vpop.f32.mrf.mxu0  ;;  %24559 = vadd.xlane.f32.xlu1 %v24558_v34  ;;  %24544 = vadd.xlane.f32.xlu0 %v24543_v21 }
 0xf91   : > { %v34951_v53 = vadd.f32 %v24430_v57, %v36377_v54  ;;  %v24425_v22 = vadd.f32 %v34783_v14, %v24424_v47  ;;  %v24555_v51 = vsel %vm727_vm0, %v34938_v32, 0.0 }
 0xf92   : > { %v28484_v49 = vpop.f32.mrf.mxu0 }
 0xf93   : > { %v24440_v13 = vadd.f32 %v28484_v49, %v34783_v14  ;;  %v34960_v4 = vadd.f32 %v24425_v22, %v36378_v62  ;;  %v24564_v6 = vsel %vm727_vm0, %v34951_v53, 0.0 }
 0xf94   : > { %v24434_v17 = vpop.f32.mrf.mxu0  ;;  %24556 = vadd.xlane.f32.xlu1 %v24555_v51  ;;  %24553 = vadd.xlane.f32.xlu0 %v24552_v38 }
 0xf95   : > { %v34963_v28 = vadd.f32 %v24440_v13, %v36379_v41  ;;  %v24435_v44 = vadd.f32 %v34783_v14, %v24434_v17  ;;  %v24561_v26 = vsel %vm727_vm0, %v34960_v4, 0.0 }
 0xf97   : > { %v34969_v1 = vadd.f32 %v24435_v44, %v36380_v36  ;;  %v24570_v15 = vsel %vm727_vm0, %v34963_v28, 0.0 }
 0xf98   : > { %24565 = vadd.xlane.f32.xlu1 %v24564_v6  ;;  %24550 = vadd.xlane.f32.xlu0 %v24549_v56 }
 0xf99   : > { %v24567_v40 = vsel %vm727_vm0, %v34969_v1, 0.0 }
 0xf9c   : > { %24562 = vadd.xlane.f32.xlu1 %v24561_v26  ;;  %24571 = vadd.xlane.f32.xlu0 %v24570_v15 }
 0xfa0   : > { %24568 = vadd.xlane.f32.xlu1 %v24567_v40 }
 0xfd1   : > { %v24482_v14 = vpop.xlane.xlu1 %24481 }
 0xfd2   : > { %v24574_v12 = vmul.f32 0.03125, %v24482_v14 }
 0xfd3   : > { %v24479_v58 = vpop.xlane.xlu0 %24478 }
 0xfd4   : > { %v34978_v25 = vsub.f32 %v34787_v31, %v24574_v12  ;;  %v24573_v46 = vmul.f32 0.03125, %v24479_v58 }
 0xfd6   : > { %v34981_v9 = vsub.f32 %v34791_v2, %v24573_v46  ;;  %v24488_v63 = vpop.xlane.xlu1 %24487  ;;  %v24638_v33 = vmul.f32 %v34978_v25, %v34978_v25 }
 0xfd7   : > { %v24576_v52 = vmul.f32 0.03125, %v24488_v63 }
 0xfd8   : > { %v24485_v19 = vpop.xlane.xlu0 %24484  ;;  %v24672_v45 = vsel %vm727_vm0, %v24638_v33, 0.0  ;;  %v24637_v57 = vmul.f32 %v34981_v9, %v34981_v9 }
 0xfd9   : > { %v34989_v34 = vsub.f32 %v34799_v30, %v24576_v52  ;;  %v24575_v31 = vmul.f32 0.03125, %v24485_v19  ;;  %24673 = vadd.xlane.f32.xlu1 %v24672_v45 }
 0xfda   : > { %v24669_v21 = vsel %vm727_vm0, %v24637_v57, 0.0 }
 0xfdb   : > { %v34993_v2 = vsub.f32 %v34803_v27, %v24575_v31  ;;  %24670 = vadd.xlane.f32.xlu0 %v24669_v21  ;;  %v24640_v47 = vmul.f32 %v34989_v34, %v34989_v34 }
 0xfdc   : > { %v24494_v10 = vpop.xlane.xlu0 %24493  ;;  %v24491_v30 = vpop.xlane.xlu1 %24490 }
 0xfdd   : > { %v24578_v49 = vmul.f32 0.03125, %v24494_v10  ;;  %v24678_v38 = vsel %vm727_vm0, %v24640_v47, 0.0  ;;  %v24639_v54 = vmul.f32 %v34993_v2, %v34993_v2  ;;  %v24577_v22 = vmul.f32 0.03125, %v24491_v30 }
 0xfde   : > { %24679 = vadd.xlane.f32.xlu1 %v24678_v38 }
 0xfdf   : > { %v35001_v13 = vsub.f32 %v34811_v39, %v24578_v49  ;;  %v24675_v27 = vsel %vm727_vm0, %v24639_v54, 0.0  ;;  %v35005_v51 = vsub.f32 %v34815_v59, %v24577_v22 }
 0xfe0   : > { %24676 = vadd.xlane.f32.xlu0 %v24675_v27 }
 0xfe1   : > { %v24642_v17 = vmul.f32 %v35001_v13, %v35001_v13  ;;  %v24641_v56 = vmul.f32 %v35005_v51, %v35005_v51 }
 0xfe3   : > { %v24684_v62 = vsel %vm727_vm0, %v24642_v17, 0.0  ;;  %v24681_v41 = vsel %vm727_vm0, %v24641_v56, 0.0 }
 0xfe4   : > { %24685 = vadd.xlane.f32.xlu0 %v24684_v62  ;;  %24682 = vadd.xlane.f32.xlu1 %v24681_v41 }
 0xfe7   : > { %v24500_v39 = vpop.xlane.xlu1 %24499 }
 0xfe8   : > { %v24580_v44 = vmul.f32 0.03125, %v24500_v39 }
 0xfea   : > { %v35014_v6 = vsub.f32 %v34823_v18, %v24580_v44 }
 0xfeb   : > { %v24497_v36 = vpop.xlane.xlu1 %24496 }
 0xfec   : > { %v24579_v59 = vmul.f32 0.03125, %v24497_v36  ;;  %v24644_v26 = vmul.f32 %v35014_v6, %v35014_v6 }
 0xfee   : > { %v35019_v15 = vsub.f32 %v34827_v50, %v24579_v59  ;;  %v24690_v40 = vsel %vm727_vm0, %v24644_v26, 0.0 }
 0xfef   : > { %24691 = vadd.xlane.f32.xlu1 %v24690_v40  ;;  %v24506_v14 = vpop.xlane.xlu1 %24505 }
 0xff0   : > { %v24582_v12 = vmul.f32 0.03125, %v24506_v14  ;;  %v24643_v58 = vmul.f32 %v35019_v15, %v35019_v15 }
 0xff1   : > { %v24503_v46 = vpop.xlane.xlu0 %24502 }
 0xff2   : > { %v24581_v63 = vmul.f32 0.03125, %v24503_v46  ;;  %v35025_v18 = vsub.f32 %v34835_v43, %v24582_v12  ;;  %v24687_v33 = vsel %vm727_vm0, %v24643_v58, 0.0 }
 0xff3   : > { %24688 = vadd.xlane.f32.xlu1 %v24687_v33 }
 0xff4   : > { %v35029_v52 = vsub.f32 %v34839_v42, %v24581_v63  ;;  %v24512_v50 = vpop.xlane.xlu1 %24511  ;;  %v24646_v19 = vmul.f32 %v35025_v18, %v35025_v18 }
 0xff5   : > { %v24584_v45 = vmul.f32 0.03125, %v24512_v50 }
 0xff6   : > { %v24509_v57 = vpop.xlane.xlu0 %24508  ;;  %v24645_v31 = vmul.f32 %v35029_v52, %v35029_v52  ;;  %v24696_v21 = vsel %vm727_vm0, %v24646_v19, 0.0 }
 0xff7   : > { %v24583_v47 = vmul.f32 0.03125, %v24509_v57  ;;  %v35037_v43 = vsub.f32 %v34847_v29, %v24584_v45  ;;  %24697 = vadd.xlane.f32.xlu1 %v24696_v21 }
 0xff8   : > { %v24693_v10 = vsel %vm727_vm0, %v24645_v31, 0.0 }
 0xff9   : > { %v35041_v42 = vsub.f32 %v34851_v3, %v24583_v47  ;;  %24694 = vadd.xlane.f32.xlu0 %v24693_v10  ;;  %v24648_v49 = vmul.f32 %v35037_v43, %v35037_v43 }
 0xffb   : > { %v24518_v38 = vpop.xlane.xlu0 %24517  ;;  %v24647_v54 = vmul.f32 %v35041_v42, %v35041_v42  ;;  %v24702_v30 = vsel %vm727_vm0, %v24648_v49, 0.0 }
 0xffc   : > { %v24586_v22 = vmul.f32 0.03125, %v24518_v38  ;;  %24703 = vadd.xlane.f32.xlu1 %v24702_v30 }
 0xffd   : > { %v24515_v29 = vpop.xlane.xlu1 %24514  ;;  %v24699_v27 = vsel %vm727_vm0, %v24647_v54, 0.0 }
 0xffe   : > { %v35050_v17 = vsub.f32 %v34859_v37, %v24586_v22  ;;  %v24585_v3 = vmul.f32 0.03125, %v24515_v29  ;;  %24700 = vadd.xlane.f32.xlu0 %v24699_v27 }
0x1000   : > { %v35053_v56 = vsub.f32 %v34863_v8, %v24585_v3  ;;  %v24650_v62 = vmul.f32 %v35050_v17, %v35050_v17 }
0x1001   : > { %v24524_v41 = vpop.xlane.xlu0 %24523 }
0x1002   : > { %v24588_v39 = vmul.f32 0.03125, %v24524_v41  ;;  %v24708_v44 = vsel %vm727_vm0, %v24650_v62, 0.0  ;;  %v24649_v36 = vmul.f32 %v35053_v56, %v35053_v56 }
0x1003   : > { %24709 = vadd.xlane.f32.xlu0 %v24708_v44 }
0x1004   : > { %v35061_v59 = vsub.f32 %v34871_v5, %v24588_v39  ;;  %v24705_v37 = vsel %vm727_vm0, %v24649_v36, 0.0 }
0x1005   : > { %v24521_v26 = vpop.xlane.xlu0 %24520  ;;  %24706 = vadd.xlane.f32.xlu1 %v24705_v37 }
0x1006   : > { %v24587_v8 = vmul.f32 0.03125, %v24521_v26  ;;  %v24652_v40 = vmul.f32 %v35061_v59, %v35061_v59 }
0x1007   : > { %v24527_v14 = vpop.xlane.xlu1 %24526 }
0x1008   : > { %v24589_v12 = vmul.f32 0.03125, %v24527_v14  ;;  %v35067_v58 = vsub.f32 %v34875_v16, %v24587_v8  ;;  %v24714_v46 = vsel %vm727_vm0, %v24652_v40, 0.0 }
0x1009   : > { %24715 = vadd.xlane.f32.xlu0 %v24714_v46  ;;  %v24530_v63 = vpop.xlane.xlu0 %24529 }
0x100a   : > { %v35071_v5 = vsub.f32 %v34885_v48, %v24589_v12  ;;  %v24590_v33 = vmul.f32 0.03125, %v24530_v63  ;;  %v24651_v50 = vmul.f32 %v35067_v58, %v35067_v58 }
0x100b   : > { %v24533_v19 = vpop.xlane.xlu1 %24532 }
0x100c   : > { %v24591_v45 = vmul.f32 0.03125, %v24533_v19  ;;  %v35076_v57 = vsub.f32 %v34882_v55, %v24590_v33  ;;  %v24653_v16 = vmul.f32 %v35071_v5, %v35071_v5  ;;  %v24711_v31 = vsel %vm727_vm0, %v24651_v50, 0.0 }
0x100d   : > { %24712 = vadd.xlane.f32.xlu0 %v24711_v31  ;;  %v24536_v21 = vpop.xlane.xlu0 %24535 }
0x100e   : > { %v35082_v47 = vsub.f32 %v34897_v11, %v24591_v45  ;;  %v24717_v48 = vsel %vm727_vm0, %v24653_v16, 0.0  ;;  %v24592_v10 = vmul.f32 0.03125, %v24536_v21  ;;  %v24654_v49 = vmul.f32 %v35076_v57, %v35076_v57 }
0x100f   : > { %24718 = vadd.xlane.f32.xlu1 %v24717_v48  ;;  %v24539_v38 = vpop.xlane.xlu1 %24538 }
0x1010   : > { %v24593_v55 = vmul.f32 0.03125, %v24539_v38  ;;  %v35088_v54 = vsub.f32 %v34894_v60, %v24592_v10  ;;  %v24655_v30 = vmul.f32 %v35082_v47, %v35082_v47  ;;  %v24720_v22 = vsel %vm727_vm0, %v24654_v49, 0.0 }
0x1011   : > { %24721 = vadd.xlane.f32.xlu0 %v24720_v22  ;;  %v24542_v11 = vpop.xlane.xlu0 %24541 }
0x1012   : > { %v35094_v29 = vsub.f32 %v34909_v7, %v24593_v55  ;;  %v24723_v27 = vsel %vm727_vm0, %v24655_v30, 0.0  ;;  %v24594_v3 = vmul.f32 0.03125, %v24542_v11  ;;  %v24656_v62 = vmul.f32 %v35088_v54, %v35088_v54 }
0x1013   : > { %24724 = vadd.xlane.f32.xlu1 %v24723_v27 }
0x1014   : > { %v35100_v60 = vsub.f32 %v34906_v61, %v24594_v3  ;;  %v24657_v41 = vmul.f32 %v35094_v29, %v35094_v29  ;;  %v24726_v39 = vsel %vm727_vm0, %v24656_v62, 0.0 }
0x1015   : > { %24727 = vadd.xlane.f32.xlu0 %v24726_v39  ;;  %v24548_v44 = vpop.xlane.xlu0 %24547 }
0x1016   : > { %v24729_v7 = vsel %vm727_vm0, %v24657_v41, 0.0  ;;  %v24596_v36 = vmul.f32 0.03125, %v24548_v44  ;;  %v24658_v37 = vmul.f32 %v35100_v60, %v35100_v60 }
0x1017   : > { %24730 = vadd.xlane.f32.xlu1 %v24729_v7 }
0x1018   : > { %v35109_v26 = vsub.f32 %v34917_v24, %v24596_v36  ;;  %v24732_v61 = vsel %vm727_vm0, %v24658_v37, 0.0 }
0x1019   : > { %v24560_v8 = vpop.xlane.xlu1 %24559  ;;  %24733 = vadd.xlane.f32.xlu0 %v24732_v61  ;;  %v24545_v40 = vpop.xlane.xlu0 %24544 }
0x101a   : > { %v24600_v14 = vmul.f32 0.03125, %v24560_v8  ;;  %v24595_v12 = vmul.f32 0.03125, %v24545_v40  ;;  %v24660_v46 = vmul.f32 %v35109_v26, %v35109_v26 }
0x101c   : > { %v35115_v63 = vsub.f32 %v34930_v23, %v24600_v14  ;;  %v35118_v33 = vsub.f32 %v34924_v0, %v24595_v12  ;;  %v24738_v50 = vsel %vm727_vm0, %v24660_v46, 0.0 }
0x101d   : > { %v24557_v24 = vpop.xlane.xlu1 %24556  ;;  %24739 = vadd.xlane.f32.xlu0 %v24738_v50  ;;  %v24554_v19 = vpop.xlane.xlu0 %24553 }
0x101e   : > { %v24599_v45 = vmul.f32 0.03125, %v24557_v24  ;;  %v24598_v16 = vmul.f32 0.03125, %v24554_v19  ;;  %v24664_v31 = vmul.f32 %v35115_v63, %v35115_v63  ;;  %v24659_v21 = vmul.f32 %v35118_v33, %v35118_v33  ;;  %v24968_v19 = vld [vmem:[#allocation2 + $0x118] sm:$0xff] }
0x101f   : > { %28485 = vmatprep.subr.mxu1 %v24968_v19 }
0x1020   : > { %v35126_v48 = vsub.f32 %v34938_v32, %v24599_v45  ;;  %v35129_v23 = vsub.f32 %v34934_v20, %v24598_v16  ;;  %v24750_v0 = vsel %vm727_vm0, %v24664_v31, 0.0  ;;  %v24735_v10 = vsel %vm727_vm0, %v24659_v21, 0.0  ;;  %28486 = vmatpush3.msra.mxu1 %v24968_v19  ;;  %v24967_v45 = vld [vmem:[#allocation2 + $0x110] sm:$0xff]  ;;  %v24965_v16 = vld [vmem:[#allocation2 + $0x100] sm:$0xff] }
0x1021   : > { %24751 = vadd.xlane.f32.xlu1 %v24750_v0  ;;  %v24566_v49 = vpop.xlane.xlu1 %24565  ;;  %24736 = vadd.xlane.f32.xlu0 %v24735_v10  ;;  %v24551_v38 = vpop.xlane.xlu0 %24550 }
0x1022   : > { %v24602_v55 = vmul.f32 0.03125, %v24566_v49  ;;  %v24597_v30 = vmul.f32 0.03125, %v24551_v38  ;;  %v24663_v22 = vmul.f32 %v35126_v48, %v35126_v48  ;;  %v24662_v32 = vmul.f32 %v35129_v23, %v35129_v23  ;;  %28487 = vmatprep.subr.mxu1 %v24967_v45 }
0x1023   : > { %28488 = vmatpush3.msra.mxu1 %v24967_v45 }
0x1024   : > { %v35138_v11 = vsub.f32 %v34951_v53, %v24602_v55  ;;  %v35141_v20 = vsub.f32 %v34946_v35, %v24597_v30  ;;  %v24747_v27 = vsel %vm727_vm0, %v24663_v22, 0.0  ;;  %v24744_v3 = vsel %vm727_vm0, %v24662_v32, 0.0 }
0x1025   : > { %24748 = vadd.xlane.f32.xlu1 %v24747_v27  ;;  %v24563_v62 = vpop.xlane.xlu1 %24562  ;;  %24745 = vadd.xlane.f32.xlu0 %v24744_v3  ;;  %v24572_v41 = vpop.xlane.xlu0 %24571 }
0x1026   : > { %v24601_v39 = vmul.f32 0.03125, %v24563_v62  ;;  %v24604_v44 = vmul.f32 0.03125, %v24572_v41  ;;  %v24666_v7 = vmul.f32 %v35138_v11, %v35138_v11  ;;  %v24661_v53 = vmul.f32 %v35141_v20, %v35141_v20 }
0x1028   : > { %v35150_v36 = vsub.f32 %v34960_v4, %v24601_v39  ;;  %v35153_v35 = vsub.f32 %v34963_v28, %v24604_v44  ;;  %v24756_v37 = vsel %vm727_vm0, %v24666_v7, 0.0  ;;  %v24741_v61 = vsel %vm727_vm0, %v24661_v53, 0.0 }
0x1029   : > { %24757 = vadd.xlane.f32.xlu1 %v24756_v37  ;;  %v24569_v8 = vpop.xlane.xlu1 %24568  ;;  %24742 = vadd.xlane.f32.xlu0 %v24741_v61 }
0x102a   : > { %v24603_v40 = vmul.f32 0.03125, %v24569_v8  ;;  %v24665_v14 = vmul.f32 %v35150_v36, %v35150_v36  ;;  %v24668_v12 = vmul.f32 %v35153_v35, %v35153_v35 }
0x102c   : > { %v35162_v4 = vsub.f32 %v34969_v1, %v24603_v40  ;;  %v24753_v28 = vsel %vm727_vm0, %v24665_v14, 0.0  ;;  %v24762_v46 = vsel %vm727_vm0, %v24668_v12, 0.0  ;;  %v24966_v1 = vld [vmem:[#allocation2 + $0x108] sm:$0xff] }
0x102d   : > { %24754 = vadd.xlane.f32.xlu1 %v24753_v28  ;;  %24763 = vadd.xlane.f32.xlu0 %v24762_v46 }
0x102e   : > { %v24667_v50 = vmul.f32 %v35162_v4, %v35162_v4  ;;  %28489 = vmatprep.subr.mxu1 %v24966_v1 }
0x102f   : > { %28490 = vmatpush3.msra.mxu1 %v24966_v1 }
0x1030   : > { %v24759_v24 = vsel %vm727_vm0, %v24667_v50, 0.0  ;;  %28491 = vmatprep.subr.mxu1 %v24965_v16  ;;  %v35173_v50 = vld [vmem:[%s35327_s2 + $0x8] ss:$0 sm:$0xff] }
0x1031   : > { %24760 = vadd.xlane.f32.xlu1 %v24759_v24  ;;  %28492 = vmatpush3.msra.mxu1 %v24965_v16 }
0x1062   : > { %v24674_v21 = vpop.xlane.xlu1 %24673 }
0x1063   : > { %v24766_v0 = vmul.f32 0.03125, %v24674_v21 }
0x1064   : > { %v24671_v31 = vpop.xlane.xlu0 %24670 }
0x1065   : > { %v24798_v55 = vadd.f32 1e-05, %v24766_v0  ;;  %v24765_v30 = vmul.f32 0.03125, %v24671_v31 }
0x1067   : > { %v24680_v49 = vpop.xlane.xlu1 %24679  ;;  %29186 = vrsqrt.f32 %v24798_v55  ;;  %v24797_v41 = vadd.f32 1e-05, %v24765_v30 }
0x1068   : > { %v24768_v22 = vmul.f32 0.03125, %v24680_v49 }
0x1069   : > { %v24677_v10 = vpop.xlane.xlu0 %24676 }
0x106a   : > { %v24767_v38 = vmul.f32 0.03125, %v24677_v10  ;;  %v24800_v44 = vadd.f32 1e-05, %v24768_v22 }
0x106c   : > { %v24799_v32 = vadd.f32 1e-05, %v24767_v38 }
0x106d   : > { %v24683_v27 = vpop.xlane.xlu1 %24682  ;;  %v24686_v3 = vpop.xlane.xlu0 %24685 }
0x106e   : > { %v24769_v62 = vmul.f32 0.03125, %v24683_v27  ;;  %v24770_v39 = vmul.f32 0.03125, %v24686_v3  ;;  %29188 = vrsqrt.f32 %v24799_v32 }
0x106f   : > { %29190 = vrsqrt.f32 %v24797_v41 }
0x1070   : > { %v24801_v7 = vadd.f32 1e-05, %v24769_v62  ;;  %v24802_v53 = vadd.f32 1e-05, %v24770_v39  ;;  %29192 = vrsqrt.f32 %v24800_v44 }
0x1072   : > { %29194 = vrsqrt.f32 %v24801_v7 }
0x1073   : > { %29196 = vrsqrt.f32 %v24802_v53 }
0x1074   : > { %v29187_v8 = vpop.eup %29186 }
0x1075   : > { %v24862_v28 = vmul.f32 %v29187_v8, %v34978_v25  ;;  %v35180_v25 = vld [vmem:[%s35327_s2 + $0x9] ss:$0 sm:$0xff] }
0x1077   : > { %v24898_v21 = vmul.f32 %v35173_v50, %v24862_v28 }
0x1078   : > { %v24692_v37 = vpop.xlane.xlu1 %24691 }
0x1079   : > { %v24772_v61 = vmul.f32 0.03125, %v24692_v37  ;;  %v24934_v27 = vadd.f32 %v35180_v25, %v24898_v21 }
0x107b   : > { %v24804_v40 = vadd.f32 1e-05, %v24772_v61  ;;  %v29189_v14 = vpop.eup %29188 }
0x107c   : > { %v24689_v12 = vpop.xlane.xlu1 %24688  ;;  %v29191_v24 = vpop.eup %29190  ;;  %v24863_v19 = vmul.f32 %v29189_v14, %v34993_v2 }
0x107d   : > { %29198 = vrsqrt.f32 %v24804_v40  ;;  %v24771_v46 = vmul.f32 0.03125, %v24689_v12  ;;  %v29193_v1 = vpop.eup %29192  ;;  %v24861_v10 = vmul.f32 %v29191_v24, %v34981_v9 }
0x107e   : > { %v24899_v55 = vmul.f32 %v35173_v50, %v24863_v19  ;;  %v24864_v22 = vmul.f32 %v29193_v1, %v34989_v34 }
0x107f   : > { %v24803_v45 = vadd.f32 1e-05, %v24771_v46  ;;  %v29195_v31 = vpop.eup %29194  ;;  %v24897_v62 = vmul.f32 %v35173_v50, %v24861_v10 }
0x1080   : > { %v24698_v16 = vpop.xlane.xlu1 %24697  ;;  %v29197_v38 = vpop.eup %29196  ;;  %v24865_v32 = vmul.f32 %v29195_v31, %v35005_v51  ;;  %v24935_v9 = vadd.f32 %v35180_v25, %v24899_v55  ;;  %v24900_v53 = vmul.f32 %v35173_v50, %v24864_v22  ;;  %v25006_v51 = vrot.slane %v24934_v27, 7 }
0x1081   : > { %29200 = vrsqrt.f32 %v24803_v45  ;;  %v24774_v0 = vmul.f32 0.03125, %v24698_v16  ;;  %v24866_v41 = vmul.f32 %v29197_v38, %v35001_v13  ;;  %v24933_v40 = vadd.f32 %v35180_v25, %v24897_v62 }
0x1082   : > { %v24695_v49 = vpop.xlane.xlu0 %24694  ;;  %v24901_v34 = vmul.f32 %v35173_v50, %v24865_v32  ;;  %v25009_v12 = vrot.slane %v24935_v9, 6  ;;  %v24936_v24 = vadd.f32 %v35180_v25, %v24900_v53 }
0x1083   : > { %v24773_v2 = vmul.f32 0.03125, %v24695_v49  ;;  %v24806_v30 = vadd.f32 1e-05, %v24774_v0  ;;  %v24902_v13 = vmul.f32 %v35173_v50, %v24866_v41  ;;  %v25008_v21 = vsel %vm25007_vm5, %v25006_v51, %v24933_v40 }
0x1084   : > { %v24937_v19 = vadd.f32 %v35180_v25, %v24901_v34  ;;  %v25011_v38 = vsel %vm25010_vm6, %v25009_v12, %v25008_v21  ;;  %v25012_v55 = vrot.slane %v24936_v24, 5 }
0x1085   : > { %v24704_v3 = vpop.xlane.xlu1 %24703  ;;  %29202 = vrsqrt.f32 %v24806_v30  ;;  %v24805_v44 = vadd.f32 1e-05, %v24773_v2  ;;  %v24938_v31 = vadd.f32 %v35180_v25, %v24902_v13 }
0x1086   : > { %v24776_v39 = vmul.f32 0.03125, %v24704_v3  ;;  %v25015_v2 = vrot.slane %v24937_v19, 4  ;;  %v25014_v27 = vsel %vm25013_vm7, %v25012_v55, %v25011_v38 }
0x1087   : > { %v24701_v7 = vpop.xlane.xlu0 %24700 }
0x1088   : > { %v24775_v37 = vmul.f32 0.03125, %v24701_v7  ;;  %v24808_v61 = vadd.f32 1e-05, %v24776_v39  ;;  %v25017_v9 = vsel %vm25016_vm8, %v25015_v2, %v25014_v27 }
0x108a   : > { %v29199_v8 = vpop.eup %29198  ;;  %v24807_v14 = vadd.f32 1e-05, %v24775_v37  ;;  %29204 = vrsqrt.f32 %v24808_v61 }
0x108b   : > { %29206 = vrsqrt.f32 %v24805_v44  ;;  %v24868_v46 = vmul.f32 %v29199_v8, %v35014_v6 }
0x108c   : > { %29208 = vrsqrt.f32 %v24807_v14  ;;  %v24710_v28 = vpop.xlane.xlu0 %24709 }
0x108d   : > { %v24778_v45 = vmul.f32 0.03125, %v24710_v28  ;;  %v24904_v6 = vmul.f32 %v35173_v50, %v24868_v46 }
0x108e   : > { %v29201_v1 = vpop.eup %29200  ;;  %v24707_v16 = vpop.xlane.xlu1 %24706 }
0x108f   : > { %v24810_v0 = vadd.f32 1e-05, %v24778_v45  ;;  %v24777_v10 = vmul.f32 0.03125, %v24707_v16  ;;  %v24867_v49 = vmul.f32 %v29201_v1, %v35019_v15  ;;  %v25018_v15 = vrot.slane %v24938_v31, 3 }
0x1090   : > { %v24940_v39 = vadd.f32 %v35180_v25, %v24904_v6 }
0x1091   : > { %29210 = vrsqrt.f32 %v24810_v0  ;;  %v24809_v30 = vadd.f32 1e-05, %v24777_v10  ;;  %v24903_v22 = vmul.f32 %v35173_v50, %v24867_v49  ;;  %v25020_v51 = vsel %vm25019_vm9, %v25018_v15, %v25017_v9 }
0x1092   : > { %v24716_v32 = vpop.xlane.xlu0 %24715  ;;  %v29203_v3 = vpop.eup %29202  ;;  %v25024_v13 = vrot.slane %v24940_v39, 1 }
0x1093   : > { %29212 = vrsqrt.f32 %v24809_v30  ;;  %v24780_v62 = vmul.f32 0.03125, %v24716_v32  ;;  %v24939_v41 = vadd.f32 %v35180_v25, %v24903_v22  ;;  %v24870_v53 = vmul.f32 %v29203_v3, %v35025_v18 }
0x1095   : > { %v24812_v44 = vadd.f32 1e-05, %v24780_v62  ;;  %v25021_v7 = vrot.slane %v24939_v41, 2  ;;  %v24906_v46 = vmul.f32 %v35173_v50, %v24870_v53 }
0x1096   : > { %v24713_v37 = vpop.xlane.xlu0 %24712 }
0x1097   : > { %v29205_v61 = vpop.eup %29204  ;;  %29214 = vrsqrt.f32 %v24812_v44  ;;  %v24779_v34 = vmul.f32 0.03125, %v24713_v37  ;;  %v25023_v14 = vsel %vm25022_vm10, %v25021_v7, %v25020_v51  ;;  %v24942_v38 = vadd.f32 %v35180_v25, %v24906_v46 }
0x1098   : > { %v29207_v8 = vpop.eup %29206  ;;  %v24719_v40 = vpop.xlane.xlu1 %24718  ;;  %v24872_v18 = vmul.f32 %v29205_v61, %v35037_v43  ;;  %v25026_v45 = vsel %vm25025_vm11, %v25024_v13, %v25023_v14 }
0x1099   : > { %v29209_v12 = vpop.eup %29208  ;;  %v24811_v28 = vadd.f32 1e-05, %v24779_v34  ;;  %v24781_v1 = vmul.f32 0.03125, %v24719_v40  ;;  %28493 = vmatprep.mubr.msk.f32.mxu1 %vm727_vm0, %v25026_v45  ;;  %v24869_v31 = vmul.f32 %v29207_v8, %v35029_v52  ;;  %v25027_v41 = vrot.slane %v24942_v38, 7 }
0x109a   : > { %v24871_v24 = vmul.f32 %v29209_v12, %v35041_v42  ;;  %v24722_v19 = vpop.xlane.xlu0 %24721  ;;  %v24908_v43 = vmul.f32 %v35173_v50, %v24872_v18 }
0x109b   : > { %29216 = vrsqrt.f32 %v24811_v28  ;;  %v24782_v16 = vmul.f32 0.03125, %v24722_v19  ;;  %v24813_v55 = vadd.f32 1e-05, %v24781_v1  ;;  %v24905_v32 = vmul.f32 %v35173_v50, %v24869_v31 }
0x109c   : > { %v24725_v21 = vpop.xlane.xlu1 %24724  ;;  %v24907_v42 = vmul.f32 %v35173_v50, %v24871_v24  ;;  %v24944_v39 = vadd.f32 %v35180_v25, %v24908_v43 }
0x109d   : > { %v24783_v0 = vmul.f32 0.03125, %v24725_v21  ;;  %v24814_v10 = vadd.f32 1e-05, %v24782_v16  ;;  %v24941_v34 = vadd.f32 %v35180_v25, %v24905_v32 }
0x109e   : > { %v29211_v49 = vpop.eup %29210  ;;  %v24728_v6 = vpop.xlane.xlu0 %24727  ;;  %v24943_v15 = vadd.f32 %v35180_v25, %v24907_v42  ;;  %v25031_v13 = vrot.slane %v24944_v39, 5 }
0x109f   : > { %v24815_v2 = vadd.f32 1e-05, %v24783_v0  ;;  %29218 = vrsqrt.f32 %v24814_v10  ;;  %v24784_v30 = vmul.f32 0.03125, %v24728_v6  ;;  %v24874_v52 = vmul.f32 %v29211_v49, %v35050_v17 }
0x10a0   : > { %v29213_v22 = vpop.eup %29212  ;;  %v24731_v27 = vpop.xlane.xlu1 %24730  ;;  %v25029_v8 = vrot.slane %v24943_v15, 6  ;;  %v25028_v12 = vsel %vm25007_vm5, %v25027_v41, %v24941_v34 }
0x10a1   : > { %v24873_v3 = vmul.f32 %v29213_v22, %v35053_v56  ;;  %29220 = vrsqrt.f32 %v24815_v2  ;;  %v24785_v62 = vmul.f32 0.03125, %v24731_v27  ;;  %v24816_v9 = vadd.f32 1e-05, %v24784_v30 }
0x10a2   : > { %v24734_v44 = vpop.xlane.xlu0 %24733  ;;  %29222 = vrsqrt.f32 %v24813_v55  ;;  %v24910_v17 = vmul.f32 %v35173_v50, %v24874_v52 }
0x10a3   : > { %v24909_v7 = vmul.f32 %v35173_v50, %v24873_v3  ;;  %v24817_v53 = vadd.f32 1e-05, %v24785_v62  ;;  %v24786_v37 = vmul.f32 0.03125, %v24734_v44  ;;  %29224 = vrsqrt.f32 %v24816_v9 }
0x10a4   : > { %v29215_v61 = vpop.eup %29214  ;;  %v24946_v19 = vadd.f32 %v35180_v25, %v24910_v17 }
0x10a5   : > { %v24945_v56 = vadd.f32 %v35180_v25, %v24909_v7  ;;  %v24876_v51 = vmul.f32 %v29215_v61, %v35061_v59  ;;  %29226 = vrsqrt.f32 %v24817_v53  ;;  %v24818_v40 = vadd.f32 1e-05, %v24786_v37 }
0x10a6   : > { %v24740_v14 = vpop.xlane.xlu0 %24739  ;;  %v25030_v59 = vsel %vm25010_vm6, %v25029_v8, %v25028_v12  ;;  %v25035_v6 = vrot.slane %v24946_v19, 3 }
0x10a7   : > { %v24788_v28 = vmul.f32 0.03125, %v24740_v14  ;;  %v25033_v24 = vrot.slane %v24945_v56, 4  ;;  %v24912_v18 = vmul.f32 %v35173_v50, %v24876_v51  ;;  %29228 = vrsqrt.f32 %v24818_v40 }
0x10a8   : > { %v29217_v46 = vpop.eup %29216  ;;  %v25032_v0 = vsel %vm25013_vm7, %v25031_v13, %v25030_v59 }
0x10a9   : > { %v24875_v45 = vmul.f32 %v29217_v46, %v35067_v58  ;;  %v24820_v1 = vadd.f32 1e-05, %v24788_v28  ;;  %v24948_v49 = vadd.f32 %v35180_v25, %v24912_v18  ;;  %v25034_v38 = vsel %vm25016_vm8, %v25033_v24, %v25032_v0 }
0x10aa   : > { %v24752_v16 = vpop.xlane.xlu1 %24751  ;;  %v24737_v31 = vpop.xlane.xlu0 %24736  ;;  %v25036_v52 = vsel %vm25019_vm9, %v25035_v6, %v25034_v38 }
0x10ab   : > { %v24911_v21 = vmul.f32 %v35173_v50, %v24875_v45  ;;  %29230 = vrsqrt.f32 %v24820_v1  ;;  %v24792_v42 = vmul.f32 0.03125, %v24752_v16  ;;  %v24787_v43 = vmul.f32 0.03125, %v24737_v31 }
0x10ac   : > { %v29219_v10 = vpop.eup %29218  ;;  %v25039_v41 = vrot.slane %v24948_v49, 1 }
0x10ad   : > { %v24878_v58 = vmul.f32 %v29219_v10, %v35076_v57  ;;  %v24947_v55 = vadd.f32 %v35180_v25, %v24911_v21  ;;  %v24824_v30 = vadd.f32 1e-05, %v24792_v42  ;;  %v24819_v22 = vadd.f32 1e-05, %v24787_v43 }
0x10ae   : > { %v29221_v2 = vpop.eup %29220  ;;  %v24749_v32 = vpop.xlane.xlu1 %24748 }
0x10af   : > { %v24746_v27 = vpop.xlane.xlu0 %24745  ;;  %v25037_v3 = vrot.slane %v24947_v55, 2  ;;  %v29223_v62 = vpop.eup %29222  ;;  %29232 = vrsqrt.f32 %v24824_v30  ;;  %v24791_v15 = vmul.f32 0.03125, %v24749_v32  ;;  %v24879_v44 = vmul.f32 %v29221_v2, %v35082_v47 }
0x10b0   : > { %v24790_v39 = vmul.f32 0.03125, %v24746_v27  ;;  %v29225_v9 = vpop.eup %29224  ;;  %v24914_v57 = vmul.f32 %v35173_v50, %v24878_v58  ;;  %29234 = vrsqrt.f32 %v24819_v22  ;;  %v24877_v40 = vmul.f32 %v29223_v62, %v35071_v5 }
0x10b1   : > { %v25038_v7 = vsel %vm25022_vm10, %v25037_v3, %v25036_v52  ;;  %v24880_v37 = vmul.f32 %v29225_v9, %v35088_v54  ;;  %v24823_v34 = vadd.f32 1e-05, %v24791_v15  ;;  %v24915_v13 = vmul.f32 %v35173_v50, %v24879_v44 }
0x10b2   : > { %v29227_v53 = vpop.eup %29226  ;;  %v25040_v61 = vsel %vm25025_vm11, %v25039_v41, %v25038_v7  ;;  %v24822_v17 = vadd.f32 1e-05, %v24790_v39  ;;  %v24758_v56 = vpop.xlane.xlu1 %24757  ;;  %v24950_v28 = vadd.f32 %v35180_v25, %v24914_v57  ;;  %v24913_v16 = vmul.f32 %v35173_v50, %v24877_v40 }
0x10b3   : > { %v24743_v51 = vpop.xlane.xlu0 %24742  ;;  %v24794_v8 = vmul.f32 0.03125, %v24758_v56  ;;  %28494 = vmatmul.mubr.msk.f32.vlgmr.msra.gmra.mxu1 %vm727_vm0, %v25040_v61  ;;  %29236 = vrsqrt.f32 %v24823_v34  ;;  %v24881_v12 = vmul.f32 %v29227_v53, %v35094_v29  ;;  %v24916_v46 = vmul.f32 %v35173_v50, %v24880_v37 }
0x10b4   : > { %v24789_v47 = vmul.f32 0.03125, %v24743_v51  ;;  %v29229_v14 = vpop.eup %29228  ;;  %29238 = vrsqrt.f32 %v24822_v17  ;;  %v24951_v29 = vadd.f32 %v35180_v25, %v24915_v13  ;;  %v25041_v10 = vrot.slane %v24950_v28, 7 }
0x10b5   : > { %v24826_v54 = vadd.f32 1e-05, %v24794_v8  ;;  %v24882_v24 = vmul.f32 %v29229_v14, %v35100_v60  ;;  %v24917_v0 = vmul.f32 %v35173_v50, %v24881_v12  ;;  %v24952_v42 = vadd.f32 %v35180_v25, %v24916_v46 }
0x10b6   : > { %v24821_v18 = vadd.f32 1e-05, %v24789_v47  ;;  %v24755_v19 = vpop.xlane.xlu1 %24754  ;;  %v24949_v6 = vadd.f32 %v35180_v25, %v24913_v16  ;;  %v25043_v30 = vrot.slane %v24951_v29, 6 }
0x10b7   : > { %v24764_v45 = vpop.xlane.xlu0 %24763  ;;  %29240 = vrsqrt.f32 %v24826_v54  ;;  %v24793_v5 = vmul.f32 0.03125, %v24755_v19  ;;  %v24918_v38 = vmul.f32 %v35173_v50, %v24882_v24  ;;  %v24953_v2 = vadd.f32 %v35180_v25, %v24917_v0 }
0x10b8   : > { %v24796_v1 = vmul.f32 0.03125, %v24764_v45  ;;  %v29231_v59 = vpop.eup %29230  ;;  %29242 = vrsqrt.f32 %v24821_v18  ;;  %v25045_v52 = vrot.slane %v24952_v42, 5 }
0x10b9   : > { %v24825_v31 = vadd.f32 1e-05, %v24793_v5  ;;  %v24884_v60 = vmul.f32 %v29231_v59, %v35109_v26  ;;  %v24954_v27 = vadd.f32 %v35180_v25, %v24918_v38  ;;  %v25042_v26 = vsel %vm25007_vm5, %v25041_v10, %v24949_v6 }
0x10ba   : > { %v24828_v21 = vadd.f32 1e-05, %v24796_v1  ;;  %v24761_v49 = vpop.xlane.xlu1 %24760  ;;  %v25044_v39 = vsel %vm25010_vm6, %v25043_v30, %v25042_v26  ;;  %v25047_v9 = vrot.slane %v24953_v2, 4  ;;  %v25167_v26 = vld [vmem:[#allocation2 + $0x128] sm:$0xff] }
0x10bb   : > { %29244 = vrsqrt.f32 %v24825_v31  ;;  %v24795_v43 = vmul.f32 0.03125, %v24761_v49  ;;  %v24920_v32 = vmul.f32 %v35173_v50, %v24884_v60  ;;  %v25046_v53 = vsel %vm25013_vm7, %v25045_v52, %v25044_v39  ;;  %v26009_v52 = vld [vmem:[%s35327_s2 + $0xa] ss:$0 sm:$0xff] }
0x10bc   : > { %29246 = vrsqrt.f32 %v24828_v21  ;;  %v29233_v58 = vpop.eup %29232  ;;  %v25049_v37 = vrot.slane %v24954_v27, 3  ;;  %v25048_v8 = vsel %vm25016_vm8, %v25047_v9, %v25046_v53  ;;  %v25169_v27 = vld [vmem:[#allocation2 + $0x138] sm:$0xff] }
0x10bd   : > { %v24827_v55 = vadd.f32 1e-05, %v24795_v43  ;;  %v29235_v22 = vpop.eup %29234  ;;  %v24888_v62 = vmul.f32 %v29233_v58, %v35115_v63  ;;  %v24956_v7 = vadd.f32 %v35180_v25, %v24920_v32  ;;  %28499 = vmatprep.subr.mxu1 %v25169_v27 }
0x10be   : > { %v24883_v3 = vmul.f32 %v29235_v22, %v35118_v33  ;;  %v25050_v14 = vsel %vm25019_vm9, %v25049_v37, %v25048_v8  ;;  %28500 = vmatpush3.msra.mxu1 %v25169_v27 }
0x10bf   : > { %29248 = vrsqrt.f32 %v24827_v55  ;;  %v24924_v63 = vmul.f32 %v35173_v50, %v24888_v62 }
0x10c0   : > { %v29237_v41 = vpop.eup %29236  ;;  %v24919_v15 = vmul.f32 %v35173_v50, %v24883_v3 }
0x10c1   : > { %v29239_v44 = vpop.eup %29238  ;;  %v24887_v57 = vmul.f32 %v29237_v41, %v35126_v48  ;;  %v24960_v46 = vadd.f32 %v35180_v25, %v24924_v63 }
0x10c2   : > { %v24886_v61 = vmul.f32 %v29239_v44, %v35129_v23  ;;  %v24955_v33 = vadd.f32 %v35180_v25, %v24919_v15  ;;  %v25053_v23 = vrot.slane %v24956_v7, 1 }
0x10c3   : > { %v24923_v17 = vmul.f32 %v35173_v50, %v24887_v57  ;;  %v25059_v0 = vrot.slane %v24960_v46, 5 }
0x10c4   : > { %v29241_v34 = vpop.eup %29240  ;;  %v24922_v51 = vmul.f32 %v35173_v50, %v24886_v61  ;;  %v25051_v48 = vrot.slane %v24955_v33, 2 }
0x10c5   : > { %v29243_v56 = vpop.eup %29242  ;;  %v24890_v40 = vmul.f32 %v29241_v34, %v35138_v11  ;;  %v24959_v13 = vadd.f32 %v35180_v25, %v24923_v17  ;;  %v26014_v34 = vld [vmem:[%s35327_s2 + $0xb] ss:$0 sm:$0xff] }
0x10c6   : > { %v24885_v47 = vmul.f32 %v29243_v56, %v35141_v20  ;;  %v24958_v12 = vadd.f32 %v35180_v25, %v24922_v51  ;;  %v25052_v54 = vsel %vm25022_vm10, %v25051_v48, %v25050_v14 }
0x10c7   : > { %v25054_v18 = vsel %vm25025_vm11, %v25053_v23, %v25052_v54  ;;  %v24926_v1 = vmul.f32 %v35173_v50, %v24890_v40  ;;  %v25057_v59 = vrot.slane %v24959_v13, 6 }
0x10c8   : > { %v29245_v28 = vpop.eup %29244  ;;  %v24921_v24 = vmul.f32 %v35173_v50, %v24885_v47  ;;  %28496 = vmatprep.mubr.msk.f32.mxu1 %vm727_vm0, %v25054_v18  ;;  %v25055_v20 = vrot.slane %v24958_v12, 7 }
0x10c9   : > { %v29247_v19 = vpop.eup %29246  ;;  %v24889_v11 = vmul.f32 %v29245_v28, %v35150_v36  ;;  %v24962_v60 = vadd.f32 %v35180_v25, %v24926_v1 }
0x10ca   : > { %v24957_v45 = vadd.f32 %v35180_v25, %v24921_v24  ;;  %v24892_v5 = vmul.f32 %v29247_v19, %v35153_v35 }
0x10cb   : > { %v24925_v16 = vmul.f32 %v35173_v50, %v24889_v11  ;;  %v25063_v55 = vrot.slane %v24962_v60, 3 }
0x10cc   : > { %v29249_v29 = vpop.eup %29248  ;;  %v24928_v31 = vmul.f32 %v35173_v50, %v24892_v5  ;;  %v25056_v21 = vsel %vm25007_vm5, %v25055_v20, %v24957_v45 }
0x10cd   : > { %v24891_v36 = vmul.f32 %v29249_v29, %v35162_v4  ;;  %v24961_v10 = vadd.f32 %v35180_v25, %v24925_v16  ;;  %v25058_v49 = vsel %vm25010_vm6, %v25057_v59, %v25056_v21 }
0x10ce   : > { %v25060_v35 = vsel %vm25013_vm7, %v25059_v0, %v25058_v49  ;;  %v24964_v43 = vadd.f32 %v35180_v25, %v24928_v31 }
0x10cf   : > { %v24927_v38 = vmul.f32 %v35173_v50, %v24891_v36  ;;  %v25061_v42 = vrot.slane %v24961_v10, 4  ;;  %v25168_v50 = vld [vmem:[#allocation2 + $0x130] sm:$0xff] }
0x10d0   : > { %v25067_v30 = vrot.slane %v24964_v43, 1  ;;  %28501 = vmatprep.subr.mxu1 %v25168_v50 }
0x10d1   : > { %v24963_v6 = vadd.f32 %v35180_v25, %v24927_v38  ;;  %v25062_v58 = vsel %vm25016_vm8, %v25061_v42, %v25060_v35  ;;  %28502 = vmatpush3.msra.mxu1 %v25168_v50  ;;  %v25166_v25 = vld [vmem:[#allocation2 + $0x120] sm:$0xff] }
0x10d2   : > { %v25064_v4 = vsel %vm25019_vm9, %v25063_v55, %v25062_v58  ;;  %28503 = vmatprep.subr.mxu1 %v25167_v26 }
0x10d3   : > { %v25065_v2 = vrot.slane %v24963_v6, 2  ;;  %28504 = vmatpush3.msra.mxu1 %v25167_v26 }
0x10d4   : > { %28505 = vmatprep.subr.mxu1 %v25166_v25 }
0x10d5   : > { %v25066_v22 = vsel %vm25022_vm10, %v25065_v2, %v25064_v4  ;;  %28506 = vmatpush3.msra.mxu1 %v25166_v25 }
0x10d6   : > { %v25068_v32 = vsel %vm25025_vm11, %v25067_v30, %v25066_v22 }
0x10d7   : > { %28497 = vmatmul.mubr.msk.f32.gmra.mxu1 %vm727_vm0, %v25068_v32 }
0x1173   : > { %v28495_v3 = vpop.f32.mrf.mxu1 }
0x1174   : > { %v25149_v62 = vadd.f32 %v28495_v3, %v26009_v52 }
0x1175   : > { %v25143_v41 = vpop.f32.mrf.mxu1 }
0x1176   : > { %v25144_v15 = vadd.f32 %v26009_v52, %v25143_v41 }
0x1178   : > { %29250 = vtanh.f32 %v25144_v15 }
0x1179   : > { %29252 = vtanh.f32 %v25149_v62 }
0x1185   : > { %v29251_v39 = vpop.eup %29250 }
0x1186   : > { %v29253_v9 = vpop.eup %29252  ;;  %28507 = vmatprep.mubr.msk.f32.mxu1 %vm727_vm0, %v29251_v39 }
0x1187   : > { %28508 = vmatmul.mubr.msk.f32.vlgmr.msra.gmra.mxu1 %vm727_vm0, %v29253_v9 }
0x1197   : > { %v28498_v44 = vpop.f32.mrf.mxu1 }
0x1198   : > { %v25159_v57 = vadd.f32 %v28498_v44, %v26009_v52 }
0x1199   : > { %v25153_v7 = vpop.f32.mrf.mxu1 }
0x119a   : > { %v25154_v53 = vadd.f32 %v26009_v52, %v25153_v7 }
0x119c   : > { %29254 = vtanh.f32 %v25154_v53 }
0x119d   : > { %29256 = vtanh.f32 %v25159_v57 }
0x11a9   : > { %v29255_v37 = vpop.eup %29254 }
0x11aa   : > { %v29257_v61 = vpop.eup %29256  ;;  %28510 = vmatprep.mubr.msk.f32.mxu1 %vm727_vm0, %v29255_v37 }
0x11ab   : > { %28511 = vmatmul.mubr.msk.f32.gmra.mxu1 %vm727_vm0, %v29257_v61 }
0x1247   : > { %v28509_v33 = vpop.f32.mrf.mxu1 }
0x1248   : > { %v25259_v56 = vadd.f32 %v28509_v33, %v26014_v34 }
0x1249   : > { %v25253_v63 = vpop.f32.mrf.mxu1 }
0x124a   : > { %v25254_v17 = vadd.f32 %v26014_v34, %v25253_v63  ;;  %25273 = vst [vmem:[%s187_s7 + $0x8] sm:$0xff] %v25259_v56 }
0x124c   : > { %25272 = vst [vmem:[%s187_s7] sm:$0xff] %v25254_v17 }
0x126b   : > { %v28512_v51 = vpop.f32.mrf.mxu1 }
0x126c   : > { %v25269_v40 = vadd.f32 %v28512_v51, %v26014_v34 }
0x126d   : > { %v25263_v8 = vpop.f32.mrf.mxu1 }
0x126e   : > { %v25264_v48 = vadd.f32 %v26014_v34, %v25263_v8  ;;  %25275 = vst [vmem:[%s187_s7 + $0x18] sm:$0xff] %v25269_v40 }
0x1270   : > { %25274 = vst [vmem:[%s187_s7 + $0x10] sm:$0xff] %v25264_v48 }
0x1271 PF: > { %s14_s12 = sadd.s32 1, %s29299_s12  }
0x1272   : > { %p11_p1 = scmp.ge.s32.totalorder %s14_s12, 4  }
0x1274   :  { %13 = sbr.rel (!%p11_p1) target bundleno = 1 (0x1), region = 67 }
0x1279   :  { %25298 = vsyncpa [#allocation3], 1 }
0x127a   :  { %25300 = vsyncpa [#allocation3 + $0x1], 1 }

</bundles_post_ra>
